<compile_context>
chip_gen: v7x
topology: tpu7x:2x2x1
jax: 0.10.0
libtpu: 0.0.40
codegen_flags: <defaults>
</compile_context>

<pallas_src>
import functools

import jax
import jax.numpy as jnp
from jax import lax
from jax.experimental import pallas as pl
from jax.experimental.pallas import tpu as pltpu

ACTION_SIZE = 3
BN_EPS = 1e-5
FC2_PAD = 128        # fc2 output padded to a lane-dense 128-wide store
HC = 256             # fc1 hidden-dim chunk per head grid step (512 // HC steps)


# ----------------------------------------------------------------------------
# Pallas kernel 1: fused matmul + per-column shift + ReLU   (conv1 / conv2)
# ----------------------------------------------------------------------------
def _conv_matmul_kernel(p_ref, w_ref, shift_ref, o_ref):
    y = jnp.dot(p_ref[...], w_ref[...], preferred_element_type=jnp.float32)
    o_ref[...] = jnp.maximum(y + shift_ref[...], 0.0).astype(o_ref.dtype)


def conv_relu_matmul(patches, w, shift):
    """relu(patches @ w + shift).  patches:(M,K) f32, w:(K,C) f32, shift:(1,C)."""
    M, K = patches.shape
    _, C = w.shape
    # Small M (the batch=2 case): one full block, no grid overhead.
    # Large M (big batches, v7x VMEM hardening): tile rows (multiple of 8) and
    # mark the axis parallel so a 2-TC chip can split it.
    rows = M
    if M > 2048:
        for cand in (2048, 1024, 512, 256, 128, 64, 32, 16, 8):
            if M % cand == 0:
                rows = cand
                break
    grid = (M // rows,)
    return pl.pallas_call(
        _conv_matmul_kernel,
        out_shape=jax.ShapeDtypeStruct((M, C), jnp.float32),
        grid=grid,
        in_specs=[
            pl.BlockSpec((rows, K), lambda i: (i, 0)),
            pl.BlockSpec((K, C), lambda i: (0, 0)),
            pl.BlockSpec((1, C), lambda i: (0, 0)),
        ],
        out_specs=pl.BlockSpec((rows, C), lambda i: (i, 0)),
        compiler_params=pltpu.CompilerParams(
            dimension_semantics=("parallel",)),
    )(patches, w, shift)


# ----------------------------------------------------------------------------
# Pallas kernel 2: fused conv3 + fc1 (bf16, chunked over hidden dim) + fc2
# ----------------------------------------------------------------------------
def _head_kernel(p3_ref, w3_ref, s3_ref, fw1_ref, fb1_ref, fw2_ref, fb2_ref,
                 o_ref, a3_ref, *, n_batch):
    i = pl.program_id(0)
    n_pos = p3_ref.shape[0] // n_batch          # 49 spatial positions
    c3 = w3_ref.shape[1]                        # 64 conv3 output channels

    # Grid step 0: conv3 (+folded BN, ReLU), then re-layout its (49*N, 64)
    # output (rows ordered (p, n)) into a (N, 49*64) scratch so fc1 is a
    # single aligned dot.  49 static slice/stores, once per forward.
    @pl.when(i == 0)
    def _():
        y3 = jnp.dot(p3_ref[...], w3_ref[...],
                     preferred_element_type=jnp.float32)
        y3 = jnp.maximum(y3 + s3_ref[...], 0.0)               # (49*N, 64)
        a3_ref[...] = jnp.zeros_like(a3_ref)
        for p in range(n_pos):
            a3_ref[:, p * c3:(p + 1) * c3] = (
                y3[p * n_batch:(p + 1) * n_batch, :])
        # Seed the fc2 accumulator with the fc2 bias.
        o_ref[...] = jnp.zeros_like(o_ref) + fb2_ref[...]

    # fc1 for this 256-wide hidden chunk: one bf16 x bf16 MXU dot with K=3136
    # (weight chunk streamed in by the BlockSpec pipeline), bias + ReLU, then
    # contract through the matching fc2 row block into the output accumulator.
    lhs = a3_ref[...].astype(jnp.bfloat16)                    # (N, 3136)
    h = jnp.dot(lhs, fw1_ref[...], preferred_element_type=jnp.float32)
    h = jnp.maximum(h + fb1_ref[...], 0.0).astype(jnp.bfloat16)   # (N, HC)
    o_ref[...] += jnp.dot(h, fw2_ref[...],
                          preferred_element_type=jnp.float32)


def head_call(p3, w3, s3, fw1, fb1, fw2, fb2, n_batch):
    M3, K3 = p3.shape                       # (49*N, 576)
    Kf, dh = fw1.shape                      # (3136, 512)
    c3 = w3.shape[1]                        # 64
    n_steps = dh // HC                      # 2 grid steps
    kernel = functools.partial(_head_kernel, n_batch=n_batch)
    return pl.pallas_call(
        kernel,
        out_shape=jax.ShapeDtypeStruct((n_batch, FC2_PAD), jnp.float32),
        grid=(n_steps,),
        in_specs=[
            pl.BlockSpec((M3, K3), lambda i: (0, 0)),          # conv3 patches
            pl.BlockSpec((K3, c3), lambda i: (0, 0)),          # conv3 weight
            pl.BlockSpec((1, c3), lambda i: (0, 0)),           # conv3 shift
            pl.BlockSpec((Kf, HC), lambda i: (0, i)),          # fc1 wt chunk (bf16)
            pl.BlockSpec((1, HC), lambda i: (0, i)),           # fc1 bias chunk
            pl.BlockSpec((HC, FC2_PAD), lambda i: (i, 0)),     # fc2 wt chunk (bf16)
            pl.BlockSpec((1, FC2_PAD), lambda i: (0, 0)),      # fc2 bias
        ],
        out_specs=pl.BlockSpec((n_batch, FC2_PAD), lambda i: (0, 0)),
        scratch_shapes=[
            pltpu.VMEM((n_batch, Kf), jnp.float32),   # conv3 act, fc1 layout
        ],
        compiler_params=pltpu.CompilerParams(
            dimension_semantics=("arbitrary",)),
    )(p3, w3, s3, fw1, fb1, fw2, fb2)


# ----------------------------------------------------------------------------
# Plain-JAX glue: patch extraction with slices only (no gathers)
# ----------------------------------------------------------------------------
def extract_patches(x, k, s, *, spatial_major=False):
    """x: (N, H, W, C) NHWC -> patch matrix, K ordered (kh, kw, c).

    Row order is image-major by default; `spatial_major=True` orders rows
    (spatial, image), which is what the fused conv3+fc head expects.
    """
    N, H, W, C = x.shape
    Ho = (H - k) // s + 1
    Wo = (W - k) // s + 1
    pieces = []
    for kh in range(k):
        for kw in range(k):
            sl = lax.slice(
                x, (0, kh, kw, 0),
                (N, kh + s * (Ho - 1) + 1, kw + s * (Wo - 1) + 1, C),
                (1, s, s, 1))                                # (N, Ho, Wo, C)
            pieces.append(sl)
    pt = jnp.stack(pieces, axis=3)                           # (N, Ho, Wo, k*k, C)
    if spatial_major:
        pt = pt.transpose(1, 2, 0, 3, 4)                     # (Ho, Wo, N, k*k, C)
        return pt.reshape(Ho * Wo * N, k * k * C), Ho, Wo
    return pt.reshape(N * Ho * Wo, k * k * C), Ho, Wo


# ----------------------------------------------------------------------------
# Parameter construction (deterministic, synthetic) and one-time preparation
# ----------------------------------------------------------------------------
def _init_params(key):
    ks = jax.random.split(key, 16)

    def winit(k, shape, fan_in):
        bound = (1.0 / fan_in) ** 0.5
        return jax.random.uniform(k, shape, jnp.float32, -bound, bound)

    p = {}
    p["w1"] = winit(ks[0], (32, 4, 8, 8), 4 * 8 * 8)
    p["b1"] = winit(ks[1], (32,), 4 * 8 * 8)
    p["w2"] = winit(ks[2], (64, 32, 4, 4), 32 * 4 * 4)
    p["b2"] = winit(ks[3], (64,), 32 * 4 * 4)
    p["w3"] = winit(ks[4], (64, 64, 3, 3), 64 * 3 * 3)
    p["b3"] = winit(ks[5], (64,), 64 * 3 * 3)
    p["fw1"] = winit(ks[6], (512, 3136), 3136)
    p["fb1"] = winit(ks[7], (512,), 3136)
    p["fw2"] = winit(ks[8], (ACTION_SIZE, 512), 512)
    p["fb2"] = winit(ks[9], (ACTION_SIZE,), 512)
    for i, c, kk in ((1, 32, ks[10]), (2, 64, ks[11]), (3, 64, ks[12])):
        k_g, k_b, k_m, k_v = jax.random.split(kk, 4)
        p[f"bn{i}_g"] = 1.0 + 0.1 * jax.random.normal(k_g, (c,), jnp.float32)
        p[f"bn{i}_b"] = 0.1 * jax.random.normal(k_b, (c,), jnp.float32)
        p[f"bn{i}_m"] = 0.05 * jax.random.normal(k_m, (c,), jnp.float32)
        p[f"bn{i}_v"] = 0.5 + jnp.abs(jax.random.normal(k_v, (c,), jnp.float32))
    return p


def prepare_params(p):
    """One-time (outside the jitted forward) weight folding / re-layout."""

    def fold_conv(w, b, g, be, m, v):
        cout, cin, k, _ = w.shape
        scale = g / jnp.sqrt(v + BN_EPS)                        # (Cout,)
        wf = w.transpose(2, 3, 1, 0).reshape(k * k * cin, cout)  # (kh,kw,c) rows
        wf = wf * scale[None, :]                                # fold BN scale
        shift = ((b - m) * scale + be).reshape(1, cout)         # bias + BN shift
        return wf, shift

    q = {}
    q["w1"], q["s1"] = fold_conv(p["w1"], p["b1"], p["bn1_g"], p["bn1_b"],
                                 p["bn1_m"], p["bn1_v"])
    q["w2"], q["s2"] = fold_conv(p["w2"], p["b2"], p["bn2_g"], p["bn2_b"],
                                 p["bn2_m"], p["bn2_v"])
    q["w3"], q["s3"] = fold_conv(p["w3"], p["b3"], p["bn3_g"], p["bn3_b"],
                                 p["bn3_m"], p["bn3_v"])
    # fc1: PyTorch flattens (C=64, H=7, W=7) c-major, i.e. torch column index
    # is c*49 + p with p = h*7 + w.  The kernel's lhs row is laid out
    # (p, c) c-minor, so rearrange rows to p*64 + c and store in bf16
    # (f32 accumulation in-kernel).
    q["fw1"] = (p["fw1"].reshape(512, 64, 49).transpose(2, 1, 0)
                .reshape(49 * 64, 512).astype(jnp.bfloat16))    # (3136, 512)
    q["fb1"] = p["fb1"].reshape(1, 512)
    # fc2: pre-transposed, zero-padded to a lane-dense 128-wide output, bf16.
    fw2 = jnp.zeros((512, FC2_PAD), jnp.float32).at[:, :ACTION_SIZE].set(
        p["fw2"].T)
    fb2 = jnp.zeros((1, FC2_PAD), jnp.float32).at[:, :ACTION_SIZE].set(
        p["fb2"][None, :])
    q["fw2"], q["fb2"] = fw2.astype(jnp.bfloat16), fb2
    return q


# ----------------------------------------------------------------------------
# Forward pass
# ----------------------------------------------------------------------------
def dqn_forward(q, state):
    """state: (N, 4, 84, 84) float32 NCHW  ->  (N, ACTION_SIZE) float32."""
    N = state.shape[0]
    x = state.transpose(0, 2, 3, 1)                           # NHWC (N,84,84,4)

    # conv1 + bn1 + relu
    p1, ho, wo = extract_patches(x, 8, 4)                     # (N*400, 256)
    y1 = conv_relu_matmul(p1, q["w1"], q["s1"])
    x = y1.reshape(N, ho, wo, 32)

    # conv2 + bn2 + relu
    p2, ho, wo = extract_patches(x, 4, 2)                     # (N*81, 512)
    y2 = conv_relu_matmul(p2, q["w2"], q["s2"])
    x = y2.reshape(N, ho, wo, 64)

    # conv3 + bn3 + relu + fc1 + relu + fc2 in one fused, pipelined call
    p3, ho, wo = extract_patches(x, 3, 1, spatial_major=True)  # (49*N, 576)
    out = head_call(p3, q["w3"], q["s3"], q["fw1"], q["fb1"],
                    q["fw2"], q["fb2"], N)                    # (N, 128)
    return out[:, :ACTION_SIZE]


# ----------------------------------------------------------------------------
# Pure-JAX reference (for self-check, uses the original unfolded params)
# ----------------------------------------------------------------------------
def dqn_forward_ref(params, state):
    p = params

    def conv_bn_relu(x, w, b, g, be, m, v, s):
        y = lax.conv_general_dilated(
            x, w, window_strides=(s, s), padding="VALID",
            dimension_numbers=("NCHW", "OIHW", "NCHW"))
        y = y + b.reshape(1, -1, 1, 1)
        y = (y - m.reshape(1, -1, 1, 1)) / jnp.sqrt(
            v.reshape(1, -1, 1, 1) + BN_EPS)
        y = y * g.reshape(1, -1, 1, 1) + be.reshape(1, -1, 1, 1)
        return jnp.maximum(y, 0.0)

    x = conv_bn_relu(state, p["w1"], p["b1"], p["bn1_g"], p["bn1_b"],
                     p["bn1_m"], p["bn1_v"], 4)
    x = conv_bn_relu(x, p["w2"], p["b2"], p["bn2_g"], p["bn2_b"],
                     p["bn2_m"], p["bn2_v"], 2)
    x = conv_bn_relu(x, p["w3"], p["b3"], p["bn3_g"], p["bn3_b"],
                     p["bn3_m"], p["bn3_v"], 1)
    x = x.reshape(x.shape[0], -1)
    x = jnp.maximum(x @ p["fw1"].T + p["fb1"], 0.0)
    return x @ p["fw2"].T + p["fb2"]


if __name__ == "__main__":
    key = jax.random.PRNGKey(0)
    k_param, k_in = jax.random.split(key)
    params = _init_params(k_param)
    prepared = prepare_params(params)   # one-time weight folding / re-layout

    # fc1 (64*7*7 inputs) pins the spatial size to 84x84; batch = 2.
    state = jax.random.uniform(k_in, (2, 4, 84, 84), jnp.float32)

    fwd = jax.jit(dqn_forward)
    out = jax.block_until_ready(fwd(prepared, state))

    ref = dqn_forward_ref(params, state)
    assert out.shape == (2, ACTION_SIZE)
    # Tolerance covers the bf16 rounding of fc1 (weights + activations) and
    # the bf16 fc2 weights (kernel-side only; f32 accumulation throughout).
    assert jnp.allclose(out, ref, atol=2e-2, rtol=2e-2), (out, ref)

    print("KERNEL_OK")
</pallas_src>

<mosaic_0001>
module attributes {stable_mosaic.version = 11 : i64} {
  func.func @_conv_matmul_kernel(%arg0: i32, %arg1: memref<800x256xf32, #tpu.memory_space<vmem>>, %arg2: memref<256x32xf32, #tpu.memory_space<vmem>>, %arg3: memref<1x32xf32, #tpu.memory_space<vmem>>, %arg4: memref<800x32xf32, #tpu.memory_space<vmem>>) attributes {dimension_semantics = [#tpu.dimension_semantics<parallel>], iteration_bounds = array<i64: 1>, scalar_prefetch = 0 : i64, scratch_operands = 0 : i64, tpu.core_type = #tpu.core_type<tc>, window_params = [{transform_indices = @transform_0, window_bounds = array<i64: 800, 256>}, {pipeline_mode = #tpu.pipeline_mode<synchronous>, transform_indices = @transform_1, window_bounds = array<i64: 256, 32>}, {pipeline_mode = #tpu.pipeline_mode<synchronous>, transform_indices = @transform_2, window_bounds = array<i64: 1, 32>}, {transform_indices = @transform_3, window_bounds = array<i64: 800, 32>}]} {
    %c0 = arith.constant 0 : index
    %c0_0 = arith.constant 0 : index
    %0 = vector.load %arg1[%c0, %c0_0] : memref<800x256xf32, #tpu.memory_space<vmem>>, vector<800x256xf32>
    %c0_1 = arith.constant 0 : index
    %c0_2 = arith.constant 0 : index
    %1 = vector.load %arg2[%c0_1, %c0_2] : memref<256x32xf32, #tpu.memory_space<vmem>>, vector<256x32xf32>
    %cst = arith.constant dense<0.000000e+00> : vector<800x32xf32>
    %2 = tpu.matmul %0, %1, %cst {dimension_numbers = #tpu.dot_dimension_numbers<[1], [0], [0], [1], [0, 0, 1, 1], [], []>} : vector<800x256xf32>, vector<256x32xf32>, vector<800x32xf32> -> vector<800x32xf32>
    %c0_3 = arith.constant 0 : index
    %c0_4 = arith.constant 0 : index
    %3 = vector.load %arg3[%c0_3, %c0_4] : memref<1x32xf32, #tpu.memory_space<vmem>>, vector<1x32xf32>
    %4 = vector.broadcast %3 : vector<1x32xf32> to vector<800x32xf32>
    %5 = arith.addf %2, %4 : vector<800x32xf32>
    %cst_5 = arith.constant 0.000000e+00 : f32
    %6 = vector.broadcast %cst_5 : f32 to vector<800x32xf32>
    %7 = arith.maximumf %5, %6 : vector<800x32xf32>
    %c0_6 = arith.constant 0 : index
    %c0_7 = arith.constant 0 : index
    %8 = vector.load %arg4[%c0_6, %c0_7] : memref<800x32xf32, #tpu.memory_space<vmem>>, vector<800x32xf32>
    tpu.vector_store %arg4[%c0_6, %c0_7], %7 {strides = array<i32>} : memref<800x32xf32, #tpu.memory_space<vmem>>, vector<800x32xf32>,
    return
  }
  func.func @transform_0(%arg0: i32) -> (i32, i32) {
    %c0_i32 = arith.constant 0 : i32
    %c0_i32_0 = arith.constant 0 : i32
    return %arg0, %c0_i32 : i32, i32
  }
  func.func @transform_1(%arg0: i32) -> (i32, i32) {
    %c0_i32 = arith.constant 0 : i32
    %c0_i32_0 = arith.constant 0 : i32
    %c0_i32_1 = arith.constant 0 : i32
    return %c0_i32, %c0_i32_0 : i32, i32
  }
  func.func @transform_2(%arg0: i32) -> (i32, i32) {
    %c0_i32 = arith.constant 0 : i32
    %c0_i32_0 = arith.constant 0 : i32
    %c0_i32_1 = arith.constant 0 : i32
    return %c0_i32, %c0_i32_0 : i32, i32
  }
  func.func @transform_3(%arg0: i32) -> (i32, i32) {
    %c0_i32 = arith.constant 0 : i32
    %c0_i32_0 = arith.constant 0 : i32
    return %arg0, %c0_i32 : i32, i32
  }
}

module attributes {stable_mosaic.version = 11 : i64} {
  func.func @_conv_matmul_kernel(%arg0: i32, %arg1: memref<162x512xf32, #tpu.memory_space<vmem>>, %arg2: memref<512x64xf32, #tpu.memory_space<vmem>>, %arg3: memref<1x64xf32, #tpu.memory_space<vmem>>, %arg4: memref<162x64xf32, #tpu.memory_space<vmem>>) attributes {dimension_semantics = [#tpu.dimension_semantics<parallel>], iteration_bounds = array<i64: 1>, scalar_prefetch = 0 : i64, scratch_operands = 0 : i64, tpu.core_type = #tpu.core_type<tc>, window_params = [{transform_indices = @transform_0, window_bounds = array<i64: 162, 512>}, {pipeline_mode = #tpu.pipeline_mode<synchronous>, transform_indices = @transform_1, window_bounds = array<i64: 512, 64>}, {pipeline_mode = #tpu.pipeline_mode<synchronous>, transform_indices = @transform_2, window_bounds = array<i64: 1, 64>}, {transform_indices = @transform_3, window_bounds = array<i64: 162, 64>}]} {
    %c0 = arith.constant 0 : index
    %c0_0 = arith.constant 0 : index
    %0 = vector.load %arg1[%c0, %c0_0] : memref<162x512xf32, #tpu.memory_space<vmem>>, vector<162x512xf32>
    %c0_1 = arith.constant 0 : index
    %c0_2 = arith.constant 0 : index
    %1 = vector.load %arg2[%c0_1, %c0_2] : memref<512x64xf32, #tpu.memory_space<vmem>>, vector<512x64xf32>
    %cst = arith.constant dense<0.000000e+00> : vector<162x64xf32>
    %2 = tpu.matmul %0, %1, %cst {dimension_numbers = #tpu.dot_dimension_numbers<[1], [0], [0], [1], [0, 0, 1, 1], [], []>} : vector<162x512xf32>, vector<512x64xf32>, vector<162x64xf32> -> vector<162x64xf32>
    %c0_3 = arith.constant 0 : index
    %c0_4 = arith.constant 0 : index
    %3 = vector.load %arg3[%c0_3, %c0_4] : memref<1x64xf32, #tpu.memory_space<vmem>>, vector<1x64xf32>
    %4 = vector.broadcast %3 : vector<1x64xf32> to vector<162x64xf32>
    %5 = arith.addf %2, %4 : vector<162x64xf32>
    %cst_5 = arith.constant 0.000000e+00 : f32
    %6 = vector.broadcast %cst_5 : f32 to vector<162x64xf32>
    %7 = arith.maximumf %5, %6 : vector<162x64xf32>
    %c0_6 = arith.constant 0 : index
    %c0_7 = arith.constant 0 : index
    %8 = vector.load %arg4[%c0_6, %c0_7] : memref<162x64xf32, #tpu.memory_space<vmem>>, vector<162x64xf32>
    tpu.vector_store %arg4[%c0_6, %c0_7], %7 {strides = array<i32>} : memref<162x64xf32, #tpu.memory_space<vmem>>, vector<162x64xf32>,
    return
  }
  func.func @transform_0(%arg0: i32) -> (i32, i32) {
    %c0_i32 = arith.constant 0 : i32
    %c0_i32_0 = arith.constant 0 : i32
    return %arg0, %c0_i32 : i32, i32
  }
  func.func @transform_1(%arg0: i32) -> (i32, i32) {
    %c0_i32 = arith.constant 0 : i32
    %c0_i32_0 = arith.constant 0 : i32
    %c0_i32_1 = arith.constant 0 : i32
    return %c0_i32, %c0_i32_0 : i32, i32
  }
  func.func @transform_2(%arg0: i32) -> (i32, i32) {
    %c0_i32 = arith.constant 0 : i32
    %c0_i32_0 = arith.constant 0 : i32
    %c0_i32_1 = arith.constant 0 : i32
    return %c0_i32, %c0_i32_0 : i32, i32
  }
  func.func @transform_3(%arg0: i32) -> (i32, i32) {
    %c0_i32 = arith.constant 0 : i32
    %c0_i32_0 = arith.constant 0 : i32
    return %arg0, %c0_i32 : i32, i32
  }
}

module attributes {stable_mosaic.version = 11 : i64} {
  func.func @_head_kernel(%arg0: i32, %arg1: memref<98x576xf32, #tpu.memory_space<vmem>>, %arg2: memref<576x64xf32, #tpu.memory_space<vmem>>, %arg3: memref<1x64xf32, #tpu.memory_space<vmem>>, %arg4: memref<3136x256xbf16, #tpu.memory_space<vmem>>, %arg5: memref<1x256xf32, #tpu.memory_space<vmem>>, %arg6: memref<256x128xbf16, #tpu.memory_space<vmem>>, %arg7: memref<1x128xf32, #tpu.memory_space<vmem>>, %arg8: memref<2x128xf32, #tpu.memory_space<vmem>>, %arg9: memref<2x3136xf32, #tpu.memory_space<vmem>>) attributes {dimension_semantics = [#tpu.dimension_semantics<arbitrary>], iteration_bounds = array<i64: 2>, scalar_prefetch = 0 : i64, scratch_operands = 1 : i64, tpu.core_type = #tpu.core_type<tc>, window_params = [{pipeline_mode = #tpu.pipeline_mode<synchronous>, transform_indices = @transform_0, window_bounds = array<i64: 98, 576>}, {pipeline_mode = #tpu.pipeline_mode<synchronous>, transform_indices = @transform_1, window_bounds = array<i64: 576, 64>}, {pipeline_mode = #tpu.pipeline_mode<synchronous>, transform_indices = @transform_2, window_bounds = array<i64: 1, 64>}, {transform_indices = @transform_3, window_bounds = array<i64: 3136, 256>}, {transform_indices = @transform_4, window_bounds = array<i64: 1, 256>}, {transform_indices = @transform_5, window_bounds = array<i64: 256, 128>}, {pipeline_mode = #tpu.pipeline_mode<synchronous>, transform_indices = @transform_6, window_bounds = array<i64: 1, 128>}, {pipeline_mode = #tpu.pipeline_mode<synchronous>, transform_indices = @transform_7, window_bounds = array<i64: 2, 128>}]} {
    %c0_i32 = arith.constant 0 : i32
    %0 = arith.cmpi eq, %arg0, %c0_i32 : i32
    %1 = arith.extui %0 : i1 to i32
    %c0_i32_0 = arith.constant 0 : i32
    %2 = arith.cmpi ne, %1, %c0_i32_0 : i32
    scf.if %2 {
      %c0_14 = arith.constant 0 : index
      %c0_15 = arith.constant 0 : index
      %18 = vector.load %arg1[%c0_14, %c0_15] : memref<98x576xf32, #tpu.memory_space<vmem>>, vector<98x576xf32>
      %c0_16 = arith.constant 0 : index
      %c0_17 = arith.constant 0 : index
      %19 = vector.load %arg2[%c0_16, %c0_17] : memref<576x64xf32, #tpu.memory_space<vmem>>, vector<576x64xf32>
      %cst_18 = arith.constant dense<0.000000e+00> : vector<98x64xf32>
      %20 = tpu.matmul %18, %19, %cst_18 {dimension_numbers = #tpu.dot_dimension_numbers<[1], [0], [0], [1], [0, 0, 1, 1], [], []>} : vector<98x576xf32>, vector<576x64xf32>, vector<98x64xf32> -> vector<98x64xf32>
      %c0_19 = arith.constant 0 : index
      %c0_20 = arith.constant 0 : index
      %21 = vector.load %arg3[%c0_19, %c0_20] : memref<1x64xf32, #tpu.memory_space<vmem>>, vector<1x64xf32>
      %22 = vector.broadcast %21 : vector<1x64xf32> to vector<98x64xf32>
      %23 = arith.addf %20, %22 : vector<98x64xf32>
      %cst_21 = arith.constant 0.000000e+00 : f32
      %24 = vector.broadcast %cst_21 : f32 to vector<98x64xf32>
      %25 = arith.maximumf %23, %24 : vector<98x64xf32>
      %cst_22 = arith.constant 0.000000e+00 : f32
      %26 = vector.broadcast %cst_22 : f32 to vector<2x3136xf32>
      %c0_23 = arith.constant 0 : index
      %c0_24 = arith.constant 0 : index
      %27 = vector.load %arg9[%c0_23, %c0_24] : memref<2x3136xf32, #tpu.memory_space<vmem>>, vector<2x3136xf32>
      tpu.vector_store %arg9[%c0_23, %c0_24], %26 {strides = array<i32>} : memref<2x3136xf32, #tpu.memory_space<vmem>>, vector<2x3136xf32>,
      %28 = vector.extract_strided_slice %25 {offsets = [0, 0], sizes = [2, 64], strides = [1, 1]} : vector<98x64xf32> to vector<2x64xf32>
      %c0_25 = arith.constant 0 : index
      %c0_26 = arith.constant 0 : index
      %29 = vector.load %arg9[%c0_25, %c0_26] : memref<2x3136xf32, #tpu.memory_space<vmem>>, vector<2x64xf32>
      tpu.vector_store %arg9[%c0_25, %c0_26], %28 {strides = array<i32>} : memref<2x3136xf32, #tpu.memory_space<vmem>>, vector<2x64xf32>,
      %30 = vector.extract_strided_slice %25 {offsets = [2, 0], sizes = [2, 64], strides = [1, 1]} : vector<98x64xf32> to vector<2x64xf32>
      %c0_27 = arith.constant 0 : index
      %c64 = arith.constant 64 : index
      %31 = vector.load %arg9[%c0_27, %c64] : memref<2x3136xf32, #tpu.memory_space<vmem>>, vector<2x64xf32>
      tpu.vector_store %arg9[%c0_27, %c64], %30 {strides = array<i32>} : memref<2x3136xf32, #tpu.memory_space<vmem>>, vector<2x64xf32>,
      %32 = vector.extract_strided_slice %25 {offsets = [4, 0], sizes = [2, 64], strides = [1, 1]} : vector<98x64xf32> to vector<2x64xf32>
      %c0_28 = arith.constant 0 : index
      %c128 = arith.constant 128 : index
      %33 = vector.load %arg9[%c0_28, %c128] : memref<2x3136xf32, #tpu.memory_space<vmem>>, vector<2x64xf32>
      tpu.vector_store %arg9[%c0_28, %c128], %32 {strides = array<i32>} : memref<2x3136xf32, #tpu.memory_space<vmem>>, vector<2x64xf32>,
      %34 = vector.extract_strided_slice %25 {offsets = [6, 0], sizes = [2, 64], strides = [1, 1]} : vector<98x64xf32> to vector<2x64xf32>
      %c0_29 = arith.constant 0 : index
      %c192 = arith.constant 192 : index
      %35 = vector.load %arg9[%c0_29, %c192] : memref<2x3136xf32, #tpu.memory_space<vmem>>, vector<2x64xf32>
      tpu.vector_store %arg9[%c0_29, %c192], %34 {strides = array<i32>} : memref<2x3136xf32, #tpu.memory_space<vmem>>, vector<2x64xf32>,
      %36 = vector.extract_strided_slice %25 {offsets = [8, 0], sizes = [2, 64], strides = [1, 1]} : vector<98x64xf32> to vector<2x64xf32>
      %c0_30 = arith.constant 0 : index
      %c256 = arith.constant 256 : index
      %37 = vector.load %arg9[%c0_30, %c256] : memref<2x3136xf32, #tpu.memory_space<vmem>>, vector<2x64xf32>
      tpu.vector_store %arg9[%c0_30, %c256], %36 {strides = array<i32>} : memref<2x3136xf32, #tpu.memory_space<vmem>>, vector<2x64xf32>,
      %38 = vector.extract_strided_slice %25 {offsets = [10, 0], sizes = [2, 64], strides = [1, 1]} : vector<98x64xf32> to vector<2x64xf32>
      %c0_31 = arith.constant 0 : index
      %c320 = arith.constant 320 : index
      %39 = vector.load %arg9[%c0_31, %c320] : memref<2x3136xf32, #tpu.memory_space<vmem>>, vector<2x64xf32>
      tpu.vector_store %arg9[%c0_31, %c320], %38 {strides = array<i32>} : memref<2x3136xf32, #tpu.memory_space<vmem>>, vector<2x64xf32>,
      %40 = vector.extract_strided_slice %25 {offsets = [12, 0], sizes = [2, 64], strides = [1, 1]} : vector<98x64xf32> to vector<2x64xf32>
      %c0_32 = arith.constant 0 : index
      %c384 = arith.constant 384 : index
      %41 = vector.load %arg9[%c0_32, %c384] : memref<2x3136xf32, #tpu.memory_space<vmem>>, vector<2x64xf32>
      tpu.vector_store %arg9[%c0_32, %c384], %40 {strides = array<i32>} : memref<2x3136xf32, #tpu.memory_space<vmem>>, vector<2x64xf32>,
      %42 = vector.extract_strided_slice %25 {offsets = [14, 0], sizes = [2, 64], strides = [1, 1]} : vector<98x64xf32> to vector<2x64xf32>
      %c0_33 = arith.constant 0 : index
      %c448 = arith.constant 448 : index
      %43 = vector.load %arg9[%c0_33, %c448] : memref<2x3136xf32, #tpu.memory_space<vmem>>, vector<2x64xf32>
      tpu.vector_store %arg9[%c0_33, %c448], %42 {strides = array<i32>} : memref<2x3136xf32, #tpu.memory_space<vmem>>, vector<2x64xf32>,
      %44 = vector.extract_strided_slice %25 {offsets = [16, 0], sizes = [2, 64], strides = [1, 1]} : vector<98x64xf32> to vector<2x64xf32>
      %c0_34 = arith.constant 0 : index
      %c512 = arith.constant 512 : index
      %45 = vector.load %arg9[%c0_34, %c512] : memref<2x3136xf32, #tpu.memory_space<vmem>>, vector<2x64xf32>
      tpu.vector_store %arg9[%c0_34, %c512], %44 {strides = array<i32>} : memref<2x3136xf32, #tpu.memory_space<vmem>>, vector<2x64xf32>,
      %46 = vector.extract_strided_slice %25 {offsets = [18, 0], sizes = [2, 64], strides = [1, 1]} : vector<98x64xf32> to vector<2x64xf32>
      %c0_35 = arith.constant 0 : index
      %c576 = arith.constant 576 : index
      %47 = vector.load %arg9[%c0_35, %c576] : memref<2x3136xf32, #tpu.memory_space<vmem>>, vector<2x64xf32>
      tpu.vector_store %arg9[%c0_35, %c576], %46 {strides = array<i32>} : memref<2x3136xf32, #tpu.memory_space<vmem>>, vector<2x64xf32>,
      %48 = vector.extract_strided_slice %25 {offsets = [20, 0], sizes = [2, 64], strides = [1, 1]} : vector<98x64xf32> to vector<2x64xf32>
      %c0_36 = arith.constant 0 : index
      %c640 = arith.constant 640 : index
      %49 = vector.load %arg9[%c0_36, %c640] : memref<2x3136xf32, #tpu.memory_space<vmem>>, vector<2x64xf32>
      tpu.vector_store %arg9[%c0_36, %c640], %48 {strides = array<i32>} : memref<2x3136xf32, #tpu.memory_space<vmem>>, vector<2x64xf32>,
      %50 = vector.extract_strided_slice %25 {offsets = [22, 0], sizes = [2, 64], strides = [1, 1]} : vector<98x64xf32> to vector<2x64xf32>
      %c0_37 = arith.constant 0 : index
      %c704 = arith.constant 704 : index
      %51 = vector.load %arg9[%c0_37, %c704] : memref<2x3136xf32, #tpu.memory_space<vmem>>, vector<2x64xf32>
      tpu.vector_store %arg9[%c0_37, %c704], %50 {strides = array<i32>} : memref<2x3136xf32, #tpu.memory_space<vmem>>, vector<2x64xf32>,
      %52 = vector.extract_strided_slice %25 {offsets = [24, 0], sizes = [2, 64], strides = [1, 1]} : vector<98x64xf32> to vector<2x64xf32>
      %c0_38 = arith.constant 0 : index
      %c768 = arith.constant 768 : index
      %53 = vector.load %arg9[%c0_38, %c768] : memref<2x3136xf32, #tpu.memory_space<vmem>>, vector<2x64xf32>
      tpu.vector_store %arg9[%c0_38, %c768], %52 {strides = array<i32>} : memref<2x3136xf32, #tpu.memory_space<vmem>>, vector<2x64xf32>,
      %54 = vector.extract_strided_slice %25 {offsets = [26, 0], sizes = [2, 64], strides = [1, 1]} : vector<98x64xf32> to vector<2x64xf32>
      %c0_39 = arith.constant 0 : index
      %c832 = arith.constant 832 : index
      %55 = vector.load %arg9[%c0_39, %c832] : memref<2x3136xf32, #tpu.memory_space<vmem>>, vector<2x64xf32>
      tpu.vector_store %arg9[%c0_39, %c832], %54 {strides = array<i32>} : memref<2x3136xf32, #tpu.memory_space<vmem>>, vector<2x64xf32>,
      %56 = vector.extract_strided_slice %25 {offsets = [28, 0], sizes = [2, 64], strides = [1, 1]} : vector<98x64xf32> to vector<2x64xf32>
      %c0_40 = arith.constant 0 : index
      %c896 = arith.constant 896 : index
      %57 = vector.load %arg9[%c0_40, %c896] : memref<2x3136xf32, #tpu.memory_space<vmem>>, vector<2x64xf32>
      tpu.vector_store %arg9[%c0_40, %c896], %56 {strides = array<i32>} : memref<2x3136xf32, #tpu.memory_space<vmem>>, vector<2x64xf32>,
      %58 = vector.extract_strided_slice %25 {offsets = [30, 0], sizes = [2, 64], strides = [1, 1]} : vector<98x64xf32> to vector<2x64xf32>
      %c0_41 = arith.constant 0 : index
      %c960 = arith.constant 960 : index
      %59 = vector.load %arg9[%c0_41, %c960] : memref<2x3136xf32, #tpu.memory_space<vmem>>, vector<2x64xf32>
      tpu.vector_store %arg9[%c0_41, %c960], %58 {strides = array<i32>} : memref<2x3136xf32, #tpu.memory_space<vmem>>, vector<2x64xf32>,
      %60 = vector.extract_strided_slice %25 {offsets = [32, 0], sizes = [2, 64], strides = [1, 1]} : vector<98x64xf32> to vector<2x64xf32>
      %c0_42 = arith.constant 0 : index
      %c1024 = arith.constant 1024 : index
      %61 = vector.load %arg9[%c0_42, %c1024] : memref<2x3136xf32, #tpu.memory_space<vmem>>, vector<2x64xf32>
      tpu.vector_store %arg9[%c0_42, %c1024], %60 {strides = array<i32>} : memref<2x3136xf32, #tpu.memory_space<vmem>>, vector<2x64xf32>,
      %62 = vector.extract_strided_slice %25 {offsets = [34, 0], sizes = [2, 64], strides = [1, 1]} : vector<98x64xf32> to vector<2x64xf32>
      %c0_43 = arith.constant 0 : index
      %c1088 = arith.constant 1088 : index
      %63 = vector.load %arg9[%c0_43, %c1088] : memref<2x3136xf32, #tpu.memory_space<vmem>>, vector<2x64xf32>
      tpu.vector_store %arg9[%c0_43, %c1088], %62 {strides = array<i32>} : memref<2x3136xf32, #tpu.memory_space<vmem>>, vector<2x64xf32>,
      %64 = vector.extract_strided_slice %25 {offsets = [36, 0], sizes = [2, 64], strides = [1, 1]} : vector<98x64xf32> to vector<2x64xf32>
      %c0_44 = arith.constant 0 : index
      %c1152 = arith.constant 1152 : index
      %65 = vector.load %arg9[%c0_44, %c1152] : memref<2x3136xf32, #tpu.memory_space<vmem>>, vector<2x64xf32>
      tpu.vector_store %arg9[%c0_44, %c1152], %64 {strides = array<i32>} : memref<2x3136xf32, #tpu.memory_space<vmem>>, vector<2x64xf32>,
      %66 = vector.extract_strided_slice %25 {offsets = [38, 0], sizes = [2, 64], strides = [1, 1]} : vector<98x64xf32> to vector<2x64xf32>
      %c0_45 = arith.constant 0 : index
      %c1216 = arith.constant 1216 : index
      %67 = vector.load %arg9[%c0_45, %c1216] : memref<2x3136xf32, #tpu.memory_space<vmem>>, vector<2x64xf32>
      tpu.vector_store %arg9[%c0_45, %c1216], %66 {strides = array<i32>} : memref<2x3136xf32, #tpu.memory_space<vmem>>, vector<2x64xf32>,
      %68 = vector.extract_strided_slice %25 {offsets = [40, 0], sizes = [2, 64], strides = [1, 1]} : vector<98x64xf32> to vector<2x64xf32>
      %c0_46 = arith.constant 0 : index
      %c1280 = arith.constant 1280 : index
      %69 = vector.load %arg9[%c0_46, %c1280] : memref<2x3136xf32, #tpu.memory_space<vmem>>, vector<2x64xf32>
      tpu.vector_store %arg9[%c0_46, %c1280], %68 {strides = array<i32>} : memref<2x3136xf32, #tpu.memory_space<vmem>>, vector<2x64xf32>,
      %70 = vector.extract_strided_slice %25 {offsets = [42, 0], sizes = [2, 64], strides = [1, 1]} : vector<98x64xf32> to vector<2x64xf32>
      %c0_47 = arith.constant 0 : index
      %c1344 = arith.constant 1344 : index
      %71 = vector.load %arg9[%c0_47, %c1344] : memref<2x3136xf32, #tpu.memory_space<vmem>>, vector<2x64xf32>
      tpu.vector_store %arg9[%c0_47, %c1344], %70 {strides = array<i32>} : memref<2x3136xf32, #tpu.memory_space<vmem>>, vector<2x64xf32>,
      %72 = vector.extract_strided_slice %25 {offsets = [44, 0], sizes = [2, 64], strides = [1, 1]} : vector<98x64xf32> to vector<2x64xf32>
      %c0_48 = arith.constant 0 : index
      %c1408 = arith.constant 1408 : index
      %73 = vector.load %arg9[%c0_48, %c1408] : memref<2x3136xf32, #tpu.memory_space<vmem>>, vector<2x64xf32>
      tpu.vector_store %arg9[%c0_48, %c1408], %72 {strides = array<i32>} : memref<2x3136xf32, #tpu.memory_space<vmem>>, vector<2x64xf32>,
      %74 = vector.extract_strided_slice %25 {offsets = [46, 0], sizes = [2, 64], strides = [1, 1]} : vector<98x64xf32> to vector<2x64xf32>
      %c0_49 = arith.constant 0 : index
      %c1472 = arith.constant 1472 : index
      %75 = vector.load %arg9[%c0_49, %c1472] : memref<2x3136xf32, #tpu.memory_space<vmem>>, vector<2x64xf32>
      tpu.vector_store %arg9[%c0_49, %c1472], %74 {strides = array<i32>} : memref<2x3136xf32, #tpu.memory_space<vmem>>, vector<2x64xf32>,
      %76 = vector.extract_strided_slice %25 {offsets = [48, 0], sizes = [2, 64], strides = [1, 1]} : vector<98x64xf32> to vector<2x64xf32>
      %c0_50 = arith.constant 0 : index
      %c1536 = arith.constant 1536 : index
      %77 = vector.load %arg9[%c0_50, %c1536] : memref<2x3136xf32, #tpu.memory_space<vmem>>, vector<2x64xf32>
      tpu.vector_store %arg9[%c0_50, %c1536], %76 {strides = array<i32>} : memref<2x3136xf32, #tpu.memory_space<vmem>>, vector<2x64xf32>,
      %78 = vector.extract_strided_slice %25 {offsets = [50, 0], sizes = [2, 64], strides = [1, 1]} : vector<98x64xf32> to vector<2x64xf32>
      %c0_51 = arith.constant 0 : index
      %c1600 = arith.constant 1600 : index
      %79 = vector.load %arg9[%c0_51, %c1600] : memref<2x3136xf32, #tpu.memory_space<vmem>>, vector<2x64xf32>
      tpu.vector_store %arg9[%c0_51, %c1600], %78 {strides = array<i32>} : memref<2x3136xf32, #tpu.memory_space<vmem>>, vector<2x64xf32>,
      %80 = vector.extract_strided_slice %25 {offsets = [52, 0], sizes = [2, 64], strides = [1, 1]} : vector<98x64xf32> to vector<2x64xf32>
      %c0_52 = arith.constant 0 : index
      %c1664 = arith.constant 1664 : index
      %81 = vector.load %arg9[%c0_52, %c1664] : memref<2x3136xf32, #tpu.memory_space<vmem>>, vector<2x64xf32>
      tpu.vector_store %arg9[%c0_52, %c1664], %80 {strides = array<i32>} : memref<2x3136xf32, #tpu.memory_space<vmem>>, vector<2x64xf32>,
      %82 = vector.extract_strided_slice %25 {offsets = [54, 0], sizes = [2, 64], strides = [1, 1]} : vector<98x64xf32> to vector<2x64xf32>
      %c0_53 = arith.constant 0 : index
      %c1728 = arith.constant 1728 : index
      %83 = vector.load %arg9[%c0_53, %c1728] : memref<2x3136xf32, #tpu.memory_space<vmem>>, vector<2x64xf32>
      tpu.vector_store %arg9[%c0_53, %c1728], %82 {strides = array<i32>} : memref<2x3136xf32, #tpu.memory_space<vmem>>, vector<2x64xf32>,
      %84 = vector.extract_strided_slice %25 {offsets = [56, 0], sizes = [2, 64], strides = [1, 1]} : vector<98x64xf32> to vector<2x64xf32>
      %c0_54 = arith.constant 0 : index
      %c1792 = arith.constant 1792 : index
      %85 = vector.load %arg9[%c0_54, %c1792] : memref<2x3136xf32, #tpu.memory_space<vmem>>, vector<2x64xf32>
      tpu.vector_store %arg9[%c0_54, %c1792], %84 {strides = array<i32>} : memref<2x3136xf32, #tpu.memory_space<vmem>>, vector<2x64xf32>,
      %86 = vector.extract_strided_slice %25 {offsets = [58, 0], sizes = [2, 64], strides = [1, 1]} : vector<98x64xf32> to vector<2x64xf32>
      %c0_55 = arith.constant 0 : index
      %c1856 = arith.constant 1856 : index
      %87 = vector.load %arg9[%c0_55, %c1856] : memref<2x3136xf32, #tpu.memory_space<vmem>>, vector<2x64xf32>
      tpu.vector_store %arg9[%c0_55, %c1856], %86 {strides = array<i32>} : memref<2x3136xf32, #tpu.memory_space<vmem>>, vector<2x64xf32>,
      %88 = vector.extract_strided_slice %25 {offsets = [60, 0], sizes = [2, 64], strides = [1, 1]} : vector<98x64xf32> to vector<2x64xf32>
      %c0_56 = arith.constant 0 : index
      %c1920 = arith.constant 1920 : index
      %89 = vector.load %arg9[%c0_56, %c1920] : memref<2x3136xf32, #tpu.memory_space<vmem>>, vector<2x64xf32>
      tpu.vector_store %arg9[%c0_56, %c1920], %88 {strides = array<i32>} : memref<2x3136xf32, #tpu.memory_space<vmem>>, vector<2x64xf32>,
      %90 = vector.extract_strided_slice %25 {offsets = [62, 0], sizes = [2, 64], strides = [1, 1]} : vector<98x64xf32> to vector<2x64xf32>
      %c0_57 = arith.constant 0 : index
      %c1984 = arith.constant 1984 : index
      %91 = vector.load %arg9[%c0_57, %c1984] : memref<2x3136xf32, #tpu.memory_space<vmem>>, vector<2x64xf32>
      tpu.vector_store %arg9[%c0_57, %c1984], %90 {strides = array<i32>} : memref<2x3136xf32, #tpu.memory_space<vmem>>, vector<2x64xf32>,
      %92 = vector.extract_strided_slice %25 {offsets = [64, 0], sizes = [2, 64], strides = [1, 1]} : vector<98x64xf32> to vector<2x64xf32>
      %c0_58 = arith.constant 0 : index
      %c2048 = arith.constant 2048 : index
      %93 = vector.load %arg9[%c0_58, %c2048] : memref<2x3136xf32, #tpu.memory_space<vmem>>, vector<2x64xf32>
      tpu.vector_store %arg9[%c0_58, %c2048], %92 {strides = array<i32>} : memref<2x3136xf32, #tpu.memory_space<vmem>>, vector<2x64xf32>,
      %94 = vector.extract_strided_slice %25 {offsets = [66, 0], sizes = [2, 64], strides = [1, 1]} : vector<98x64xf32> to vector<2x64xf32>
      %c0_59 = arith.constant 0 : index
      %c2112 = arith.constant 2112 : index
      %95 = vector.load %arg9[%c0_59, %c2112] : memref<2x3136xf32, #tpu.memory_space<vmem>>, vector<2x64xf32>
      tpu.vector_store %arg9[%c0_59, %c2112], %94 {strides = array<i32>} : memref<2x3136xf32, #tpu.memory_space<vmem>>, vector<2x64xf32>,
      %96 = vector.extract_strided_slice %25 {offsets = [68, 0], sizes = [2, 64], strides = [1, 1]} : vector<98x64xf32> to vector<2x64xf32>
      %c0_60 = arith.constant 0 : index
      %c2176 = arith.constant 2176 : index
      %97 = vector.load %arg9[%c0_60, %c2176] : memref<2x3136xf32, #tpu.memory_space<vmem>>, vector<2x64xf32>
      tpu.vector_store %arg9[%c0_60, %c2176], %96 {strides = array<i32>} : memref<2x3136xf32, #tpu.memory_space<vmem>>, vector<2x64xf32>,
      %98 = vector.extract_strided_slice %25 {offsets = [70, 0], sizes = [2, 64], strides = [1, 1]} : vector<98x64xf32> to vector<2x64xf32>
      %c0_61 = arith.constant 0 : index
      %c2240 = arith.constant 2240 : index
      %99 = vector.load %arg9[%c0_61, %c2240] : memref<2x3136xf32, #tpu.memory_space<vmem>>, vector<2x64xf32>
      tpu.vector_store %arg9[%c0_61, %c2240], %98 {strides = array<i32>} : memref<2x3136xf32, #tpu.memory_space<vmem>>, vector<2x64xf32>,
      %100 = vector.extract_strided_slice %25 {offsets = [72, 0], sizes = [2, 64], strides = [1, 1]} : vector<98x64xf32> to vector<2x64xf32>
      %c0_62 = arith.constant 0 : index
      %c2304 = arith.constant 2304 : index
      %101 = vector.load %arg9[%c0_62, %c2304] : memref<2x3136xf32, #tpu.memory_space<vmem>>, vector<2x64xf32>
      tpu.vector_store %arg9[%c0_62, %c2304], %100 {strides = array<i32>} : memref<2x3136xf32, #tpu.memory_space<vmem>>, vector<2x64xf32>,
      %102 = vector.extract_strided_slice %25 {offsets = [74, 0], sizes = [2, 64], strides = [1, 1]} : vector<98x64xf32> to vector<2x64xf32>
      %c0_63 = arith.constant 0 : index
      %c2368 = arith.constant 2368 : index
      %103 = vector.load %arg9[%c0_63, %c2368] : memref<2x3136xf32, #tpu.memory_space<vmem>>, vector<2x64xf32>
      tpu.vector_store %arg9[%c0_63, %c2368], %102 {strides = array<i32>} : memref<2x3136xf32, #tpu.memory_space<vmem>>, vector<2x64xf32>,
      %104 = vector.extract_strided_slice %25 {offsets = [76, 0], sizes = [2, 64], strides = [1, 1]} : vector<98x64xf32> to vector<2x64xf32>
      %c0_64 = arith.constant 0 : index
      %c2432 = arith.constant 2432 : index
      %105 = vector.load %arg9[%c0_64, %c2432] : memref<2x3136xf32, #tpu.memory_space<vmem>>, vector<2x64xf32>
      tpu.vector_store %arg9[%c0_64, %c2432], %104 {strides = array<i32>} : memref<2x3136xf32, #tpu.memory_space<vmem>>, vector<2x64xf32>,
      %106 = vector.extract_strided_slice %25 {offsets = [78, 0], sizes = [2, 64], strides = [1, 1]} : vector<98x64xf32> to vector<2x64xf32>
      %c0_65 = arith.constant 0 : index
      %c2496 = arith.constant 2496 : index
      %107 = vector.load %arg9[%c0_65, %c2496] : memref<2x3136xf32, #tpu.memory_space<vmem>>, vector<2x64xf32>
      tpu.vector_store %arg9[%c0_65, %c2496], %106 {strides = array<i32>} : memref<2x3136xf32, #tpu.memory_space<vmem>>, vector<2x64xf32>,
      %108 = vector.extract_strided_slice %25 {offsets = [80, 0], sizes = [2, 64], strides = [1, 1]} : vector<98x64xf32> to vector<2x64xf32>
      %c0_66 = arith.constant 0 : index
      %c2560 = arith.constant 2560 : index
      %109 = vector.load %arg9[%c0_66, %c2560] : memref<2x3136xf32, #tpu.memory_space<vmem>>, vector<2x64xf32>
      tpu.vector_store %arg9[%c0_66, %c2560], %108 {strides = array<i32>} : memref<2x3136xf32, #tpu.memory_space<vmem>>, vector<2x64xf32>,
      %110 = vector.extract_strided_slice %25 {offsets = [82, 0], sizes = [2, 64], strides = [1, 1]} : vector<98x64xf32> to vector<2x64xf32>
      %c0_67 = arith.constant 0 : index
      %c2624 = arith.constant 2624 : index
      %111 = vector.load %arg9[%c0_67, %c2624] : memref<2x3136xf32, #tpu.memory_space<vmem>>, vector<2x64xf32>
      tpu.vector_store %arg9[%c0_67, %c2624], %110 {strides = array<i32>} : memref<2x3136xf32, #tpu.memory_space<vmem>>, vector<2x64xf32>,
      %112 = vector.extract_strided_slice %25 {offsets = [84, 0], sizes = [2, 64], strides = [1, 1]} : vector<98x64xf32> to vector<2x64xf32>
      %c0_68 = arith.constant 0 : index
      %c2688 = arith.constant 2688 : index
      %113 = vector.load %arg9[%c0_68, %c2688] : memref<2x3136xf32, #tpu.memory_space<vmem>>, vector<2x64xf32>
      tpu.vector_store %arg9[%c0_68, %c2688], %112 {strides = array<i32>} : memref<2x3136xf32, #tpu.memory_space<vmem>>, vector<2x64xf32>,
      %114 = vector.extract_strided_slice %25 {offsets = [86, 0], sizes = [2, 64], strides = [1, 1]} : vector<98x64xf32> to vector<2x64xf32>
      %c0_69 = arith.constant 0 : index
      %c2752 = arith.constant 2752 : index
      %115 = vector.load %arg9[%c0_69, %c2752] : memref<2x3136xf32, #tpu.memory_space<vmem>>, vector<2x64xf32>
      tpu.vector_store %arg9[%c0_69, %c2752], %114 {strides = array<i32>} : memref<2x3136xf32, #tpu.memory_space<vmem>>, vector<2x64xf32>,
      %116 = vector.extract_strided_slice %25 {offsets = [88, 0], sizes = [2, 64], strides = [1, 1]} : vector<98x64xf32> to vector<2x64xf32>
      %c0_70 = arith.constant 0 : index
      %c2816 = arith.constant 2816 : index
      %117 = vector.load %arg9[%c0_70, %c2816] : memref<2x3136xf32, #tpu.memory_space<vmem>>, vector<2x64xf32>
      tpu.vector_store %arg9[%c0_70, %c2816], %116 {strides = array<i32>} : memref<2x3136xf32, #tpu.memory_space<vmem>>, vector<2x64xf32>,
      %118 = vector.extract_strided_slice %25 {offsets = [90, 0], sizes = [2, 64], strides = [1, 1]} : vector<98x64xf32> to vector<2x64xf32>
      %c0_71 = arith.constant 0 : index
      %c2880 = arith.constant 2880 : index
      %119 = vector.load %arg9[%c0_71, %c2880] : memref<2x3136xf32, #tpu.memory_space<vmem>>, vector<2x64xf32>
      tpu.vector_store %arg9[%c0_71, %c2880], %118 {strides = array<i32>} : memref<2x3136xf32, #tpu.memory_space<vmem>>, vector<2x64xf32>,
      %120 = vector.extract_strided_slice %25 {offsets = [92, 0], sizes = [2, 64], strides = [1, 1]} : vector<98x64xf32> to vector<2x64xf32>
      %c0_72 = arith.constant 0 : index
      %c2944 = arith.constant 2944 : index
      %121 = vector.load %arg9[%c0_72, %c2944] : memref<2x3136xf32, #tpu.memory_space<vmem>>, vector<2x64xf32>
      tpu.vector_store %arg9[%c0_72, %c2944], %120 {strides = array<i32>} : memref<2x3136xf32, #tpu.memory_space<vmem>>, vector<2x64xf32>,
      %122 = vector.extract_strided_slice %25 {offsets = [94, 0], sizes = [2, 64], strides = [1, 1]} : vector<98x64xf32> to vector<2x64xf32>
      %c0_73 = arith.constant 0 : index
      %c3008 = arith.constant 3008 : index
      %123 = vector.load %arg9[%c0_73, %c3008] : memref<2x3136xf32, #tpu.memory_space<vmem>>, vector<2x64xf32>
      tpu.vector_store %arg9[%c0_73, %c3008], %122 {strides = array<i32>} : memref<2x3136xf32, #tpu.memory_space<vmem>>, vector<2x64xf32>,
      %124 = vector.extract_strided_slice %25 {offsets = [96, 0], sizes = [2, 64], strides = [1, 1]} : vector<98x64xf32> to vector<2x64xf32>
      %c0_74 = arith.constant 0 : index
      %c3072 = arith.constant 3072 : index
      %125 = vector.load %arg9[%c0_74, %c3072] : memref<2x3136xf32, #tpu.memory_space<vmem>>, vector<2x64xf32>
      tpu.vector_store %arg9[%c0_74, %c3072], %124 {strides = array<i32>} : memref<2x3136xf32, #tpu.memory_space<vmem>>, vector<2x64xf32>,
      %cst_75 = arith.constant 0.000000e+00 : f32
      %126 = vector.broadcast %cst_75 : f32 to vector<2x128xf32>
      %c0_76 = arith.constant 0 : index
      %c0_77 = arith.constant 0 : index
      %127 = vector.load %arg7[%c0_76, %c0_77] : memref<1x128xf32, #tpu.memory_space<vmem>>, vector<1x128xf32>
      %128 = vector.broadcast %127 : vector<1x128xf32> to vector<2x128xf32>
      %129 = arith.addf %126, %128 : vector<2x128xf32>
      %c0_78 = arith.constant 0 : index
      %c0_79 = arith.constant 0 : index
      %130 = vector.load %arg8[%c0_78, %c0_79] : memref<2x128xf32, #tpu.memory_space<vmem>>, vector<2x128xf32>
      tpu.vector_store %arg8[%c0_78, %c0_79], %129 {strides = array<i32>} : memref<2x128xf32, #tpu.memory_space<vmem>>, vector<2x128xf32>,
    } else {
    }
    %c0 = arith.constant 0 : index
    %c0_1 = arith.constant 0 : index
    %3 = vector.load %arg9[%c0, %c0_1] : memref<2x3136xf32, #tpu.memory_space<vmem>>, vector<2x3136xf32>
    %4 = arith.truncf %3 : vector<2x3136xf32> to vector<2x3136xbf16>
    %c0_2 = arith.constant 0 : index
    %c0_3 = arith.constant 0 : index
    %5 = vector.load %arg4[%c0_2, %c0_3] : memref<3136x256xbf16, #tpu.memory_space<vmem>>, vector<3136x256xbf16>
    %cst = arith.constant dense<0.000000e+00> : vector<2x256xf32>
    %6 = tpu.matmul %4, %5, %cst {dimension_numbers = #tpu.dot_dimension_numbers<[1], [0], [0], [1], [0, 0, 1, 1], [], []>} : vector<2x3136xbf16>, vector<3136x256xbf16>, vector<2x256xf32> -> vector<2x256xf32>
    %c0_4 = arith.constant 0 : index
    %c0_5 = arith.constant 0 : index
    %7 = vector.load %arg5[%c0_4, %c0_5] : memref<1x256xf32, #tpu.memory_space<vmem>>, vector<1x256xf32>
    %8 = vector.broadcast %7 : vector<1x256xf32> to vector<2x256xf32>
    %9 = arith.addf %6, %8 : vector<2x256xf32>
    %cst_6 = arith.constant 0.000000e+00 : f32
    %10 = vector.broadcast %cst_6 : f32 to vector<2x256xf32>
    %11 = arith.maximumf %9, %10 : vector<2x256xf32>
    %12 = arith.truncf %11 : vector<2x256xf32> to vector<2x256xbf16>
    %c0_7 = arith.constant 0 : index
    %c0_8 = arith.constant 0 : index
    %13 = vector.load %arg8[%c0_7, %c0_8] : memref<2x128xf32, #tpu.memory_space<vmem>>, vector<2x128xf32>
    %c0_9 = arith.constant 0 : index
    %c0_10 = arith.constant 0 : index
    %14 = vector.load %arg6[%c0_9, %c0_10] : memref<256x128xbf16, #tpu.memory_space<vmem>>, vector<256x128xbf16>
    %cst_11 = arith.constant dense<0.000000e+00> : vector<2x128xf32>
    %15 = tpu.matmul %12, %14, %cst_11 {dimension_numbers = #tpu.dot_dimension_numbers<[1], [0], [0], [1], [0, 0, 1, 1], [], []>} : vector<2x256xbf16>, vector<256x128xbf16>, vector<2x128xf32> -> vector<2x128xf32>
    %16 = arith.addf %13, %15 : vector<2x128xf32>
    %c0_12 = arith.constant 0 : index
    %c0_13 = arith.constant 0 : index
    %17 = vector.load %arg8[%c0_12, %c0_13] : memref<2x128xf32, #tpu.memory_space<vmem>>, vector<2x128xf32>
    tpu.vector_store %arg8[%c0_12, %c0_13], %16 {strides = array<i32>} : memref<2x128xf32, #tpu.memory_space<vmem>>, vector<2x128xf32>,
    return
  }
  func.func @transform_0(%arg0: i32) -> (i32, i32) {
    %c0_i32 = arith.constant 0 : i32
    %c0_i32_0 = arith.constant 0 : i32
    %c0_i32_1 = arith.constant 0 : i32
    return %c0_i32, %c0_i32_0 : i32, i32
  }
  func.func @transform_1(%arg0: i32) -> (i32, i32) {
    %c0_i32 = arith.constant 0 : i32
    %c0_i32_0 = arith.constant 0 : i32
    %c0_i32_1 = arith.constant 0 : i32
    return %c0_i32, %c0_i32_0 : i32, i32
  }
  func.func @transform_2(%arg0: i32) -> (i32, i32) {
    %c0_i32 = arith.constant 0 : i32
    %c0_i32_0 = arith.constant 0 : i32
    %c0_i32_1 = arith.constant 0 : i32
    return %c0_i32, %c0_i32_0 : i32, i32
  }
  func.func @transform_3(%arg0: i32) -> (i32, i32) {
    %c0_i32 = arith.constant 0 : i32
    %c0_i32_0 = arith.constant 0 : i32
    return %c0_i32, %arg0 : i32, i32
  }
  func.func @transform_4(%arg0: i32) -> (i32, i32) {
    %c0_i32 = arith.constant 0 : i32
    %c0_i32_0 = arith.constant 0 : i32
    return %c0_i32, %arg0 : i32, i32
  }
  func.func @transform_5(%arg0: i32) -> (i32, i32) {
    %c0_i32 = arith.constant 0 : i32
    %c0_i32_0 = arith.constant 0 : i32
    return %arg0, %c0_i32 : i32, i32
  }
  func.func @transform_6(%arg0: i32) -> (i32, i32) {
    %c0_i32 = arith.constant 0 : i32
    %c0_i32_0 = arith.constant 0 : i32
    %c0_i32_1 = arith.constant 0 : i32
    return %c0_i32, %c0_i32_0 : i32, i32
  }
  func.func @transform_7(%arg0: i32) -> (i32, i32) {
    %c0_i32 = arith.constant 0 : i32
    %c0_i32_0 = arith.constant 0 : i32
    %c0_i32_1 = arith.constant 0 : i32
    return %c0_i32, %c0_i32_0 : i32, i32
  }
}

</mosaic_0001>

<bundles_post_ra>
// kernel: dqn_forward.3
= control target key start
LH: loop header
LB: loop body
LE: loop exit
PB: predicated region body
PF: predicated region fallthrough
CT: control target
= control target key end

     0   :  { %v1105_v0 = vmov 0.0|0.0   ;;  %vm918_vm0 = vcmask 261120   ;;  %s2359_s1 = inlined_call_operand.vmem [shape: f32[256,32], index: 1, kind: input, shape index: {}]   ;;  %s2360_s0 = inlined_call_operand.vmem [shape: f32[800,256], index: 0, kind: input, shape index: {}]   ;;  %s2361_s2 = inlined_call_operand.vmem [shape: f32[1,32], index: 2, kind: input, shape index: {}]   ;;  %s2362_s3 = inlined_call_operand.vmem [shape: f32[800,32], index: 3, kind: output, shape index: {}]  }
   0x1   :  { %1024 = vmatprep.subr.bf16.mxu0 %v1105_v0  ;;  %1072 = vmatprep.subr.bf16.mxu1 %v1105_v0  ;;  %v214_v1 = vld [vmem:[%s2359_s1] sm:$0xff]  ;;  %v215_v2 = vld [vmem:[%s2359_s1 + $0x8] sm:$0xff]  ;;  %v216_v3 = vld [vmem:[%s2359_s1 + $0x10] sm:$0xff] }
   0x2   :  { %v1025_v4 = vpack.c.bf16 %v215_v2, %v214_v1  ;;  %v217_v5 = vld [vmem:[%s2359_s1 + $0x18] sm:$0xff]  ;;  %v218_v7 = vld [vmem:[%s2359_s1 + $0x20] sm:$0xff]  ;;  %v219_v8 = vld [vmem:[%s2359_s1 + $0x28] sm:$0xff] }
   0x3   :  { %v1028_v6 = vpack.c.bf16 %v217_v5, %v216_v3  ;;  %v1031_v9 = vpack.c.bf16 %v219_v8, %v218_v7  ;;  %v220_v10 = vld [vmem:[%s2359_s1 + $0x30] sm:$0xff]  ;;  %v221_v11 = vld [vmem:[%s2359_s1 + $0x38] sm:$0xff]  ;;  %v15_v12 = vld [vmem:[%s2360_s0 + $0x8] sm:$0xff] }
   0x4   :  { %1026 = vmatpush1.bf16.msra.mxu0 %v1025_v4  ;;  %1088 = vmatpush1.bf16.msra.mxu1 %v1025_v4  ;;  %v1034_v13 = vpack.c.bf16 %v221_v11, %v220_v10  ;;  %v115_v14 = vld [vmem:[%s2360_s0 + $0x328] sm:$0xff]  ;;  %v222_v15 = vld [vmem:[%s2359_s1 + $0x40] sm:$0xff]  ;;  %v224_v18 = vld [vmem:[%s2359_s1 + $0x50] sm:$0xff] }
   0x5   :  { %1027 = vmatprep.subr.bf16.mxu0 %v1105_v0  ;;  %1073 = vmatprep.subr.bf16.mxu1 %v1105_v0  ;;  %v223_v16 = vld [vmem:[%s2359_s1 + $0x48] sm:$0xff]  ;;  %v225_v19 = vld [vmem:[%s2359_s1 + $0x58] sm:$0xff]  ;;  %v226_v21 = vld [vmem:[%s2359_s1 + $0x60] sm:$0xff] }
   0x6   :  { %317 = vmatprep.mubr.f32.mxu0 %v15_v12  ;;  %567 = vmatprep.mubr.f32.mxu1 %v115_v14  ;;  %v1037_v17 = vpack.c.bf16 %v223_v16, %v222_v15  ;;  %v1040_v20 = vpack.c.bf16 %v225_v19, %v224_v18  ;;  %v227_v22 = vld [vmem:[%s2359_s1 + $0x68] sm:$0xff]  ;;  %v228_v24 = vld [vmem:[%s2359_s1 + $0x70] sm:$0xff]  ;;  %v229_v25 = vld [vmem:[%s2359_s1 + $0x78] sm:$0xff] }
   0x7   :  { %v1043_v23 = vpack.c.bf16 %v227_v22, %v226_v21  ;;  %v1046_v26 = vpack.c.bf16 %v229_v25, %v228_v24  ;;  %v230_v27 = vld [vmem:[%s2359_s1 + $0x80] sm:$0xff]  ;;  %v231_v28 = vld [vmem:[%s2359_s1 + $0x88] sm:$0xff]  ;;  %v232_v30 = vld [vmem:[%s2359_s1 + $0x90] sm:$0xff] }
   0x8   :  { %1029 = vmatpush1.bf16.msra.mxu0 %v1028_v6  ;;  %1089 = vmatpush1.bf16.msra.mxu1 %v1028_v6  ;;  %v1049_v29 = vpack.c.bf16 %v231_v28, %v230_v27  ;;  %v233_v31 = vld [vmem:[%s2359_s1 + $0x98] sm:$0xff]  ;;  %v234_v33 = vld [vmem:[%s2359_s1 + $0xa0] sm:$0xff]  ;;  %v235_v34 = vld [vmem:[%s2359_s1 + $0xa8] sm:$0xff] }
   0x9   :  { %1030 = vmatprep.subr.bf16.mxu0 %v1105_v0  ;;  %1074 = vmatprep.subr.bf16.mxu1 %v1105_v0  ;;  %v1052_v32 = vpack.c.bf16 %v233_v31, %v232_v30  ;;  %v1055_v35 = vpack.c.bf16 %v235_v34, %v234_v33  ;;  %v236_v36 = vld [vmem:[%s2359_s1 + $0xb0] sm:$0xff]  ;;  %v237_v37 = vld [vmem:[%s2359_s1 + $0xb8] sm:$0xff]  ;;  %v238_v39 = vld [vmem:[%s2359_s1 + $0xc0] sm:$0xff] }
   0xa   :  { %v1058_v38 = vpack.c.bf16 %v237_v37, %v236_v36  ;;  %v239_v40 = vld [vmem:[%s2359_s1 + $0xc8] sm:$0xff]  ;;  %v240_v42 = vld [vmem:[%s2359_s1 + $0xd0] sm:$0xff]  ;;  %v241_v43 = vld [vmem:[%s2359_s1 + $0xd8] sm:$0xff] }
   0xb   :  { %v1061_v41 = vpack.c.bf16 %v239_v40, %v238_v39  ;;  %v1064_v44 = vpack.c.bf16 %v241_v43, %v240_v42  ;;  %v242_v45 = vld [vmem:[%s2359_s1 + $0xe0] sm:$0xff]  ;;  %v243_v46 = vld [vmem:[%s2359_s1 + $0xe8] sm:$0xff]  ;;  %v244_v48 = vld [vmem:[%s2359_s1 + $0xf0] sm:$0xff] }
   0xc   :  { %1032 = vmatpush1.bf16.msra.mxu0 %v1031_v9  ;;  %1090 = vmatpush1.bf16.msra.mxu1 %v1031_v9  ;;  %v1067_v47 = vpack.c.bf16 %v243_v46, %v242_v45  ;;  %v245_v49 = vld [vmem:[%s2359_s1 + $0xf8] sm:$0xff]  ;;  %v14_v51 = vld [vmem:[%s2360_s0] sm:$0xff]  ;;  %v16_v55 = vld [vmem:[%s2360_s0 + $0x10] sm:$0xff] }
   0xd   :  { %1033 = vmatprep.subr.bf16.mxu0 %v1105_v0  ;;  %1075 = vmatprep.subr.bf16.mxu1 %v1105_v0  ;;  %v1070_v50 = vpack.c.bf16 %v245_v49, %v244_v48  ;;  %v114_v52 = vld [vmem:[%s2360_s0 + $0x320] sm:$0xff]  ;;  %v17_v53 = vld [vmem:[%s2360_s0 + $0x18] sm:$0xff]  ;;  %v116_v56 = vld [vmem:[%s2360_s0 + $0x330] sm:$0xff] }
   0xe   :  { %v117_v54 = vld [vmem:[%s2360_s0 + $0x338] sm:$0xff]  ;;  %v19_v57 = vld [vmem:[%s2360_s0 + $0x28] sm:$0xff]  ;;  %v18_v59 = vld [vmem:[%s2360_s0 + $0x20] sm:$0xff] }
   0xf   :  { %v119_v58 = vld [vmem:[%s2360_s0 + $0x348] sm:$0xff]  ;;  %v118_v60 = vld [vmem:[%s2360_s0 + $0x340] sm:$0xff]  ;;  %v21_v61 = vld [vmem:[%s2360_s0 + $0x38] sm:$0xff] }
  0x10   :  { %1035 = vmatpush1.bf16.msra.mxu0 %v1034_v13  ;;  %1091 = vmatpush1.bf16.msra.mxu1 %v1034_v13  ;;  %v121_v62 = vld [vmem:[%s2360_s0 + $0x358] sm:$0xff]  ;;  %v20_v63 = vld [vmem:[%s2360_s0 + $0x30] sm:$0xff]  ;;  %v23_v1 = vld [vmem:[%s2360_s0 + $0x48] sm:$0xff] }
  0x11   :  { %1036 = vmatprep.subr.bf16.mxu0 %v1105_v0  ;;  %1076 = vmatprep.subr.bf16.mxu1 %v1105_v0  ;;  %v123_v2 = vld [vmem:[%s2360_s0 + $0x368] sm:$0xff]  ;;  %v22_v3 = vld [vmem:[%s2360_s0 + $0x40] sm:$0xff]  ;;  %v25_v5 = vld [vmem:[%s2360_s0 + $0x58] sm:$0xff] }
  0x12   :  { %v122_v4 = vld [vmem:[%s2360_s0 + $0x360] sm:$0xff]  ;;  %v125_v6 = vld [vmem:[%s2360_s0 + $0x378] sm:$0xff]  ;;  %v24_v7 = vld [vmem:[%s2360_s0 + $0x50] sm:$0xff] }
  0x13   :  { %v124_v8 = vld [vmem:[%s2360_s0 + $0x370] sm:$0xff]  ;;  %v27_v9 = vld [vmem:[%s2360_s0 + $0x68] sm:$0xff]  ;;  %v26_v11 = vld [vmem:[%s2360_s0 + $0x60] sm:$0xff] }
  0x14   :  { %1038 = vmatpush1.bf16.msra.mxu0 %v1037_v17  ;;  %1092 = vmatpush1.bf16.msra.mxu1 %v1037_v17  ;;  %v127_v10 = vld [vmem:[%s2360_s0 + $0x388] sm:$0xff]  ;;  %v126_v12 = vld [vmem:[%s2360_s0 + $0x380] sm:$0xff]  ;;  %v29_v13 = vld [vmem:[%s2360_s0 + $0x78] sm:$0xff] }
  0x15   :  { %1039 = vmatprep.subr.bf16.mxu0 %v1105_v0  ;;  %1077 = vmatprep.subr.bf16.mxu1 %v1105_v0  ;;  %v129_v14 = vld [vmem:[%s2360_s0 + $0x398] sm:$0xff]  ;;  %v28_v15 = vld [vmem:[%s2360_s0 + $0x70] sm:$0xff]  ;;  %v31_v17 = vld [vmem:[%s2360_s0 + $0x88] sm:$0xff] }
  0x16   :  { %v128_v16 = vld [vmem:[%s2360_s0 + $0x390] sm:$0xff]  ;;  %v131_v18 = vld [vmem:[%s2360_s0 + $0x3a8] sm:$0xff]  ;;  %v30_v19 = vld [vmem:[%s2360_s0 + $0x80] sm:$0xff] }
  0x17   :  { %v33_v21 = vld [vmem:[%s2360_s0 + $0x98] sm:$0xff]  ;;  %v132_v24 = vld [vmem:[%s2360_s0 + $0x3b0] sm:$0xff]  ;;  %v35_v25 = vld [vmem:[%s2360_s0 + $0xa8] sm:$0xff] }
  0x18   :  { %1041 = vmatpush1.bf16.msra.mxu0 %v1040_v20  ;;  %1093 = vmatpush1.bf16.msra.mxu1 %v1040_v20  ;;  %v130_v20 = vld [vmem:[%s2360_s0 + $0x3a0] sm:$0xff]  ;;  %v133_v22 = vld [vmem:[%s2360_s0 + $0x3b8] sm:$0xff]  ;;  %v36_v31 = vld [vmem:[%s2360_s0 + $0xb0] sm:$0xff] }
  0x19   :  { %1042 = vmatprep.subr.bf16.mxu0 %v1105_v0  ;;  %1078 = vmatprep.subr.bf16.mxu1 %v1105_v0  ;;  %v34_v27 = vld [vmem:[%s2360_s0 + $0xa0] sm:$0xff]  ;;  %v137_v30 = vld [vmem:[%s2360_s0 + $0x3d8] sm:$0xff]  ;;  %v39_v33 = vld [vmem:[%s2360_s0 + $0xc8] sm:$0xff] }
  0x1a   :  { %v134_v28 = vld [vmem:[%s2360_s0 + $0x3c0] sm:$0xff]  ;;  %v139_v34 = vld [vmem:[%s2360_s0 + $0x3e8] sm:$0xff]  ;;  %v41_v37 = vld [vmem:[%s2360_s0 + $0xd8] sm:$0xff] }
  0x1b   :  { %v138_v36 = vld [vmem:[%s2360_s0 + $0x3e0] sm:$0xff]  ;;  %v40_v39 = vld [vmem:[%s2360_s0 + $0xd0] sm:$0xff]  ;;  %v143_v42 = vld [vmem:[%s2360_s0 + $0x408] sm:$0xff] }
  0x1c   :  { %1044 = vmatpush1.bf16.msra.mxu0 %v1043_v23  ;;  %1094 = vmatpush1.bf16.msra.mxu1 %v1043_v23  ;;  %v32_v23 = vld [vmem:[%s2360_s0 + $0x90] sm:$0xff]  ;;  %v42_v43 = vld [vmem:[%s2360_s0 + $0xe0] sm:$0xff]  ;;  %v45_v45 = vld [vmem:[%s2360_s0 + $0xf8] sm:$0xff] }
  0x1d   :  { %1045 = vmatprep.subr.bf16.mxu0 %v1105_v0  ;;  %1079 = vmatprep.subr.bf16.mxu1 %v1105_v0  ;;  %v140_v40 = vld [vmem:[%s2360_s0 + $0x3f0] sm:$0xff]  ;;  %v145_v46 = vld [vmem:[%s2360_s0 + $0x418] sm:$0xff]  ;;  %v47_v49 = vld [vmem:[%s2360_s0 + $0x108] sm:$0xff] }
  0x1e   :  { %v144_v48 = vld [vmem:[%s2360_s0 + $0x410] sm:$0xff] }
  0x20   :  { %1047 = vmatpush1.bf16.msra.mxu0 %v1046_v26  ;;  %1095 = vmatpush1.bf16.msra.mxu1 %v1046_v26  ;;  %v135_v26 = vld [vmem:[%s2360_s0 + $0x3c8] sm:$0xff] }
  0x21   :  { %1048 = vmatprep.subr.bf16.mxu0 %v1105_v0  ;;  %1080 = vmatprep.subr.bf16.mxu1 %v1105_v0 }
  0x24   :  { %1050 = vmatpush1.bf16.msra.mxu0 %v1049_v29  ;;  %1096 = vmatpush1.bf16.msra.mxu1 %v1049_v29  ;;  %v37_v29 = vld [vmem:[%s2360_s0 + $0xb8] sm:$0xff] }
  0x25   :  { %1051 = vmatprep.subr.bf16.mxu0 %v1105_v0  ;;  %1081 = vmatprep.subr.bf16.mxu1 %v1105_v0 }
  0x28   :  { %1053 = vmatpush1.bf16.msra.mxu0 %v1052_v32  ;;  %1097 = vmatpush1.bf16.msra.mxu1 %v1052_v32  ;;  %v136_v32 = vld [vmem:[%s2360_s0 + $0x3d0] sm:$0xff] }
  0x29   :  { %1054 = vmatprep.subr.bf16.mxu0 %v1105_v0  ;;  %1082 = vmatprep.subr.bf16.mxu1 %v1105_v0 }
  0x2c   :  { %1056 = vmatpush1.bf16.msra.mxu0 %v1055_v35  ;;  %1098 = vmatpush1.bf16.msra.mxu1 %v1055_v35  ;;  %v38_v35 = vld [vmem:[%s2360_s0 + $0xc0] sm:$0xff] }
  0x2d   :  { %1057 = vmatprep.subr.bf16.mxu0 %v1105_v0  ;;  %1083 = vmatprep.subr.bf16.mxu1 %v1105_v0 }
  0x30   :  { %1059 = vmatpush1.bf16.msra.mxu0 %v1058_v38  ;;  %1099 = vmatpush1.bf16.msra.mxu1 %v1058_v38  ;;  %v141_v38 = vld [vmem:[%s2360_s0 + $0x3f8] sm:$0xff] }
  0x31   :  { %1060 = vmatprep.subr.bf16.mxu0 %v1105_v0  ;;  %1084 = vmatprep.subr.bf16.mxu1 %v1105_v0 }
  0x34   :  { %1062 = vmatpush1.bf16.msra.mxu0 %v1061_v41  ;;  %1100 = vmatpush1.bf16.msra.mxu1 %v1061_v41  ;;  %v43_v41 = vld [vmem:[%s2360_s0 + $0xe8] sm:$0xff] }
  0x35   :  { %1063 = vmatprep.subr.bf16.mxu0 %v1105_v0  ;;  %1085 = vmatprep.subr.bf16.mxu1 %v1105_v0 }
  0x38   :  { %1065 = vmatpush1.bf16.msra.mxu0 %v1064_v44  ;;  %1101 = vmatpush1.bf16.msra.mxu1 %v1064_v44  ;;  %v142_v44 = vld [vmem:[%s2360_s0 + $0x400] sm:$0xff] }
  0x39   :  { %1066 = vmatprep.subr.bf16.mxu0 %v1105_v0  ;;  %1086 = vmatprep.subr.bf16.mxu1 %v1105_v0 }
  0x3c   :  { %1068 = vmatpush1.bf16.msra.mxu0 %v1067_v47  ;;  %1102 = vmatpush1.bf16.msra.mxu1 %v1067_v47  ;;  %v44_v47 = vld [vmem:[%s2360_s0 + $0xf0] sm:$0xff] }
  0x3d   :  { %1069 = vmatprep.subr.bf16.mxu0 %v1105_v0  ;;  %1087 = vmatprep.subr.bf16.mxu1 %v1105_v0  ;;  %v120_v0 = vld [vmem:[%s2360_s0 + $0x350] sm:$0xff] }
  0x40   :  { %1071 = vmatpush1.bf16.msra.mxu0 %v1070_v50  ;;  %1103 = vmatpush1.bf16.msra.mxu1 %v1070_v50  ;;  %v147_v50 = vld [vmem:[%s2360_s0 + $0x428] sm:$0xff] }
  0x43   :  { %318 = vmatmul.mubr.f32.vlgmr.msra.gmra.mrb[0].mxu0 %v14_v51  ;;  %568 = vmatmul.mubr.f32.vlgmr.msra.gmra.mrb[0].mxu1 %v114_v52  ;;  %v46_v51 = vld [vmem:[%s2360_s0 + $0x100] sm:$0xff] }
  0x44   :  { %322 = vmatprep.mubr.f32.mxu0 %v17_v53  ;;  %572 = vmatprep.mubr.f32.mxu1 %v117_v54  ;;  %v146_v52 = vld [vmem:[%s2360_s0 + $0x420] sm:$0xff]  ;;  %v49_v53 = vld [vmem:[%s2360_s0 + $0x118] sm:$0xff] }
  0x45   :  { %v149_v54 = vld [vmem:[%s2360_s0 + $0x438] sm:$0xff] }
  0x47   :  { %323 = vmatmul.mubr.f32.gmra.mrb[2].mxu0 %v16_v55  ;;  %573 = vmatmul.mubr.f32.gmra.mrb[2].mxu1 %v116_v56  ;;  %v48_v55 = vld [vmem:[%s2360_s0 + $0x110] sm:$0xff] }
  0x48   :  { %327 = vmatprep.mubr.f32.mxu0 %v19_v57  ;;  %577 = vmatprep.mubr.f32.mxu1 %v119_v58  ;;  %v148_v56 = vld [vmem:[%s2360_s0 + $0x430] sm:$0xff]  ;;  %v51_v57 = vld [vmem:[%s2360_s0 + $0x128] sm:$0xff] }
  0x49   :  { %v151_v58 = vld [vmem:[%s2360_s0 + $0x448] sm:$0xff] }
  0x4b   :  { %328 = vmatmul.mubr.f32.gmra.mrb[4].mxu0 %v18_v59  ;;  %578 = vmatmul.mubr.f32.gmra.mrb[4].mxu1 %v118_v60  ;;  %v50_v59 = vld [vmem:[%s2360_s0 + $0x120] sm:$0xff] }
  0x4c   :  { %332 = vmatprep.mubr.f32.mxu0 %v21_v61  ;;  %582 = vmatprep.mubr.f32.mxu1 %v121_v62  ;;  %v150_v60 = vld [vmem:[%s2360_s0 + $0x440] sm:$0xff]  ;;  %v53_v61 = vld [vmem:[%s2360_s0 + $0x138] sm:$0xff] }
  0x4d   :  { %v153_v62 = vld [vmem:[%s2360_s0 + $0x458] sm:$0xff] }
  0x4f   :  { %333 = vmatmul.mubr.f32.gmra.mrb[6].mxu0 %v20_v63  ;;  %583 = vmatmul.mubr.f32.gmra.mrb[6].mxu1 %v120_v0  ;;  %v52_v63 = vld [vmem:[%s2360_s0 + $0x130] sm:$0xff] }
  0x50   :  { %337 = vmatprep.mubr.f32.mxu0 %v23_v1  ;;  %587 = vmatprep.mubr.f32.mxu1 %v123_v2  ;;  %v152_v0 = vld [vmem:[%s2360_s0 + $0x450] sm:$0xff]  ;;  %v55_v1 = vld [vmem:[%s2360_s0 + $0x148] sm:$0xff] }
  0x51   :  { %v155_v2 = vld [vmem:[%s2360_s0 + $0x468] sm:$0xff] }
  0x53   :  { %338 = vmatmul.mubr.f32.gmra.mrb[8].mxu0 %v22_v3  ;;  %588 = vmatmul.mubr.f32.gmra.mrb[8].mxu1 %v122_v4  ;;  %v54_v3 = vld [vmem:[%s2360_s0 + $0x140] sm:$0xff] }
  0x54   :  { %342 = vmatprep.mubr.f32.mxu0 %v25_v5  ;;  %592 = vmatprep.mubr.f32.mxu1 %v125_v6  ;;  %v154_v4 = vld [vmem:[%s2360_s0 + $0x460] sm:$0xff]  ;;  %v57_v5 = vld [vmem:[%s2360_s0 + $0x158] sm:$0xff] }
  0x55   :  { %v157_v6 = vld [vmem:[%s2360_s0 + $0x478] sm:$0xff] }
  0x57   :  { %343 = vmatmul.mubr.f32.gmra.mrb[10].mxu0 %v24_v7  ;;  %593 = vmatmul.mubr.f32.gmra.mrb[10].mxu1 %v124_v8  ;;  %v56_v7 = vld [vmem:[%s2360_s0 + $0x150] sm:$0xff] }
  0x58   :  { %347 = vmatprep.mubr.f32.mxu0 %v27_v9  ;;  %597 = vmatprep.mubr.f32.mxu1 %v127_v10  ;;  %v156_v8 = vld [vmem:[%s2360_s0 + $0x470] sm:$0xff]  ;;  %v59_v9 = vld [vmem:[%s2360_s0 + $0x168] sm:$0xff] }
  0x59   :  { %v159_v10 = vld [vmem:[%s2360_s0 + $0x488] sm:$0xff] }
  0x5b   :  { %348 = vmatmul.mubr.f32.gmra.mrb[12].mxu0 %v26_v11  ;;  %598 = vmatmul.mubr.f32.gmra.mrb[12].mxu1 %v126_v12  ;;  %v58_v11 = vld [vmem:[%s2360_s0 + $0x160] sm:$0xff] }
  0x5c   :  { %352 = vmatprep.mubr.f32.mxu0 %v29_v13  ;;  %602 = vmatprep.mubr.f32.mxu1 %v129_v14  ;;  %v158_v12 = vld [vmem:[%s2360_s0 + $0x480] sm:$0xff]  ;;  %v61_v13 = vld [vmem:[%s2360_s0 + $0x178] sm:$0xff] }
  0x5d   :  { %v161_v14 = vld [vmem:[%s2360_s0 + $0x498] sm:$0xff] }
  0x5f   :  { %353 = vmatmul.mubr.f32.gmra.mrb[14].mxu0 %v28_v15  ;;  %603 = vmatmul.mubr.f32.gmra.mrb[14].mxu1 %v128_v16  ;;  %v60_v15 = vld [vmem:[%s2360_s0 + $0x170] sm:$0xff] }
  0x60   :  { %357 = vmatprep.mubr.f32.mxu0 %v31_v17  ;;  %607 = vmatprep.mubr.f32.mxu1 %v131_v18  ;;  %v160_v16 = vld [vmem:[%s2360_s0 + $0x490] sm:$0xff]  ;;  %v63_v17 = vld [vmem:[%s2360_s0 + $0x188] sm:$0xff] }
  0x61   :  { %v163_v18 = vld [vmem:[%s2360_s0 + $0x4a8] sm:$0xff] }
  0x63   :  { %358 = vmatmul.mubr.f32.gmra.mrb[16].mxu0 %v30_v19  ;;  %608 = vmatmul.mubr.f32.gmra.mrb[16].mxu1 %v130_v20  ;;  %v62_v19 = vld [vmem:[%s2360_s0 + $0x180] sm:$0xff] }
  0x64   :  { %362 = vmatprep.mubr.f32.mxu0 %v33_v21  ;;  %612 = vmatprep.mubr.f32.mxu1 %v133_v22  ;;  %v162_v20 = vld [vmem:[%s2360_s0 + $0x4a0] sm:$0xff]  ;;  %v65_v21 = vld [vmem:[%s2360_s0 + $0x198] sm:$0xff] }
  0x65   :  { %v165_v22 = vld [vmem:[%s2360_s0 + $0x4b8] sm:$0xff] }
  0x67   :  { %363 = vmatmul.mubr.f32.gmra.mrb[18].mxu0 %v32_v23  ;;  %613 = vmatmul.mubr.f32.gmra.mrb[18].mxu1 %v132_v24  ;;  %v64_v23 = vld [vmem:[%s2360_s0 + $0x190] sm:$0xff] }
  0x68   :  { %367 = vmatprep.mubr.f32.mxu0 %v35_v25  ;;  %617 = vmatprep.mubr.f32.mxu1 %v135_v26  ;;  %v164_v24 = vld [vmem:[%s2360_s0 + $0x4b0] sm:$0xff]  ;;  %v67_v25 = vld [vmem:[%s2360_s0 + $0x1a8] sm:$0xff] }
  0x69   :  { %v167_v26 = vld [vmem:[%s2360_s0 + $0x4c8] sm:$0xff] }
  0x6b   :  { %368 = vmatmul.mubr.f32.gmra.mrb[20].mxu0 %v34_v27  ;;  %618 = vmatmul.mubr.f32.gmra.mrb[20].mxu1 %v134_v28  ;;  %v66_v27 = vld [vmem:[%s2360_s0 + $0x1a0] sm:$0xff] }
  0x6c   :  { %372 = vmatprep.mubr.f32.mxu0 %v37_v29  ;;  %622 = vmatprep.mubr.f32.mxu1 %v137_v30  ;;  %v166_v28 = vld [vmem:[%s2360_s0 + $0x4c0] sm:$0xff]  ;;  %v69_v29 = vld [vmem:[%s2360_s0 + $0x1b8] sm:$0xff] }
  0x6d   :  { %v169_v30 = vld [vmem:[%s2360_s0 + $0x4d8] sm:$0xff] }
  0x6f   :  { %373 = vmatmul.mubr.f32.gmra.mrb[22].mxu0 %v36_v31  ;;  %623 = vmatmul.mubr.f32.gmra.mrb[22].mxu1 %v136_v32  ;;  %v68_v31 = vld [vmem:[%s2360_s0 + $0x1b0] sm:$0xff] }
  0x70   :  { %377 = vmatprep.mubr.f32.mxu0 %v39_v33  ;;  %627 = vmatprep.mubr.f32.mxu1 %v139_v34  ;;  %v168_v32 = vld [vmem:[%s2360_s0 + $0x4d0] sm:$0xff]  ;;  %v71_v33 = vld [vmem:[%s2360_s0 + $0x1c8] sm:$0xff] }
  0x71   :  { %v171_v34 = vld [vmem:[%s2360_s0 + $0x4e8] sm:$0xff] }
  0x73   :  { %378 = vmatmul.mubr.f32.gmra.mrb[24].mxu0 %v38_v35  ;;  %628 = vmatmul.mubr.f32.gmra.mrb[24].mxu1 %v138_v36  ;;  %v70_v35 = vld [vmem:[%s2360_s0 + $0x1c0] sm:$0xff] }
  0x74   :  { %382 = vmatprep.mubr.f32.mxu0 %v41_v37  ;;  %632 = vmatprep.mubr.f32.mxu1 %v141_v38  ;;  %v170_v36 = vld [vmem:[%s2360_s0 + $0x4e0] sm:$0xff]  ;;  %v73_v37 = vld [vmem:[%s2360_s0 + $0x1d8] sm:$0xff] }
  0x75   :  { %v173_v38 = vld [vmem:[%s2360_s0 + $0x4f8] sm:$0xff] }
  0x77   :  { %383 = vmatmul.mubr.f32.gmra.mrb[26].mxu0 %v40_v39  ;;  %633 = vmatmul.mubr.f32.gmra.mrb[26].mxu1 %v140_v40  ;;  %v72_v39 = vld [vmem:[%s2360_s0 + $0x1d0] sm:$0xff] }
  0x78   :  { %387 = vmatprep.mubr.f32.mxu0 %v43_v41  ;;  %637 = vmatprep.mubr.f32.mxu1 %v143_v42  ;;  %v172_v40 = vld [vmem:[%s2360_s0 + $0x4f0] sm:$0xff]  ;;  %v75_v41 = vld [vmem:[%s2360_s0 + $0x1e8] sm:$0xff] }
  0x79   :  { %v175_v42 = vld [vmem:[%s2360_s0 + $0x508] sm:$0xff] }
  0x7b   :  { %388 = vmatmul.mubr.f32.gmra.mrb[28].mxu0 %v42_v43  ;;  %638 = vmatmul.mubr.f32.gmra.mrb[28].mxu1 %v142_v44  ;;  %v74_v43 = vld [vmem:[%s2360_s0 + $0x1e0] sm:$0xff] }
  0x7c   :  { %392 = vmatprep.mubr.f32.mxu0 %v45_v45  ;;  %642 = vmatprep.mubr.f32.mxu1 %v145_v46  ;;  %v174_v44 = vld [vmem:[%s2360_s0 + $0x500] sm:$0xff]  ;;  %v77_v45 = vld [vmem:[%s2360_s0 + $0x1f8] sm:$0xff] }
  0x7d   :  { %v177_v46 = vld [vmem:[%s2360_s0 + $0x518] sm:$0xff] }
  0x7f   :  { %393 = vmatmul.mubr.f32.gmra.mrb[30].mxu0 %v44_v47  ;;  %643 = vmatmul.mubr.f32.gmra.mrb[30].mxu1 %v144_v48  ;;  %v76_v47 = vld [vmem:[%s2360_s0 + $0x1f0] sm:$0xff] }
  0x80   :  { %397 = vmatprep.mubr.f32.mxu0 %v47_v49  ;;  %647 = vmatprep.mubr.f32.mxu1 %v147_v50  ;;  %v176_v48 = vld [vmem:[%s2360_s0 + $0x510] sm:$0xff]  ;;  %v79_v49 = vld [vmem:[%s2360_s0 + $0x208] sm:$0xff] }
  0x81   :  { %v179_v50 = vld [vmem:[%s2360_s0 + $0x528] sm:$0xff] }
  0x83   :  { %398 = vmatmul.mubr.f32.gmra.mrb[32].mxu0 %v46_v51  ;;  %648 = vmatmul.mubr.f32.gmra.mrb[32].mxu1 %v146_v52  ;;  %v78_v51 = vld [vmem:[%s2360_s0 + $0x200] sm:$0xff] }
  0x84   :  { %402 = vmatprep.mubr.f32.mxu0 %v49_v53  ;;  %652 = vmatprep.mubr.f32.mxu1 %v149_v54  ;;  %v178_v52 = vld [vmem:[%s2360_s0 + $0x520] sm:$0xff]  ;;  %v81_v53 = vld [vmem:[%s2360_s0 + $0x218] sm:$0xff] }
  0x85   :  { %v181_v54 = vld [vmem:[%s2360_s0 + $0x538] sm:$0xff] }
  0x87   :  { %403 = vmatmul.mubr.f32.gmra.mrb[34].mxu0 %v48_v55  ;;  %653 = vmatmul.mubr.f32.gmra.mrb[34].mxu1 %v148_v56  ;;  %v80_v55 = vld [vmem:[%s2360_s0 + $0x210] sm:$0xff] }
  0x88   :  { %407 = vmatprep.mubr.f32.mxu0 %v51_v57  ;;  %657 = vmatprep.mubr.f32.mxu1 %v151_v58  ;;  %v180_v56 = vld [vmem:[%s2360_s0 + $0x530] sm:$0xff]  ;;  %v83_v57 = vld [vmem:[%s2360_s0 + $0x228] sm:$0xff] }
  0x89   :  { %v183_v58 = vld [vmem:[%s2360_s0 + $0x548] sm:$0xff] }
  0x8b   :  { %408 = vmatmul.mubr.f32.gmra.mrb[36].mxu0 %v50_v59  ;;  %658 = vmatmul.mubr.f32.gmra.mrb[36].mxu1 %v150_v60  ;;  %v82_v59 = vld [vmem:[%s2360_s0 + $0x220] sm:$0xff] }
  0x8c   :  { %412 = vmatprep.mubr.f32.mxu0 %v53_v61  ;;  %662 = vmatprep.mubr.f32.mxu1 %v153_v62  ;;  %v182_v60 = vld [vmem:[%s2360_s0 + $0x540] sm:$0xff]  ;;  %v85_v61 = vld [vmem:[%s2360_s0 + $0x238] sm:$0xff] }
  0x8d   :  { %v185_v62 = vld [vmem:[%s2360_s0 + $0x558] sm:$0xff] }
  0x8f   :  { %413 = vmatmul.mubr.f32.gmra.mrb[38].mxu0 %v52_v63  ;;  %663 = vmatmul.mubr.f32.gmra.mrb[38].mxu1 %v152_v0  ;;  %v84_v63 = vld [vmem:[%s2360_s0 + $0x230] sm:$0xff] }
  0x90   :  { %417 = vmatprep.mubr.f32.mxu0 %v55_v1  ;;  %667 = vmatprep.mubr.f32.mxu1 %v155_v2  ;;  %v184_v0 = vld [vmem:[%s2360_s0 + $0x550] sm:$0xff]  ;;  %v87_v1 = vld [vmem:[%s2360_s0 + $0x248] sm:$0xff] }
  0x91   :  { %v187_v2 = vld [vmem:[%s2360_s0 + $0x568] sm:$0xff] }
  0x93   :  { %418 = vmatmul.mubr.f32.gmra.mrb[40].mxu0 %v54_v3  ;;  %668 = vmatmul.mubr.f32.gmra.mrb[40].mxu1 %v154_v4  ;;  %v86_v3 = vld [vmem:[%s2360_s0 + $0x240] sm:$0xff] }
  0x94   :  { %422 = vmatprep.mubr.f32.mxu0 %v57_v5  ;;  %672 = vmatprep.mubr.f32.mxu1 %v157_v6  ;;  %v186_v4 = vld [vmem:[%s2360_s0 + $0x560] sm:$0xff]  ;;  %v89_v5 = vld [vmem:[%s2360_s0 + $0x258] sm:$0xff] }
  0x95   :  { %v189_v6 = vld [vmem:[%s2360_s0 + $0x578] sm:$0xff] }
  0x97   :  { %423 = vmatmul.mubr.f32.gmra.mrb[42].mxu0 %v56_v7  ;;  %673 = vmatmul.mubr.f32.gmra.mrb[42].mxu1 %v156_v8  ;;  %v88_v7 = vld [vmem:[%s2360_s0 + $0x250] sm:$0xff] }
  0x98   :  { %427 = vmatprep.mubr.f32.mxu0 %v59_v9  ;;  %677 = vmatprep.mubr.f32.mxu1 %v159_v10  ;;  %v188_v8 = vld [vmem:[%s2360_s0 + $0x570] sm:$0xff]  ;;  %v91_v9 = vld [vmem:[%s2360_s0 + $0x268] sm:$0xff] }
  0x99   :  { %v191_v10 = vld [vmem:[%s2360_s0 + $0x588] sm:$0xff] }
  0x9b   :  { %428 = vmatmul.mubr.f32.gmra.mrb[44].mxu0 %v58_v11  ;;  %678 = vmatmul.mubr.f32.gmra.mrb[44].mxu1 %v158_v12  ;;  %v90_v11 = vld [vmem:[%s2360_s0 + $0x260] sm:$0xff] }
  0x9c   :  { %432 = vmatprep.mubr.f32.mxu0 %v61_v13  ;;  %682 = vmatprep.mubr.f32.mxu1 %v161_v14  ;;  %v190_v12 = vld [vmem:[%s2360_s0 + $0x580] sm:$0xff]  ;;  %v93_v13 = vld [vmem:[%s2360_s0 + $0x278] sm:$0xff] }
  0x9d   :  { %v193_v14 = vld [vmem:[%s2360_s0 + $0x598] sm:$0xff] }
  0x9f   :  { %433 = vmatmul.mubr.f32.gmra.mrb[46].mxu0 %v60_v15  ;;  %683 = vmatmul.mubr.f32.gmra.mrb[46].mxu1 %v160_v16  ;;  %v92_v15 = vld [vmem:[%s2360_s0 + $0x270] sm:$0xff] }
  0xa0   :  { %437 = vmatprep.mubr.f32.mxu0 %v63_v17  ;;  %687 = vmatprep.mubr.f32.mxu1 %v163_v18  ;;  %v192_v16 = vld [vmem:[%s2360_s0 + $0x590] sm:$0xff]  ;;  %v95_v17 = vld [vmem:[%s2360_s0 + $0x288] sm:$0xff] }
  0xa1   :  { %v195_v18 = vld [vmem:[%s2360_s0 + $0x5a8] sm:$0xff] }
  0xa3   :  { %438 = vmatmul.mubr.f32.gmra.mrb[48].mxu0 %v62_v19  ;;  %688 = vmatmul.mubr.f32.gmra.mrb[48].mxu1 %v162_v20  ;;  %v94_v19 = vld [vmem:[%s2360_s0 + $0x280] sm:$0xff] }
  0xa4   :  { %442 = vmatprep.mubr.f32.mxu0 %v65_v21  ;;  %692 = vmatprep.mubr.f32.mxu1 %v165_v22  ;;  %v194_v20 = vld [vmem:[%s2360_s0 + $0x5a0] sm:$0xff]  ;;  %v97_v21 = vld [vmem:[%s2360_s0 + $0x298] sm:$0xff] }
  0xa5   :  { %v197_v22 = vld [vmem:[%s2360_s0 + $0x5b8] sm:$0xff] }
  0xa7   :  { %443 = vmatmul.mubr.f32.gmra.mrb[50].mxu0 %v64_v23  ;;  %693 = vmatmul.mubr.f32.gmra.mrb[50].mxu1 %v164_v24  ;;  %v96_v23 = vld [vmem:[%s2360_s0 + $0x290] sm:$0xff] }
  0xa8   :  { %447 = vmatprep.mubr.f32.mxu0 %v67_v25  ;;  %697 = vmatprep.mubr.f32.mxu1 %v167_v26  ;;  %v196_v24 = vld [vmem:[%s2360_s0 + $0x5b0] sm:$0xff]  ;;  %v99_v25 = vld [vmem:[%s2360_s0 + $0x2a8] sm:$0xff] }
  0xa9   :  { %v199_v26 = vld [vmem:[%s2360_s0 + $0x5c8] sm:$0xff] }
  0xab   :  { %448 = vmatmul.mubr.f32.gmra.mrb[52].mxu0 %v66_v27  ;;  %698 = vmatmul.mubr.f32.gmra.mrb[52].mxu1 %v166_v28  ;;  %v98_v27 = vld [vmem:[%s2360_s0 + $0x2a0] sm:$0xff] }
  0xac   :  { %452 = vmatprep.mubr.f32.mxu0 %v69_v29  ;;  %702 = vmatprep.mubr.f32.mxu1 %v169_v30  ;;  %v198_v28 = vld [vmem:[%s2360_s0 + $0x5c0] sm:$0xff]  ;;  %v101_v29 = vld [vmem:[%s2360_s0 + $0x2b8] sm:$0xff] }
  0xad   :  { %v201_v30 = vld [vmem:[%s2360_s0 + $0x5d8] sm:$0xff] }
  0xaf   :  { %453 = vmatmul.mubr.f32.gmra.mrb[54].mxu0 %v68_v31  ;;  %703 = vmatmul.mubr.f32.gmra.mrb[54].mxu1 %v168_v32  ;;  %v100_v31 = vld [vmem:[%s2360_s0 + $0x2b0] sm:$0xff] }
  0xb0   :  { %457 = vmatprep.mubr.f32.mxu0 %v71_v33  ;;  %707 = vmatprep.mubr.f32.mxu1 %v171_v34  ;;  %v200_v32 = vld [vmem:[%s2360_s0 + $0x5d0] sm:$0xff]  ;;  %v103_v33 = vld [vmem:[%s2360_s0 + $0x2c8] sm:$0xff] }
  0xb1   :  { %v203_v34 = vld [vmem:[%s2360_s0 + $0x5e8] sm:$0xff] }
  0xb3   :  { %458 = vmatmul.mubr.f32.gmra.mrb[56].mxu0 %v70_v35  ;;  %708 = vmatmul.mubr.f32.gmra.mrb[56].mxu1 %v170_v36  ;;  %v102_v35 = vld [vmem:[%s2360_s0 + $0x2c0] sm:$0xff] }
  0xb4   :  { %462 = vmatprep.mubr.f32.mxu0 %v73_v37  ;;  %712 = vmatprep.mubr.f32.mxu1 %v173_v38  ;;  %v202_v36 = vld [vmem:[%s2360_s0 + $0x5e0] sm:$0xff]  ;;  %v105_v37 = vld [vmem:[%s2360_s0 + $0x2d8] sm:$0xff] }
  0xb5   :  { %v205_v38 = vld [vmem:[%s2360_s0 + $0x5f8] sm:$0xff] }
  0xb7   :  { %463 = vmatmul.mubr.f32.gmra.mrb[58].mxu0 %v72_v39  ;;  %713 = vmatmul.mubr.f32.gmra.mrb[58].mxu1 %v172_v40  ;;  %v104_v39 = vld [vmem:[%s2360_s0 + $0x2d0] sm:$0xff] }
  0xb8   :  { %467 = vmatprep.mubr.f32.mxu0 %v75_v41  ;;  %717 = vmatprep.mubr.f32.mxu1 %v175_v42  ;;  %v204_v40 = vld [vmem:[%s2360_s0 + $0x5f0] sm:$0xff]  ;;  %v107_v41 = vld [vmem:[%s2360_s0 + $0x2e8] sm:$0xff] }
  0xb9   :  { %v207_v42 = vld [vmem:[%s2360_s0 + $0x608] sm:$0xff] }
  0xbb   :  { %468 = vmatmul.mubr.f32.gmra.mrb[60].mxu0 %v74_v43  ;;  %718 = vmatmul.mubr.f32.gmra.mrb[60].mxu1 %v174_v44  ;;  %v106_v43 = vld [vmem:[%s2360_s0 + $0x2e0] sm:$0xff] }
  0xbc   :  { %472 = vmatprep.mubr.f32.mxu0 %v77_v45  ;;  %722 = vmatprep.mubr.f32.mxu1 %v177_v46  ;;  %v206_v44 = vld [vmem:[%s2360_s0 + $0x600] sm:$0xff]  ;;  %v109_v45 = vld [vmem:[%s2360_s0 + $0x2f8] sm:$0xff] }
  0xbd   :  { %v209_v46 = vld [vmem:[%s2360_s0 + $0x618] sm:$0xff] }
  0xbf   :  { %473 = vmatmul.mubr.f32.gmra.mrb[62].mxu0 %v76_v47  ;;  %723 = vmatmul.mubr.f32.gmra.mrb[62].mxu1 %v176_v48  ;;  %v108_v47 = vld [vmem:[%s2360_s0 + $0x2f0] sm:$0xff] }
  0xc0   :  { %477 = vmatprep.mubr.f32.mxu0 %v79_v49  ;;  %727 = vmatprep.mubr.f32.mxu1 %v179_v50  ;;  %v208_v48 = vld [vmem:[%s2360_s0 + $0x610] sm:$0xff]  ;;  %v111_v49 = vld [vmem:[%s2360_s0 + $0x308] sm:$0xff] }
  0xc1   :  { %v211_v50 = vld [vmem:[%s2360_s0 + $0x628] sm:$0xff] }
  0xc3   :  { %478 = vmatmul.mubr.f32.gmra.mrb[64].mxu0 %v78_v51  ;;  %728 = vmatmul.mubr.f32.gmra.mrb[64].mxu1 %v178_v52  ;;  %v110_v51 = vld [vmem:[%s2360_s0 + $0x300] sm:$0xff] }
  0xc4   :  { %482 = vmatprep.mubr.f32.mxu0 %v81_v53  ;;  %732 = vmatprep.mubr.f32.mxu1 %v181_v54  ;;  %v210_v52 = vld [vmem:[%s2360_s0 + $0x620] sm:$0xff]  ;;  %v113_v53 = vld [vmem:[%s2360_s0 + $0x318] sm:$0xff] }
  0xc5   :  { %v213_v54 = vld [vmem:[%s2360_s0 + $0x638] sm:$0xff] }
  0xc7   :  { %483 = vmatmul.mubr.f32.gmra.mrb[66].mxu0 %v80_v55  ;;  %733 = vmatmul.mubr.f32.gmra.mrb[66].mxu1 %v180_v56  ;;  %v112_v55 = vld [vmem:[%s2360_s0 + $0x310] sm:$0xff] }
  0xc8   :  { %487 = vmatprep.mubr.f32.mxu0 %v83_v57  ;;  %737 = vmatprep.mubr.f32.mxu1 %v183_v58  ;;  %v212_v56 = vld [vmem:[%s2360_s0 + $0x630] sm:$0xff]  ;;  %v1857_v57 = vld [vmem:[%s2361_s2] ss:$0 sm:$0xff] }
  0xcb   :  { %488 = vmatmul.mubr.f32.gmra.mrb[68].mxu0 %v82_v59  ;;  %738 = vmatmul.mubr.f32.gmra.mrb[68].mxu1 %v182_v60 }
  0xcc   :  { %492 = vmatprep.mubr.f32.mxu0 %v85_v61  ;;  %742 = vmatprep.mubr.f32.mxu1 %v185_v62 }
  0xcf   :  { %493 = vmatmul.mubr.f32.gmra.mrb[70].mxu0 %v84_v63  ;;  %743 = vmatmul.mubr.f32.gmra.mrb[70].mxu1 %v184_v0 }
  0xd0   :  { %497 = vmatprep.mubr.f32.mxu0 %v87_v1  ;;  %747 = vmatprep.mubr.f32.mxu1 %v187_v2 }
  0xd3   :  { %498 = vmatmul.mubr.f32.gmra.mrb[72].mxu0 %v86_v3  ;;  %748 = vmatmul.mubr.f32.gmra.mrb[72].mxu1 %v186_v4 }
  0xd4   :  { %502 = vmatprep.mubr.f32.mxu0 %v89_v5  ;;  %752 = vmatprep.mubr.f32.mxu1 %v189_v6 }
  0xd7   :  { %503 = vmatmul.mubr.f32.gmra.mrb[74].mxu0 %v88_v7  ;;  %753 = vmatmul.mubr.f32.gmra.mrb[74].mxu1 %v188_v8 }
  0xd8   :  { %507 = vmatprep.mubr.f32.mxu0 %v91_v9  ;;  %757 = vmatprep.mubr.f32.mxu1 %v191_v10 }
  0xdb   :  { %508 = vmatmul.mubr.f32.gmra.mrb[76].mxu0 %v90_v11  ;;  %758 = vmatmul.mubr.f32.gmra.mrb[76].mxu1 %v190_v12 }
  0xdc   :  { %512 = vmatprep.mubr.f32.mxu0 %v93_v13  ;;  %762 = vmatprep.mubr.f32.mxu1 %v193_v14 }
  0xdf   :  { %513 = vmatmul.mubr.f32.gmra.mrb[78].mxu0 %v92_v15  ;;  %763 = vmatmul.mubr.f32.gmra.mrb[78].mxu1 %v192_v16 }
  0xe0   :  { %517 = vmatprep.mubr.f32.mxu0 %v95_v17  ;;  %767 = vmatprep.mubr.f32.mxu1 %v195_v18 }
  0xe3   :  { %518 = vmatmul.mubr.f32.gmra.mrb[80].mxu0 %v94_v19  ;;  %768 = vmatmul.mubr.f32.gmra.mrb[80].mxu1 %v194_v20 }
  0xe4   :  { %522 = vmatprep.mubr.f32.mxu0 %v97_v21  ;;  %772 = vmatprep.mubr.f32.mxu1 %v197_v22 }
  0xe7   :  { %523 = vmatmul.mubr.f32.gmra.mrb[82].mxu0 %v96_v23  ;;  %773 = vmatmul.mubr.f32.gmra.mrb[82].mxu1 %v196_v24 }
  0xe8   :  { %527 = vmatprep.mubr.f32.mxu0 %v99_v25  ;;  %777 = vmatprep.mubr.f32.mxu1 %v199_v26 }
  0xeb   :  { %528 = vmatmul.mubr.f32.gmra.mrb[84].mxu0 %v98_v27  ;;  %778 = vmatmul.mubr.f32.gmra.mrb[84].mxu1 %v198_v28 }
  0xec   :  { %532 = vmatprep.mubr.f32.mxu0 %v101_v29  ;;  %782 = vmatprep.mubr.f32.mxu1 %v201_v30 }
  0xef   :  { %533 = vmatmul.mubr.f32.gmra.mrb[86].mxu0 %v100_v31  ;;  %783 = vmatmul.mubr.f32.gmra.mrb[86].mxu1 %v200_v32 }
  0xf0   :  { %537 = vmatprep.mubr.f32.mxu0 %v103_v33  ;;  %787 = vmatprep.mubr.f32.mxu1 %v203_v34 }
  0xf3   :  { %538 = vmatmul.mubr.f32.gmra.mrb[88].mxu0 %v102_v35  ;;  %788 = vmatmul.mubr.f32.gmra.mrb[88].mxu1 %v202_v36 }
  0xf4   :  { %542 = vmatprep.mubr.f32.mxu0 %v105_v37  ;;  %792 = vmatprep.mubr.f32.mxu1 %v205_v38 }
  0xf7   :  { %543 = vmatmul.mubr.f32.gmra.mrb[90].mxu0 %v104_v39  ;;  %793 = vmatmul.mubr.f32.gmra.mrb[90].mxu1 %v204_v40 }
  0xf8   :  { %547 = vmatprep.mubr.f32.mxu0 %v107_v41  ;;  %797 = vmatprep.mubr.f32.mxu1 %v207_v42 }
  0xfb   :  { %548 = vmatmul.mubr.f32.gmra.mrb[92].mxu0 %v106_v43  ;;  %798 = vmatmul.mubr.f32.gmra.mrb[92].mxu1 %v206_v44 }
  0xfc   :  { %552 = vmatprep.mubr.f32.mxu0 %v109_v45  ;;  %802 = vmatprep.mubr.f32.mxu1 %v209_v46 }
  0xff   :  { %553 = vmatmul.mubr.f32.gmra.mrb[94].mxu0 %v108_v47  ;;  %803 = vmatmul.mubr.f32.gmra.mrb[94].mxu1 %v208_v48 }
 0x100   :  { %557 = vmatprep.mubr.f32.mxu0 %v111_v49  ;;  %807 = vmatprep.mubr.f32.mxu1 %v211_v50 }
 0x103   :  { %558 = vmatmul.mubr.f32.gmra.mrb[96].mxu0 %v110_v51  ;;  %808 = vmatmul.mubr.f32.gmra.mrb[96].mxu1 %v210_v52 }
 0x104   :  { %562 = vmatprep.mubr.f32.mxu0 %v113_v53  ;;  %812 = vmatprep.mubr.f32.mxu1 %v213_v54 }
 0x107   :  { %563 = vmatmul.mubr.f32.gmra.mrb[98].mxu0 %v112_v55  ;;  %813 = vmatmul.mubr.f32.gmra.mrb[98].mxu1 %v212_v56 }
 0x116   :  { %v319_v58 = vpop.f32.mrb[0].mxu0  ;;  %v569_v59 = vpop.f32.mrb[0].mxu1 }
 0x117   :  { %v320_v60 = vadd.f32 %v1857_v57, %v319_v58  ;;  %v570_v61 = vadd.f32 %v1857_v57, %v569_v59  ;;  %v321_v62 = vpop.f32.mrb[1].mxu0  ;;  %v571_v63 = vpop.f32.mrb[1].mxu1 }
 0x119   :  { %v818_v0 = vmax.f32 %v320_v60, 0.0  ;;  %v868_v1 = vmax.f32 %v570_v61, 0.0 }
 0x11a   :  { %v324_v2 = vpop.f32.mrb[2].mxu0  ;;  %v574_v3 = vpop.f32.mrb[2].mxu1 }
 0x11b   :  { %919 = vst.msk [vmem:[%s2362_s3] sm:$0xff] %vm918_vm0, %v818_v0  ;;  %969 = vst.msk [vmem:[%s2362_s3 + $0x190] sm:$0xff] %vm918_vm0, %v868_v1  ;;  %v325_v4 = vadd.f32 %v1857_v57, %v324_v2  ;;  %v575_v5 = vadd.f32 %v1857_v57, %v574_v3  ;;  %v326_v6 = vpop.f32.mrb[3].mxu0  ;;  %v576_v7 = vpop.f32.mrb[3].mxu1 }
 0x11d   :  { %v819_v8 = vmax.f32 %v325_v4, 0.0  ;;  %v869_v9 = vmax.f32 %v575_v5, 0.0 }
 0x11e   :  { %v329_v10 = vpop.f32.mrb[4].mxu0  ;;  %v579_v11 = vpop.f32.mrb[4].mxu1 }
 0x11f   :  { %920 = vst.msk [vmem:[%s2362_s3 + $0x8] sm:$0xff] %vm918_vm0, %v819_v8  ;;  %970 = vst.msk [vmem:[%s2362_s3 + $0x198] sm:$0xff] %vm918_vm0, %v869_v9  ;;  %v330_v12 = vadd.f32 %v1857_v57, %v329_v10  ;;  %v580_v13 = vadd.f32 %v1857_v57, %v579_v11  ;;  %v331_v14 = vpop.f32.mrb[5].mxu0  ;;  %v581_v15 = vpop.f32.mrb[5].mxu1 }
 0x121   :  { %v820_v16 = vmax.f32 %v330_v12, 0.0  ;;  %v870_v17 = vmax.f32 %v580_v13, 0.0 }
 0x122   :  { %v334_v18 = vpop.f32.mrb[6].mxu0  ;;  %v584_v19 = vpop.f32.mrb[6].mxu1 }
 0x123   :  { %921 = vst.msk [vmem:[%s2362_s3 + $0x10] sm:$0xff] %vm918_vm0, %v820_v16  ;;  %971 = vst.msk [vmem:[%s2362_s3 + $0x1a0] sm:$0xff] %vm918_vm0, %v870_v17  ;;  %v335_v20 = vadd.f32 %v1857_v57, %v334_v18  ;;  %v585_v21 = vadd.f32 %v1857_v57, %v584_v19  ;;  %v336_v22 = vpop.f32.mrb[7].mxu0  ;;  %v586_v23 = vpop.f32.mrb[7].mxu1 }
 0x125   :  { %v821_v24 = vmax.f32 %v335_v20, 0.0  ;;  %v871_v25 = vmax.f32 %v585_v21, 0.0 }
 0x126   :  { %v339_v26 = vpop.f32.mrb[8].mxu0  ;;  %v589_v27 = vpop.f32.mrb[8].mxu1 }
 0x127   :  { %922 = vst.msk [vmem:[%s2362_s3 + $0x18] sm:$0xff] %vm918_vm0, %v821_v24  ;;  %972 = vst.msk [vmem:[%s2362_s3 + $0x1a8] sm:$0xff] %vm918_vm0, %v871_v25  ;;  %v340_v28 = vadd.f32 %v1857_v57, %v339_v26  ;;  %v590_v29 = vadd.f32 %v1857_v57, %v589_v27  ;;  %v341_v30 = vpop.f32.mrb[9].mxu0  ;;  %v591_v31 = vpop.f32.mrb[9].mxu1 }
 0x129   :  { %v822_v32 = vmax.f32 %v340_v28, 0.0  ;;  %v872_v33 = vmax.f32 %v590_v29, 0.0 }
 0x12a   :  { %v344_v34 = vpop.f32.mrb[10].mxu0  ;;  %v594_v35 = vpop.f32.mrb[10].mxu1 }
 0x12b   :  { %923 = vst.msk [vmem:[%s2362_s3 + $0x20] sm:$0xff] %vm918_vm0, %v822_v32  ;;  %973 = vst.msk [vmem:[%s2362_s3 + $0x1b0] sm:$0xff] %vm918_vm0, %v872_v33  ;;  %v345_v36 = vadd.f32 %v1857_v57, %v344_v34  ;;  %v595_v37 = vadd.f32 %v1857_v57, %v594_v35  ;;  %v346_v38 = vpop.f32.mrb[11].mxu0  ;;  %v596_v39 = vpop.f32.mrb[11].mxu1 }
 0x12d   :  { %v823_v40 = vmax.f32 %v345_v36, 0.0  ;;  %v873_v41 = vmax.f32 %v595_v37, 0.0 }
 0x12e   :  { %v349_v42 = vpop.f32.mrb[12].mxu0  ;;  %v599_v43 = vpop.f32.mrb[12].mxu1 }
 0x12f   :  { %924 = vst.msk [vmem:[%s2362_s3 + $0x28] sm:$0xff] %vm918_vm0, %v823_v40  ;;  %974 = vst.msk [vmem:[%s2362_s3 + $0x1b8] sm:$0xff] %vm918_vm0, %v873_v41  ;;  %v350_v44 = vadd.f32 %v1857_v57, %v349_v42  ;;  %v600_v45 = vadd.f32 %v1857_v57, %v599_v43  ;;  %v351_v46 = vpop.f32.mrb[13].mxu0  ;;  %v601_v47 = vpop.f32.mrb[13].mxu1 }
 0x131   :  { %v824_v48 = vmax.f32 %v350_v44, 0.0  ;;  %v874_v49 = vmax.f32 %v600_v45, 0.0 }
 0x132   :  { %v354_v50 = vpop.f32.mrb[14].mxu0  ;;  %v604_v51 = vpop.f32.mrb[14].mxu1 }
 0x133   :  { %925 = vst.msk [vmem:[%s2362_s3 + $0x30] sm:$0xff] %vm918_vm0, %v824_v48  ;;  %975 = vst.msk [vmem:[%s2362_s3 + $0x1c0] sm:$0xff] %vm918_vm0, %v874_v49  ;;  %v355_v52 = vadd.f32 %v1857_v57, %v354_v50  ;;  %v605_v53 = vadd.f32 %v1857_v57, %v604_v51  ;;  %v356_v54 = vpop.f32.mrb[15].mxu0  ;;  %v606_v55 = vpop.f32.mrb[15].mxu1 }
 0x135   :  { %v825_v56 = vmax.f32 %v355_v52, 0.0  ;;  %v875_v58 = vmax.f32 %v605_v53, 0.0 }
 0x136   :  { %v359_v59 = vpop.f32.mrb[16].mxu0  ;;  %v609_v60 = vpop.f32.mrb[16].mxu1 }
 0x137   :  { %926 = vst.msk [vmem:[%s2362_s3 + $0x38] sm:$0xff] %vm918_vm0, %v825_v56  ;;  %976 = vst.msk [vmem:[%s2362_s3 + $0x1c8] sm:$0xff] %vm918_vm0, %v875_v58  ;;  %v360_v61 = vadd.f32 %v1857_v57, %v359_v59  ;;  %v610_v62 = vadd.f32 %v1857_v57, %v609_v60  ;;  %v361_v63 = vpop.f32.mrb[17].mxu0  ;;  %v611_v0 = vpop.f32.mrb[17].mxu1 }
 0x139   :  { %v826_v1 = vmax.f32 %v360_v61, 0.0  ;;  %v876_v2 = vmax.f32 %v610_v62, 0.0 }
 0x13a   :  { %v364_v3 = vpop.f32.mrb[18].mxu0  ;;  %v614_v4 = vpop.f32.mrb[18].mxu1 }
 0x13b   :  { %927 = vst.msk [vmem:[%s2362_s3 + $0x40] sm:$0xff] %vm918_vm0, %v826_v1  ;;  %977 = vst.msk [vmem:[%s2362_s3 + $0x1d0] sm:$0xff] %vm918_vm0, %v876_v2  ;;  %v365_v5 = vadd.f32 %v1857_v57, %v364_v3  ;;  %v615_v6 = vadd.f32 %v1857_v57, %v614_v4  ;;  %v366_v7 = vpop.f32.mrb[19].mxu0  ;;  %v616_v8 = vpop.f32.mrb[19].mxu1 }
 0x13d   :  { %v827_v9 = vmax.f32 %v365_v5, 0.0  ;;  %v877_v10 = vmax.f32 %v615_v6, 0.0 }
 0x13e   :  { %v369_v11 = vpop.f32.mrb[20].mxu0  ;;  %v619_v12 = vpop.f32.mrb[20].mxu1 }
 0x13f   :  { %928 = vst.msk [vmem:[%s2362_s3 + $0x48] sm:$0xff] %vm918_vm0, %v827_v9  ;;  %978 = vst.msk [vmem:[%s2362_s3 + $0x1d8] sm:$0xff] %vm918_vm0, %v877_v10  ;;  %v370_v13 = vadd.f32 %v1857_v57, %v369_v11  ;;  %v620_v14 = vadd.f32 %v1857_v57, %v619_v12  ;;  %v371_v15 = vpop.f32.mrb[21].mxu0  ;;  %v621_v16 = vpop.f32.mrb[21].mxu1 }
 0x141   :  { %v828_v17 = vmax.f32 %v370_v13, 0.0  ;;  %v878_v18 = vmax.f32 %v620_v14, 0.0 }
 0x142   :  { %v374_v19 = vpop.f32.mrb[22].mxu0  ;;  %v624_v20 = vpop.f32.mrb[22].mxu1 }
 0x143   :  { %929 = vst.msk [vmem:[%s2362_s3 + $0x50] sm:$0xff] %vm918_vm0, %v828_v17  ;;  %979 = vst.msk [vmem:[%s2362_s3 + $0x1e0] sm:$0xff] %vm918_vm0, %v878_v18  ;;  %v375_v21 = vadd.f32 %v1857_v57, %v374_v19  ;;  %v625_v22 = vadd.f32 %v1857_v57, %v624_v20  ;;  %v376_v23 = vpop.f32.mrb[23].mxu0  ;;  %v626_v24 = vpop.f32.mrb[23].mxu1 }
 0x145   :  { %v829_v25 = vmax.f32 %v375_v21, 0.0  ;;  %v879_v26 = vmax.f32 %v625_v22, 0.0 }
 0x146   :  { %v379_v27 = vpop.f32.mrb[24].mxu0  ;;  %v629_v28 = vpop.f32.mrb[24].mxu1 }
 0x147   :  { %930 = vst.msk [vmem:[%s2362_s3 + $0x58] sm:$0xff] %vm918_vm0, %v829_v25  ;;  %980 = vst.msk [vmem:[%s2362_s3 + $0x1e8] sm:$0xff] %vm918_vm0, %v879_v26  ;;  %v380_v29 = vadd.f32 %v1857_v57, %v379_v27  ;;  %v630_v30 = vadd.f32 %v1857_v57, %v629_v28  ;;  %v381_v31 = vpop.f32.mrb[25].mxu0  ;;  %v631_v32 = vpop.f32.mrb[25].mxu1 }
 0x149   :  { %v830_v33 = vmax.f32 %v380_v29, 0.0  ;;  %v880_v34 = vmax.f32 %v630_v30, 0.0 }
 0x14a   :  { %v384_v35 = vpop.f32.mrb[26].mxu0  ;;  %v634_v36 = vpop.f32.mrb[26].mxu1 }
 0x14b   :  { %931 = vst.msk [vmem:[%s2362_s3 + $0x60] sm:$0xff] %vm918_vm0, %v830_v33  ;;  %981 = vst.msk [vmem:[%s2362_s3 + $0x1f0] sm:$0xff] %vm918_vm0, %v880_v34  ;;  %v385_v37 = vadd.f32 %v1857_v57, %v384_v35  ;;  %v635_v38 = vadd.f32 %v1857_v57, %v634_v36  ;;  %v386_v39 = vpop.f32.mrb[27].mxu0  ;;  %v636_v40 = vpop.f32.mrb[27].mxu1 }
 0x14d   :  { %v831_v41 = vmax.f32 %v385_v37, 0.0  ;;  %v881_v42 = vmax.f32 %v635_v38, 0.0 }
 0x14e   :  { %v389_v43 = vpop.f32.mrb[28].mxu0  ;;  %v639_v44 = vpop.f32.mrb[28].mxu1 }
 0x14f   :  { %932 = vst.msk [vmem:[%s2362_s3 + $0x68] sm:$0xff] %vm918_vm0, %v831_v41  ;;  %982 = vst.msk [vmem:[%s2362_s3 + $0x1f8] sm:$0xff] %vm918_vm0, %v881_v42  ;;  %v390_v45 = vadd.f32 %v1857_v57, %v389_v43  ;;  %v640_v46 = vadd.f32 %v1857_v57, %v639_v44  ;;  %v391_v47 = vpop.f32.mrb[29].mxu0  ;;  %v641_v48 = vpop.f32.mrb[29].mxu1 }
 0x151   :  { %v832_v49 = vmax.f32 %v390_v45, 0.0  ;;  %v882_v50 = vmax.f32 %v640_v46, 0.0 }
 0x152   :  { %v394_v51 = vpop.f32.mrb[30].mxu0  ;;  %v644_v52 = vpop.f32.mrb[30].mxu1 }
 0x153   :  { %933 = vst.msk [vmem:[%s2362_s3 + $0x70] sm:$0xff] %vm918_vm0, %v832_v49  ;;  %983 = vst.msk [vmem:[%s2362_s3 + $0x200] sm:$0xff] %vm918_vm0, %v882_v50  ;;  %v395_v53 = vadd.f32 %v1857_v57, %v394_v51  ;;  %v645_v54 = vadd.f32 %v1857_v57, %v644_v52  ;;  %v396_v55 = vpop.f32.mrb[31].mxu0  ;;  %v646_v56 = vpop.f32.mrb[31].mxu1 }
 0x155   :  { %v833_v58 = vmax.f32 %v395_v53, 0.0  ;;  %v883_v59 = vmax.f32 %v645_v54, 0.0 }
 0x156   :  { %v399_v60 = vpop.f32.mrb[32].mxu0  ;;  %v649_v61 = vpop.f32.mrb[32].mxu1 }
 0x157   :  { %934 = vst.msk [vmem:[%s2362_s3 + $0x78] sm:$0xff] %vm918_vm0, %v833_v58  ;;  %984 = vst.msk [vmem:[%s2362_s3 + $0x208] sm:$0xff] %vm918_vm0, %v883_v59  ;;  %v400_v62 = vadd.f32 %v1857_v57, %v399_v60  ;;  %v650_v63 = vadd.f32 %v1857_v57, %v649_v61  ;;  %v401_v0 = vpop.f32.mrb[33].mxu0  ;;  %v651_v1 = vpop.f32.mrb[33].mxu1 }
 0x159   :  { %v834_v2 = vmax.f32 %v400_v62, 0.0  ;;  %v884_v3 = vmax.f32 %v650_v63, 0.0 }
 0x15a   :  { %v404_v4 = vpop.f32.mrb[34].mxu0  ;;  %v654_v5 = vpop.f32.mrb[34].mxu1 }
 0x15b   :  { %935 = vst.msk [vmem:[%s2362_s3 + $0x80] sm:$0xff] %vm918_vm0, %v834_v2  ;;  %985 = vst.msk [vmem:[%s2362_s3 + $0x210] sm:$0xff] %vm918_vm0, %v884_v3  ;;  %v405_v6 = vadd.f32 %v1857_v57, %v404_v4  ;;  %v655_v7 = vadd.f32 %v1857_v57, %v654_v5  ;;  %v406_v8 = vpop.f32.mrb[35].mxu0  ;;  %v656_v9 = vpop.f32.mrb[35].mxu1 }
 0x15d   :  { %v835_v10 = vmax.f32 %v405_v6, 0.0  ;;  %v885_v11 = vmax.f32 %v655_v7, 0.0 }
 0x15e   :  { %v409_v12 = vpop.f32.mrb[36].mxu0  ;;  %v659_v13 = vpop.f32.mrb[36].mxu1 }
 0x15f   :  { %936 = vst.msk [vmem:[%s2362_s3 + $0x88] sm:$0xff] %vm918_vm0, %v835_v10  ;;  %986 = vst.msk [vmem:[%s2362_s3 + $0x218] sm:$0xff] %vm918_vm0, %v885_v11  ;;  %v410_v14 = vadd.f32 %v1857_v57, %v409_v12  ;;  %v660_v15 = vadd.f32 %v1857_v57, %v659_v13  ;;  %v411_v16 = vpop.f32.mrb[37].mxu0  ;;  %v661_v17 = vpop.f32.mrb[37].mxu1 }
 0x161   :  { %v836_v18 = vmax.f32 %v410_v14, 0.0  ;;  %v886_v19 = vmax.f32 %v660_v15, 0.0 }
 0x162   :  { %v414_v20 = vpop.f32.mrb[38].mxu0  ;;  %v664_v21 = vpop.f32.mrb[38].mxu1 }
 0x163   :  { %937 = vst.msk [vmem:[%s2362_s3 + $0x90] sm:$0xff] %vm918_vm0, %v836_v18  ;;  %987 = vst.msk [vmem:[%s2362_s3 + $0x220] sm:$0xff] %vm918_vm0, %v886_v19  ;;  %v415_v22 = vadd.f32 %v1857_v57, %v414_v20  ;;  %v665_v23 = vadd.f32 %v1857_v57, %v664_v21  ;;  %v416_v24 = vpop.f32.mrb[39].mxu0  ;;  %v666_v25 = vpop.f32.mrb[39].mxu1 }
 0x165   :  { %v837_v26 = vmax.f32 %v415_v22, 0.0  ;;  %v887_v27 = vmax.f32 %v665_v23, 0.0 }
 0x166   :  { %v419_v28 = vpop.f32.mrb[40].mxu0  ;;  %v669_v29 = vpop.f32.mrb[40].mxu1 }
 0x167   :  { %938 = vst.msk [vmem:[%s2362_s3 + $0x98] sm:$0xff] %vm918_vm0, %v837_v26  ;;  %988 = vst.msk [vmem:[%s2362_s3 + $0x228] sm:$0xff] %vm918_vm0, %v887_v27  ;;  %v420_v30 = vadd.f32 %v1857_v57, %v419_v28  ;;  %v670_v31 = vadd.f32 %v1857_v57, %v669_v29  ;;  %v421_v32 = vpop.f32.mrb[41].mxu0  ;;  %v671_v33 = vpop.f32.mrb[41].mxu1 }
 0x169   :  { %v838_v34 = vmax.f32 %v420_v30, 0.0  ;;  %v888_v35 = vmax.f32 %v670_v31, 0.0 }
 0x16a   :  { %v424_v36 = vpop.f32.mrb[42].mxu0  ;;  %v674_v37 = vpop.f32.mrb[42].mxu1 }
 0x16b   :  { %939 = vst.msk [vmem:[%s2362_s3 + $0xa0] sm:$0xff] %vm918_vm0, %v838_v34  ;;  %989 = vst.msk [vmem:[%s2362_s3 + $0x230] sm:$0xff] %vm918_vm0, %v888_v35  ;;  %v425_v38 = vadd.f32 %v1857_v57, %v424_v36  ;;  %v675_v39 = vadd.f32 %v1857_v57, %v674_v37  ;;  %v426_v40 = vpop.f32.mrb[43].mxu0  ;;  %v676_v41 = vpop.f32.mrb[43].mxu1 }
 0x16d   :  { %v839_v42 = vmax.f32 %v425_v38, 0.0  ;;  %v889_v43 = vmax.f32 %v675_v39, 0.0 }
 0x16e   :  { %v429_v44 = vpop.f32.mrb[44].mxu0  ;;  %v679_v45 = vpop.f32.mrb[44].mxu1 }
 0x16f   :  { %940 = vst.msk [vmem:[%s2362_s3 + $0xa8] sm:$0xff] %vm918_vm0, %v839_v42  ;;  %990 = vst.msk [vmem:[%s2362_s3 + $0x238] sm:$0xff] %vm918_vm0, %v889_v43  ;;  %v430_v46 = vadd.f32 %v1857_v57, %v429_v44  ;;  %v680_v47 = vadd.f32 %v1857_v57, %v679_v45  ;;  %v431_v48 = vpop.f32.mrb[45].mxu0  ;;  %v681_v49 = vpop.f32.mrb[45].mxu1 }
 0x171   :  { %v840_v50 = vmax.f32 %v430_v46, 0.0  ;;  %v890_v51 = vmax.f32 %v680_v47, 0.0 }
 0x172   :  { %v434_v52 = vpop.f32.mrb[46].mxu0  ;;  %v684_v53 = vpop.f32.mrb[46].mxu1 }
 0x173   :  { %941 = vst.msk [vmem:[%s2362_s3 + $0xb0] sm:$0xff] %vm918_vm0, %v840_v50  ;;  %991 = vst.msk [vmem:[%s2362_s3 + $0x240] sm:$0xff] %vm918_vm0, %v890_v51  ;;  %v435_v54 = vadd.f32 %v1857_v57, %v434_v52  ;;  %v685_v55 = vadd.f32 %v1857_v57, %v684_v53  ;;  %v436_v56 = vpop.f32.mrb[47].mxu0  ;;  %v686_v58 = vpop.f32.mrb[47].mxu1 }
 0x175   :  { %v841_v59 = vmax.f32 %v435_v54, 0.0  ;;  %v891_v60 = vmax.f32 %v685_v55, 0.0 }
 0x176   :  { %v439_v61 = vpop.f32.mrb[48].mxu0  ;;  %v689_v62 = vpop.f32.mrb[48].mxu1 }
 0x177   :  { %942 = vst.msk [vmem:[%s2362_s3 + $0xb8] sm:$0xff] %vm918_vm0, %v841_v59  ;;  %992 = vst.msk [vmem:[%s2362_s3 + $0x248] sm:$0xff] %vm918_vm0, %v891_v60  ;;  %v440_v63 = vadd.f32 %v1857_v57, %v439_v61  ;;  %v690_v0 = vadd.f32 %v1857_v57, %v689_v62  ;;  %v441_v1 = vpop.f32.mrb[49].mxu0  ;;  %v691_v2 = vpop.f32.mrb[49].mxu1 }
 0x179   :  { %v842_v3 = vmax.f32 %v440_v63, 0.0  ;;  %v892_v4 = vmax.f32 %v690_v0, 0.0 }
 0x17a   :  { %v444_v5 = vpop.f32.mrb[50].mxu0  ;;  %v694_v6 = vpop.f32.mrb[50].mxu1 }
 0x17b   :  { %943 = vst.msk [vmem:[%s2362_s3 + $0xc0] sm:$0xff] %vm918_vm0, %v842_v3  ;;  %993 = vst.msk [vmem:[%s2362_s3 + $0x250] sm:$0xff] %vm918_vm0, %v892_v4  ;;  %v445_v7 = vadd.f32 %v1857_v57, %v444_v5  ;;  %v695_v8 = vadd.f32 %v1857_v57, %v694_v6  ;;  %v446_v9 = vpop.f32.mrb[51].mxu0  ;;  %v696_v10 = vpop.f32.mrb[51].mxu1 }
 0x17d   :  { %v843_v11 = vmax.f32 %v445_v7, 0.0  ;;  %v893_v12 = vmax.f32 %v695_v8, 0.0 }
 0x17e   :  { %v449_v13 = vpop.f32.mrb[52].mxu0  ;;  %v699_v14 = vpop.f32.mrb[52].mxu1 }
 0x17f   :  { %944 = vst.msk [vmem:[%s2362_s3 + $0xc8] sm:$0xff] %vm918_vm0, %v843_v11  ;;  %994 = vst.msk [vmem:[%s2362_s3 + $0x258] sm:$0xff] %vm918_vm0, %v893_v12  ;;  %v450_v15 = vadd.f32 %v1857_v57, %v449_v13  ;;  %v700_v16 = vadd.f32 %v1857_v57, %v699_v14  ;;  %v451_v17 = vpop.f32.mrb[53].mxu0  ;;  %v701_v18 = vpop.f32.mrb[53].mxu1 }
 0x181   :  { %v844_v19 = vmax.f32 %v450_v15, 0.0  ;;  %v894_v20 = vmax.f32 %v700_v16, 0.0 }
 0x182   :  { %v454_v21 = vpop.f32.mrb[54].mxu0  ;;  %v704_v22 = vpop.f32.mrb[54].mxu1 }
 0x183   :  { %945 = vst.msk [vmem:[%s2362_s3 + $0xd0] sm:$0xff] %vm918_vm0, %v844_v19  ;;  %995 = vst.msk [vmem:[%s2362_s3 + $0x260] sm:$0xff] %vm918_vm0, %v894_v20  ;;  %v455_v23 = vadd.f32 %v1857_v57, %v454_v21  ;;  %v705_v24 = vadd.f32 %v1857_v57, %v704_v22  ;;  %v456_v25 = vpop.f32.mrb[55].mxu0  ;;  %v706_v26 = vpop.f32.mrb[55].mxu1 }
 0x185   :  { %v845_v27 = vmax.f32 %v455_v23, 0.0  ;;  %v895_v28 = vmax.f32 %v705_v24, 0.0 }
 0x186   :  { %v459_v29 = vpop.f32.mrb[56].mxu0  ;;  %v709_v30 = vpop.f32.mrb[56].mxu1 }
 0x187   :  { %946 = vst.msk [vmem:[%s2362_s3 + $0xd8] sm:$0xff] %vm918_vm0, %v845_v27  ;;  %996 = vst.msk [vmem:[%s2362_s3 + $0x268] sm:$0xff] %vm918_vm0, %v895_v28  ;;  %v460_v31 = vadd.f32 %v1857_v57, %v459_v29  ;;  %v710_v32 = vadd.f32 %v1857_v57, %v709_v30  ;;  %v461_v33 = vpop.f32.mrb[57].mxu0  ;;  %v711_v34 = vpop.f32.mrb[57].mxu1 }
 0x189   :  { %v846_v35 = vmax.f32 %v460_v31, 0.0  ;;  %v896_v36 = vmax.f32 %v710_v32, 0.0 }
 0x18a   :  { %v464_v37 = vpop.f32.mrb[58].mxu0  ;;  %v714_v38 = vpop.f32.mrb[58].mxu1 }
 0x18b   :  { %947 = vst.msk [vmem:[%s2362_s3 + $0xe0] sm:$0xff] %vm918_vm0, %v846_v35  ;;  %997 = vst.msk [vmem:[%s2362_s3 + $0x270] sm:$0xff] %vm918_vm0, %v896_v36  ;;  %v465_v39 = vadd.f32 %v1857_v57, %v464_v37  ;;  %v715_v40 = vadd.f32 %v1857_v57, %v714_v38  ;;  %v466_v41 = vpop.f32.mrb[59].mxu0  ;;  %v716_v42 = vpop.f32.mrb[59].mxu1 }
 0x18d   :  { %v847_v43 = vmax.f32 %v465_v39, 0.0  ;;  %v897_v44 = vmax.f32 %v715_v40, 0.0 }
 0x18e   :  { %v469_v45 = vpop.f32.mrb[60].mxu0  ;;  %v719_v46 = vpop.f32.mrb[60].mxu1 }
 0x18f   :  { %948 = vst.msk [vmem:[%s2362_s3 + $0xe8] sm:$0xff] %vm918_vm0, %v847_v43  ;;  %998 = vst.msk [vmem:[%s2362_s3 + $0x278] sm:$0xff] %vm918_vm0, %v897_v44  ;;  %v470_v47 = vadd.f32 %v1857_v57, %v469_v45  ;;  %v720_v48 = vadd.f32 %v1857_v57, %v719_v46  ;;  %v471_v49 = vpop.f32.mrb[61].mxu0  ;;  %v721_v50 = vpop.f32.mrb[61].mxu1 }
 0x191   :  { %v848_v51 = vmax.f32 %v470_v47, 0.0  ;;  %v898_v52 = vmax.f32 %v720_v48, 0.0 }
 0x192   :  { %v474_v53 = vpop.f32.mrb[62].mxu0  ;;  %v724_v54 = vpop.f32.mrb[62].mxu1 }
 0x193   :  { %949 = vst.msk [vmem:[%s2362_s3 + $0xf0] sm:$0xff] %vm918_vm0, %v848_v51  ;;  %999 = vst.msk [vmem:[%s2362_s3 + $0x280] sm:$0xff] %vm918_vm0, %v898_v52  ;;  %v475_v55 = vadd.f32 %v1857_v57, %v474_v53  ;;  %v725_v56 = vadd.f32 %v1857_v57, %v724_v54  ;;  %v476_v58 = vpop.f32.mrb[63].mxu0  ;;  %v726_v59 = vpop.f32.mrb[63].mxu1 }
 0x195   :  { %v849_v60 = vmax.f32 %v475_v55, 0.0  ;;  %v899_v61 = vmax.f32 %v725_v56, 0.0 }
 0x196   :  { %v479_v62 = vpop.f32.mrb[64].mxu0  ;;  %v729_v63 = vpop.f32.mrb[64].mxu1 }
 0x197   :  { %950 = vst.msk [vmem:[%s2362_s3 + $0xf8] sm:$0xff] %vm918_vm0, %v849_v60  ;;  %1000 = vst.msk [vmem:[%s2362_s3 + $0x288] sm:$0xff] %vm918_vm0, %v899_v61  ;;  %v480_v0 = vadd.f32 %v1857_v57, %v479_v62  ;;  %v730_v1 = vadd.f32 %v1857_v57, %v729_v63  ;;  %v481_v2 = vpop.f32.mrb[65].mxu0  ;;  %v731_v3 = vpop.f32.mrb[65].mxu1 }
 0x199   :  { %v850_v4 = vmax.f32 %v480_v0, 0.0  ;;  %v900_v5 = vmax.f32 %v730_v1, 0.0 }
 0x19a   :  { %v484_v6 = vpop.f32.mrb[66].mxu0  ;;  %v734_v7 = vpop.f32.mrb[66].mxu1 }
 0x19b   :  { %951 = vst.msk [vmem:[%s2362_s3 + $0x100] sm:$0xff] %vm918_vm0, %v850_v4  ;;  %1001 = vst.msk [vmem:[%s2362_s3 + $0x290] sm:$0xff] %vm918_vm0, %v900_v5  ;;  %v485_v8 = vadd.f32 %v1857_v57, %v484_v6  ;;  %v735_v9 = vadd.f32 %v1857_v57, %v734_v7  ;;  %v486_v10 = vpop.f32.mrb[67].mxu0  ;;  %v736_v11 = vpop.f32.mrb[67].mxu1 }
 0x19d   :  { %v851_v12 = vmax.f32 %v485_v8, 0.0  ;;  %v901_v13 = vmax.f32 %v735_v9, 0.0 }
 0x19e   :  { %v489_v14 = vpop.f32.mrb[68].mxu0  ;;  %v739_v15 = vpop.f32.mrb[68].mxu1 }
 0x19f   :  { %952 = vst.msk [vmem:[%s2362_s3 + $0x108] sm:$0xff] %vm918_vm0, %v851_v12  ;;  %1002 = vst.msk [vmem:[%s2362_s3 + $0x298] sm:$0xff] %vm918_vm0, %v901_v13  ;;  %v490_v16 = vadd.f32 %v1857_v57, %v489_v14  ;;  %v740_v17 = vadd.f32 %v1857_v57, %v739_v15  ;;  %v491_v18 = vpop.f32.mrb[69].mxu0  ;;  %v741_v19 = vpop.f32.mrb[69].mxu1 }
 0x1a1   :  { %v852_v20 = vmax.f32 %v490_v16, 0.0  ;;  %v902_v21 = vmax.f32 %v740_v17, 0.0 }
 0x1a2   :  { %v494_v22 = vpop.f32.mrb[70].mxu0  ;;  %v744_v23 = vpop.f32.mrb[70].mxu1 }
 0x1a3   :  { %953 = vst.msk [vmem:[%s2362_s3 + $0x110] sm:$0xff] %vm918_vm0, %v852_v20  ;;  %1003 = vst.msk [vmem:[%s2362_s3 + $0x2a0] sm:$0xff] %vm918_vm0, %v902_v21  ;;  %v495_v24 = vadd.f32 %v1857_v57, %v494_v22  ;;  %v745_v25 = vadd.f32 %v1857_v57, %v744_v23  ;;  %v496_v26 = vpop.f32.mrb[71].mxu0  ;;  %v746_v27 = vpop.f32.mrb[71].mxu1 }
 0x1a5   :  { %v853_v28 = vmax.f32 %v495_v24, 0.0  ;;  %v903_v29 = vmax.f32 %v745_v25, 0.0 }
 0x1a6   :  { %v499_v30 = vpop.f32.mrb[72].mxu0  ;;  %v749_v31 = vpop.f32.mrb[72].mxu1 }
 0x1a7   :  { %954 = vst.msk [vmem:[%s2362_s3 + $0x118] sm:$0xff] %vm918_vm0, %v853_v28  ;;  %1004 = vst.msk [vmem:[%s2362_s3 + $0x2a8] sm:$0xff] %vm918_vm0, %v903_v29  ;;  %v500_v32 = vadd.f32 %v1857_v57, %v499_v30  ;;  %v750_v33 = vadd.f32 %v1857_v57, %v749_v31  ;;  %v501_v34 = vpop.f32.mrb[73].mxu0  ;;  %v751_v35 = vpop.f32.mrb[73].mxu1 }
 0x1a9   :  { %v854_v36 = vmax.f32 %v500_v32, 0.0  ;;  %v904_v37 = vmax.f32 %v750_v33, 0.0 }
 0x1aa   :  { %v504_v38 = vpop.f32.mrb[74].mxu0  ;;  %v754_v39 = vpop.f32.mrb[74].mxu1 }
 0x1ab   :  { %955 = vst.msk [vmem:[%s2362_s3 + $0x120] sm:$0xff] %vm918_vm0, %v854_v36  ;;  %1005 = vst.msk [vmem:[%s2362_s3 + $0x2b0] sm:$0xff] %vm918_vm0, %v904_v37  ;;  %v505_v40 = vadd.f32 %v1857_v57, %v504_v38  ;;  %v755_v41 = vadd.f32 %v1857_v57, %v754_v39  ;;  %v506_v42 = vpop.f32.mrb[75].mxu0  ;;  %v756_v43 = vpop.f32.mrb[75].mxu1 }
 0x1ad   :  { %v855_v44 = vmax.f32 %v505_v40, 0.0  ;;  %v905_v45 = vmax.f32 %v755_v41, 0.0 }
 0x1ae   :  { %v509_v46 = vpop.f32.mrb[76].mxu0  ;;  %v759_v47 = vpop.f32.mrb[76].mxu1 }
 0x1af   :  { %956 = vst.msk [vmem:[%s2362_s3 + $0x128] sm:$0xff] %vm918_vm0, %v855_v44  ;;  %1006 = vst.msk [vmem:[%s2362_s3 + $0x2b8] sm:$0xff] %vm918_vm0, %v905_v45  ;;  %v510_v48 = vadd.f32 %v1857_v57, %v509_v46  ;;  %v760_v49 = vadd.f32 %v1857_v57, %v759_v47  ;;  %v511_v50 = vpop.f32.mrb[77].mxu0  ;;  %v761_v51 = vpop.f32.mrb[77].mxu1 }
 0x1b1   :  { %v856_v52 = vmax.f32 %v510_v48, 0.0  ;;  %v906_v53 = vmax.f32 %v760_v49, 0.0 }
 0x1b2   :  { %v514_v54 = vpop.f32.mrb[78].mxu0  ;;  %v764_v55 = vpop.f32.mrb[78].mxu1 }
 0x1b3   :  { %957 = vst.msk [vmem:[%s2362_s3 + $0x130] sm:$0xff] %vm918_vm0, %v856_v52  ;;  %1007 = vst.msk [vmem:[%s2362_s3 + $0x2c0] sm:$0xff] %vm918_vm0, %v906_v53  ;;  %v515_v56 = vadd.f32 %v1857_v57, %v514_v54  ;;  %v765_v58 = vadd.f32 %v1857_v57, %v764_v55  ;;  %v516_v59 = vpop.f32.mrb[79].mxu0  ;;  %v766_v60 = vpop.f32.mrb[79].mxu1 }
 0x1b5   :  { %v857_v61 = vmax.f32 %v515_v56, 0.0  ;;  %v907_v62 = vmax.f32 %v765_v58, 0.0 }
 0x1b6   :  { %v519_v63 = vpop.f32.mrb[80].mxu0  ;;  %v769_v0 = vpop.f32.mrb[80].mxu1 }
 0x1b7   :  { %958 = vst.msk [vmem:[%s2362_s3 + $0x138] sm:$0xff] %vm918_vm0, %v857_v61  ;;  %1008 = vst.msk [vmem:[%s2362_s3 + $0x2c8] sm:$0xff] %vm918_vm0, %v907_v62  ;;  %v520_v1 = vadd.f32 %v1857_v57, %v519_v63  ;;  %v770_v2 = vadd.f32 %v1857_v57, %v769_v0  ;;  %v521_v3 = vpop.f32.mrb[81].mxu0  ;;  %v771_v4 = vpop.f32.mrb[81].mxu1 }
 0x1b9   :  { %v858_v5 = vmax.f32 %v520_v1, 0.0  ;;  %v908_v6 = vmax.f32 %v770_v2, 0.0 }
 0x1ba   :  { %v524_v7 = vpop.f32.mrb[82].mxu0  ;;  %v774_v8 = vpop.f32.mrb[82].mxu1 }
 0x1bb   :  { %959 = vst.msk [vmem:[%s2362_s3 + $0x140] sm:$0xff] %vm918_vm0, %v858_v5  ;;  %1009 = vst.msk [vmem:[%s2362_s3 + $0x2d0] sm:$0xff] %vm918_vm0, %v908_v6  ;;  %v525_v9 = vadd.f32 %v1857_v57, %v524_v7  ;;  %v775_v10 = vadd.f32 %v1857_v57, %v774_v8  ;;  %v526_v11 = vpop.f32.mrb[83].mxu0  ;;  %v776_v12 = vpop.f32.mrb[83].mxu1 }
 0x1bd   :  { %v859_v13 = vmax.f32 %v525_v9, 0.0  ;;  %v909_v14 = vmax.f32 %v775_v10, 0.0 }
 0x1be   :  { %v529_v15 = vpop.f32.mrb[84].mxu0  ;;  %v779_v16 = vpop.f32.mrb[84].mxu1 }
 0x1bf   :  { %960 = vst.msk [vmem:[%s2362_s3 + $0x148] sm:$0xff] %vm918_vm0, %v859_v13  ;;  %1010 = vst.msk [vmem:[%s2362_s3 + $0x2d8] sm:$0xff] %vm918_vm0, %v909_v14  ;;  %v530_v17 = vadd.f32 %v1857_v57, %v529_v15  ;;  %v780_v18 = vadd.f32 %v1857_v57, %v779_v16  ;;  %v531_v19 = vpop.f32.mrb[85].mxu0  ;;  %v781_v20 = vpop.f32.mrb[85].mxu1 }
 0x1c1   :  { %v860_v21 = vmax.f32 %v530_v17, 0.0  ;;  %v910_v22 = vmax.f32 %v780_v18, 0.0 }
 0x1c2   :  { %v534_v23 = vpop.f32.mrb[86].mxu0  ;;  %v784_v24 = vpop.f32.mrb[86].mxu1 }
 0x1c3   :  { %961 = vst.msk [vmem:[%s2362_s3 + $0x150] sm:$0xff] %vm918_vm0, %v860_v21  ;;  %1011 = vst.msk [vmem:[%s2362_s3 + $0x2e0] sm:$0xff] %vm918_vm0, %v910_v22  ;;  %v535_v25 = vadd.f32 %v1857_v57, %v534_v23  ;;  %v785_v26 = vadd.f32 %v1857_v57, %v784_v24  ;;  %v536_v27 = vpop.f32.mrb[87].mxu0  ;;  %v786_v28 = vpop.f32.mrb[87].mxu1 }
 0x1c5   :  { %v861_v29 = vmax.f32 %v535_v25, 0.0  ;;  %v911_v30 = vmax.f32 %v785_v26, 0.0 }
 0x1c6   :  { %v539_v31 = vpop.f32.mrb[88].mxu0  ;;  %v789_v32 = vpop.f32.mrb[88].mxu1 }
 0x1c7   :  { %962 = vst.msk [vmem:[%s2362_s3 + $0x158] sm:$0xff] %vm918_vm0, %v861_v29  ;;  %1012 = vst.msk [vmem:[%s2362_s3 + $0x2e8] sm:$0xff] %vm918_vm0, %v911_v30  ;;  %v540_v33 = vadd.f32 %v1857_v57, %v539_v31  ;;  %v790_v34 = vadd.f32 %v1857_v57, %v789_v32  ;;  %v541_v35 = vpop.f32.mrb[89].mxu0  ;;  %v791_v36 = vpop.f32.mrb[89].mxu1 }
 0x1c9   :  { %v862_v37 = vmax.f32 %v540_v33, 0.0  ;;  %v912_v38 = vmax.f32 %v790_v34, 0.0 }
 0x1ca   :  { %v544_v39 = vpop.f32.mrb[90].mxu0  ;;  %v794_v40 = vpop.f32.mrb[90].mxu1 }
 0x1cb   :  { %963 = vst.msk [vmem:[%s2362_s3 + $0x160] sm:$0xff] %vm918_vm0, %v862_v37  ;;  %1013 = vst.msk [vmem:[%s2362_s3 + $0x2f0] sm:$0xff] %vm918_vm0, %v912_v38  ;;  %v545_v41 = vadd.f32 %v1857_v57, %v544_v39  ;;  %v795_v42 = vadd.f32 %v1857_v57, %v794_v40  ;;  %v546_v43 = vpop.f32.mrb[91].mxu0  ;;  %v796_v44 = vpop.f32.mrb[91].mxu1 }
 0x1cd   :  { %v863_v45 = vmax.f32 %v545_v41, 0.0  ;;  %v913_v46 = vmax.f32 %v795_v42, 0.0 }
 0x1ce   :  { %v549_v47 = vpop.f32.mrb[92].mxu0  ;;  %v799_v48 = vpop.f32.mrb[92].mxu1 }
 0x1cf   :  { %964 = vst.msk [vmem:[%s2362_s3 + $0x168] sm:$0xff] %vm918_vm0, %v863_v45  ;;  %1014 = vst.msk [vmem:[%s2362_s3 + $0x2f8] sm:$0xff] %vm918_vm0, %v913_v46  ;;  %v550_v49 = vadd.f32 %v1857_v57, %v549_v47  ;;  %v800_v50 = vadd.f32 %v1857_v57, %v799_v48  ;;  %v551_v51 = vpop.f32.mrb[93].mxu0  ;;  %v801_v52 = vpop.f32.mrb[93].mxu1 }
 0x1d1   :  { %v864_v53 = vmax.f32 %v550_v49, 0.0  ;;  %v914_v54 = vmax.f32 %v800_v50, 0.0 }
 0x1d2   :  { %v554_v55 = vpop.f32.mrb[94].mxu0  ;;  %v804_v56 = vpop.f32.mrb[94].mxu1 }
 0x1d3   :  { %965 = vst.msk [vmem:[%s2362_s3 + $0x170] sm:$0xff] %vm918_vm0, %v864_v53  ;;  %1015 = vst.msk [vmem:[%s2362_s3 + $0x300] sm:$0xff] %vm918_vm0, %v914_v54  ;;  %v555_v58 = vadd.f32 %v1857_v57, %v554_v55  ;;  %v805_v59 = vadd.f32 %v1857_v57, %v804_v56  ;;  %v556_v60 = vpop.f32.mrb[95].mxu0  ;;  %v806_v61 = vpop.f32.mrb[95].mxu1 }
 0x1d5   :  { %v865_v62 = vmax.f32 %v555_v58, 0.0  ;;  %v915_v63 = vmax.f32 %v805_v59, 0.0 }
 0x1d6   :  { %v559_v0 = vpop.f32.mrb[96].mxu0  ;;  %v809_v1 = vpop.f32.mrb[96].mxu1 }
 0x1d7   :  { %966 = vst.msk [vmem:[%s2362_s3 + $0x178] sm:$0xff] %vm918_vm0, %v865_v62  ;;  %1016 = vst.msk [vmem:[%s2362_s3 + $0x308] sm:$0xff] %vm918_vm0, %v915_v63  ;;  %v560_v2 = vadd.f32 %v1857_v57, %v559_v0  ;;  %v810_v3 = vadd.f32 %v1857_v57, %v809_v1  ;;  %v561_v4 = vpop.f32.mrb[97].mxu0  ;;  %v811_v5 = vpop.f32.mrb[97].mxu1 }
 0x1d9   :  { %v866_v6 = vmax.f32 %v560_v2, 0.0  ;;  %v916_v7 = vmax.f32 %v810_v3, 0.0 }
 0x1da   :  { %v564_v8 = vpop.f32.mrb[98].mxu0  ;;  %v814_v9 = vpop.f32.mrb[98].mxu1 }
 0x1db   :  { %967 = vst.msk [vmem:[%s2362_s3 + $0x180] sm:$0xff] %vm918_vm0, %v866_v6  ;;  %1017 = vst.msk [vmem:[%s2362_s3 + $0x310] sm:$0xff] %vm918_vm0, %v916_v7  ;;  %v565_v10 = vadd.f32 %v1857_v57, %v564_v8  ;;  %v815_v11 = vadd.f32 %v1857_v57, %v814_v9  ;;  %v566_v12 = vpop.f32.mrb[99].mxu0  ;;  %v816_v13 = vpop.f32.mrb[99].mxu1 }
 0x1dd   :  { %v867_v14 = vmax.f32 %v565_v10, 0.0  ;;  %v917_v15 = vmax.f32 %v815_v11, 0.0 }
 0x1df   :  { %968 = vst.msk [vmem:[%s2362_s3 + $0x188] sm:$0xff] %vm918_vm0, %v867_v14  ;;  %1018 = vst.msk [vmem:[%s2362_s3 + $0x318] sm:$0xff] %vm918_vm0, %v917_v15 }

// kernel: dqn_forward.4
= control target key start
LH: loop header
LB: loop body
LE: loop exit
PB: predicated region body
PF: predicated region fallthrough
CT: control target
= control target key end

     0   :  { %v697_v0 = vmov 0.0|0.0   ;;  %vm530_vm0 = vcmask 523264   ;;  %vm551_vm1 = vcmask 517120   ;;  %s1303_s1 = inlined_call_operand.vmem [shape: f32[512,64], index: 1, kind: input, shape index: {}]   ;;  %s1304_s0 = inlined_call_operand.vmem [shape: f32[162,512], index: 0, kind: input, shape index: {}]   ;;  %s1305_s2 = inlined_call_operand.vmem [shape: f32[1,64], index: 2, kind: input, shape index: {}]   ;;  %s1306_s3 = inlined_call_operand.vmem [shape: f32[162,64], index: 3, kind: output, shape index: {}]  }
   0x1   :  { %558 = vmatprep.subr.bf16.mxu1 %v697_v0  ;;  %v98_v1 = vld [vmem:[%s1303_s1] sm:$0xff]  ;;  %v99_v2 = vld [vmem:[%s1303_s1 + $0x8] sm:$0xff]  ;;  %606 = vmatprep.subr.bf16.mxu0 %v697_v0  ;;  %v100_v6 = vld [vmem:[%s1303_s1 + $0x10] sm:$0xff] }
   0x2   :  { %v130_v3 = vld [vmem:[%s1303_s1 + $0x100] sm:$0xff]  ;;  %v559_v4 = vpack.c.bf16 %v99_v2, %v98_v1  ;;  %v131_v5 = vld [vmem:[%s1303_s1 + $0x108] sm:$0xff]  ;;  %v101_v7 = vld [vmem:[%s1303_s1 + $0x18] sm:$0xff] }
   0x3   :  { %v607_v8 = vpack.c.bf16 %v131_v5, %v130_v3  ;;  %v132_v9 = vld [vmem:[%s1303_s1 + $0x110] sm:$0xff]  ;;  %v133_v10 = vld [vmem:[%s1303_s1 + $0x118] sm:$0xff]  ;;  %v562_v11 = vpack.c.bf16 %v101_v7, %v100_v6  ;;  %v102_v13 = vld [vmem:[%s1303_s1 + $0x20] sm:$0xff] }
   0x4   :  { %560 = vmatpush1.bf16.msra.mxu1 %v559_v4  ;;  %v610_v12 = vpack.c.bf16 %v133_v10, %v132_v9  ;;  %v103_v14 = vld [vmem:[%s1303_s1 + $0x28] sm:$0xff]  ;;  %v134_v15 = vld [vmem:[%s1303_s1 + $0x120] sm:$0xff]  ;;  %v104_v19 = vld [vmem:[%s1303_s1 + $0x30] sm:$0xff] }
   0x5   :  { %608 = vmatpush1.bf16.msra.mxu0 %v607_v8  ;;  %561 = vmatprep.subr.bf16.mxu1 %v697_v0  ;;  %v135_v16 = vld [vmem:[%s1303_s1 + $0x128] sm:$0xff]  ;;  %v565_v17 = vpack.c.bf16 %v103_v14, %v102_v13  ;;  %v105_v20 = vld [vmem:[%s1303_s1 + $0x38] sm:$0xff]  ;;  %v136_v21 = vld [vmem:[%s1303_s1 + $0x130] sm:$0xff] }
   0x6   :  { %609 = vmatprep.subr.bf16.mxu0 %v697_v0  ;;  %v613_v18 = vpack.c.bf16 %v135_v16, %v134_v15  ;;  %v137_v22 = vld [vmem:[%s1303_s1 + $0x138] sm:$0xff]  ;;  %v568_v23 = vpack.c.bf16 %v105_v20, %v104_v19  ;;  %v106_v25 = vld [vmem:[%s1303_s1 + $0x40] sm:$0xff]  ;;  %v107_v26 = vld [vmem:[%s1303_s1 + $0x48] sm:$0xff] }
   0x7   :  { %v616_v24 = vpack.c.bf16 %v137_v22, %v136_v21  ;;  %v138_v27 = vld [vmem:[%s1303_s1 + $0x140] sm:$0xff]  ;;  %v139_v28 = vld [vmem:[%s1303_s1 + $0x148] sm:$0xff]  ;;  %v571_v29 = vpack.c.bf16 %v107_v26, %v106_v25  ;;  %v108_v31 = vld [vmem:[%s1303_s1 + $0x50] sm:$0xff] }
   0x8   :  { %563 = vmatpush1.bf16.msra.mxu1 %v562_v11  ;;  %v619_v30 = vpack.c.bf16 %v139_v28, %v138_v27  ;;  %v109_v32 = vld [vmem:[%s1303_s1 + $0x58] sm:$0xff]  ;;  %v140_v33 = vld [vmem:[%s1303_s1 + $0x150] sm:$0xff]  ;;  %v110_v37 = vld [vmem:[%s1303_s1 + $0x60] sm:$0xff] }
   0x9   :  { %611 = vmatpush1.bf16.msra.mxu0 %v610_v12  ;;  %564 = vmatprep.subr.bf16.mxu1 %v697_v0  ;;  %v141_v34 = vld [vmem:[%s1303_s1 + $0x158] sm:$0xff]  ;;  %v574_v35 = vpack.c.bf16 %v109_v32, %v108_v31  ;;  %v111_v38 = vld [vmem:[%s1303_s1 + $0x68] sm:$0xff]  ;;  %v142_v39 = vld [vmem:[%s1303_s1 + $0x160] sm:$0xff] }
   0xa   :  { %612 = vmatprep.subr.bf16.mxu0 %v697_v0  ;;  %v622_v36 = vpack.c.bf16 %v141_v34, %v140_v33  ;;  %v143_v40 = vld [vmem:[%s1303_s1 + $0x168] sm:$0xff]  ;;  %v17_v42 = vld [vmem:[%s1304_s0 + $0x18] sm:$0xff]  ;;  %v577_v43 = vpack.c.bf16 %v111_v38, %v110_v37  ;;  %v112_v45 = vld [vmem:[%s1303_s1 + $0x70] sm:$0xff] }
   0xb   :  { %v15_v41 = vld [vmem:[%s1304_s0 + $0x8] sm:$0xff]  ;;  %403 = vmatprep.mubr.f32.mxu0 %v17_v42  ;;  %v625_v44 = vpack.c.bf16 %v143_v40, %v142_v39  ;;  %v113_v46 = vld [vmem:[%s1303_s1 + $0x78] sm:$0xff]  ;;  %v144_v47 = vld [vmem:[%s1303_s1 + $0x170] sm:$0xff] }
   0xc   :  { %566 = vmatpush1.bf16.msra.mxu1 %v565_v17  ;;  %233 = vmatprep.mubr.f32.mxu1 %v15_v41  ;;  %v145_v48 = vld [vmem:[%s1303_s1 + $0x178] sm:$0xff]  ;;  %v580_v49 = vpack.c.bf16 %v113_v46, %v112_v45  ;;  %v114_v51 = vld [vmem:[%s1303_s1 + $0x80] sm:$0xff]  ;;  %v115_v52 = vld [vmem:[%s1303_s1 + $0x88] sm:$0xff] }
   0xd   :  { %614 = vmatpush1.bf16.msra.mxu0 %v613_v18  ;;  %567 = vmatprep.subr.bf16.mxu1 %v697_v0  ;;  %v628_v50 = vpack.c.bf16 %v145_v48, %v144_v47  ;;  %v146_v53 = vld [vmem:[%s1303_s1 + $0x180] sm:$0xff]  ;;  %v147_v54 = vld [vmem:[%s1303_s1 + $0x188] sm:$0xff]  ;;  %v583_v55 = vpack.c.bf16 %v115_v52, %v114_v51  ;;  %v116_v57 = vld [vmem:[%s1303_s1 + $0x90] sm:$0xff] }
   0xe   :  { %615 = vmatprep.subr.bf16.mxu0 %v697_v0  ;;  %v631_v56 = vpack.c.bf16 %v147_v54, %v146_v53  ;;  %v117_v58 = vld [vmem:[%s1303_s1 + $0x98] sm:$0xff]  ;;  %v148_v59 = vld [vmem:[%s1303_s1 + $0x190] sm:$0xff]  ;;  %v118_v63 = vld [vmem:[%s1303_s1 + $0xa0] sm:$0xff] }
   0xf   :  { %v149_v60 = vld [vmem:[%s1303_s1 + $0x198] sm:$0xff]  ;;  %v586_v61 = vpack.c.bf16 %v117_v58, %v116_v57  ;;  %v119_v1 = vld [vmem:[%s1303_s1 + $0xa8] sm:$0xff]  ;;  %v150_v2 = vld [vmem:[%s1303_s1 + $0x1a0] sm:$0xff] }
  0x10   :  { %569 = vmatpush1.bf16.msra.mxu1 %v568_v23  ;;  %v634_v62 = vpack.c.bf16 %v149_v60, %v148_v59  ;;  %v151_v3 = vld [vmem:[%s1303_s1 + $0x1a8] sm:$0xff]  ;;  %v589_v4 = vpack.c.bf16 %v119_v1, %v118_v63  ;;  %v120_v6 = vld [vmem:[%s1303_s1 + $0xb0] sm:$0xff]  ;;  %v121_v7 = vld [vmem:[%s1303_s1 + $0xb8] sm:$0xff] }
  0x11   :  { %617 = vmatpush1.bf16.msra.mxu0 %v616_v24  ;;  %570 = vmatprep.subr.bf16.mxu1 %v697_v0  ;;  %v637_v5 = vpack.c.bf16 %v151_v3, %v150_v2  ;;  %v152_v8 = vld [vmem:[%s1303_s1 + $0x1b0] sm:$0xff]  ;;  %v153_v9 = vld [vmem:[%s1303_s1 + $0x1b8] sm:$0xff]  ;;  %v592_v10 = vpack.c.bf16 %v121_v7, %v120_v6  ;;  %v122_v12 = vld [vmem:[%s1303_s1 + $0xc0] sm:$0xff] }
  0x12   :  { %618 = vmatprep.subr.bf16.mxu0 %v697_v0  ;;  %v640_v11 = vpack.c.bf16 %v153_v9, %v152_v8  ;;  %v123_v13 = vld [vmem:[%s1303_s1 + $0xc8] sm:$0xff]  ;;  %v154_v14 = vld [vmem:[%s1303_s1 + $0x1c0] sm:$0xff]  ;;  %v124_v18 = vld [vmem:[%s1303_s1 + $0xd0] sm:$0xff] }
  0x13   :  { %v155_v15 = vld [vmem:[%s1303_s1 + $0x1c8] sm:$0xff]  ;;  %v595_v16 = vpack.c.bf16 %v123_v13, %v122_v12  ;;  %v125_v19 = vld [vmem:[%s1303_s1 + $0xd8] sm:$0xff]  ;;  %v156_v20 = vld [vmem:[%s1303_s1 + $0x1d0] sm:$0xff] }
  0x14   :  { %572 = vmatpush1.bf16.msra.mxu1 %v571_v29  ;;  %v643_v17 = vpack.c.bf16 %v155_v15, %v154_v14  ;;  %v157_v21 = vld [vmem:[%s1303_s1 + $0x1d8] sm:$0xff]  ;;  %v598_v22 = vpack.c.bf16 %v125_v19, %v124_v18  ;;  %v126_v24 = vld [vmem:[%s1303_s1 + $0xe0] sm:$0xff]  ;;  %v127_v25 = vld [vmem:[%s1303_s1 + $0xe8] sm:$0xff] }
  0x15   :  { %620 = vmatpush1.bf16.msra.mxu0 %v619_v30  ;;  %573 = vmatprep.subr.bf16.mxu1 %v697_v0  ;;  %v646_v23 = vpack.c.bf16 %v157_v21, %v156_v20  ;;  %v158_v26 = vld [vmem:[%s1303_s1 + $0x1e0] sm:$0xff]  ;;  %v159_v27 = vld [vmem:[%s1303_s1 + $0x1e8] sm:$0xff]  ;;  %v601_v28 = vpack.c.bf16 %v127_v25, %v126_v24  ;;  %v128_v30 = vld [vmem:[%s1303_s1 + $0xf0] sm:$0xff] }
  0x16   :  { %621 = vmatprep.subr.bf16.mxu0 %v697_v0  ;;  %v649_v29 = vpack.c.bf16 %v159_v27, %v158_v26  ;;  %v129_v31 = vld [vmem:[%s1303_s1 + $0xf8] sm:$0xff]  ;;  %v160_v32 = vld [vmem:[%s1303_s1 + $0x1f0] sm:$0xff]  ;;  %v19_v38 = vld [vmem:[%s1304_s0 + $0x28] sm:$0xff] }
  0x17   :  { %v161_v33 = vld [vmem:[%s1303_s1 + $0x1f8] sm:$0xff]  ;;  %v604_v34 = vpack.c.bf16 %v129_v31, %v128_v30  ;;  %v16_v37 = vld [vmem:[%s1304_s0 + $0x10] sm:$0xff]  ;;  %v23_v41 = vld [vmem:[%s1304_s0 + $0x48] sm:$0xff] }
  0x18   :  { %575 = vmatpush1.bf16.msra.mxu1 %v574_v35  ;;  %v652_v35 = vpack.c.bf16 %v161_v33, %v160_v32  ;;  %v21_v39 = vld [vmem:[%s1304_s0 + $0x38] sm:$0xff]  ;;  %v20_v40 = vld [vmem:[%s1304_s0 + $0x30] sm:$0xff]  ;;  %v27_v45 = vld [vmem:[%s1304_s0 + $0x68] sm:$0xff] }
  0x19   :  { %623 = vmatpush1.bf16.msra.mxu0 %v622_v36  ;;  %576 = vmatprep.subr.bf16.mxu1 %v697_v0  ;;  %v14_v36 = vld [vmem:[%s1304_s0] sm:$0xff]  ;;  %v25_v42 = vld [vmem:[%s1304_s0 + $0x58] sm:$0xff]  ;;  %v28_v48 = vld [vmem:[%s1304_s0 + $0x70] sm:$0xff] }
  0x1a   :  { %624 = vmatprep.subr.bf16.mxu0 %v697_v0  ;;  %v29_v46 = vld [vmem:[%s1304_s0 + $0x78] sm:$0xff]  ;;  %v26_v47 = vld [vmem:[%s1304_s0 + $0x60] sm:$0xff]  ;;  %v32_v52 = vld [vmem:[%s1304_s0 + $0x90] sm:$0xff] }
  0x1b   :  { %v30_v51 = vld [vmem:[%s1304_s0 + $0x80] sm:$0xff]  ;;  %v35_v53 = vld [vmem:[%s1304_s0 + $0xa8] sm:$0xff]  ;;  %v37_v54 = vld [vmem:[%s1304_s0 + $0xb8] sm:$0xff] }
  0x1c   :  { %578 = vmatpush1.bf16.msra.mxu1 %v577_v43  ;;  %v22_v43 = vld [vmem:[%s1304_s0 + $0x40] sm:$0xff]  ;;  %v39_v57 = vld [vmem:[%s1304_s0 + $0xc8] sm:$0xff]  ;;  %v41_v58 = vld [vmem:[%s1304_s0 + $0xd8] sm:$0xff] }
  0x1d   :  { %626 = vmatpush1.bf16.msra.mxu0 %v625_v44  ;;  %579 = vmatprep.subr.bf16.mxu1 %v697_v0  ;;  %v24_v44 = vld [vmem:[%s1304_s0 + $0x50] sm:$0xff]  ;;  %v38_v59 = vld [vmem:[%s1304_s0 + $0xc0] sm:$0xff]  ;;  %v47_v2 = vld [vmem:[%s1304_s0 + $0x108] sm:$0xff] }
  0x1e   :  { %627 = vmatprep.subr.bf16.mxu0 %v697_v0  ;;  %v40_v60 = vld [vmem:[%s1304_s0 + $0xd0] sm:$0xff]  ;;  %v42_v63 = vld [vmem:[%s1304_s0 + $0xe0] sm:$0xff]  ;;  %v49_v3 = vld [vmem:[%s1304_s0 + $0x118] sm:$0xff] }
  0x1f   :  { %v44_v1 = vld [vmem:[%s1304_s0 + $0xf0] sm:$0xff]  ;;  %v51_v6 = vld [vmem:[%s1304_s0 + $0x128] sm:$0xff]  ;;  %v53_v7 = vld [vmem:[%s1304_s0 + $0x138] sm:$0xff] }
  0x20   :  { %581 = vmatpush1.bf16.msra.mxu1 %v580_v49  ;;  %v31_v49 = vld [vmem:[%s1304_s0 + $0x88] sm:$0xff]  ;;  %v50_v8 = vld [vmem:[%s1304_s0 + $0x120] sm:$0xff]  ;;  %v52_v9 = vld [vmem:[%s1304_s0 + $0x130] sm:$0xff] }
  0x21   :  { %629 = vmatpush1.bf16.msra.mxu0 %v628_v50  ;;  %582 = vmatprep.subr.bf16.mxu1 %v697_v0  ;;  %v33_v50 = vld [vmem:[%s1304_s0 + $0x98] sm:$0xff]  ;;  %v54_v12 = vld [vmem:[%s1304_s0 + $0x140] sm:$0xff]  ;;  %v56_v13 = vld [vmem:[%s1304_s0 + $0x150] sm:$0xff] }
  0x22   :  { %630 = vmatprep.subr.bf16.mxu0 %v697_v0  ;;  %v59_v14 = vld [vmem:[%s1304_s0 + $0x168] sm:$0xff]  ;;  %v61_v15 = vld [vmem:[%s1304_s0 + $0x178] sm:$0xff]  ;;  %v62_v20 = vld [vmem:[%s1304_s0 + $0x180] sm:$0xff] }
  0x23   :  { %v63_v18 = vld [vmem:[%s1304_s0 + $0x188] sm:$0xff]  ;;  %v65_v19 = vld [vmem:[%s1304_s0 + $0x198] sm:$0xff]  ;;  %v64_v21 = vld [vmem:[%s1304_s0 + $0x190] sm:$0xff] }
  0x24   :  { %584 = vmatpush1.bf16.msra.mxu1 %v583_v55  ;;  %v34_v55 = vld [vmem:[%s1304_s0 + $0xa0] sm:$0xff]  ;;  %v68_v25 = vld [vmem:[%s1304_s0 + $0x1b0] sm:$0xff]  ;;  %v71_v26 = vld [vmem:[%s1304_s0 + $0x1c8] sm:$0xff] }
  0x25   :  { %632 = vmatpush1.bf16.msra.mxu0 %v631_v56  ;;  %585 = vmatprep.subr.bf16.mxu1 %v697_v0  ;;  %v36_v56 = vld [vmem:[%s1304_s0 + $0xb0] sm:$0xff]  ;;  %v66_v24 = vld [vmem:[%s1304_s0 + $0x1a0] sm:$0xff]  ;;  %v73_v27 = vld [vmem:[%s1304_s0 + $0x1d8] sm:$0xff] }
  0x26   :  { %633 = vmatprep.subr.bf16.mxu0 %v697_v0  ;;  %v75_v30 = vld [vmem:[%s1304_s0 + $0x1e8] sm:$0xff]  ;;  %v77_v31 = vld [vmem:[%s1304_s0 + $0x1f8] sm:$0xff]  ;;  %v74_v32 = vld [vmem:[%s1304_s0 + $0x1e0] sm:$0xff] }
  0x27   :  { %v76_v33 = vld [vmem:[%s1304_s0 + $0x1f0] sm:$0xff] }
  0x28   :  { %587 = vmatpush1.bf16.msra.mxu1 %v586_v61  ;;  %v43_v61 = vld [vmem:[%s1304_s0 + $0xe8] sm:$0xff] }
  0x29   :  { %635 = vmatpush1.bf16.msra.mxu0 %v634_v62  ;;  %588 = vmatprep.subr.bf16.mxu1 %v697_v0  ;;  %v45_v62 = vld [vmem:[%s1304_s0 + $0xf8] sm:$0xff] }
  0x2a   :  { %636 = vmatprep.subr.bf16.mxu0 %v697_v0 }
  0x2c   :  { %590 = vmatpush1.bf16.msra.mxu1 %v589_v4  ;;  %v46_v4 = vld [vmem:[%s1304_s0 + $0x100] sm:$0xff] }
  0x2d   :  { %638 = vmatpush1.bf16.msra.mxu0 %v637_v5  ;;  %591 = vmatprep.subr.bf16.mxu1 %v697_v0  ;;  %v48_v5 = vld [vmem:[%s1304_s0 + $0x110] sm:$0xff] }
  0x2e   :  { %639 = vmatprep.subr.bf16.mxu0 %v697_v0 }
  0x30   :  { %593 = vmatpush1.bf16.msra.mxu1 %v592_v10  ;;  %v55_v10 = vld [vmem:[%s1304_s0 + $0x148] sm:$0xff] }
  0x31   :  { %641 = vmatpush1.bf16.msra.mxu0 %v640_v11  ;;  %594 = vmatprep.subr.bf16.mxu1 %v697_v0  ;;  %v57_v11 = vld [vmem:[%s1304_s0 + $0x158] sm:$0xff] }
  0x32   :  { %642 = vmatprep.subr.bf16.mxu0 %v697_v0 }
  0x34   :  { %596 = vmatpush1.bf16.msra.mxu1 %v595_v16  ;;  %v58_v16 = vld [vmem:[%s1304_s0 + $0x160] sm:$0xff] }
  0x35   :  { %644 = vmatpush1.bf16.msra.mxu0 %v643_v17  ;;  %597 = vmatprep.subr.bf16.mxu1 %v697_v0  ;;  %v60_v17 = vld [vmem:[%s1304_s0 + $0x170] sm:$0xff] }
  0x36   :  { %645 = vmatprep.subr.bf16.mxu0 %v697_v0 }
  0x38   :  { %599 = vmatpush1.bf16.msra.mxu1 %v598_v22  ;;  %v67_v22 = vld [vmem:[%s1304_s0 + $0x1a8] sm:$0xff] }
  0x39   :  { %647 = vmatpush1.bf16.msra.mxu0 %v646_v23  ;;  %600 = vmatprep.subr.bf16.mxu1 %v697_v0  ;;  %v69_v23 = vld [vmem:[%s1304_s0 + $0x1b8] sm:$0xff] }
  0x3a   :  { %648 = vmatprep.subr.bf16.mxu0 %v697_v0 }
  0x3c   :  { %602 = vmatpush1.bf16.msra.mxu1 %v601_v28  ;;  %v70_v28 = vld [vmem:[%s1304_s0 + $0x1c0] sm:$0xff] }
  0x3d   :  { %650 = vmatpush1.bf16.msra.mxu0 %v649_v29  ;;  %603 = vmatprep.subr.bf16.mxu1 %v697_v0  ;;  %v72_v29 = vld [vmem:[%s1304_s0 + $0x1d0] sm:$0xff] }
  0x3e   :  { %651 = vmatprep.subr.bf16.mxu0 %v697_v0  ;;  %v18_v0 = vld [vmem:[%s1304_s0 + $0x20] sm:$0xff] }
  0x40   :  { %605 = vmatpush1.bf16.msra.mxu1 %v604_v34  ;;  %v79_v34 = vld [vmem:[%s1304_s0 + $0x208] sm:$0xff] }
  0x41   :  { %653 = vmatpush1.bf16.msra.mxu0 %v652_v35  ;;  %v81_v35 = vld [vmem:[%s1304_s0 + $0x218] sm:$0xff] }
  0x43   :  { %234 = vmatmul.mubr.f32.vlgmr.msra.gmra.mrb[0].mxu1 %v14_v36  ;;  %v78_v36 = vld [vmem:[%s1304_s0 + $0x200] sm:$0xff] }
  0x44   :  { %404 = vmatmul.mubr.f32.vlgmr.msra.gmra.mrb[0].mxu0 %v16_v37  ;;  %238 = vmatprep.mubr.f32.mxu1 %v19_v38  ;;  %v80_v37 = vld [vmem:[%s1304_s0 + $0x210] sm:$0xff]  ;;  %v83_v38 = vld [vmem:[%s1304_s0 + $0x228] sm:$0xff] }
  0x45   :  { %408 = vmatprep.mubr.f32.mxu0 %v21_v39  ;;  %v85_v39 = vld [vmem:[%s1304_s0 + $0x238] sm:$0xff] }
  0x47   :  { %239 = vmatmul.mubr.f32.gmra.mrb[2].mxu1 %v18_v0  ;;  %v82_v0 = vld [vmem:[%s1304_s0 + $0x220] sm:$0xff] }
  0x48   :  { %409 = vmatmul.mubr.f32.gmra.mrb[2].mxu0 %v20_v40  ;;  %243 = vmatprep.mubr.f32.mxu1 %v23_v41  ;;  %v84_v40 = vld [vmem:[%s1304_s0 + $0x230] sm:$0xff]  ;;  %v87_v41 = vld [vmem:[%s1304_s0 + $0x248] sm:$0xff] }
  0x49   :  { %413 = vmatprep.mubr.f32.mxu0 %v25_v42  ;;  %v89_v42 = vld [vmem:[%s1304_s0 + $0x258] sm:$0xff] }
  0x4b   :  { %244 = vmatmul.mubr.f32.gmra.mrb[4].mxu1 %v22_v43  ;;  %v86_v43 = vld [vmem:[%s1304_s0 + $0x240] sm:$0xff] }
  0x4c   :  { %414 = vmatmul.mubr.f32.gmra.mrb[4].mxu0 %v24_v44  ;;  %248 = vmatprep.mubr.f32.mxu1 %v27_v45  ;;  %v88_v44 = vld [vmem:[%s1304_s0 + $0x250] sm:$0xff]  ;;  %v91_v45 = vld [vmem:[%s1304_s0 + $0x268] sm:$0xff] }
  0x4d   :  { %418 = vmatprep.mubr.f32.mxu0 %v29_v46  ;;  %v93_v46 = vld [vmem:[%s1304_s0 + $0x278] sm:$0xff] }
  0x4f   :  { %249 = vmatmul.mubr.f32.gmra.mrb[6].mxu1 %v26_v47  ;;  %v90_v47 = vld [vmem:[%s1304_s0 + $0x260] sm:$0xff] }
  0x50   :  { %419 = vmatmul.mubr.f32.gmra.mrb[6].mxu0 %v28_v48  ;;  %253 = vmatprep.mubr.f32.mxu1 %v31_v49  ;;  %v92_v48 = vld [vmem:[%s1304_s0 + $0x270] sm:$0xff]  ;;  %v95_v49 = vld [vmem:[%s1304_s0 + $0x288] sm:$0x3] }
  0x51   :  { %423 = vmatprep.mubr.f32.mxu0 %v33_v50  ;;  %v97_v50 = vld [vmem:[%s1304_s0 + $0x298] sm:$0x3] }
  0x53   :  { %254 = vmatmul.mubr.f32.gmra.mrb[8].mxu1 %v30_v51  ;;  %v94_v51 = vld [vmem:[%s1304_s0 + $0x280] sm:$0x3] }
  0x54   :  { %424 = vmatmul.mubr.f32.gmra.mrb[8].mxu0 %v32_v52  ;;  %258 = vmatprep.mubr.f32.mxu1 %v35_v53  ;;  %v96_v52 = vld [vmem:[%s1304_s0 + $0x290] sm:$0x3]  ;;  %v1197_v53 = vld [vmem:[%s1305_s2] ss:$0 sm:$0xff] }
  0x55   :  { %428 = vmatprep.mubr.f32.mxu0 %v37_v54 }
  0x57   :  { %259 = vmatmul.mubr.f32.gmra.mrb[10].mxu1 %v34_v55 }
  0x58   :  { %429 = vmatmul.mubr.f32.gmra.mrb[10].mxu0 %v36_v56  ;;  %263 = vmatprep.mubr.f32.mxu1 %v39_v57 }
  0x59   :  { %433 = vmatprep.mubr.f32.mxu0 %v41_v58 }
  0x5b   :  { %264 = vmatmul.mubr.f32.gmra.mrb[12].mxu1 %v38_v59 }
  0x5c   :  { %434 = vmatmul.mubr.f32.gmra.mrb[12].mxu0 %v40_v60  ;;  %268 = vmatprep.mubr.f32.mxu1 %v43_v61 }
  0x5d   :  { %438 = vmatprep.mubr.f32.mxu0 %v45_v62 }
  0x5f   :  { %269 = vmatmul.mubr.f32.gmra.mrb[14].mxu1 %v42_v63 }
  0x60   :  { %439 = vmatmul.mubr.f32.gmra.mrb[14].mxu0 %v44_v1  ;;  %273 = vmatprep.mubr.f32.mxu1 %v47_v2 }
  0x61   :  { %443 = vmatprep.mubr.f32.mxu0 %v49_v3 }
  0x63   :  { %274 = vmatmul.mubr.f32.gmra.mrb[16].mxu1 %v46_v4 }
  0x64   :  { %444 = vmatmul.mubr.f32.gmra.mrb[16].mxu0 %v48_v5  ;;  %278 = vmatprep.mubr.f32.mxu1 %v51_v6 }
  0x65   :  { %448 = vmatprep.mubr.f32.mxu0 %v53_v7 }
  0x67   :  { %279 = vmatmul.mubr.f32.gmra.mrb[18].mxu1 %v50_v8 }
  0x68   :  { %449 = vmatmul.mubr.f32.gmra.mrb[18].mxu0 %v52_v9  ;;  %283 = vmatprep.mubr.f32.mxu1 %v55_v10 }
  0x69   :  { %453 = vmatprep.mubr.f32.mxu0 %v57_v11 }
  0x6b   :  { %284 = vmatmul.mubr.f32.gmra.mrb[20].mxu1 %v54_v12 }
  0x6c   :  { %454 = vmatmul.mubr.f32.gmra.mrb[20].mxu0 %v56_v13  ;;  %288 = vmatprep.mubr.f32.mxu1 %v59_v14 }
  0x6d   :  { %458 = vmatprep.mubr.f32.mxu0 %v61_v15 }
  0x6f   :  { %289 = vmatmul.mubr.f32.gmra.mrb[22].mxu1 %v58_v16 }
  0x70   :  { %459 = vmatmul.mubr.f32.gmra.mrb[22].mxu0 %v60_v17  ;;  %293 = vmatprep.mubr.f32.mxu1 %v63_v18 }
  0x71   :  { %463 = vmatprep.mubr.f32.mxu0 %v65_v19 }
  0x73   :  { %294 = vmatmul.mubr.f32.gmra.mrb[24].mxu1 %v62_v20 }
  0x74   :  { %464 = vmatmul.mubr.f32.gmra.mrb[24].mxu0 %v64_v21  ;;  %298 = vmatprep.mubr.f32.mxu1 %v67_v22 }
  0x75   :  { %468 = vmatprep.mubr.f32.mxu0 %v69_v23 }
  0x77   :  { %299 = vmatmul.mubr.f32.gmra.mrb[26].mxu1 %v66_v24 }
  0x78   :  { %469 = vmatmul.mubr.f32.gmra.mrb[26].mxu0 %v68_v25  ;;  %303 = vmatprep.mubr.f32.mxu1 %v71_v26 }
  0x79   :  { %473 = vmatprep.mubr.f32.mxu0 %v73_v27 }
  0x7b   :  { %304 = vmatmul.mubr.f32.gmra.mrb[28].mxu1 %v70_v28 }
  0x7c   :  { %474 = vmatmul.mubr.f32.gmra.mrb[28].mxu0 %v72_v29  ;;  %308 = vmatprep.mubr.f32.mxu1 %v75_v30 }
  0x7d   :  { %478 = vmatprep.mubr.f32.mxu0 %v77_v31 }
  0x7f   :  { %309 = vmatmul.mubr.f32.gmra.mrb[30].mxu1 %v74_v32 }
  0x80   :  { %479 = vmatmul.mubr.f32.gmra.mrb[30].mxu0 %v76_v33  ;;  %313 = vmatprep.mubr.f32.mxu1 %v79_v34 }
  0x81   :  { %483 = vmatprep.mubr.f32.mxu0 %v81_v35 }
  0x83   :  { %314 = vmatmul.mubr.f32.gmra.mrb[32].mxu1 %v78_v36 }
  0x84   :  { %484 = vmatmul.mubr.f32.gmra.mrb[32].mxu0 %v80_v37  ;;  %318 = vmatprep.mubr.f32.mxu1 %v83_v38 }
  0x85   :  { %488 = vmatprep.mubr.f32.mxu0 %v85_v39 }
  0x87   :  { %319 = vmatmul.mubr.f32.gmra.mrb[34].mxu1 %v82_v0 }
  0x88   :  { %489 = vmatmul.mubr.f32.gmra.mrb[34].mxu0 %v84_v40  ;;  %323 = vmatprep.mubr.f32.mxu1 %v87_v41 }
  0x89   :  { %493 = vmatprep.mubr.f32.mxu0 %v89_v42 }
  0x8b   :  { %324 = vmatmul.mubr.f32.gmra.mrb[36].mxu1 %v86_v43 }
  0x8c   :  { %494 = vmatmul.mubr.f32.gmra.mrb[36].mxu0 %v88_v44  ;;  %328 = vmatprep.mubr.f32.mxu1 %v91_v45 }
  0x8d   :  { %498 = vmatprep.mubr.f32.mxu0 %v93_v46 }
  0x8f   :  { %329 = vmatmul.mubr.f32.gmra.mrb[38].mxu1 %v90_v47 }
  0x90   :  { %499 = vmatmul.mubr.f32.gmra.mrb[38].mxu0 %v92_v48  ;;  %333 = vmatprep.mubr.f32.mxu1 %v95_v49 }
  0x91   :  { %503 = vmatprep.mubr.f32.mxu0 %v97_v50 }
  0x93   :  { %334 = vmatmul.mubr.f32.gmra.mrb[40].mxu1 %v94_v51 }
  0x94   :  { %504 = vmatmul.mubr.f32.gmra.mrb[40].mxu0 %v96_v52 }
 0x116   :  { %v235_v54 = vpop.f32.mrb[0].mxu1 }
 0x117   :  { %v236_v55 = vadd.f32 %v1197_v53, %v235_v54  ;;  %v237_v56 = vpop.f32.mrb[1].mxu1  ;;  %v405_v57 = vpop.f32.mrb[0].mxu0 }
 0x118   :  { %v407_v58 = vpop.f32.mrb[1].mxu0 }
 0x119   :  { %v406_v59 = vadd.f32 %v405_v57, %v236_v55 }
 0x11a   :  { %v240_v60 = vpop.f32.mrb[2].mxu1 }
 0x11b   :  { %v509_v61 = vmax.f32 %v406_v59, 0.0  ;;  %v241_v62 = vadd.f32 %v1197_v53, %v240_v60  ;;  %v242_v63 = vpop.f32.mrb[3].mxu1  ;;  %v410_v1 = vpop.f32.mrb[2].mxu0 }
 0x11c   :  { %v412_v2 = vpop.f32.mrb[3].mxu0 }
 0x11d   :  { %531 = vst.msk [vmem:[%s1306_s3] sm:$0xff] %vm530_vm0, %v509_v61  ;;  %v411_v3 = vadd.f32 %v410_v1, %v241_v62 }
 0x11e   :  { %v245_v4 = vpop.f32.mrb[4].mxu1 }
 0x11f   :  { %v510_v5 = vmax.f32 %v411_v3, 0.0  ;;  %v246_v6 = vadd.f32 %v1197_v53, %v245_v4  ;;  %v247_v7 = vpop.f32.mrb[5].mxu1  ;;  %v415_v8 = vpop.f32.mrb[4].mxu0 }
 0x120   :  { %v417_v9 = vpop.f32.mrb[5].mxu0 }
 0x121   :  { %532 = vst.msk [vmem:[%s1306_s3 + $0x8] sm:$0xff] %vm530_vm0, %v510_v5  ;;  %v416_v10 = vadd.f32 %v415_v8, %v246_v6 }
 0x122   :  { %v250_v11 = vpop.f32.mrb[6].mxu1 }
 0x123   :  { %v511_v12 = vmax.f32 %v416_v10, 0.0  ;;  %v251_v13 = vadd.f32 %v1197_v53, %v250_v11  ;;  %v252_v14 = vpop.f32.mrb[7].mxu1  ;;  %v420_v15 = vpop.f32.mrb[6].mxu0 }
 0x124   :  { %v422_v16 = vpop.f32.mrb[7].mxu0 }
 0x125   :  { %533 = vst.msk [vmem:[%s1306_s3 + $0x10] sm:$0xff] %vm530_vm0, %v511_v12  ;;  %v421_v17 = vadd.f32 %v420_v15, %v251_v13 }
 0x126   :  { %v255_v18 = vpop.f32.mrb[8].mxu1 }
 0x127   :  { %v512_v19 = vmax.f32 %v421_v17, 0.0  ;;  %v256_v20 = vadd.f32 %v1197_v53, %v255_v18  ;;  %v257_v21 = vpop.f32.mrb[9].mxu1  ;;  %v425_v22 = vpop.f32.mrb[8].mxu0 }
 0x128   :  { %v427_v23 = vpop.f32.mrb[9].mxu0 }
 0x129   :  { %534 = vst.msk [vmem:[%s1306_s3 + $0x18] sm:$0xff] %vm530_vm0, %v512_v19  ;;  %v426_v24 = vadd.f32 %v425_v22, %v256_v20 }
 0x12a   :  { %v260_v25 = vpop.f32.mrb[10].mxu1 }
 0x12b   :  { %v513_v26 = vmax.f32 %v426_v24, 0.0  ;;  %v261_v27 = vadd.f32 %v1197_v53, %v260_v25  ;;  %v262_v28 = vpop.f32.mrb[11].mxu1  ;;  %v430_v29 = vpop.f32.mrb[10].mxu0 }
 0x12c   :  { %v432_v30 = vpop.f32.mrb[11].mxu0 }
 0x12d   :  { %535 = vst.msk [vmem:[%s1306_s3 + $0x20] sm:$0xff] %vm530_vm0, %v513_v26  ;;  %v431_v31 = vadd.f32 %v430_v29, %v261_v27 }
 0x12e   :  { %v265_v32 = vpop.f32.mrb[12].mxu1 }
 0x12f   :  { %v514_v33 = vmax.f32 %v431_v31, 0.0  ;;  %v266_v34 = vadd.f32 %v1197_v53, %v265_v32  ;;  %v267_v35 = vpop.f32.mrb[13].mxu1  ;;  %v435_v36 = vpop.f32.mrb[12].mxu0 }
 0x130   :  { %v437_v37 = vpop.f32.mrb[13].mxu0 }
 0x131   :  { %536 = vst.msk [vmem:[%s1306_s3 + $0x28] sm:$0xff] %vm530_vm0, %v514_v33  ;;  %v436_v38 = vadd.f32 %v435_v36, %v266_v34 }
 0x132   :  { %v270_v39 = vpop.f32.mrb[14].mxu1 }
 0x133   :  { %v515_v0 = vmax.f32 %v436_v38, 0.0  ;;  %v271_v40 = vadd.f32 %v1197_v53, %v270_v39  ;;  %v272_v41 = vpop.f32.mrb[15].mxu1  ;;  %v440_v42 = vpop.f32.mrb[14].mxu0 }
 0x134   :  { %v442_v43 = vpop.f32.mrb[15].mxu0 }
 0x135   :  { %537 = vst.msk [vmem:[%s1306_s3 + $0x30] sm:$0xff] %vm530_vm0, %v515_v0  ;;  %v441_v44 = vadd.f32 %v440_v42, %v271_v40 }
 0x136   :  { %v275_v45 = vpop.f32.mrb[16].mxu1 }
 0x137   :  { %v516_v46 = vmax.f32 %v441_v44, 0.0  ;;  %v276_v47 = vadd.f32 %v1197_v53, %v275_v45  ;;  %v277_v48 = vpop.f32.mrb[17].mxu1  ;;  %v445_v49 = vpop.f32.mrb[16].mxu0 }
 0x138   :  { %v447_v50 = vpop.f32.mrb[17].mxu0 }
 0x139   :  { %538 = vst.msk [vmem:[%s1306_s3 + $0x38] sm:$0xff] %vm530_vm0, %v516_v46  ;;  %v446_v51 = vadd.f32 %v445_v49, %v276_v47 }
 0x13a   :  { %v280_v52 = vpop.f32.mrb[18].mxu1 }
 0x13b   :  { %v517_v54 = vmax.f32 %v446_v51, 0.0  ;;  %v281_v55 = vadd.f32 %v1197_v53, %v280_v52  ;;  %v282_v56 = vpop.f32.mrb[19].mxu1  ;;  %v450_v57 = vpop.f32.mrb[18].mxu0 }
 0x13c   :  { %v452_v58 = vpop.f32.mrb[19].mxu0 }
 0x13d   :  { %539 = vst.msk [vmem:[%s1306_s3 + $0x40] sm:$0xff] %vm530_vm0, %v517_v54  ;;  %v451_v59 = vadd.f32 %v450_v57, %v281_v55 }
 0x13e   :  { %v285_v60 = vpop.f32.mrb[20].mxu1 }
 0x13f   :  { %v518_v61 = vmax.f32 %v451_v59, 0.0  ;;  %v286_v62 = vadd.f32 %v1197_v53, %v285_v60  ;;  %v287_v63 = vpop.f32.mrb[21].mxu1  ;;  %v455_v1 = vpop.f32.mrb[20].mxu0 }
 0x140   :  { %v457_v2 = vpop.f32.mrb[21].mxu0 }
 0x141   :  { %540 = vst.msk [vmem:[%s1306_s3 + $0x48] sm:$0xff] %vm530_vm0, %v518_v61  ;;  %v456_v3 = vadd.f32 %v455_v1, %v286_v62 }
 0x142   :  { %v290_v4 = vpop.f32.mrb[22].mxu1 }
 0x143   :  { %v519_v5 = vmax.f32 %v456_v3, 0.0  ;;  %v291_v6 = vadd.f32 %v1197_v53, %v290_v4  ;;  %v292_v7 = vpop.f32.mrb[23].mxu1  ;;  %v460_v8 = vpop.f32.mrb[22].mxu0 }
 0x144   :  { %v462_v9 = vpop.f32.mrb[23].mxu0 }
 0x145   :  { %541 = vst.msk [vmem:[%s1306_s3 + $0x50] sm:$0xff] %vm530_vm0, %v519_v5  ;;  %v461_v10 = vadd.f32 %v460_v8, %v291_v6 }
 0x146   :  { %v295_v11 = vpop.f32.mrb[24].mxu1 }
 0x147   :  { %v520_v12 = vmax.f32 %v461_v10, 0.0  ;;  %v296_v13 = vadd.f32 %v1197_v53, %v295_v11  ;;  %v297_v14 = vpop.f32.mrb[25].mxu1  ;;  %v465_v15 = vpop.f32.mrb[24].mxu0 }
 0x148   :  { %v467_v16 = vpop.f32.mrb[25].mxu0 }
 0x149   :  { %542 = vst.msk [vmem:[%s1306_s3 + $0x58] sm:$0xff] %vm530_vm0, %v520_v12  ;;  %v466_v17 = vadd.f32 %v465_v15, %v296_v13 }
 0x14a   :  { %v300_v18 = vpop.f32.mrb[26].mxu1 }
 0x14b   :  { %v521_v19 = vmax.f32 %v466_v17, 0.0  ;;  %v301_v20 = vadd.f32 %v1197_v53, %v300_v18  ;;  %v302_v21 = vpop.f32.mrb[27].mxu1  ;;  %v470_v22 = vpop.f32.mrb[26].mxu0 }
 0x14c   :  { %v472_v23 = vpop.f32.mrb[27].mxu0 }
 0x14d   :  { %543 = vst.msk [vmem:[%s1306_s3 + $0x60] sm:$0xff] %vm530_vm0, %v521_v19  ;;  %v471_v24 = vadd.f32 %v470_v22, %v301_v20 }
 0x14e   :  { %v305_v25 = vpop.f32.mrb[28].mxu1 }
 0x14f   :  { %v522_v26 = vmax.f32 %v471_v24, 0.0  ;;  %v306_v27 = vadd.f32 %v1197_v53, %v305_v25  ;;  %v307_v28 = vpop.f32.mrb[29].mxu1  ;;  %v475_v29 = vpop.f32.mrb[28].mxu0 }
 0x150   :  { %v477_v30 = vpop.f32.mrb[29].mxu0 }
 0x151   :  { %544 = vst.msk [vmem:[%s1306_s3 + $0x68] sm:$0xff] %vm530_vm0, %v522_v26  ;;  %v476_v31 = vadd.f32 %v475_v29, %v306_v27 }
 0x152   :  { %v310_v32 = vpop.f32.mrb[30].mxu1 }
 0x153   :  { %v523_v33 = vmax.f32 %v476_v31, 0.0  ;;  %v311_v34 = vadd.f32 %v1197_v53, %v310_v32  ;;  %v312_v35 = vpop.f32.mrb[31].mxu1  ;;  %v480_v36 = vpop.f32.mrb[30].mxu0 }
 0x154   :  { %v482_v37 = vpop.f32.mrb[31].mxu0 }
 0x155   :  { %545 = vst.msk [vmem:[%s1306_s3 + $0x70] sm:$0xff] %vm530_vm0, %v523_v33  ;;  %v481_v38 = vadd.f32 %v480_v36, %v311_v34 }
 0x156   :  { %v315_v39 = vpop.f32.mrb[32].mxu1 }
 0x157   :  { %v524_v0 = vmax.f32 %v481_v38, 0.0  ;;  %v316_v40 = vadd.f32 %v1197_v53, %v315_v39  ;;  %v317_v41 = vpop.f32.mrb[33].mxu1  ;;  %v485_v42 = vpop.f32.mrb[32].mxu0 }
 0x158   :  { %v487_v43 = vpop.f32.mrb[33].mxu0 }
 0x159   :  { %546 = vst.msk [vmem:[%s1306_s3 + $0x78] sm:$0xff] %vm530_vm0, %v524_v0  ;;  %v486_v44 = vadd.f32 %v485_v42, %v316_v40 }
 0x15a   :  { %v320_v45 = vpop.f32.mrb[34].mxu1 }
 0x15b   :  { %v525_v46 = vmax.f32 %v486_v44, 0.0  ;;  %v321_v47 = vadd.f32 %v1197_v53, %v320_v45  ;;  %v322_v48 = vpop.f32.mrb[35].mxu1  ;;  %v490_v49 = vpop.f32.mrb[34].mxu0 }
 0x15c   :  { %v492_v50 = vpop.f32.mrb[35].mxu0 }
 0x15d   :  { %547 = vst.msk [vmem:[%s1306_s3 + $0x80] sm:$0xff] %vm530_vm0, %v525_v46  ;;  %v491_v51 = vadd.f32 %v490_v49, %v321_v47 }
 0x15e   :  { %v325_v52 = vpop.f32.mrb[36].mxu1 }
 0x15f   :  { %v526_v54 = vmax.f32 %v491_v51, 0.0  ;;  %v326_v55 = vadd.f32 %v1197_v53, %v325_v52  ;;  %v327_v56 = vpop.f32.mrb[37].mxu1  ;;  %v495_v57 = vpop.f32.mrb[36].mxu0 }
 0x160   :  { %v497_v58 = vpop.f32.mrb[37].mxu0 }
 0x161   :  { %548 = vst.msk [vmem:[%s1306_s3 + $0x88] sm:$0xff] %vm530_vm0, %v526_v54  ;;  %v496_v59 = vadd.f32 %v495_v57, %v326_v55 }
 0x162   :  { %v330_v60 = vpop.f32.mrb[38].mxu1 }
 0x163   :  { %v527_v61 = vmax.f32 %v496_v59, 0.0  ;;  %v331_v62 = vadd.f32 %v1197_v53, %v330_v60  ;;  %v332_v63 = vpop.f32.mrb[39].mxu1  ;;  %v500_v1 = vpop.f32.mrb[38].mxu0 }
 0x164   :  { %v502_v2 = vpop.f32.mrb[39].mxu0 }
 0x165   :  { %549 = vst.msk [vmem:[%s1306_s3 + $0x90] sm:$0xff] %vm530_vm0, %v527_v61  ;;  %v501_v3 = vadd.f32 %v500_v1, %v331_v62 }
 0x166   :  { %v335_v4 = vpop.f32.mrb[40].mxu1 }
 0x167   :  { %v528_v5 = vmax.f32 %v501_v3, 0.0  ;;  %v336_v6 = vadd.f32 %v1197_v53, %v335_v4  ;;  %v337_v7 = vpop.f32.mrb[41].mxu1  ;;  %v505_v8 = vpop.f32.mrb[40].mxu0 }
 0x168   :  { %v507_v9 = vpop.f32.mrb[41].mxu0 }
 0x169   :  { %550 = vst.msk [vmem:[%s1306_s3 + $0x98] sm:$0xff] %vm530_vm0, %v528_v5  ;;  %v506_v10 = vadd.f32 %v505_v8, %v336_v6 }
 0x16b   :  { %v529_v11 = vmax.f32 %v506_v10, 0.0 }
 0x16d   :  { %552 = vst.msk [vmem:[%s1306_s3 + $0xa0] sm:$0x3] %vm551_vm1, %v529_v11 }

// kernel: dqn_forward.5
= control target key start
LH: loop header
LB: loop body
LE: loop exit
PB: predicated region body
PF: predicated region fallthrough
CT: control target
= control target key end

     0   :  { %12 = vsyncpa [#allocation5], 0  ;;  %s7751_s24 = smov 0   ;;  %s7753_s25 = smov 0   ;;  %s9770_s0 = inlined_call_operand.vmem [shape: f32[98,576], index: 0, kind: input, shape index: {}]   ;;  %s9771_s1 = inlined_call_operand.vmem [shape: f32[576,64], index: 1, kind: input, shape index: {}]   ;;  %s9772_s2 = inlined_call_operand.vmem [shape: f32[1,64], index: 2, kind: input, shape index: {}]   ;;  %s9773_s3 = inlined_call_operand.vmem [shape: bf16[3136,512], index: 3, kind: input, shape index: {}]   ;;  %s9774_s4 = inlined_call_operand.vmem [shape: f32[1,512], index: 4, kind: input, shape index: {}]   ;;  %s9775_s5 = inlined_call_operand.vmem [shape: bf16[512,128], index: 5, kind: input, shape index: {}]   ;;  %s9776_s6 = inlined_call_operand.vmem [shape: f32[1,128], index: 6, kind: input, shape index: {}]   ;;  %s9777_s7 = inlined_call_operand.hbm [shape: f32[2,128], index: 7, kind: output, shape index: {}]  }
   0x1   :  { %s7755_s26 = smov 0  }
   0x2 LB: > { %s7767_s27 = sadd.s32 4294967295, %s7701_s26   ;;  %s7770_s28 = sadd.s32 1, %s7701_s26   ;;  %s7701_s26 = sphi %s7755_s26, %s9780_s26   ;;  %s7697_s25 = sphi %s7753_s25, %s9779_s25   ;;  %s7693_s24 = sphi %s7751_s24, %s9778_s24  }
   0x3   : > { %s85_s29 = ssub.s32 %s7701_s26, %s7770_s28  ;;  %s88_s30 = sadd.s32 1, %s7697_s25 }
   0x4   : > { %p86_p0 = scmp.eq.s32.totalorder %s85_s29, 0  ;;  %p95_p1 = scmp.ne.s32.totalorder %s7697_s25, %s7693_s24 }
   0x5   : > { %p96_p2 = scmp.eq.s32.totalorder %s7701_s26, 0  ;;  %p6189_p4 = scmp.ge.s32.totalorder %s7701_s26, 2 }
   0x6   : > { %s7779_s8 = scalar_select %p86_p0, %s7697_s25, %s88_s30  }
   0x7   : > { %p97_p3 = por %p96_p2, %p95_p1  ;;  %227 = sbr.rel (%p6189_p4) target bundleno = 214 (0xd6), region = 32 }
   0xe   : > { %230 = sbr.rel (!%p97_p3) target bundleno = 214 (0xd6), region = 36  ;;  %s232_s9 = sand.u32 (%p97_p3), 1, %s7697_s25  }
   0xf   : > { %s6626_s10 = sshll.u32 (%p97_p3), %s7701_s26, 3  ;;  %s6999_s11 = smul.u32 (%p97_p3), 3136, %s232_s9 }
  0x10   : > { %s7787_s14 = scalar_lea.vmem (%p97_p3), %s9773_s3, %s6626_s10 }
  0x11   : > { %v1047_v0 = vld [vmem:[%s7787_s14] sm:$0xff] (%p97_p3)  ;;  %v1049_v1 = vld [vmem:[%s7787_s14 + $0x10] sm:$0xff] (%p97_p3)  ;;  %s7795_s15 = scalar_lea.vmem (%p97_p3), [#allocation3], %s6999_s11 }
  0x12   : > { %v1051_v2 = vld [vmem:[%s7787_s14 + $0x20] sm:$0xff] (%p97_p3)  ;;  %v1053_v3 = vld [vmem:[%s7787_s14 + $0x30] sm:$0xff] (%p97_p3)  ;;  %1048 = vst [vmem:[%s7795_s15] sm:$0xff] (%p97_p3), %v1047_v0  ;;  %1050 = vst [vmem:[%s7795_s15 + $0x8] sm:$0xff] (%p97_p3), %v1049_v1 }
  0x13   : > { %v1055_v4 = vld [vmem:[%s7787_s14 + $0x40] sm:$0xff] (%p97_p3)  ;;  %v1057_v5 = vld [vmem:[%s7787_s14 + $0x50] sm:$0xff] (%p97_p3)  ;;  %1052 = vst [vmem:[%s7795_s15 + $0x10] sm:$0xff] (%p97_p3), %v1051_v2  ;;  %1054 = vst [vmem:[%s7795_s15 + $0x18] sm:$0xff] (%p97_p3), %v1053_v3 }
  0x14   : > { %1056 = vst [vmem:[%s7795_s15 + $0x20] sm:$0xff] (%p97_p3), %v1055_v4  ;;  %1058 = vst [vmem:[%s7795_s15 + $0x28] sm:$0xff] (%p97_p3), %v1057_v5  ;;  %v1059_v6 = vld [vmem:[%s7787_s14 + $0x60] sm:$0xff] (%p97_p3)  ;;  %v1061_v7 = vld [vmem:[%s7787_s14 + $0x70] sm:$0xff] (%p97_p3) }
  0x15   : > { %v1063_v8 = vld [vmem:[%s7787_s14 + $0x80] sm:$0xff]  ;;  %1060 = vst [vmem:[%s7795_s15 + $0x30] sm:$0xff] %v1059_v6  ;;  %1062 = vst [vmem:[%s7795_s15 + $0x38] sm:$0xff] %v1061_v7  ;;  %v1065_v9 = vld [vmem:[%s7787_s14 + $0x90] sm:$0xff] }
  0x16   : > { %1064 = vst [vmem:[%s7795_s15 + $0x40] sm:$0xff] %v1063_v8  ;;  %v1067_v10 = vld [vmem:[%s7787_s14 + $0xa0] sm:$0xff]  ;;  %v1069_v11 = vld [vmem:[%s7787_s14 + $0xb0] sm:$0xff]  ;;  %1066 = vst [vmem:[%s7795_s15 + $0x48] sm:$0xff] %v1065_v9 }
  0x17   : > { %1068 = vst [vmem:[%s7795_s15 + $0x50] sm:$0xff] %v1067_v10  ;;  %1070 = vst [vmem:[%s7795_s15 + $0x58] sm:$0xff] %v1069_v11  ;;  %v1071_v12 = vld [vmem:[%s7787_s14 + $0xc0] sm:$0xff]  ;;  %v1073_v13 = vld [vmem:[%s7787_s14 + $0xd0] sm:$0xff] }
  0x18   : > { %v1075_v14 = vld [vmem:[%s7787_s14 + $0xe0] sm:$0xff]  ;;  %1072 = vst [vmem:[%s7795_s15 + $0x60] sm:$0xff] %v1071_v12  ;;  %1074 = vst [vmem:[%s7795_s15 + $0x68] sm:$0xff] %v1073_v13  ;;  %v1077_v15 = vld [vmem:[%s7787_s14 + $0xf0] sm:$0xff] }
  0x19   : > { %1076 = vst [vmem:[%s7795_s15 + $0x70] sm:$0xff] %v1075_v14  ;;  %v1079_v16 = vld [vmem:[%s7787_s14 + $0x100] sm:$0xff]  ;;  %v1081_v17 = vld [vmem:[%s7787_s14 + $0x110] sm:$0xff]  ;;  %1078 = vst [vmem:[%s7795_s15 + $0x78] sm:$0xff] %v1077_v15 }
  0x1a   : > { %1080 = vst [vmem:[%s7795_s15 + $0x80] sm:$0xff] %v1079_v16  ;;  %1082 = vst [vmem:[%s7795_s15 + $0x88] sm:$0xff] %v1081_v17  ;;  %v1083_v18 = vld [vmem:[%s7787_s14 + $0x120] sm:$0xff]  ;;  %v1085_v19 = vld [vmem:[%s7787_s14 + $0x130] sm:$0xff] }
  0x1b   : > { %v1087_v20 = vld [vmem:[%s7787_s14 + $0x140] sm:$0xff]  ;;  %1084 = vst [vmem:[%s7795_s15 + $0x90] sm:$0xff] %v1083_v18  ;;  %1086 = vst [vmem:[%s7795_s15 + $0x98] sm:$0xff] %v1085_v19  ;;  %v1089_v21 = vld [vmem:[%s7787_s14 + $0x150] sm:$0xff] }
  0x1c   : > { %1088 = vst [vmem:[%s7795_s15 + $0xa0] sm:$0xff] %v1087_v20  ;;  %v1091_v22 = vld [vmem:[%s7787_s14 + $0x160] sm:$0xff]  ;;  %v1093_v23 = vld [vmem:[%s7787_s14 + $0x170] sm:$0xff]  ;;  %1090 = vst [vmem:[%s7795_s15 + $0xa8] sm:$0xff] %v1089_v21 }
  0x1d   : > { %1092 = vst [vmem:[%s7795_s15 + $0xb0] sm:$0xff] %v1091_v22  ;;  %1094 = vst [vmem:[%s7795_s15 + $0xb8] sm:$0xff] %v1093_v23  ;;  %v1095_v24 = vld [vmem:[%s7787_s14 + $0x180] sm:$0xff]  ;;  %v1097_v25 = vld [vmem:[%s7787_s14 + $0x190] sm:$0xff] }
  0x1e   : > { %v1099_v26 = vld [vmem:[%s7787_s14 + $0x1a0] sm:$0xff]  ;;  %1096 = vst [vmem:[%s7795_s15 + $0xc0] sm:$0xff] %v1095_v24  ;;  %1098 = vst [vmem:[%s7795_s15 + $0xc8] sm:$0xff] %v1097_v25  ;;  %v1101_v27 = vld [vmem:[%s7787_s14 + $0x1b0] sm:$0xff] }
  0x1f   : > { %1100 = vst [vmem:[%s7795_s15 + $0xd0] sm:$0xff] %v1099_v26  ;;  %v1103_v28 = vld [vmem:[%s7787_s14 + $0x1c0] sm:$0xff]  ;;  %v1105_v29 = vld [vmem:[%s7787_s14 + $0x1d0] sm:$0xff]  ;;  %1102 = vst [vmem:[%s7795_s15 + $0xd8] sm:$0xff] %v1101_v27 }
  0x20   : > { %1104 = vst [vmem:[%s7795_s15 + $0xe0] sm:$0xff] %v1103_v28  ;;  %1106 = vst [vmem:[%s7795_s15 + $0xe8] sm:$0xff] %v1105_v29  ;;  %v1107_v30 = vld [vmem:[%s7787_s14 + $0x1e0] sm:$0xff]  ;;  %v1109_v31 = vld [vmem:[%s7787_s14 + $0x1f0] sm:$0xff] }
  0x21   : > { %v1111_v32 = vld [vmem:[%s7787_s14 + $0x200] sm:$0xff]  ;;  %1108 = vst [vmem:[%s7795_s15 + $0xf0] sm:$0xff] %v1107_v30  ;;  %1110 = vst [vmem:[%s7795_s15 + $0xf8] sm:$0xff] %v1109_v31  ;;  %v1113_v33 = vld [vmem:[%s7787_s14 + $0x210] sm:$0xff] }
  0x22   : > { %1112 = vst [vmem:[%s7795_s15 + $0x100] sm:$0xff] %v1111_v32  ;;  %v1115_v34 = vld [vmem:[%s7787_s14 + $0x220] sm:$0xff]  ;;  %v1117_v35 = vld [vmem:[%s7787_s14 + $0x230] sm:$0xff]  ;;  %1114 = vst [vmem:[%s7795_s15 + $0x108] sm:$0xff] %v1113_v33 }
  0x23   : > { %1116 = vst [vmem:[%s7795_s15 + $0x110] sm:$0xff] %v1115_v34  ;;  %1118 = vst [vmem:[%s7795_s15 + $0x118] sm:$0xff] %v1117_v35  ;;  %v1119_v36 = vld [vmem:[%s7787_s14 + $0x240] sm:$0xff]  ;;  %v1121_v37 = vld [vmem:[%s7787_s14 + $0x250] sm:$0xff] }
  0x24   : > { %v1123_v38 = vld [vmem:[%s7787_s14 + $0x260] sm:$0xff]  ;;  %1120 = vst [vmem:[%s7795_s15 + $0x120] sm:$0xff] %v1119_v36  ;;  %1122 = vst [vmem:[%s7795_s15 + $0x128] sm:$0xff] %v1121_v37  ;;  %v1125_v39 = vld [vmem:[%s7787_s14 + $0x270] sm:$0xff] }
  0x25   : > { %1124 = vst [vmem:[%s7795_s15 + $0x130] sm:$0xff] %v1123_v38  ;;  %v1127_v40 = vld [vmem:[%s7787_s14 + $0x280] sm:$0xff]  ;;  %v1129_v41 = vld [vmem:[%s7787_s14 + $0x290] sm:$0xff]  ;;  %1126 = vst [vmem:[%s7795_s15 + $0x138] sm:$0xff] %v1125_v39 }
  0x26   : > { %1128 = vst [vmem:[%s7795_s15 + $0x140] sm:$0xff] %v1127_v40  ;;  %1130 = vst [vmem:[%s7795_s15 + $0x148] sm:$0xff] %v1129_v41  ;;  %v1131_v42 = vld [vmem:[%s7787_s14 + $0x2a0] sm:$0xff]  ;;  %v1133_v43 = vld [vmem:[%s7787_s14 + $0x2b0] sm:$0xff] }
  0x27   : > { %v1135_v44 = vld [vmem:[%s7787_s14 + $0x2c0] sm:$0xff]  ;;  %1132 = vst [vmem:[%s7795_s15 + $0x150] sm:$0xff] %v1131_v42  ;;  %1134 = vst [vmem:[%s7795_s15 + $0x158] sm:$0xff] %v1133_v43  ;;  %v1137_v45 = vld [vmem:[%s7787_s14 + $0x2d0] sm:$0xff] }
  0x28   : > { %1136 = vst [vmem:[%s7795_s15 + $0x160] sm:$0xff] %v1135_v44  ;;  %v1139_v46 = vld [vmem:[%s7787_s14 + $0x2e0] sm:$0xff]  ;;  %v1141_v47 = vld [vmem:[%s7787_s14 + $0x2f0] sm:$0xff]  ;;  %1138 = vst [vmem:[%s7795_s15 + $0x168] sm:$0xff] %v1137_v45 }
  0x29   : > { %1140 = vst [vmem:[%s7795_s15 + $0x170] sm:$0xff] %v1139_v46  ;;  %1142 = vst [vmem:[%s7795_s15 + $0x178] sm:$0xff] %v1141_v47  ;;  %v1143_v48 = vld [vmem:[%s7787_s14 + $0x300] sm:$0xff]  ;;  %v1145_v49 = vld [vmem:[%s7787_s14 + $0x310] sm:$0xff] }
  0x2a   : > { %v1147_v50 = vld [vmem:[%s7787_s14 + $0x320] sm:$0xff]  ;;  %1144 = vst [vmem:[%s7795_s15 + $0x180] sm:$0xff] %v1143_v48  ;;  %1146 = vst [vmem:[%s7795_s15 + $0x188] sm:$0xff] %v1145_v49  ;;  %v1149_v51 = vld [vmem:[%s7787_s14 + $0x330] sm:$0xff] }
  0x2b   : > { %1148 = vst [vmem:[%s7795_s15 + $0x190] sm:$0xff] %v1147_v50  ;;  %v1151_v52 = vld [vmem:[%s7787_s14 + $0x340] sm:$0xff]  ;;  %v1153_v53 = vld [vmem:[%s7787_s14 + $0x350] sm:$0xff]  ;;  %1150 = vst [vmem:[%s7795_s15 + $0x198] sm:$0xff] %v1149_v51 }
  0x2c   : > { %1152 = vst [vmem:[%s7795_s15 + $0x1a0] sm:$0xff] %v1151_v52  ;;  %1154 = vst [vmem:[%s7795_s15 + $0x1a8] sm:$0xff] %v1153_v53  ;;  %v1155_v54 = vld [vmem:[%s7787_s14 + $0x360] sm:$0xff]  ;;  %v1157_v55 = vld [vmem:[%s7787_s14 + $0x370] sm:$0xff] }
  0x2d   : > { %v1159_v56 = vld [vmem:[%s7787_s14 + $0x380] sm:$0xff]  ;;  %1156 = vst [vmem:[%s7795_s15 + $0x1b0] sm:$0xff] %v1155_v54  ;;  %1158 = vst [vmem:[%s7795_s15 + $0x1b8] sm:$0xff] %v1157_v55  ;;  %v1161_v57 = vld [vmem:[%s7787_s14 + $0x390] sm:$0xff] }
  0x2e   : > { %1160 = vst [vmem:[%s7795_s15 + $0x1c0] sm:$0xff] %v1159_v56  ;;  %v1163_v58 = vld [vmem:[%s7787_s14 + $0x3a0] sm:$0xff]  ;;  %v1165_v59 = vld [vmem:[%s7787_s14 + $0x3b0] sm:$0xff]  ;;  %1162 = vst [vmem:[%s7795_s15 + $0x1c8] sm:$0xff] %v1161_v57 }
  0x2f   : > { %1164 = vst [vmem:[%s7795_s15 + $0x1d0] sm:$0xff] %v1163_v58  ;;  %1166 = vst [vmem:[%s7795_s15 + $0x1d8] sm:$0xff] %v1165_v59  ;;  %v1167_v60 = vld [vmem:[%s7787_s14 + $0x3c0] sm:$0xff]  ;;  %v1169_v61 = vld [vmem:[%s7787_s14 + $0x3d0] sm:$0xff] }
  0x30   : > { %v1171_v62 = vld [vmem:[%s7787_s14 + $0x3e0] sm:$0xff]  ;;  %1168 = vst [vmem:[%s7795_s15 + $0x1e0] sm:$0xff] %v1167_v60  ;;  %1170 = vst [vmem:[%s7795_s15 + $0x1e8] sm:$0xff] %v1169_v61  ;;  %v1173_v63 = vld [vmem:[%s7787_s14 + $0x3f0] sm:$0xff] }
  0x31   : > { %1172 = vst [vmem:[%s7795_s15 + $0x1f0] sm:$0xff] %v1171_v62  ;;  %v1175_v0 = vld [vmem:[%s7787_s14 + $0x400] sm:$0xff]  ;;  %v1177_v1 = vld [vmem:[%s7787_s14 + $0x410] sm:$0xff]  ;;  %1174 = vst [vmem:[%s7795_s15 + $0x1f8] sm:$0xff] %v1173_v63 }
  0x32   : > { %1176 = vst [vmem:[%s7795_s15 + $0x200] sm:$0xff] %v1175_v0  ;;  %1178 = vst [vmem:[%s7795_s15 + $0x208] sm:$0xff] %v1177_v1  ;;  %v1179_v2 = vld [vmem:[%s7787_s14 + $0x420] sm:$0xff]  ;;  %v1181_v3 = vld [vmem:[%s7787_s14 + $0x430] sm:$0xff] }
  0x33   : > { %v1183_v4 = vld [vmem:[%s7787_s14 + $0x440] sm:$0xff]  ;;  %1180 = vst [vmem:[%s7795_s15 + $0x210] sm:$0xff] %v1179_v2  ;;  %1182 = vst [vmem:[%s7795_s15 + $0x218] sm:$0xff] %v1181_v3  ;;  %v1185_v5 = vld [vmem:[%s7787_s14 + $0x450] sm:$0xff] }
  0x34   : > { %1184 = vst [vmem:[%s7795_s15 + $0x220] sm:$0xff] %v1183_v4  ;;  %v1187_v6 = vld [vmem:[%s7787_s14 + $0x460] sm:$0xff]  ;;  %v1189_v7 = vld [vmem:[%s7787_s14 + $0x470] sm:$0xff]  ;;  %1186 = vst [vmem:[%s7795_s15 + $0x228] sm:$0xff] %v1185_v5 }
  0x35   : > { %1188 = vst [vmem:[%s7795_s15 + $0x230] sm:$0xff] %v1187_v6  ;;  %1190 = vst [vmem:[%s7795_s15 + $0x238] sm:$0xff] %v1189_v7  ;;  %v1191_v8 = vld [vmem:[%s7787_s14 + $0x480] sm:$0xff]  ;;  %v1193_v9 = vld [vmem:[%s7787_s14 + $0x490] sm:$0xff] }
  0x36   : > { %v1195_v10 = vld [vmem:[%s7787_s14 + $0x4a0] sm:$0xff]  ;;  %1192 = vst [vmem:[%s7795_s15 + $0x240] sm:$0xff] %v1191_v8  ;;  %1194 = vst [vmem:[%s7795_s15 + $0x248] sm:$0xff] %v1193_v9  ;;  %v1197_v11 = vld [vmem:[%s7787_s14 + $0x4b0] sm:$0xff] }
  0x37   : > { %1196 = vst [vmem:[%s7795_s15 + $0x250] sm:$0xff] %v1195_v10  ;;  %v1199_v12 = vld [vmem:[%s7787_s14 + $0x4c0] sm:$0xff]  ;;  %v1201_v13 = vld [vmem:[%s7787_s14 + $0x4d0] sm:$0xff]  ;;  %1198 = vst [vmem:[%s7795_s15 + $0x258] sm:$0xff] %v1197_v11 }
  0x38   : > { %1200 = vst [vmem:[%s7795_s15 + $0x260] sm:$0xff] %v1199_v12  ;;  %1202 = vst [vmem:[%s7795_s15 + $0x268] sm:$0xff] %v1201_v13  ;;  %v1203_v14 = vld [vmem:[%s7787_s14 + $0x4e0] sm:$0xff]  ;;  %v1205_v15 = vld [vmem:[%s7787_s14 + $0x4f0] sm:$0xff] }
  0x39   : > { %v1207_v16 = vld [vmem:[%s7787_s14 + $0x500] sm:$0xff]  ;;  %1204 = vst [vmem:[%s7795_s15 + $0x270] sm:$0xff] %v1203_v14  ;;  %1206 = vst [vmem:[%s7795_s15 + $0x278] sm:$0xff] %v1205_v15  ;;  %v1209_v17 = vld [vmem:[%s7787_s14 + $0x510] sm:$0xff] }
  0x3a   : > { %1208 = vst [vmem:[%s7795_s15 + $0x280] sm:$0xff] %v1207_v16  ;;  %v1211_v18 = vld [vmem:[%s7787_s14 + $0x520] sm:$0xff]  ;;  %v1213_v19 = vld [vmem:[%s7787_s14 + $0x530] sm:$0xff]  ;;  %1210 = vst [vmem:[%s7795_s15 + $0x288] sm:$0xff] %v1209_v17 }
  0x3b   : > { %1212 = vst [vmem:[%s7795_s15 + $0x290] sm:$0xff] %v1211_v18  ;;  %1214 = vst [vmem:[%s7795_s15 + $0x298] sm:$0xff] %v1213_v19  ;;  %v1215_v20 = vld [vmem:[%s7787_s14 + $0x540] sm:$0xff]  ;;  %v1217_v21 = vld [vmem:[%s7787_s14 + $0x550] sm:$0xff] }
  0x3c   : > { %v1219_v22 = vld [vmem:[%s7787_s14 + $0x560] sm:$0xff]  ;;  %1216 = vst [vmem:[%s7795_s15 + $0x2a0] sm:$0xff] %v1215_v20  ;;  %1218 = vst [vmem:[%s7795_s15 + $0x2a8] sm:$0xff] %v1217_v21  ;;  %v1221_v23 = vld [vmem:[%s7787_s14 + $0x570] sm:$0xff] }
  0x3d   : > { %1220 = vst [vmem:[%s7795_s15 + $0x2b0] sm:$0xff] %v1219_v22  ;;  %v1223_v24 = vld [vmem:[%s7787_s14 + $0x580] sm:$0xff]  ;;  %v1225_v25 = vld [vmem:[%s7787_s14 + $0x590] sm:$0xff]  ;;  %1222 = vst [vmem:[%s7795_s15 + $0x2b8] sm:$0xff] %v1221_v23 }
  0x3e   : > { %1224 = vst [vmem:[%s7795_s15 + $0x2c0] sm:$0xff] %v1223_v24  ;;  %1226 = vst [vmem:[%s7795_s15 + $0x2c8] sm:$0xff] %v1225_v25  ;;  %v1227_v26 = vld [vmem:[%s7787_s14 + $0x5a0] sm:$0xff]  ;;  %v1229_v27 = vld [vmem:[%s7787_s14 + $0x5b0] sm:$0xff] }
  0x3f   : > { %v1231_v28 = vld [vmem:[%s7787_s14 + $0x5c0] sm:$0xff]  ;;  %1228 = vst [vmem:[%s7795_s15 + $0x2d0] sm:$0xff] %v1227_v26  ;;  %1230 = vst [vmem:[%s7795_s15 + $0x2d8] sm:$0xff] %v1229_v27  ;;  %v1233_v29 = vld [vmem:[%s7787_s14 + $0x5d0] sm:$0xff] }
  0x40   : > { %1232 = vst [vmem:[%s7795_s15 + $0x2e0] sm:$0xff] %v1231_v28  ;;  %v1235_v30 = vld [vmem:[%s7787_s14 + $0x5e0] sm:$0xff]  ;;  %v1237_v31 = vld [vmem:[%s7787_s14 + $0x5f0] sm:$0xff]  ;;  %1234 = vst [vmem:[%s7795_s15 + $0x2e8] sm:$0xff] %v1233_v29 }
  0x41   : > { %1236 = vst [vmem:[%s7795_s15 + $0x2f0] sm:$0xff] %v1235_v30  ;;  %1238 = vst [vmem:[%s7795_s15 + $0x2f8] sm:$0xff] %v1237_v31  ;;  %v1239_v32 = vld [vmem:[%s7787_s14 + $0x600] sm:$0xff]  ;;  %v1241_v33 = vld [vmem:[%s7787_s14 + $0x610] sm:$0xff] }
  0x42   : > { %v1243_v34 = vld [vmem:[%s7787_s14 + $0x620] sm:$0xff]  ;;  %1240 = vst [vmem:[%s7795_s15 + $0x300] sm:$0xff] %v1239_v32  ;;  %1242 = vst [vmem:[%s7795_s15 + $0x308] sm:$0xff] %v1241_v33  ;;  %v1245_v35 = vld [vmem:[%s7787_s14 + $0x630] sm:$0xff] }
  0x43   : > { %1244 = vst [vmem:[%s7795_s15 + $0x310] sm:$0xff] %v1243_v34  ;;  %v1247_v36 = vld [vmem:[%s7787_s14 + $0x640] sm:$0xff]  ;;  %v1249_v37 = vld [vmem:[%s7787_s14 + $0x650] sm:$0xff]  ;;  %1246 = vst [vmem:[%s7795_s15 + $0x318] sm:$0xff] %v1245_v35 }
  0x44   : > { %1248 = vst [vmem:[%s7795_s15 + $0x320] sm:$0xff] %v1247_v36  ;;  %1250 = vst [vmem:[%s7795_s15 + $0x328] sm:$0xff] %v1249_v37  ;;  %v1251_v38 = vld [vmem:[%s7787_s14 + $0x660] sm:$0xff]  ;;  %v1253_v39 = vld [vmem:[%s7787_s14 + $0x670] sm:$0xff] }
  0x45   : > { %v1255_v40 = vld [vmem:[%s7787_s14 + $0x680] sm:$0xff]  ;;  %1252 = vst [vmem:[%s7795_s15 + $0x330] sm:$0xff] %v1251_v38  ;;  %1254 = vst [vmem:[%s7795_s15 + $0x338] sm:$0xff] %v1253_v39  ;;  %v1257_v41 = vld [vmem:[%s7787_s14 + $0x690] sm:$0xff] }
  0x46   : > { %1256 = vst [vmem:[%s7795_s15 + $0x340] sm:$0xff] %v1255_v40  ;;  %v1259_v42 = vld [vmem:[%s7787_s14 + $0x6a0] sm:$0xff]  ;;  %v1261_v43 = vld [vmem:[%s7787_s14 + $0x6b0] sm:$0xff]  ;;  %1258 = vst [vmem:[%s7795_s15 + $0x348] sm:$0xff] %v1257_v41 }
  0x47   : > { %1260 = vst [vmem:[%s7795_s15 + $0x350] sm:$0xff] %v1259_v42  ;;  %1262 = vst [vmem:[%s7795_s15 + $0x358] sm:$0xff] %v1261_v43  ;;  %v1263_v44 = vld [vmem:[%s7787_s14 + $0x6c0] sm:$0xff]  ;;  %v1265_v45 = vld [vmem:[%s7787_s14 + $0x6d0] sm:$0xff] }
  0x48   : > { %v1267_v46 = vld [vmem:[%s7787_s14 + $0x6e0] sm:$0xff]  ;;  %1264 = vst [vmem:[%s7795_s15 + $0x360] sm:$0xff] %v1263_v44  ;;  %1266 = vst [vmem:[%s7795_s15 + $0x368] sm:$0xff] %v1265_v45  ;;  %v1269_v47 = vld [vmem:[%s7787_s14 + $0x6f0] sm:$0xff] }
  0x49   : > { %1268 = vst [vmem:[%s7795_s15 + $0x370] sm:$0xff] %v1267_v46  ;;  %v1271_v48 = vld [vmem:[%s7787_s14 + $0x700] sm:$0xff]  ;;  %v1273_v49 = vld [vmem:[%s7787_s14 + $0x710] sm:$0xff]  ;;  %1270 = vst [vmem:[%s7795_s15 + $0x378] sm:$0xff] %v1269_v47 }
  0x4a   : > { %1272 = vst [vmem:[%s7795_s15 + $0x380] sm:$0xff] %v1271_v48  ;;  %1274 = vst [vmem:[%s7795_s15 + $0x388] sm:$0xff] %v1273_v49  ;;  %v1275_v50 = vld [vmem:[%s7787_s14 + $0x720] sm:$0xff]  ;;  %v1277_v51 = vld [vmem:[%s7787_s14 + $0x730] sm:$0xff] }
  0x4b   : > { %v1279_v52 = vld [vmem:[%s7787_s14 + $0x740] sm:$0xff]  ;;  %1276 = vst [vmem:[%s7795_s15 + $0x390] sm:$0xff] %v1275_v50  ;;  %1278 = vst [vmem:[%s7795_s15 + $0x398] sm:$0xff] %v1277_v51  ;;  %v1281_v53 = vld [vmem:[%s7787_s14 + $0x750] sm:$0xff] }
  0x4c   : > { %1280 = vst [vmem:[%s7795_s15 + $0x3a0] sm:$0xff] %v1279_v52  ;;  %v1283_v54 = vld [vmem:[%s7787_s14 + $0x760] sm:$0xff]  ;;  %v1285_v55 = vld [vmem:[%s7787_s14 + $0x770] sm:$0xff]  ;;  %1282 = vst [vmem:[%s7795_s15 + $0x3a8] sm:$0xff] %v1281_v53 }
  0x4d   : > { %1284 = vst [vmem:[%s7795_s15 + $0x3b0] sm:$0xff] %v1283_v54  ;;  %1286 = vst [vmem:[%s7795_s15 + $0x3b8] sm:$0xff] %v1285_v55  ;;  %v1287_v56 = vld [vmem:[%s7787_s14 + $0x780] sm:$0xff]  ;;  %v1289_v57 = vld [vmem:[%s7787_s14 + $0x790] sm:$0xff] }
  0x4e   : > { %v1291_v58 = vld [vmem:[%s7787_s14 + $0x7a0] sm:$0xff]  ;;  %1288 = vst [vmem:[%s7795_s15 + $0x3c0] sm:$0xff] %v1287_v56  ;;  %1290 = vst [vmem:[%s7795_s15 + $0x3c8] sm:$0xff] %v1289_v57  ;;  %v1293_v59 = vld [vmem:[%s7787_s14 + $0x7b0] sm:$0xff] }
  0x4f   : > { %1292 = vst [vmem:[%s7795_s15 + $0x3d0] sm:$0xff] %v1291_v58  ;;  %v1295_v60 = vld [vmem:[%s7787_s14 + $0x7c0] sm:$0xff]  ;;  %v1297_v61 = vld [vmem:[%s7787_s14 + $0x7d0] sm:$0xff]  ;;  %1294 = vst [vmem:[%s7795_s15 + $0x3d8] sm:$0xff] %v1293_v59 }
  0x50   : > { %1296 = vst [vmem:[%s7795_s15 + $0x3e0] sm:$0xff] %v1295_v60  ;;  %1298 = vst [vmem:[%s7795_s15 + $0x3e8] sm:$0xff] %v1297_v61  ;;  %v1299_v62 = vld [vmem:[%s7787_s14 + $0x7e0] sm:$0xff]  ;;  %v1301_v63 = vld [vmem:[%s7787_s14 + $0x7f0] sm:$0xff] }
  0x51   : > { %v1303_v0 = vld [vmem:[%s7787_s14 + $0x800] sm:$0xff]  ;;  %1300 = vst [vmem:[%s7795_s15 + $0x3f0] sm:$0xff] %v1299_v62  ;;  %1302 = vst [vmem:[%s7795_s15 + $0x3f8] sm:$0xff] %v1301_v63  ;;  %v1305_v1 = vld [vmem:[%s7787_s14 + $0x810] sm:$0xff] }
  0x52   : > { %1304 = vst [vmem:[%s7795_s15 + $0x400] sm:$0xff] %v1303_v0  ;;  %v1307_v2 = vld [vmem:[%s7787_s14 + $0x820] sm:$0xff]  ;;  %v1309_v3 = vld [vmem:[%s7787_s14 + $0x830] sm:$0xff]  ;;  %1306 = vst [vmem:[%s7795_s15 + $0x408] sm:$0xff] %v1305_v1 }
  0x53   : > { %1308 = vst [vmem:[%s7795_s15 + $0x410] sm:$0xff] %v1307_v2  ;;  %1310 = vst [vmem:[%s7795_s15 + $0x418] sm:$0xff] %v1309_v3  ;;  %v1311_v4 = vld [vmem:[%s7787_s14 + $0x840] sm:$0xff]  ;;  %v1313_v5 = vld [vmem:[%s7787_s14 + $0x850] sm:$0xff] }
  0x54   : > { %v1315_v6 = vld [vmem:[%s7787_s14 + $0x860] sm:$0xff]  ;;  %1312 = vst [vmem:[%s7795_s15 + $0x420] sm:$0xff] %v1311_v4  ;;  %1314 = vst [vmem:[%s7795_s15 + $0x428] sm:$0xff] %v1313_v5  ;;  %v1317_v7 = vld [vmem:[%s7787_s14 + $0x870] sm:$0xff] }
  0x55   : > { %1316 = vst [vmem:[%s7795_s15 + $0x430] sm:$0xff] %v1315_v6  ;;  %v1319_v8 = vld [vmem:[%s7787_s14 + $0x880] sm:$0xff]  ;;  %v1321_v9 = vld [vmem:[%s7787_s14 + $0x890] sm:$0xff]  ;;  %1318 = vst [vmem:[%s7795_s15 + $0x438] sm:$0xff] %v1317_v7 }
  0x56   : > { %1320 = vst [vmem:[%s7795_s15 + $0x440] sm:$0xff] %v1319_v8  ;;  %1322 = vst [vmem:[%s7795_s15 + $0x448] sm:$0xff] %v1321_v9  ;;  %v1323_v10 = vld [vmem:[%s7787_s14 + $0x8a0] sm:$0xff]  ;;  %v1325_v11 = vld [vmem:[%s7787_s14 + $0x8b0] sm:$0xff] }
  0x57   : > { %v1327_v12 = vld [vmem:[%s7787_s14 + $0x8c0] sm:$0xff]  ;;  %1324 = vst [vmem:[%s7795_s15 + $0x450] sm:$0xff] %v1323_v10  ;;  %1326 = vst [vmem:[%s7795_s15 + $0x458] sm:$0xff] %v1325_v11  ;;  %v1329_v13 = vld [vmem:[%s7787_s14 + $0x8d0] sm:$0xff] }
  0x58   : > { %1328 = vst [vmem:[%s7795_s15 + $0x460] sm:$0xff] %v1327_v12  ;;  %v1331_v14 = vld [vmem:[%s7787_s14 + $0x8e0] sm:$0xff]  ;;  %v1333_v15 = vld [vmem:[%s7787_s14 + $0x8f0] sm:$0xff]  ;;  %1330 = vst [vmem:[%s7795_s15 + $0x468] sm:$0xff] %v1329_v13 }
  0x59   : > { %1332 = vst [vmem:[%s7795_s15 + $0x470] sm:$0xff] %v1331_v14  ;;  %1334 = vst [vmem:[%s7795_s15 + $0x478] sm:$0xff] %v1333_v15  ;;  %v1335_v16 = vld [vmem:[%s7787_s14 + $0x900] sm:$0xff]  ;;  %v1337_v17 = vld [vmem:[%s7787_s14 + $0x910] sm:$0xff] }
  0x5a   : > { %v1339_v18 = vld [vmem:[%s7787_s14 + $0x920] sm:$0xff]  ;;  %1336 = vst [vmem:[%s7795_s15 + $0x480] sm:$0xff] %v1335_v16  ;;  %1338 = vst [vmem:[%s7795_s15 + $0x488] sm:$0xff] %v1337_v17  ;;  %v1341_v19 = vld [vmem:[%s7787_s14 + $0x930] sm:$0xff] }
  0x5b   : > { %1340 = vst [vmem:[%s7795_s15 + $0x490] sm:$0xff] %v1339_v18  ;;  %v1343_v20 = vld [vmem:[%s7787_s14 + $0x940] sm:$0xff]  ;;  %v1345_v21 = vld [vmem:[%s7787_s14 + $0x950] sm:$0xff]  ;;  %1342 = vst [vmem:[%s7795_s15 + $0x498] sm:$0xff] %v1341_v19 }
  0x5c   : > { %1344 = vst [vmem:[%s7795_s15 + $0x4a0] sm:$0xff] %v1343_v20  ;;  %1346 = vst [vmem:[%s7795_s15 + $0x4a8] sm:$0xff] %v1345_v21  ;;  %v1347_v22 = vld [vmem:[%s7787_s14 + $0x960] sm:$0xff]  ;;  %v1349_v23 = vld [vmem:[%s7787_s14 + $0x970] sm:$0xff] }
  0x5d   : > { %v1351_v24 = vld [vmem:[%s7787_s14 + $0x980] sm:$0xff]  ;;  %1348 = vst [vmem:[%s7795_s15 + $0x4b0] sm:$0xff] %v1347_v22  ;;  %1350 = vst [vmem:[%s7795_s15 + $0x4b8] sm:$0xff] %v1349_v23  ;;  %v1353_v25 = vld [vmem:[%s7787_s14 + $0x990] sm:$0xff] }
  0x5e   : > { %1352 = vst [vmem:[%s7795_s15 + $0x4c0] sm:$0xff] %v1351_v24  ;;  %v1355_v26 = vld [vmem:[%s7787_s14 + $0x9a0] sm:$0xff]  ;;  %v1357_v27 = vld [vmem:[%s7787_s14 + $0x9b0] sm:$0xff]  ;;  %1354 = vst [vmem:[%s7795_s15 + $0x4c8] sm:$0xff] %v1353_v25 }
  0x5f   : > { %1356 = vst [vmem:[%s7795_s15 + $0x4d0] sm:$0xff] %v1355_v26  ;;  %1358 = vst [vmem:[%s7795_s15 + $0x4d8] sm:$0xff] %v1357_v27  ;;  %v1359_v28 = vld [vmem:[%s7787_s14 + $0x9c0] sm:$0xff]  ;;  %v1361_v29 = vld [vmem:[%s7787_s14 + $0x9d0] sm:$0xff] }
  0x60   : > { %v1363_v30 = vld [vmem:[%s7787_s14 + $0x9e0] sm:$0xff]  ;;  %1360 = vst [vmem:[%s7795_s15 + $0x4e0] sm:$0xff] %v1359_v28  ;;  %1362 = vst [vmem:[%s7795_s15 + $0x4e8] sm:$0xff] %v1361_v29  ;;  %v1365_v31 = vld [vmem:[%s7787_s14 + $0x9f0] sm:$0xff] }
  0x61   : > { %1364 = vst [vmem:[%s7795_s15 + $0x4f0] sm:$0xff] %v1363_v30  ;;  %v1367_v32 = vld [vmem:[%s7787_s14 + $0xa00] sm:$0xff]  ;;  %v1369_v33 = vld [vmem:[%s7787_s14 + $0xa10] sm:$0xff]  ;;  %1366 = vst [vmem:[%s7795_s15 + $0x4f8] sm:$0xff] %v1365_v31 }
  0x62   : > { %1368 = vst [vmem:[%s7795_s15 + $0x500] sm:$0xff] %v1367_v32  ;;  %1370 = vst [vmem:[%s7795_s15 + $0x508] sm:$0xff] %v1369_v33  ;;  %v1371_v34 = vld [vmem:[%s7787_s14 + $0xa20] sm:$0xff]  ;;  %v1373_v35 = vld [vmem:[%s7787_s14 + $0xa30] sm:$0xff] }
  0x63   : > { %v1375_v36 = vld [vmem:[%s7787_s14 + $0xa40] sm:$0xff]  ;;  %1372 = vst [vmem:[%s7795_s15 + $0x510] sm:$0xff] %v1371_v34  ;;  %1374 = vst [vmem:[%s7795_s15 + $0x518] sm:$0xff] %v1373_v35  ;;  %v1377_v37 = vld [vmem:[%s7787_s14 + $0xa50] sm:$0xff] }
  0x64   : > { %1376 = vst [vmem:[%s7795_s15 + $0x520] sm:$0xff] %v1375_v36  ;;  %v1379_v38 = vld [vmem:[%s7787_s14 + $0xa60] sm:$0xff]  ;;  %v1381_v39 = vld [vmem:[%s7787_s14 + $0xa70] sm:$0xff]  ;;  %1378 = vst [vmem:[%s7795_s15 + $0x528] sm:$0xff] %v1377_v37 }
  0x65   : > { %1380 = vst [vmem:[%s7795_s15 + $0x530] sm:$0xff] %v1379_v38  ;;  %1382 = vst [vmem:[%s7795_s15 + $0x538] sm:$0xff] %v1381_v39  ;;  %v1383_v40 = vld [vmem:[%s7787_s14 + $0xa80] sm:$0xff]  ;;  %v1385_v41 = vld [vmem:[%s7787_s14 + $0xa90] sm:$0xff] }
  0x66   : > { %v1387_v42 = vld [vmem:[%s7787_s14 + $0xaa0] sm:$0xff]  ;;  %1384 = vst [vmem:[%s7795_s15 + $0x540] sm:$0xff] %v1383_v40  ;;  %1386 = vst [vmem:[%s7795_s15 + $0x548] sm:$0xff] %v1385_v41  ;;  %v1389_v43 = vld [vmem:[%s7787_s14 + $0xab0] sm:$0xff] }
  0x67   : > { %1388 = vst [vmem:[%s7795_s15 + $0x550] sm:$0xff] %v1387_v42  ;;  %v1391_v44 = vld [vmem:[%s7787_s14 + $0xac0] sm:$0xff]  ;;  %v1393_v45 = vld [vmem:[%s7787_s14 + $0xad0] sm:$0xff]  ;;  %1390 = vst [vmem:[%s7795_s15 + $0x558] sm:$0xff] %v1389_v43 }
  0x68   : > { %1392 = vst [vmem:[%s7795_s15 + $0x560] sm:$0xff] %v1391_v44  ;;  %1394 = vst [vmem:[%s7795_s15 + $0x568] sm:$0xff] %v1393_v45  ;;  %v1395_v46 = vld [vmem:[%s7787_s14 + $0xae0] sm:$0xff]  ;;  %v1397_v47 = vld [vmem:[%s7787_s14 + $0xaf0] sm:$0xff] }
  0x69   : > { %v1399_v48 = vld [vmem:[%s7787_s14 + $0xb00] sm:$0xff]  ;;  %1396 = vst [vmem:[%s7795_s15 + $0x570] sm:$0xff] %v1395_v46  ;;  %1398 = vst [vmem:[%s7795_s15 + $0x578] sm:$0xff] %v1397_v47  ;;  %v1401_v49 = vld [vmem:[%s7787_s14 + $0xb10] sm:$0xff] }
  0x6a   : > { %1400 = vst [vmem:[%s7795_s15 + $0x580] sm:$0xff] %v1399_v48  ;;  %v1403_v50 = vld [vmem:[%s7787_s14 + $0xb20] sm:$0xff]  ;;  %v1405_v51 = vld [vmem:[%s7787_s14 + $0xb30] sm:$0xff]  ;;  %1402 = vst [vmem:[%s7795_s15 + $0x588] sm:$0xff] %v1401_v49 }
  0x6b   : > { %1404 = vst [vmem:[%s7795_s15 + $0x590] sm:$0xff] %v1403_v50  ;;  %1406 = vst [vmem:[%s7795_s15 + $0x598] sm:$0xff] %v1405_v51  ;;  %v1407_v52 = vld [vmem:[%s7787_s14 + $0xb40] sm:$0xff]  ;;  %v1409_v53 = vld [vmem:[%s7787_s14 + $0xb50] sm:$0xff] }
  0x6c   : > { %v1411_v54 = vld [vmem:[%s7787_s14 + $0xb60] sm:$0xff]  ;;  %1408 = vst [vmem:[%s7795_s15 + $0x5a0] sm:$0xff] %v1407_v52  ;;  %1410 = vst [vmem:[%s7795_s15 + $0x5a8] sm:$0xff] %v1409_v53  ;;  %v1413_v55 = vld [vmem:[%s7787_s14 + $0xb70] sm:$0xff] }
  0x6d   : > { %1412 = vst [vmem:[%s7795_s15 + $0x5b0] sm:$0xff] %v1411_v54  ;;  %v1415_v56 = vld [vmem:[%s7787_s14 + $0xb80] sm:$0xff]  ;;  %v1417_v57 = vld [vmem:[%s7787_s14 + $0xb90] sm:$0xff]  ;;  %1414 = vst [vmem:[%s7795_s15 + $0x5b8] sm:$0xff] %v1413_v55 }
  0x6e   : > { %1416 = vst [vmem:[%s7795_s15 + $0x5c0] sm:$0xff] %v1415_v56  ;;  %1418 = vst [vmem:[%s7795_s15 + $0x5c8] sm:$0xff] %v1417_v57  ;;  %v1419_v58 = vld [vmem:[%s7787_s14 + $0xba0] sm:$0xff]  ;;  %v1421_v59 = vld [vmem:[%s7787_s14 + $0xbb0] sm:$0xff] }
  0x6f   : > { %v1423_v60 = vld [vmem:[%s7787_s14 + $0xbc0] sm:$0xff]  ;;  %1420 = vst [vmem:[%s7795_s15 + $0x5d0] sm:$0xff] %v1419_v58  ;;  %1422 = vst [vmem:[%s7795_s15 + $0x5d8] sm:$0xff] %v1421_v59  ;;  %v1425_v61 = vld [vmem:[%s7787_s14 + $0xbd0] sm:$0xff] }
  0x70   : > { %1424 = vst [vmem:[%s7795_s15 + $0x5e0] sm:$0xff] %v1423_v60  ;;  %v1427_v62 = vld [vmem:[%s7787_s14 + $0xbe0] sm:$0xff]  ;;  %v1429_v63 = vld [vmem:[%s7787_s14 + $0xbf0] sm:$0xff]  ;;  %1426 = vst [vmem:[%s7795_s15 + $0x5e8] sm:$0xff] %v1425_v61 }
  0x71   : > { %1428 = vst [vmem:[%s7795_s15 + $0x5f0] sm:$0xff] %v1427_v62  ;;  %1430 = vst [vmem:[%s7795_s15 + $0x5f8] sm:$0xff] %v1429_v63  ;;  %v1431_v0 = vld [vmem:[%s7787_s14 + $0xc00] sm:$0xff]  ;;  %v1433_v1 = vld [vmem:[%s7787_s14 + $0xc10] sm:$0xff] }
  0x72   : > { %v1435_v2 = vld [vmem:[%s7787_s14 + $0xc20] sm:$0xff]  ;;  %1432 = vst [vmem:[%s7795_s15 + $0x600] sm:$0xff] %v1431_v0  ;;  %1434 = vst [vmem:[%s7795_s15 + $0x608] sm:$0xff] %v1433_v1  ;;  %v1437_v3 = vld [vmem:[%s7787_s14 + $0xc30] sm:$0xff] }
  0x73   : > { %1436 = vst [vmem:[%s7795_s15 + $0x610] sm:$0xff] %v1435_v2  ;;  %v1439_v4 = vld [vmem:[%s7787_s14 + $0xc40] sm:$0xff]  ;;  %v1441_v5 = vld [vmem:[%s7787_s14 + $0xc50] sm:$0xff]  ;;  %1438 = vst [vmem:[%s7795_s15 + $0x618] sm:$0xff] %v1437_v3 }
  0x74   : > { %1440 = vst [vmem:[%s7795_s15 + $0x620] sm:$0xff] %v1439_v4  ;;  %1442 = vst [vmem:[%s7795_s15 + $0x628] sm:$0xff] %v1441_v5  ;;  %v1443_v6 = vld [vmem:[%s7787_s14 + $0xc60] sm:$0xff]  ;;  %v1445_v7 = vld [vmem:[%s7787_s14 + $0xc70] sm:$0xff] }
  0x75   : > { %v1447_v8 = vld [vmem:[%s7787_s14 + $0xc80] sm:$0xff]  ;;  %1444 = vst [vmem:[%s7795_s15 + $0x630] sm:$0xff] %v1443_v6  ;;  %1446 = vst [vmem:[%s7795_s15 + $0x638] sm:$0xff] %v1445_v7  ;;  %v1449_v9 = vld [vmem:[%s7787_s14 + $0xc90] sm:$0xff] }
  0x76   : > { %1448 = vst [vmem:[%s7795_s15 + $0x640] sm:$0xff] %v1447_v8  ;;  %v1451_v10 = vld [vmem:[%s7787_s14 + $0xca0] sm:$0xff]  ;;  %v1453_v11 = vld [vmem:[%s7787_s14 + $0xcb0] sm:$0xff]  ;;  %1450 = vst [vmem:[%s7795_s15 + $0x648] sm:$0xff] %v1449_v9 }
  0x77   : > { %1452 = vst [vmem:[%s7795_s15 + $0x650] sm:$0xff] %v1451_v10  ;;  %1454 = vst [vmem:[%s7795_s15 + $0x658] sm:$0xff] %v1453_v11  ;;  %v1455_v12 = vld [vmem:[%s7787_s14 + $0xcc0] sm:$0xff]  ;;  %v1457_v13 = vld [vmem:[%s7787_s14 + $0xcd0] sm:$0xff] }
  0x78   : > { %v1459_v14 = vld [vmem:[%s7787_s14 + $0xce0] sm:$0xff]  ;;  %1456 = vst [vmem:[%s7795_s15 + $0x660] sm:$0xff] %v1455_v12  ;;  %1458 = vst [vmem:[%s7795_s15 + $0x668] sm:$0xff] %v1457_v13  ;;  %v1461_v15 = vld [vmem:[%s7787_s14 + $0xcf0] sm:$0xff] }
  0x79   : > { %1460 = vst [vmem:[%s7795_s15 + $0x670] sm:$0xff] %v1459_v14  ;;  %v1463_v16 = vld [vmem:[%s7787_s14 + $0xd00] sm:$0xff]  ;;  %v1465_v17 = vld [vmem:[%s7787_s14 + $0xd10] sm:$0xff]  ;;  %1462 = vst [vmem:[%s7795_s15 + $0x678] sm:$0xff] %v1461_v15 }
  0x7a   : > { %1464 = vst [vmem:[%s7795_s15 + $0x680] sm:$0xff] %v1463_v16  ;;  %1466 = vst [vmem:[%s7795_s15 + $0x688] sm:$0xff] %v1465_v17  ;;  %v1467_v18 = vld [vmem:[%s7787_s14 + $0xd20] sm:$0xff]  ;;  %v1469_v19 = vld [vmem:[%s7787_s14 + $0xd30] sm:$0xff] }
  0x7b   : > { %v1471_v20 = vld [vmem:[%s7787_s14 + $0xd40] sm:$0xff]  ;;  %1468 = vst [vmem:[%s7795_s15 + $0x690] sm:$0xff] %v1467_v18  ;;  %1470 = vst [vmem:[%s7795_s15 + $0x698] sm:$0xff] %v1469_v19  ;;  %v1473_v21 = vld [vmem:[%s7787_s14 + $0xd50] sm:$0xff] }
  0x7c   : > { %1472 = vst [vmem:[%s7795_s15 + $0x6a0] sm:$0xff] %v1471_v20  ;;  %v1475_v22 = vld [vmem:[%s7787_s14 + $0xd60] sm:$0xff]  ;;  %v1477_v23 = vld [vmem:[%s7787_s14 + $0xd70] sm:$0xff]  ;;  %1474 = vst [vmem:[%s7795_s15 + $0x6a8] sm:$0xff] %v1473_v21 }
  0x7d   : > { %1476 = vst [vmem:[%s7795_s15 + $0x6b0] sm:$0xff] %v1475_v22  ;;  %1478 = vst [vmem:[%s7795_s15 + $0x6b8] sm:$0xff] %v1477_v23  ;;  %v1479_v24 = vld [vmem:[%s7787_s14 + $0xd80] sm:$0xff]  ;;  %v1481_v25 = vld [vmem:[%s7787_s14 + $0xd90] sm:$0xff] }
  0x7e   : > { %v1483_v26 = vld [vmem:[%s7787_s14 + $0xda0] sm:$0xff]  ;;  %1480 = vst [vmem:[%s7795_s15 + $0x6c0] sm:$0xff] %v1479_v24  ;;  %1482 = vst [vmem:[%s7795_s15 + $0x6c8] sm:$0xff] %v1481_v25  ;;  %v1485_v27 = vld [vmem:[%s7787_s14 + $0xdb0] sm:$0xff] }
  0x7f   : > { %1484 = vst [vmem:[%s7795_s15 + $0x6d0] sm:$0xff] %v1483_v26  ;;  %v1487_v28 = vld [vmem:[%s7787_s14 + $0xdc0] sm:$0xff]  ;;  %v1489_v29 = vld [vmem:[%s7787_s14 + $0xdd0] sm:$0xff]  ;;  %1486 = vst [vmem:[%s7795_s15 + $0x6d8] sm:$0xff] %v1485_v27 }
  0x80   : > { %1488 = vst [vmem:[%s7795_s15 + $0x6e0] sm:$0xff] %v1487_v28  ;;  %1490 = vst [vmem:[%s7795_s15 + $0x6e8] sm:$0xff] %v1489_v29  ;;  %v1491_v30 = vld [vmem:[%s7787_s14 + $0xde0] sm:$0xff]  ;;  %v1493_v31 = vld [vmem:[%s7787_s14 + $0xdf0] sm:$0xff] }
  0x81   : > { %v1495_v32 = vld [vmem:[%s7787_s14 + $0xe00] sm:$0xff]  ;;  %1492 = vst [vmem:[%s7795_s15 + $0x6f0] sm:$0xff] %v1491_v30  ;;  %1494 = vst [vmem:[%s7795_s15 + $0x6f8] sm:$0xff] %v1493_v31  ;;  %v1497_v33 = vld [vmem:[%s7787_s14 + $0xe10] sm:$0xff] }
  0x82   : > { %1496 = vst [vmem:[%s7795_s15 + $0x700] sm:$0xff] %v1495_v32  ;;  %v1499_v34 = vld [vmem:[%s7787_s14 + $0xe20] sm:$0xff]  ;;  %v1501_v35 = vld [vmem:[%s7787_s14 + $0xe30] sm:$0xff]  ;;  %1498 = vst [vmem:[%s7795_s15 + $0x708] sm:$0xff] %v1497_v33 }
  0x83   : > { %1500 = vst [vmem:[%s7795_s15 + $0x710] sm:$0xff] %v1499_v34  ;;  %1502 = vst [vmem:[%s7795_s15 + $0x718] sm:$0xff] %v1501_v35  ;;  %v1503_v36 = vld [vmem:[%s7787_s14 + $0xe40] sm:$0xff]  ;;  %v1505_v37 = vld [vmem:[%s7787_s14 + $0xe50] sm:$0xff] }
  0x84   : > { %v1507_v38 = vld [vmem:[%s7787_s14 + $0xe60] sm:$0xff]  ;;  %1504 = vst [vmem:[%s7795_s15 + $0x720] sm:$0xff] %v1503_v36  ;;  %1506 = vst [vmem:[%s7795_s15 + $0x728] sm:$0xff] %v1505_v37  ;;  %v1509_v39 = vld [vmem:[%s7787_s14 + $0xe70] sm:$0xff] }
  0x85   : > { %1508 = vst [vmem:[%s7795_s15 + $0x730] sm:$0xff] %v1507_v38  ;;  %v1511_v40 = vld [vmem:[%s7787_s14 + $0xe80] sm:$0xff]  ;;  %v1513_v41 = vld [vmem:[%s7787_s14 + $0xe90] sm:$0xff]  ;;  %1510 = vst [vmem:[%s7795_s15 + $0x738] sm:$0xff] %v1509_v39 }
  0x86   : > { %1512 = vst [vmem:[%s7795_s15 + $0x740] sm:$0xff] %v1511_v40  ;;  %1514 = vst [vmem:[%s7795_s15 + $0x748] sm:$0xff] %v1513_v41  ;;  %v1515_v42 = vld [vmem:[%s7787_s14 + $0xea0] sm:$0xff]  ;;  %v1517_v43 = vld [vmem:[%s7787_s14 + $0xeb0] sm:$0xff] }
  0x87   : > { %v1519_v44 = vld [vmem:[%s7787_s14 + $0xec0] sm:$0xff]  ;;  %1516 = vst [vmem:[%s7795_s15 + $0x750] sm:$0xff] %v1515_v42  ;;  %1518 = vst [vmem:[%s7795_s15 + $0x758] sm:$0xff] %v1517_v43  ;;  %v1521_v45 = vld [vmem:[%s7787_s14 + $0xed0] sm:$0xff] }
  0x88   : > { %1520 = vst [vmem:[%s7795_s15 + $0x760] sm:$0xff] %v1519_v44  ;;  %v1523_v46 = vld [vmem:[%s7787_s14 + $0xee0] sm:$0xff]  ;;  %v1525_v47 = vld [vmem:[%s7787_s14 + $0xef0] sm:$0xff]  ;;  %1522 = vst [vmem:[%s7795_s15 + $0x768] sm:$0xff] %v1521_v45 }
  0x89   : > { %1524 = vst [vmem:[%s7795_s15 + $0x770] sm:$0xff] %v1523_v46  ;;  %1526 = vst [vmem:[%s7795_s15 + $0x778] sm:$0xff] %v1525_v47  ;;  %v1527_v48 = vld [vmem:[%s7787_s14 + $0xf00] sm:$0xff]  ;;  %v1529_v49 = vld [vmem:[%s7787_s14 + $0xf10] sm:$0xff] }
  0x8a   : > { %v1531_v50 = vld [vmem:[%s7787_s14 + $0xf20] sm:$0xff]  ;;  %1528 = vst [vmem:[%s7795_s15 + $0x780] sm:$0xff] %v1527_v48  ;;  %1530 = vst [vmem:[%s7795_s15 + $0x788] sm:$0xff] %v1529_v49  ;;  %v1533_v51 = vld [vmem:[%s7787_s14 + $0xf30] sm:$0xff] }
  0x8b   : > { %1532 = vst [vmem:[%s7795_s15 + $0x790] sm:$0xff] %v1531_v50  ;;  %v1535_v52 = vld [vmem:[%s7787_s14 + $0xf40] sm:$0xff]  ;;  %v1537_v53 = vld [vmem:[%s7787_s14 + $0xf50] sm:$0xff]  ;;  %1534 = vst [vmem:[%s7795_s15 + $0x798] sm:$0xff] %v1533_v51 }
  0x8c   : > { %1536 = vst [vmem:[%s7795_s15 + $0x7a0] sm:$0xff] %v1535_v52  ;;  %1538 = vst [vmem:[%s7795_s15 + $0x7a8] sm:$0xff] %v1537_v53  ;;  %v1539_v54 = vld [vmem:[%s7787_s14 + $0xf60] sm:$0xff]  ;;  %v1541_v55 = vld [vmem:[%s7787_s14 + $0xf70] sm:$0xff] }
  0x8d   : > { %v1543_v56 = vld [vmem:[%s7787_s14 + $0xf80] sm:$0xff]  ;;  %1540 = vst [vmem:[%s7795_s15 + $0x7b0] sm:$0xff] %v1539_v54  ;;  %1542 = vst [vmem:[%s7795_s15 + $0x7b8] sm:$0xff] %v1541_v55  ;;  %v1545_v57 = vld [vmem:[%s7787_s14 + $0xf90] sm:$0xff] }
  0x8e   : > { %1544 = vst [vmem:[%s7795_s15 + $0x7c0] sm:$0xff] %v1543_v56  ;;  %v1547_v58 = vld [vmem:[%s7787_s14 + $0xfa0] sm:$0xff]  ;;  %v1549_v59 = vld [vmem:[%s7787_s14 + $0xfb0] sm:$0xff]  ;;  %1546 = vst [vmem:[%s7795_s15 + $0x7c8] sm:$0xff] %v1545_v57 }
  0x8f   : > { %1548 = vst [vmem:[%s7795_s15 + $0x7d0] sm:$0xff] %v1547_v58  ;;  %1550 = vst [vmem:[%s7795_s15 + $0x7d8] sm:$0xff] %v1549_v59  ;;  %v1551_v60 = vld [vmem:[%s7787_s14 + $0xfc0] sm:$0xff]  ;;  %v1553_v61 = vld [vmem:[%s7787_s14 + $0xfd0] sm:$0xff] }
  0x90   : > { %v1555_v62 = vld [vmem:[%s7787_s14 + $0xfe0] sm:$0xff]  ;;  %1552 = vst [vmem:[%s7795_s15 + $0x7e0] sm:$0xff] %v1551_v60  ;;  %1554 = vst [vmem:[%s7795_s15 + $0x7e8] sm:$0xff] %v1553_v61  ;;  %v1557_v63 = vld [vmem:[%s7787_s14 + $0xff0] sm:$0xff] }
  0x91   : > { %1556 = vst [vmem:[%s7795_s15 + $0x7f0] sm:$0xff] %v1555_v62  ;;  %v1559_v0 = vld [vmem:[%s7787_s14 + $0x1000] sm:$0xff]  ;;  %v1561_v1 = vld [vmem:[%s7787_s14 + $0x1010] sm:$0xff]  ;;  %1558 = vst [vmem:[%s7795_s15 + $0x7f8] sm:$0xff] %v1557_v63 }
  0x92   : > { %1560 = vst [vmem:[%s7795_s15 + $0x800] sm:$0xff] %v1559_v0  ;;  %1562 = vst [vmem:[%s7795_s15 + $0x808] sm:$0xff] %v1561_v1  ;;  %v1563_v2 = vld [vmem:[%s7787_s14 + $0x1020] sm:$0xff]  ;;  %v1565_v3 = vld [vmem:[%s7787_s14 + $0x1030] sm:$0xff] }
  0x93   : > { %v1567_v4 = vld [vmem:[%s7787_s14 + $0x1040] sm:$0xff]  ;;  %1564 = vst [vmem:[%s7795_s15 + $0x810] sm:$0xff] %v1563_v2  ;;  %1566 = vst [vmem:[%s7795_s15 + $0x818] sm:$0xff] %v1565_v3  ;;  %v1569_v5 = vld [vmem:[%s7787_s14 + $0x1050] sm:$0xff] }
  0x94   : > { %1568 = vst [vmem:[%s7795_s15 + $0x820] sm:$0xff] %v1567_v4  ;;  %v1571_v6 = vld [vmem:[%s7787_s14 + $0x1060] sm:$0xff]  ;;  %v1573_v7 = vld [vmem:[%s7787_s14 + $0x1070] sm:$0xff]  ;;  %1570 = vst [vmem:[%s7795_s15 + $0x828] sm:$0xff] %v1569_v5 }
  0x95   : > { %1572 = vst [vmem:[%s7795_s15 + $0x830] sm:$0xff] %v1571_v6  ;;  %1574 = vst [vmem:[%s7795_s15 + $0x838] sm:$0xff] %v1573_v7  ;;  %v1575_v8 = vld [vmem:[%s7787_s14 + $0x1080] sm:$0xff]  ;;  %v1577_v9 = vld [vmem:[%s7787_s14 + $0x1090] sm:$0xff] }
  0x96   : > { %v1579_v10 = vld [vmem:[%s7787_s14 + $0x10a0] sm:$0xff]  ;;  %1576 = vst [vmem:[%s7795_s15 + $0x840] sm:$0xff] %v1575_v8  ;;  %1578 = vst [vmem:[%s7795_s15 + $0x848] sm:$0xff] %v1577_v9  ;;  %v1581_v11 = vld [vmem:[%s7787_s14 + $0x10b0] sm:$0xff] }
  0x97   : > { %1580 = vst [vmem:[%s7795_s15 + $0x850] sm:$0xff] %v1579_v10  ;;  %v1583_v12 = vld [vmem:[%s7787_s14 + $0x10c0] sm:$0xff]  ;;  %v1585_v13 = vld [vmem:[%s7787_s14 + $0x10d0] sm:$0xff]  ;;  %1582 = vst [vmem:[%s7795_s15 + $0x858] sm:$0xff] %v1581_v11 }
  0x98   : > { %1584 = vst [vmem:[%s7795_s15 + $0x860] sm:$0xff] %v1583_v12  ;;  %1586 = vst [vmem:[%s7795_s15 + $0x868] sm:$0xff] %v1585_v13  ;;  %v1587_v14 = vld [vmem:[%s7787_s14 + $0x10e0] sm:$0xff]  ;;  %v1589_v15 = vld [vmem:[%s7787_s14 + $0x10f0] sm:$0xff] }
  0x99   : > { %v1591_v16 = vld [vmem:[%s7787_s14 + $0x1100] sm:$0xff]  ;;  %1588 = vst [vmem:[%s7795_s15 + $0x870] sm:$0xff] %v1587_v14  ;;  %1590 = vst [vmem:[%s7795_s15 + $0x878] sm:$0xff] %v1589_v15  ;;  %v1593_v17 = vld [vmem:[%s7787_s14 + $0x1110] sm:$0xff] }
  0x9a   : > { %1592 = vst [vmem:[%s7795_s15 + $0x880] sm:$0xff] %v1591_v16  ;;  %v1595_v18 = vld [vmem:[%s7787_s14 + $0x1120] sm:$0xff]  ;;  %v1597_v19 = vld [vmem:[%s7787_s14 + $0x1130] sm:$0xff]  ;;  %1594 = vst [vmem:[%s7795_s15 + $0x888] sm:$0xff] %v1593_v17 }
  0x9b   : > { %1596 = vst [vmem:[%s7795_s15 + $0x890] sm:$0xff] %v1595_v18  ;;  %1598 = vst [vmem:[%s7795_s15 + $0x898] sm:$0xff] %v1597_v19  ;;  %v1599_v20 = vld [vmem:[%s7787_s14 + $0x1140] sm:$0xff]  ;;  %v1601_v21 = vld [vmem:[%s7787_s14 + $0x1150] sm:$0xff] }
  0x9c   : > { %v1603_v22 = vld [vmem:[%s7787_s14 + $0x1160] sm:$0xff]  ;;  %1600 = vst [vmem:[%s7795_s15 + $0x8a0] sm:$0xff] %v1599_v20  ;;  %1602 = vst [vmem:[%s7795_s15 + $0x8a8] sm:$0xff] %v1601_v21  ;;  %v1605_v23 = vld [vmem:[%s7787_s14 + $0x1170] sm:$0xff] }
  0x9d   : > { %1604 = vst [vmem:[%s7795_s15 + $0x8b0] sm:$0xff] %v1603_v22  ;;  %v1607_v24 = vld [vmem:[%s7787_s14 + $0x1180] sm:$0xff]  ;;  %v1609_v25 = vld [vmem:[%s7787_s14 + $0x1190] sm:$0xff]  ;;  %1606 = vst [vmem:[%s7795_s15 + $0x8b8] sm:$0xff] %v1605_v23 }
  0x9e   : > { %1608 = vst [vmem:[%s7795_s15 + $0x8c0] sm:$0xff] %v1607_v24  ;;  %1610 = vst [vmem:[%s7795_s15 + $0x8c8] sm:$0xff] %v1609_v25  ;;  %v1611_v26 = vld [vmem:[%s7787_s14 + $0x11a0] sm:$0xff]  ;;  %v1613_v27 = vld [vmem:[%s7787_s14 + $0x11b0] sm:$0xff] }
  0x9f   : > { %v1615_v28 = vld [vmem:[%s7787_s14 + $0x11c0] sm:$0xff]  ;;  %1612 = vst [vmem:[%s7795_s15 + $0x8d0] sm:$0xff] %v1611_v26  ;;  %1614 = vst [vmem:[%s7795_s15 + $0x8d8] sm:$0xff] %v1613_v27  ;;  %v1617_v29 = vld [vmem:[%s7787_s14 + $0x11d0] sm:$0xff] }
  0xa0   : > { %1616 = vst [vmem:[%s7795_s15 + $0x8e0] sm:$0xff] %v1615_v28  ;;  %v1619_v30 = vld [vmem:[%s7787_s14 + $0x11e0] sm:$0xff]  ;;  %v1621_v31 = vld [vmem:[%s7787_s14 + $0x11f0] sm:$0xff]  ;;  %1618 = vst [vmem:[%s7795_s15 + $0x8e8] sm:$0xff] %v1617_v29 }
  0xa1   : > { %1620 = vst [vmem:[%s7795_s15 + $0x8f0] sm:$0xff] %v1619_v30  ;;  %1622 = vst [vmem:[%s7795_s15 + $0x8f8] sm:$0xff] %v1621_v31  ;;  %v1623_v32 = vld [vmem:[%s7787_s14 + $0x1200] sm:$0xff]  ;;  %v1625_v33 = vld [vmem:[%s7787_s14 + $0x1210] sm:$0xff] }
  0xa2   : > { %v1627_v34 = vld [vmem:[%s7787_s14 + $0x1220] sm:$0xff]  ;;  %1624 = vst [vmem:[%s7795_s15 + $0x900] sm:$0xff] %v1623_v32  ;;  %1626 = vst [vmem:[%s7795_s15 + $0x908] sm:$0xff] %v1625_v33  ;;  %v1629_v35 = vld [vmem:[%s7787_s14 + $0x1230] sm:$0xff] }
  0xa3   : > { %1628 = vst [vmem:[%s7795_s15 + $0x910] sm:$0xff] %v1627_v34  ;;  %v1631_v36 = vld [vmem:[%s7787_s14 + $0x1240] sm:$0xff]  ;;  %v1633_v37 = vld [vmem:[%s7787_s14 + $0x1250] sm:$0xff]  ;;  %1630 = vst [vmem:[%s7795_s15 + $0x918] sm:$0xff] %v1629_v35 }
  0xa4   : > { %1632 = vst [vmem:[%s7795_s15 + $0x920] sm:$0xff] %v1631_v36  ;;  %1634 = vst [vmem:[%s7795_s15 + $0x928] sm:$0xff] %v1633_v37  ;;  %v1635_v38 = vld [vmem:[%s7787_s14 + $0x1260] sm:$0xff]  ;;  %v1637_v39 = vld [vmem:[%s7787_s14 + $0x1270] sm:$0xff] }
  0xa5   : > { %v1639_v40 = vld [vmem:[%s7787_s14 + $0x1280] sm:$0xff]  ;;  %1636 = vst [vmem:[%s7795_s15 + $0x930] sm:$0xff] %v1635_v38  ;;  %1638 = vst [vmem:[%s7795_s15 + $0x938] sm:$0xff] %v1637_v39  ;;  %v1641_v41 = vld [vmem:[%s7787_s14 + $0x1290] sm:$0xff] }
  0xa6   : > { %1640 = vst [vmem:[%s7795_s15 + $0x940] sm:$0xff] %v1639_v40  ;;  %v1643_v42 = vld [vmem:[%s7787_s14 + $0x12a0] sm:$0xff]  ;;  %v1645_v43 = vld [vmem:[%s7787_s14 + $0x12b0] sm:$0xff]  ;;  %1642 = vst [vmem:[%s7795_s15 + $0x948] sm:$0xff] %v1641_v41 }
  0xa7   : > { %1644 = vst [vmem:[%s7795_s15 + $0x950] sm:$0xff] %v1643_v42  ;;  %1646 = vst [vmem:[%s7795_s15 + $0x958] sm:$0xff] %v1645_v43  ;;  %v1647_v44 = vld [vmem:[%s7787_s14 + $0x12c0] sm:$0xff]  ;;  %v1649_v45 = vld [vmem:[%s7787_s14 + $0x12d0] sm:$0xff] }
  0xa8   : > { %v1651_v46 = vld [vmem:[%s7787_s14 + $0x12e0] sm:$0xff]  ;;  %1648 = vst [vmem:[%s7795_s15 + $0x960] sm:$0xff] %v1647_v44  ;;  %1650 = vst [vmem:[%s7795_s15 + $0x968] sm:$0xff] %v1649_v45  ;;  %v1653_v47 = vld [vmem:[%s7787_s14 + $0x12f0] sm:$0xff] }
  0xa9   : > { %1652 = vst [vmem:[%s7795_s15 + $0x970] sm:$0xff] %v1651_v46  ;;  %v1655_v48 = vld [vmem:[%s7787_s14 + $0x1300] sm:$0xff]  ;;  %v1657_v49 = vld [vmem:[%s7787_s14 + $0x1310] sm:$0xff]  ;;  %1654 = vst [vmem:[%s7795_s15 + $0x978] sm:$0xff] %v1653_v47 }
  0xaa   : > { %1656 = vst [vmem:[%s7795_s15 + $0x980] sm:$0xff] %v1655_v48  ;;  %1658 = vst [vmem:[%s7795_s15 + $0x988] sm:$0xff] %v1657_v49  ;;  %v1659_v50 = vld [vmem:[%s7787_s14 + $0x1320] sm:$0xff]  ;;  %v1661_v51 = vld [vmem:[%s7787_s14 + $0x1330] sm:$0xff] }
  0xab   : > { %v1663_v52 = vld [vmem:[%s7787_s14 + $0x1340] sm:$0xff]  ;;  %1660 = vst [vmem:[%s7795_s15 + $0x990] sm:$0xff] %v1659_v50  ;;  %1662 = vst [vmem:[%s7795_s15 + $0x998] sm:$0xff] %v1661_v51  ;;  %v1665_v53 = vld [vmem:[%s7787_s14 + $0x1350] sm:$0xff] }
  0xac   : > { %1664 = vst [vmem:[%s7795_s15 + $0x9a0] sm:$0xff] %v1663_v52  ;;  %v1667_v54 = vld [vmem:[%s7787_s14 + $0x1360] sm:$0xff]  ;;  %v1669_v55 = vld [vmem:[%s7787_s14 + $0x1370] sm:$0xff]  ;;  %1666 = vst [vmem:[%s7795_s15 + $0x9a8] sm:$0xff] %v1665_v53 }
  0xad   : > { %1668 = vst [vmem:[%s7795_s15 + $0x9b0] sm:$0xff] %v1667_v54  ;;  %1670 = vst [vmem:[%s7795_s15 + $0x9b8] sm:$0xff] %v1669_v55  ;;  %v1671_v56 = vld [vmem:[%s7787_s14 + $0x1380] sm:$0xff]  ;;  %v1673_v57 = vld [vmem:[%s7787_s14 + $0x1390] sm:$0xff] }
  0xae   : > { %v1675_v58 = vld [vmem:[%s7787_s14 + $0x13a0] sm:$0xff]  ;;  %1672 = vst [vmem:[%s7795_s15 + $0x9c0] sm:$0xff] %v1671_v56  ;;  %1674 = vst [vmem:[%s7795_s15 + $0x9c8] sm:$0xff] %v1673_v57  ;;  %v1677_v59 = vld [vmem:[%s7787_s14 + $0x13b0] sm:$0xff] }
  0xaf   : > { %1676 = vst [vmem:[%s7795_s15 + $0x9d0] sm:$0xff] %v1675_v58  ;;  %v1679_v60 = vld [vmem:[%s7787_s14 + $0x13c0] sm:$0xff]  ;;  %v1681_v61 = vld [vmem:[%s7787_s14 + $0x13d0] sm:$0xff]  ;;  %1678 = vst [vmem:[%s7795_s15 + $0x9d8] sm:$0xff] %v1677_v59 }
  0xb0   : > { %1680 = vst [vmem:[%s7795_s15 + $0x9e0] sm:$0xff] %v1679_v60  ;;  %1682 = vst [vmem:[%s7795_s15 + $0x9e8] sm:$0xff] %v1681_v61  ;;  %v1683_v62 = vld [vmem:[%s7787_s14 + $0x13e0] sm:$0xff]  ;;  %v1685_v63 = vld [vmem:[%s7787_s14 + $0x13f0] sm:$0xff] }
  0xb1   : > { %v1687_v0 = vld [vmem:[%s7787_s14 + $0x1400] sm:$0xff]  ;;  %1684 = vst [vmem:[%s7795_s15 + $0x9f0] sm:$0xff] %v1683_v62  ;;  %1686 = vst [vmem:[%s7795_s15 + $0x9f8] sm:$0xff] %v1685_v63  ;;  %v1689_v1 = vld [vmem:[%s7787_s14 + $0x1410] sm:$0xff] }
  0xb2   : > { %1688 = vst [vmem:[%s7795_s15 + $0xa00] sm:$0xff] %v1687_v0  ;;  %v1691_v2 = vld [vmem:[%s7787_s14 + $0x1420] sm:$0xff]  ;;  %v1693_v3 = vld [vmem:[%s7787_s14 + $0x1430] sm:$0xff]  ;;  %1690 = vst [vmem:[%s7795_s15 + $0xa08] sm:$0xff] %v1689_v1 }
  0xb3   : > { %1692 = vst [vmem:[%s7795_s15 + $0xa10] sm:$0xff] %v1691_v2  ;;  %1694 = vst [vmem:[%s7795_s15 + $0xa18] sm:$0xff] %v1693_v3  ;;  %v1695_v4 = vld [vmem:[%s7787_s14 + $0x1440] sm:$0xff]  ;;  %v1697_v5 = vld [vmem:[%s7787_s14 + $0x1450] sm:$0xff] }
  0xb4   : > { %v1699_v6 = vld [vmem:[%s7787_s14 + $0x1460] sm:$0xff]  ;;  %1696 = vst [vmem:[%s7795_s15 + $0xa20] sm:$0xff] %v1695_v4  ;;  %1698 = vst [vmem:[%s7795_s15 + $0xa28] sm:$0xff] %v1697_v5  ;;  %v1701_v7 = vld [vmem:[%s7787_s14 + $0x1470] sm:$0xff] }
  0xb5   : > { %1700 = vst [vmem:[%s7795_s15 + $0xa30] sm:$0xff] %v1699_v6  ;;  %v1703_v8 = vld [vmem:[%s7787_s14 + $0x1480] sm:$0xff]  ;;  %v1705_v9 = vld [vmem:[%s7787_s14 + $0x1490] sm:$0xff]  ;;  %1702 = vst [vmem:[%s7795_s15 + $0xa38] sm:$0xff] %v1701_v7 }
  0xb6   : > { %1704 = vst [vmem:[%s7795_s15 + $0xa40] sm:$0xff] %v1703_v8  ;;  %1706 = vst [vmem:[%s7795_s15 + $0xa48] sm:$0xff] %v1705_v9  ;;  %v1707_v10 = vld [vmem:[%s7787_s14 + $0x14a0] sm:$0xff]  ;;  %v1709_v11 = vld [vmem:[%s7787_s14 + $0x14b0] sm:$0xff] }
  0xb7   : > { %v1711_v12 = vld [vmem:[%s7787_s14 + $0x14c0] sm:$0xff]  ;;  %1708 = vst [vmem:[%s7795_s15 + $0xa50] sm:$0xff] %v1707_v10  ;;  %1710 = vst [vmem:[%s7795_s15 + $0xa58] sm:$0xff] %v1709_v11  ;;  %v1713_v13 = vld [vmem:[%s7787_s14 + $0x14d0] sm:$0xff] }
  0xb8   : > { %1712 = vst [vmem:[%s7795_s15 + $0xa60] sm:$0xff] %v1711_v12  ;;  %v1715_v14 = vld [vmem:[%s7787_s14 + $0x14e0] sm:$0xff]  ;;  %v1717_v15 = vld [vmem:[%s7787_s14 + $0x14f0] sm:$0xff]  ;;  %1714 = vst [vmem:[%s7795_s15 + $0xa68] sm:$0xff] %v1713_v13 }
  0xb9   : > { %1716 = vst [vmem:[%s7795_s15 + $0xa70] sm:$0xff] %v1715_v14  ;;  %1718 = vst [vmem:[%s7795_s15 + $0xa78] sm:$0xff] %v1717_v15  ;;  %v1719_v16 = vld [vmem:[%s7787_s14 + $0x1500] sm:$0xff]  ;;  %v1721_v17 = vld [vmem:[%s7787_s14 + $0x1510] sm:$0xff] }
  0xba   : > { %v1723_v18 = vld [vmem:[%s7787_s14 + $0x1520] sm:$0xff]  ;;  %1720 = vst [vmem:[%s7795_s15 + $0xa80] sm:$0xff] %v1719_v16  ;;  %1722 = vst [vmem:[%s7795_s15 + $0xa88] sm:$0xff] %v1721_v17  ;;  %v1725_v19 = vld [vmem:[%s7787_s14 + $0x1530] sm:$0xff] }
  0xbb   : > { %1724 = vst [vmem:[%s7795_s15 + $0xa90] sm:$0xff] %v1723_v18  ;;  %v1727_v20 = vld [vmem:[%s7787_s14 + $0x1540] sm:$0xff]  ;;  %v1729_v21 = vld [vmem:[%s7787_s14 + $0x1550] sm:$0xff]  ;;  %1726 = vst [vmem:[%s7795_s15 + $0xa98] sm:$0xff] %v1725_v19 }
  0xbc   : > { %1728 = vst [vmem:[%s7795_s15 + $0xaa0] sm:$0xff] %v1727_v20  ;;  %1730 = vst [vmem:[%s7795_s15 + $0xaa8] sm:$0xff] %v1729_v21  ;;  %v1731_v22 = vld [vmem:[%s7787_s14 + $0x1560] sm:$0xff]  ;;  %v1733_v23 = vld [vmem:[%s7787_s14 + $0x1570] sm:$0xff] }
  0xbd   : > { %v1735_v24 = vld [vmem:[%s7787_s14 + $0x1580] sm:$0xff]  ;;  %1732 = vst [vmem:[%s7795_s15 + $0xab0] sm:$0xff] %v1731_v22  ;;  %1734 = vst [vmem:[%s7795_s15 + $0xab8] sm:$0xff] %v1733_v23  ;;  %v1737_v25 = vld [vmem:[%s7787_s14 + $0x1590] sm:$0xff] }
  0xbe   : > { %1736 = vst [vmem:[%s7795_s15 + $0xac0] sm:$0xff] %v1735_v24  ;;  %v1739_v26 = vld [vmem:[%s7787_s14 + $0x15a0] sm:$0xff]  ;;  %v1741_v27 = vld [vmem:[%s7787_s14 + $0x15b0] sm:$0xff]  ;;  %1738 = vst [vmem:[%s7795_s15 + $0xac8] sm:$0xff] %v1737_v25 }
  0xbf   : > { %1740 = vst [vmem:[%s7795_s15 + $0xad0] sm:$0xff] %v1739_v26  ;;  %1742 = vst [vmem:[%s7795_s15 + $0xad8] sm:$0xff] %v1741_v27  ;;  %v1743_v28 = vld [vmem:[%s7787_s14 + $0x15c0] sm:$0xff]  ;;  %v1745_v29 = vld [vmem:[%s7787_s14 + $0x15d0] sm:$0xff] }
  0xc0   : > { %v1747_v30 = vld [vmem:[%s7787_s14 + $0x15e0] sm:$0xff]  ;;  %1744 = vst [vmem:[%s7795_s15 + $0xae0] sm:$0xff] %v1743_v28  ;;  %1746 = vst [vmem:[%s7795_s15 + $0xae8] sm:$0xff] %v1745_v29  ;;  %v1749_v31 = vld [vmem:[%s7787_s14 + $0x15f0] sm:$0xff] }
  0xc1   : > { %1748 = vst [vmem:[%s7795_s15 + $0xaf0] sm:$0xff] %v1747_v30  ;;  %v1751_v32 = vld [vmem:[%s7787_s14 + $0x1600] sm:$0xff]  ;;  %v1753_v33 = vld [vmem:[%s7787_s14 + $0x1610] sm:$0xff]  ;;  %1750 = vst [vmem:[%s7795_s15 + $0xaf8] sm:$0xff] %v1749_v31 }
  0xc2   : > { %1752 = vst [vmem:[%s7795_s15 + $0xb00] sm:$0xff] %v1751_v32  ;;  %1754 = vst [vmem:[%s7795_s15 + $0xb08] sm:$0xff] %v1753_v33  ;;  %v1755_v34 = vld [vmem:[%s7787_s14 + $0x1620] sm:$0xff]  ;;  %v1757_v35 = vld [vmem:[%s7787_s14 + $0x1630] sm:$0xff] }
  0xc3   : > { %v1759_v36 = vld [vmem:[%s7787_s14 + $0x1640] sm:$0xff]  ;;  %1756 = vst [vmem:[%s7795_s15 + $0xb10] sm:$0xff] %v1755_v34  ;;  %1758 = vst [vmem:[%s7795_s15 + $0xb18] sm:$0xff] %v1757_v35  ;;  %v1761_v37 = vld [vmem:[%s7787_s14 + $0x1650] sm:$0xff] }
  0xc4   : > { %1760 = vst [vmem:[%s7795_s15 + $0xb20] sm:$0xff] %v1759_v36  ;;  %v1763_v38 = vld [vmem:[%s7787_s14 + $0x1660] sm:$0xff]  ;;  %v1765_v39 = vld [vmem:[%s7787_s14 + $0x1670] sm:$0xff]  ;;  %1762 = vst [vmem:[%s7795_s15 + $0xb28] sm:$0xff] %v1761_v37 }
  0xc5   : > { %1764 = vst [vmem:[%s7795_s15 + $0xb30] sm:$0xff] %v1763_v38  ;;  %1766 = vst [vmem:[%s7795_s15 + $0xb38] sm:$0xff] %v1765_v39  ;;  %v1767_v40 = vld [vmem:[%s7787_s14 + $0x1680] sm:$0xff]  ;;  %v1769_v41 = vld [vmem:[%s7787_s14 + $0x1690] sm:$0xff] }
  0xc6   : > { %v1771_v42 = vld [vmem:[%s7787_s14 + $0x16a0] sm:$0xff]  ;;  %1768 = vst [vmem:[%s7795_s15 + $0xb40] sm:$0xff] %v1767_v40  ;;  %1770 = vst [vmem:[%s7795_s15 + $0xb48] sm:$0xff] %v1769_v41  ;;  %v1773_v43 = vld [vmem:[%s7787_s14 + $0x16b0] sm:$0xff] }
  0xc7   : > { %1772 = vst [vmem:[%s7795_s15 + $0xb50] sm:$0xff] %v1771_v42  ;;  %v1775_v44 = vld [vmem:[%s7787_s14 + $0x16c0] sm:$0xff]  ;;  %v1777_v45 = vld [vmem:[%s7787_s14 + $0x16d0] sm:$0xff]  ;;  %1774 = vst [vmem:[%s7795_s15 + $0xb58] sm:$0xff] %v1773_v43 }
  0xc8   : > { %1776 = vst [vmem:[%s7795_s15 + $0xb60] sm:$0xff] %v1775_v44  ;;  %1778 = vst [vmem:[%s7795_s15 + $0xb68] sm:$0xff] %v1777_v45  ;;  %v1779_v46 = vld [vmem:[%s7787_s14 + $0x16e0] sm:$0xff]  ;;  %v1781_v47 = vld [vmem:[%s7787_s14 + $0x16f0] sm:$0xff] }
  0xc9   : > { %v1783_v48 = vld [vmem:[%s7787_s14 + $0x1700] sm:$0xff]  ;;  %1780 = vst [vmem:[%s7795_s15 + $0xb70] sm:$0xff] %v1779_v46  ;;  %1782 = vst [vmem:[%s7795_s15 + $0xb78] sm:$0xff] %v1781_v47  ;;  %v1785_v49 = vld [vmem:[%s7787_s14 + $0x1710] sm:$0xff] }
  0xca   : > { %1784 = vst [vmem:[%s7795_s15 + $0xb80] sm:$0xff] %v1783_v48  ;;  %v1787_v50 = vld [vmem:[%s7787_s14 + $0x1720] sm:$0xff]  ;;  %v1789_v51 = vld [vmem:[%s7787_s14 + $0x1730] sm:$0xff]  ;;  %1786 = vst [vmem:[%s7795_s15 + $0xb88] sm:$0xff] %v1785_v49 }
  0xcb   : > { %1788 = vst [vmem:[%s7795_s15 + $0xb90] sm:$0xff] %v1787_v50  ;;  %1790 = vst [vmem:[%s7795_s15 + $0xb98] sm:$0xff] %v1789_v51  ;;  %v1791_v52 = vld [vmem:[%s7787_s14 + $0x1740] sm:$0xff]  ;;  %v1793_v53 = vld [vmem:[%s7787_s14 + $0x1750] sm:$0xff] }
  0xcc   : > { %v1795_v54 = vld [vmem:[%s7787_s14 + $0x1760] sm:$0xff]  ;;  %1792 = vst [vmem:[%s7795_s15 + $0xba0] sm:$0xff] %v1791_v52  ;;  %1794 = vst [vmem:[%s7795_s15 + $0xba8] sm:$0xff] %v1793_v53  ;;  %v1797_v55 = vld [vmem:[%s7787_s14 + $0x1770] sm:$0xff] }
  0xcd   : > { %1796 = vst [vmem:[%s7795_s15 + $0xbb0] sm:$0xff] %v1795_v54  ;;  %v1799_v56 = vld [vmem:[%s7787_s14 + $0x1780] sm:$0xff]  ;;  %v1801_v57 = vld [vmem:[%s7787_s14 + $0x1790] sm:$0xff]  ;;  %1798 = vst [vmem:[%s7795_s15 + $0xbb8] sm:$0xff] %v1797_v55 }
  0xce   : > { %1800 = vst [vmem:[%s7795_s15 + $0xbc0] sm:$0xff] %v1799_v56  ;;  %1802 = vst [vmem:[%s7795_s15 + $0xbc8] sm:$0xff] %v1801_v57  ;;  %v1803_v58 = vld [vmem:[%s7787_s14 + $0x17a0] sm:$0xff]  ;;  %v1805_v59 = vld [vmem:[%s7787_s14 + $0x17b0] sm:$0xff] }
  0xcf   : > { %v1807_v60 = vld [vmem:[%s7787_s14 + $0x17c0] sm:$0xff]  ;;  %1804 = vst [vmem:[%s7795_s15 + $0xbd0] sm:$0xff] %v1803_v58  ;;  %1806 = vst [vmem:[%s7795_s15 + $0xbd8] sm:$0xff] %v1805_v59  ;;  %v1809_v61 = vld [vmem:[%s7787_s14 + $0x17d0] sm:$0xff] }
  0xd0   : > { %1808 = vst [vmem:[%s7795_s15 + $0xbe0] sm:$0xff] %v1807_v60  ;;  %v1811_v62 = vld [vmem:[%s7787_s14 + $0x17e0] sm:$0xff]  ;;  %v1813_v63 = vld [vmem:[%s7787_s14 + $0x17f0] sm:$0xff]  ;;  %1810 = vst [vmem:[%s7795_s15 + $0xbe8] sm:$0xff] %v1809_v61 }
  0xd1   : > { %1812 = vst [vmem:[%s7795_s15 + $0xbf0] sm:$0xff] %v1811_v62  ;;  %1814 = vst [vmem:[%s7795_s15 + $0xbf8] sm:$0xff] %v1813_v63  ;;  %v1815_v0 = vld [vmem:[%s7787_s14 + $0x1800] sm:$0xff]  ;;  %v1817_v1 = vld [vmem:[%s7787_s14 + $0x1810] sm:$0xff] }
  0xd2   : > { %v1819_v2 = vld [vmem:[%s7787_s14 + $0x1820] sm:$0xff]  ;;  %1816 = vst [vmem:[%s7795_s15 + $0xc00] sm:$0xff] %v1815_v0  ;;  %1818 = vst [vmem:[%s7795_s15 + $0xc08] sm:$0xff] %v1817_v1  ;;  %v1821_v3 = vld [vmem:[%s7787_s14 + $0x1830] sm:$0xff] }
  0xd3   : > { %1820 = vst [vmem:[%s7795_s15 + $0xc10] sm:$0xff] %v1819_v2  ;;  %v1823_v4 = vld [vmem:[%s7787_s14 + $0x1840] sm:$0xff]  ;;  %v1825_v5 = vld [vmem:[%s7787_s14 + $0x1850] sm:$0xff]  ;;  %1822 = vst [vmem:[%s7795_s15 + $0xc18] sm:$0xff] %v1821_v3 }
  0xd4   : > { %1824 = vst [vmem:[%s7795_s15 + $0xc20] sm:$0xff] %v1823_v4  ;;  %1826 = vst [vmem:[%s7795_s15 + $0xc28] sm:$0xff] %v1825_v5  ;;  %v1827_v6 = vld [vmem:[%s7787_s14 + $0x1860] sm:$0xff]  ;;  %v1829_v7 = vld [vmem:[%s7787_s14 + $0x1870] sm:$0xff] }
  0xd5   : > { %1828 = vst [vmem:[%s7795_s15 + $0xc30] sm:$0xff] %v1827_v6  ;;  %1830 = vst [vmem:[%s7795_s15 + $0xc38] sm:$0xff] %v1829_v7 }
  0xd6 PF: > { %p6192_p5 = scmp.ge.s32.totalorder %s7701_s26, 1  ;;  %p1852_p6 = scmp.lt.s32.totalorder %s7701_s26, 3 }
  0xd8   : > { %p1853_p7 = pnand %p6192_p5, %p1852_p6 }
  0xd9   : > { %s1859_s16 = sand.u32 (!%p1853_p7), 1, %s7693_s24   ;;  %s6193_s17 = sshll.u32 (!%p1853_p7), %s7767_s27, 1 }
  0xda   : > { %1856 = sbr.rel (%p1853_p7) target bundleno = 1551 (0x60f), region = 82  ;;  %p1896_p8 = scmp.lt.s32.totalorder (!%p1853_p7), %s6193_s17, 3 }
  0xdb   : > { %s7000_s18 = smul.u32 (!%p1853_p7), 3136, %s1859_s16  ;;  %s6194_s19 = sshll.u32 (!%p1853_p7), %s7767_s27, 5 }
  0xdc   : > { %p1901_p9 = scmp.lt.s32.totalorder (!%p1853_p7), %s6194_s19, 63  ;;  %p6196_p10 = scmp.ne.s32.totalorder (!%p1853_p7), %s7767_s27, 0 }
  0xdd   : > { %s8591_s24 = scalar_lea.vmem (!%p1853_p7), [#allocation3], %s7000_s18 }
  0xe1   : > { %s9782_s17 = smov (!%p1896_p8, %s6193_s17), 3  ;;  %s9784_s19 = smov (!%p1901_p9, %s6194_s19), 63 }
  0xe2   : > { %s1898_s22 = scalar_lea.vmem %s9774_s4, %s9782_s17  ;;  %s6195_s23 = sshll.u32 %s9784_s19, 2  ;;  %v1992_v8 = vld [vmem:[%s9771_s1 + $0x80] sm:$0xff] (!%p6196_p10)  ;;  %v1993_v9 = vld [vmem:[%s9771_s1 + $0x88] sm:$0xff] (!%p6196_p10)  ;;  %v7703_v15 = vmov (!%p6196_p10), 0.0   ;;  %v1994_v20 = vld [vmem:[%s9771_s1 + $0x90] sm:$0xff] (!%p6196_p10)  ;;  %vm7705_vm0 = vmmov (!%p6196_p10), 0  }
  0xe3   : > { %s8589_s30 = scalar_lea.vmem %s9775_s5, %s6195_s23  ;;  %1910 = sbr.rel (%p6196_p10) target bundleno = 697 (0x2b9), region = 90  ;;  %v2024_v10 = vld [vmem:[%s9771_s1 + $0x180] sm:$0xff] (!%p6196_p10)  ;;  %v6867_v11 = vpack.c.bf16 (!%p6196_p10), %v1993_v9, %v1992_v8  ;;  %v2025_v12 = vld [vmem:[%s9771_s1 + $0x188] sm:$0xff] (!%p6196_p10)  ;;  %2498 = vst [vmem:[#allocation2] sm:$0xff] (!%p6196_p10), %v7703_v15  ;;  %2499 = vst [vmem:[#allocation2 + $0x8] sm:$0xff] (!%p6196_p10), %v7703_v15  ;;  %vm2055_vm1 = vcmask (!%p6196_p10), 523264  }
  0xe4   : > { %v1976_v13 = vld [vmem:[%s9771_s1] sm:$0xff] (!%p6196_p10)  ;;  %v1977_v14 = vld [vmem:[%s9771_s1 + $0x8] sm:$0xff] (!%p6196_p10)  ;;  %2500 = vst [vmem:[#allocation2 + $0x10] sm:$0xff] (!%p6196_p10), %v7703_v15  ;;  %2501 = vst [vmem:[#allocation2 + $0x18] sm:$0xff] (!%p6196_p10), %v7703_v15  ;;  %v6899_v16 = vpack.c.bf16 (!%p6196_p10), %v2025_v12, %v2024_v10  ;;  %vm2504_vm2 = vcmask (!%p6196_p10), 517120   ;;  %s7707_s15 = smov (!%p6196_p10), 64  }
  0xe5   : > { %2502 = vst [vmem:[#allocation2 + $0x20] sm:$0xff] (!%p6196_p10), %v7703_v15  ;;  %2503 = vst [vmem:[#allocation2 + $0x28] sm:$0xff] (!%p6196_p10), %v7703_v15  ;;  %v6869_v17 = vpack.c.bf16 (!%p6196_p10), %v1977_v14, %v1976_v13  ;;  %v2008_v18 = vld [vmem:[%s9771_s1 + $0x100] sm:$0xff] (!%p6196_p10)  ;;  %v2009_v19 = vld [vmem:[%s9771_s1 + $0x108] sm:$0xff] (!%p6196_p10)  ;;  %6868 = vmatprep.subr.bf16.mxu0 (!%p6196_p10), %v6867_v11  ;;  %vm2519_vm3 = vcmask (!%p6196_p10), 1041920  }
  0xe6   : > { %v6901_v21 = vpack.c.bf16 (!%p6196_p10), %v2009_v19, %v2008_v18  ;;  %v1995_v22 = vld [vmem:[%s9771_s1 + $0x98] sm:$0xff] (!%p6196_p10)  ;;  %v2026_v23 = vld [vmem:[%s9771_s1 + $0x190] sm:$0xff] (!%p6196_p10)  ;;  %6900 = vmatprep.subr.bf16.mxu1 (!%p6196_p10), %v6899_v16  ;;  %v1996_v32 = vld [vmem:[%s9771_s1 + $0xa0] sm:$0xff] (!%p6196_p10)  ;;  %2505 = vst.msk [vmem:[#allocation2 + $0x30] sm:$0x3] (!%p6196_p10), %vm2504_vm2, %v7703_v15 }
  0xe7   : > { %v2027_v24 = vld [vmem:[%s9771_s1 + $0x198] sm:$0xff] (!%p6196_p10)  ;;  %6870 = vmatpush3.bf16.msra.mxu0 (!%p6196_p10), %v6869_v17  ;;  %v6871_v25 = vpack.c.bf16 (!%p6196_p10), %v1995_v22, %v1994_v20  ;;  %v1978_v27 = vld [vmem:[%s9771_s1 + $0x10] sm:$0xff] (!%p6196_p10)  ;;  %v1997_v33 = vld [vmem:[%s9771_s1 + $0xa8] sm:$0xff] (!%p6196_p10) }
  0xe8   : > { %v6903_v26 = vpack.c.bf16 (!%p6196_p10), %v2027_v24, %v2026_v23  ;;  %v1979_v28 = vld [vmem:[%s9771_s1 + $0x18] sm:$0xff] (!%p6196_p10)  ;;  %v2010_v29 = vld [vmem:[%s9771_s1 + $0x110] sm:$0xff] (!%p6196_p10)  ;;  %6902 = vmatpush3.bf16.msra.mxu1 (!%p6196_p10), %v6901_v21  ;;  %v6875_v35 = vpack.c.bf16 (!%p6196_p10), %v1997_v33, %v1996_v32  ;;  %v2028_v36 = vld [vmem:[%s9771_s1 + $0x1a0] sm:$0xff] (!%p6196_p10) }
  0xe9   : > { %v6873_v30 = vpack.c.bf16 (!%p6196_p10), %v1979_v28, %v1978_v27  ;;  %v2011_v31 = vld [vmem:[%s9771_s1 + $0x118] sm:$0xff] (!%p6196_p10)  ;;  %6872 = vmatprep.subr.bf16.mxu0 (!%p6196_p10), %v6871_v25  ;;  %v2029_v37 = vld [vmem:[%s9771_s1 + $0x1a8] sm:$0xff] (!%p6196_p10)  ;;  %v1980_v38 = vld [vmem:[%s9771_s1 + $0x20] sm:$0xff] (!%p6196_p10) }
  0xea   : > { %6904 = vmatprep.subr.bf16.mxu1 %v6903_v26  ;;  %v6905_v34 = vpack.c.bf16 %v2011_v31, %v2010_v29  ;;  %v6907_v39 = vpack.c.bf16 %v2029_v37, %v2028_v36  ;;  %v1981_v40 = vld [vmem:[%s9771_s1 + $0x28] sm:$0xff]  ;;  %v2012_v41 = vld [vmem:[%s9771_s1 + $0x120] sm:$0xff]  ;;  %v1998_v44 = vld [vmem:[%s9771_s1 + $0xb0] sm:$0xff] }
  0xeb   : > { %v2013_v42 = vld [vmem:[%s9771_s1 + $0x128] sm:$0xff]  ;;  %6874 = vmatpush3.bf16.msra.mxu0 %v6873_v30  ;;  %v6877_v43 = vpack.c.bf16 %v1981_v40, %v1980_v38  ;;  %v1999_v45 = vld [vmem:[%s9771_s1 + $0xb8] sm:$0xff]  ;;  %v2030_v46 = vld [vmem:[%s9771_s1 + $0x1b0] sm:$0xff] }
  0xec   : > { %6906 = vmatpush3.bf16.msra.mxu1 %v6905_v34  ;;  %6876 = vmatprep.subr.bf16.mxu0 %v6875_v35  ;;  %v6909_v47 = vpack.c.bf16 %v2013_v42, %v2012_v41  ;;  %v6879_v48 = vpack.c.bf16 %v1999_v45, %v1998_v44  ;;  %v2031_v49 = vld [vmem:[%s9771_s1 + $0x1b8] sm:$0xff]  ;;  %v1982_v50 = vld [vmem:[%s9771_s1 + $0x30] sm:$0xff]  ;;  %v2000_v55 = vld [vmem:[%s9771_s1 + $0xc0] sm:$0xff] }
  0xed   : > { %v1983_v51 = vld [vmem:[%s9771_s1 + $0x38] sm:$0xff]  ;;  %6908 = vmatprep.subr.bf16.mxu1 %v6907_v39  ;;  %v6911_v52 = vpack.c.bf16 %v2031_v49, %v2030_v46  ;;  %v2014_v53 = vld [vmem:[%s9771_s1 + $0x130] sm:$0xff]  ;;  %v2001_v56 = vld [vmem:[%s9771_s1 + $0xc8] sm:$0xff]  ;;  %v7704_v49 = vmov 0.0|0.0  }
  0xee   : > { %v2015_v54 = vld [vmem:[%s9771_s1 + $0x138] sm:$0xff]  ;;  %v2032_v57 = vld [vmem:[%s9771_s1 + $0x1c0] sm:$0xff]  ;;  %v2033_v58 = vld [vmem:[%s9771_s1 + $0x1c8] sm:$0xff]  ;;  %v6881_v59 = vpack.c.bf16 %v1983_v51, %v1982_v50  ;;  %v6883_v61 = vpack.c.bf16 %v2001_v56, %v2000_v55 }
  0xef   : > { %6878 = vmatpush3.bf16.msra.mxu0 %v6877_v43  ;;  %v6913_v60 = vpack.c.bf16 %v2015_v54, %v2014_v53  ;;  %v1984_v62 = vld [vmem:[%s9771_s1 + $0x40] sm:$0xff]  ;;  %v1985_v63 = vld [vmem:[%s9771_s1 + $0x48] sm:$0xff]  ;;  %v6915_v1 = vpack.c.bf16 %v2033_v58, %v2032_v57  ;;  %v2002_v3 = vld [vmem:[%s9771_s1 + $0xd0] sm:$0xff] }
  0xf0   : > { %6910 = vmatpush3.bf16.msra.mxu1 %v6909_v47  ;;  %6880 = vmatprep.subr.bf16.mxu0 %v6879_v48  ;;  %v2016_v0 = vld [vmem:[%s9771_s1 + $0x140] sm:$0xff]  ;;  %v2017_v2 = vld [vmem:[%s9771_s1 + $0x148] sm:$0xff]  ;;  %v2003_v4 = vld [vmem:[%s9771_s1 + $0xd8] sm:$0xff]  ;;  %v6885_v7 = vpack.c.bf16 %v1985_v63, %v1984_v62 }
  0xf1   : > { %6912 = vmatprep.subr.bf16.mxu1 %v6911_v52  ;;  %v2034_v5 = vld [vmem:[%s9771_s1 + $0x1d0] sm:$0xff]  ;;  %v2035_v6 = vld [vmem:[%s9771_s1 + $0x1d8] sm:$0xff]  ;;  %v6917_v8 = vpack.c.bf16 %v2017_v2, %v2016_v0  ;;  %v6887_v9 = vpack.c.bf16 %v2003_v4, %v2002_v3  ;;  %v2004_v16 = vld [vmem:[%s9771_s1 + $0xe0] sm:$0xff] }
  0xf2   : > { %v1986_v10 = vld [vmem:[%s9771_s1 + $0x50] sm:$0xff]  ;;  %v1987_v11 = vld [vmem:[%s9771_s1 + $0x58] sm:$0xff]  ;;  %v6919_v13 = vpack.c.bf16 %v2035_v6, %v2034_v5  ;;  %v2005_v17 = vld [vmem:[%s9771_s1 + $0xe8] sm:$0xff] }
  0xf3   : > { %6882 = vmatpush3.bf16.msra.mxu0 %v6881_v59  ;;  %v2018_v12 = vld [vmem:[%s9771_s1 + $0x150] sm:$0xff]  ;;  %v2019_v14 = vld [vmem:[%s9771_s1 + $0x158] sm:$0xff]  ;;  %v2036_v18 = vld [vmem:[%s9771_s1 + $0x1e0] sm:$0xff]  ;;  %v6889_v20 = vpack.c.bf16 %v1987_v11, %v1986_v10  ;;  %v6891_v24 = vpack.c.bf16 %v2005_v17, %v2004_v16 }
  0xf4   : > { %6914 = vmatpush3.bf16.msra.mxu1 %v6913_v60  ;;  %6884 = vmatprep.subr.bf16.mxu0 %v6883_v61  ;;  %v2037_v19 = vld [vmem:[%s9771_s1 + $0x1e8] sm:$0xff]  ;;  %v1988_v21 = vld [vmem:[%s9771_s1 + $0x60] sm:$0xff]  ;;  %v6921_v23 = vpack.c.bf16 %v2019_v14, %v2018_v12  ;;  %v1914_v27 = vld [vmem:[%s9770_s0 + $0x18] sm:$0xff] }
  0xf5   : > { %6916 = vmatprep.subr.bf16.mxu1 %v6915_v1  ;;  %v1989_v22 = vld [vmem:[%s9771_s1 + $0x68] sm:$0xff]  ;;  %v2020_v25 = vld [vmem:[%s9771_s1 + $0x160] sm:$0xff]  ;;  %v6923_v28 = vpack.c.bf16 %v2037_v19, %v2036_v18  ;;  %v2006_v30 = vld [vmem:[%s9771_s1 + $0xf0] sm:$0xff]  ;;  %2289 = vmatprep.mubr.f32.mxu1 %v1914_v27 }
  0xf6   : > { %v1912_v26 = vld [vmem:[%s9770_s0 + $0x8] sm:$0xff]  ;;  %v2007_v31 = vld [vmem:[%s9771_s1 + $0xf8] sm:$0xff]  ;;  %v2038_v32 = vld [vmem:[%s9771_s1 + $0x1f0] sm:$0xff]  ;;  %v6893_v34 = vpack.c.bf16 %v1989_v22, %v1988_v21 }
  0xf7   : > { %6886 = vmatpush3.bf16.msra.mxu0 %v6885_v7  ;;  %v2021_v29 = vld [vmem:[%s9771_s1 + $0x168] sm:$0xff]  ;;  %2159 = vmatprep.mubr.f32.mxu0 %v1912_v26  ;;  %v2039_v33 = vld [vmem:[%s9771_s1 + $0x1f8] sm:$0xff]  ;;  %v6895_v36 = vpack.c.bf16 %v2007_v31, %v2006_v30  ;;  %v1990_v37 = vld [vmem:[%s9771_s1 + $0x70] sm:$0xff] }
  0xf8   : > { %6918 = vmatpush3.bf16.msra.mxu1 %v6917_v8  ;;  %6888 = vmatprep.subr.bf16.mxu0 %v6887_v9  ;;  %v6925_v35 = vpack.c.bf16 %v2021_v29, %v2020_v25  ;;  %v1991_v38 = vld [vmem:[%s9771_s1 + $0x78] sm:$0xff]  ;;  %v6927_v39 = vpack.c.bf16 %v2039_v33, %v2038_v32  ;;  %v2022_v40 = vld [vmem:[%s9771_s1 + $0x170] sm:$0xff]  ;;  %v2040_v44 = vld [vmem:[%s9771_s1 + $0x200] sm:$0xff] }
  0xf9   : > { %6920 = vmatprep.subr.bf16.mxu1 %v6919_v13  ;;  %v2023_v41 = vld [vmem:[%s9771_s1 + $0x178] sm:$0xff]  ;;  %v6897_v42 = vpack.c.bf16 %v1991_v38, %v1990_v37  ;;  %v2041_v45 = vld [vmem:[%s9771_s1 + $0x208] sm:$0xff]  ;;  %v1911_v46 = vld [vmem:[%s9770_s0] sm:$0xff] }
  0xfa   : > { %v6929_v43 = vpack.c.bf16 %v2023_v41, %v2022_v40  ;;  %v1913_v47 = vld [vmem:[%s9770_s0 + $0x10] sm:$0xff]  ;;  %v6932_v48 = vpack.c.bf16 %v2041_v45, %v2040_v44  ;;  %v1919_v51 = vld [vmem:[%s9770_s0 + $0x40] sm:$0xff]  ;;  %v2043_v53 = vld [vmem:[%s9771_s1 + $0x218] sm:$0xff] }
  0xfb   : > { %6890 = vmatpush3.bf16.msra.mxu0 %v6889_v20  ;;  %v1917_v50 = vld [vmem:[%s9770_s0 + $0x30] sm:$0xff]  ;;  %v1916_v54 = vld [vmem:[%s9770_s0 + $0x28] sm:$0xff]  ;;  %v1918_v55 = vld [vmem:[%s9770_s0 + $0x38] sm:$0xff] }
  0xfc   : > { %6922 = vmatpush3.bf16.msra.mxu1 %v6921_v23  ;;  %6892 = vmatprep.subr.bf16.mxu0 %v6891_v24  ;;  %v2042_v52 = vld [vmem:[%s9771_s1 + $0x210] sm:$0xff]  ;;  %v1922_v56 = vld [vmem:[%s9770_s0 + $0x58] sm:$0xff]  ;;  %v1924_v58 = vld [vmem:[%s9770_s0 + $0x68] sm:$0xff] }
  0xfd   : > { %6924 = vmatprep.subr.bf16.mxu1 %v6923_v28  ;;  %v6935_v57 = vpack.c.bf16 %v2043_v53, %v2042_v52  ;;  %v2044_v59 = vld [vmem:[%s9771_s1 + $0x220] sm:$0xff]  ;;  %v2045_v60 = vld [vmem:[%s9771_s1 + $0x228] sm:$0xff]  ;;  %v1921_v61 = vld [vmem:[%s9770_s0 + $0x50] sm:$0xff] }
  0xfe   : > { %v1923_v62 = vld [vmem:[%s9770_s0 + $0x60] sm:$0xff]  ;;  %v6938_v0 = vpack.c.bf16 %v2045_v60, %v2044_v59  ;;  %v1929_v1 = vld [vmem:[%s9770_s0 + $0x90] sm:$0xff]  ;;  %v2047_v3 = vld [vmem:[%s9771_s1 + $0x238] sm:$0xff] }
  0xff   : > { %6894 = vmatpush3.bf16.msra.mxu0 %v6893_v34  ;;  %v1927_v63 = vld [vmem:[%s9770_s0 + $0x80] sm:$0xff]  ;;  %v2046_v2 = vld [vmem:[%s9771_s1 + $0x230] sm:$0xff]  ;;  %v1926_v4 = vld [vmem:[%s9770_s0 + $0x78] sm:$0xff] }
 0x100   : > { %6926 = vmatpush3.bf16.msra.mxu1 %v6925_v35  ;;  %6896 = vmatprep.subr.bf16.mxu0 %v6895_v36  ;;  %v1928_v5 = vld [vmem:[%s9770_s0 + $0x88] sm:$0xff]  ;;  %v6941_v7 = vpack.c.bf16 %v2047_v3, %v2046_v2  ;;  %v1934_v8 = vld [vmem:[%s9770_s0 + $0xb8] sm:$0xff]  ;;  %v1931_v9 = vld [vmem:[%s9770_s0 + $0xa0] sm:$0xff] }
 0x101   : > { %6928 = vmatprep.subr.bf16.mxu1 %v6927_v39  ;;  %v1932_v6 = vld [vmem:[%s9770_s0 + $0xa8] sm:$0xff]  ;;  %v1933_v10 = vld [vmem:[%s9770_s0 + $0xb0] sm:$0xff]  ;;  %v1939_v12 = vld [vmem:[%s9770_s0 + $0xe0] sm:$0xff] }
 0x102   : > { %v1937_v11 = vld [vmem:[%s9770_s0 + $0xd0] sm:$0xff]  ;;  %v1936_v13 = vld [vmem:[%s9770_s0 + $0xc8] sm:$0xff]  ;;  %v1938_v14 = vld [vmem:[%s9770_s0 + $0xd8] sm:$0xff] }
 0x103   : > { %6898 = vmatpush3.bf16.msra.mxu0 %v6897_v42  ;;  %v1942_v16 = vld [vmem:[%s9770_s0 + $0xf8] sm:$0xff]  ;;  %v1944_v17 = vld [vmem:[%s9770_s0 + $0x108] sm:$0xff]  ;;  %v1941_v18 = vld [vmem:[%s9770_s0 + $0xf0] sm:$0xff] }
 0x104   : > { %6930 = vmatpush3.bf16.msra.mxu1 %v6929_v43  ;;  %6931 = vmatprep.subr.bf16.mxu0 %v7704_v49  ;;  %v1943_v19 = vld [vmem:[%s9770_s0 + $0x100] sm:$0xff]  ;;  %v1949_v21 = vld [vmem:[%s9770_s0 + $0x130] sm:$0xff]  ;;  %v1946_v22 = vld [vmem:[%s9770_s0 + $0x118] sm:$0xff] }
 0x105   : > { %6943 = vmatprep.subr.bf16.mxu1 %v7704_v49  ;;  %v1947_v20 = vld [vmem:[%s9770_s0 + $0x120] sm:$0xff]  ;;  %v1948_v23 = vld [vmem:[%s9770_s0 + $0x128] sm:$0xff]  ;;  %v1954_v25 = vld [vmem:[%s9770_s0 + $0x158] sm:$0xff] }
 0x106   : > { %2160 = vmatmul.mubr.f32.vlgmr.msra.gmra.mrb[0].mxu0 %v1911_v46  ;;  %v1952_v24 = vld [vmem:[%s9770_s0 + $0x148] sm:$0xff]  ;;  %v1951_v26 = vld [vmem:[%s9770_s0 + $0x140] sm:$0xff]  ;;  %v1953_v27 = vld [vmem:[%s9770_s0 + $0x150] sm:$0xff] }
 0x107   : > { %2290 = vmatmul.mubr.f32.vlgmr.msra.gmra.mrb[0].mxu1 %v1913_v47  ;;  %2164 = vmatprep.mubr.f32.mxu0 %v1917_v50  ;;  %v1957_v28 = vld [vmem:[%s9770_s0 + $0x170] sm:$0xff]  ;;  %v1959_v29 = vld [vmem:[%s9770_s0 + $0x180] sm:$0xff]  ;;  %v1956_v30 = vld [vmem:[%s9770_s0 + $0x168] sm:$0xff] }
 0x108   : > { %6947 = vmatpush3.bf16.msra.mxu1 %v6932_v48  ;;  %2294 = vmatprep.mubr.f32.mxu1 %v1919_v51  ;;  %v1958_v31 = vld [vmem:[%s9770_s0 + $0x178] sm:$0xff]  ;;  %v1964_v33 = vld [vmem:[%s9770_s0 + $0x1a8] sm:$0xff]  ;;  %v1961_v34 = vld [vmem:[%s9770_s0 + $0x190] sm:$0xff] }
 0x109   : > { %6933 = vmatpush3.bf16.msra.mxu0 %v6932_v48  ;;  %6944 = vmatprep.subr.bf16.mxu1 %v7704_v49  ;;  %v1962_v32 = vld [vmem:[%s9770_s0 + $0x198] sm:$0xff]  ;;  %v1963_v35 = vld [vmem:[%s9770_s0 + $0x1a0] sm:$0xff]  ;;  %v1969_v37 = vld [vmem:[%s9770_s0 + $0x1d0] sm:$0xff] }
 0x10a   : > { %2165 = vmatmul.mubr.f32.gmra.mrb[2].mxu0 %v1916_v54  ;;  %6934 = vmatprep.subr.bf16.mxu0 %v7704_v49  ;;  %v1967_v36 = vld [vmem:[%s9770_s0 + $0x1c0] sm:$0xff]  ;;  %v1966_v38 = vld [vmem:[%s9770_s0 + $0x1b8] sm:$0xff]  ;;  %v1968_v39 = vld [vmem:[%s9770_s0 + $0x1c8] sm:$0xff] }
 0x10b   : > { %2295 = vmatmul.mubr.f32.gmra.mrb[2].mxu1 %v1918_v55  ;;  %2169 = vmatprep.mubr.f32.mxu0 %v1922_v56  ;;  %v1972_v40 = vld [vmem:[%s9770_s0 + $0x1e8] sm:$0x3]  ;;  %v1974_v41 = vld [vmem:[%s9770_s0 + $0x1f8] sm:$0x3]  ;;  %v1971_v42 = vld [vmem:[%s9770_s0 + $0x1e0] sm:$0x3] }
 0x10c   : > { %2299 = vmatprep.mubr.f32.mxu1 %v1924_v58  ;;  %6948 = vmatpush3.bf16.msra.mxu1 %v6935_v57  ;;  %v1973_v43 = vld [vmem:[%s9770_s0 + $0x1f0] sm:$0x3]  ;;  %v1915_v44 = vld [vmem:[%s9770_s0 + $0x20] sm:$0xff]  ;;  %v1950_v45 = vld [vmem:[%s9770_s0 + $0x138] sm:$0xff] }
 0x10d   : > { %6936 = vmatpush3.bf16.msra.mxu0 %v6935_v57  ;;  %6945 = vmatprep.subr.bf16.mxu1 %v7704_v49  ;;  %v1920_v46 = vld [vmem:[%s9770_s0 + $0x48] sm:$0xff]  ;;  %v1955_v47 = vld [vmem:[%s9770_s0 + $0x160] sm:$0xff]  ;;  %v1925_v48 = vld [vmem:[%s9770_s0 + $0x70] sm:$0xff] }
 0x10e   : > { %2170 = vmatmul.mubr.f32.gmra.mrb[4].mxu0 %v1921_v61  ;;  %6937 = vmatprep.subr.bf16.mxu0 %v7704_v49  ;;  %v1930_v50 = vld [vmem:[%s9770_s0 + $0x98] sm:$0xff]  ;;  %v1965_v51 = vld [vmem:[%s9770_s0 + $0x1b0] sm:$0xff]  ;;  %v1935_v52 = vld [vmem:[%s9770_s0 + $0xc0] sm:$0xff] }
 0x10f   : > { %2300 = vmatmul.mubr.f32.gmra.mrb[4].mxu1 %v1923_v62  ;;  %2174 = vmatprep.mubr.f32.mxu0 %v1927_v63  ;;  %v1970_v53 = vld [vmem:[%s9770_s0 + $0x1d8] sm:$0xff]  ;;  %v1940_v54 = vld [vmem:[%s9770_s0 + $0xe8] sm:$0xff]  ;;  %v1975_v55 = vld [vmem:[%s9770_s0 + $0x200] sm:$0x3] }
 0x110   : > { %2304 = vmatprep.mubr.f32.mxu1 %v1929_v1  ;;  %6949 = vmatpush3.bf16.msra.mxu1 %v6938_v0  ;;  %v1945_v56 = vld [vmem:[%s9770_s0 + $0x110] sm:$0xff]  ;;  %v9055_v59 = vld [vmem:[%s9772_s2] ss:$0 sm:$0xff] }
 0x111   : > { %6939 = vmatpush3.bf16.msra.mxu0 %v6938_v0  ;;  %6946 = vmatprep.subr.bf16.mxu1 %v7704_v49 }
 0x112   : > { %2175 = vmatmul.mubr.f32.gmra.mrb[6].mxu0 %v1926_v4  ;;  %6940 = vmatprep.subr.bf16.mxu0 %v7704_v49  ;;  %v1960_v49 = vld [vmem:[%s9770_s0 + $0x188] sm:$0xff] }
 0x113   : > { %2305 = vmatmul.mubr.f32.gmra.mrb[6].mxu1 %v1928_v5  ;;  %2179 = vmatprep.mubr.f32.mxu0 %v1932_v6 }
 0x114   : > { %2309 = vmatprep.mubr.f32.mxu1 %v1934_v8  ;;  %6950 = vmatpush3.bf16.msra.mxu1 %v6941_v7 }
 0x115   : > { %6942 = vmatpush3.bf16.msra.mxu0 %v6941_v7 }
 0x116   : > { %2180 = vmatmul.mubr.f32.gmra.mrb[8].mxu0 %v1931_v9 }
 0x117   : > { %2310 = vmatmul.mubr.f32.gmra.mrb[8].mxu1 %v1933_v10  ;;  %2184 = vmatprep.mubr.f32.mxu0 %v1937_v11 }
 0x118   : > { %2314 = vmatprep.mubr.f32.mxu1 %v1939_v12 }
 0x11a   : > { %2185 = vmatmul.mubr.f32.gmra.mrb[10].mxu0 %v1936_v13 }
 0x11b   : > { %2315 = vmatmul.mubr.f32.gmra.mrb[10].mxu1 %v1938_v14  ;;  %2189 = vmatprep.mubr.f32.mxu0 %v1942_v16 }
 0x11c   : > { %2319 = vmatprep.mubr.f32.mxu1 %v1944_v17 }
 0x11e   : > { %2190 = vmatmul.mubr.f32.gmra.mrb[12].mxu0 %v1941_v18 }
 0x11f   : > { %2320 = vmatmul.mubr.f32.gmra.mrb[12].mxu1 %v1943_v19  ;;  %2194 = vmatprep.mubr.f32.mxu0 %v1947_v20 }
 0x120   : > { %2324 = vmatprep.mubr.f32.mxu1 %v1949_v21 }
 0x122   : > { %2195 = vmatmul.mubr.f32.gmra.mrb[14].mxu0 %v1946_v22 }
 0x123   : > { %2325 = vmatmul.mubr.f32.gmra.mrb[14].mxu1 %v1948_v23  ;;  %2199 = vmatprep.mubr.f32.mxu0 %v1952_v24 }
 0x124   : > { %2329 = vmatprep.mubr.f32.mxu1 %v1954_v25 }
 0x126   : > { %2200 = vmatmul.mubr.f32.gmra.mrb[16].mxu0 %v1951_v26 }
 0x127   : > { %2330 = vmatmul.mubr.f32.gmra.mrb[16].mxu1 %v1953_v27  ;;  %2204 = vmatprep.mubr.f32.mxu0 %v1957_v28 }
 0x128   : > { %2334 = vmatprep.mubr.f32.mxu1 %v1959_v29 }
 0x12a   : > { %2205 = vmatmul.mubr.f32.gmra.mrb[18].mxu0 %v1956_v30 }
 0x12b   : > { %2335 = vmatmul.mubr.f32.gmra.mrb[18].mxu1 %v1958_v31  ;;  %2209 = vmatprep.mubr.f32.mxu0 %v1962_v32 }
 0x12c   : > { %2339 = vmatprep.mubr.f32.mxu1 %v1964_v33 }
 0x12e   : > { %2210 = vmatmul.mubr.f32.gmra.mrb[20].mxu0 %v1961_v34 }
 0x12f   : > { %2340 = vmatmul.mubr.f32.gmra.mrb[20].mxu1 %v1963_v35  ;;  %2214 = vmatprep.mubr.f32.mxu0 %v1967_v36 }
 0x130   : > { %2344 = vmatprep.mubr.f32.mxu1 %v1969_v37 }
 0x132   : > { %2215 = vmatmul.mubr.f32.gmra.mrb[22].mxu0 %v1966_v38 }
 0x133   : > { %2345 = vmatmul.mubr.f32.gmra.mrb[22].mxu1 %v1968_v39  ;;  %2219 = vmatprep.mubr.f32.mxu0 %v1972_v40 }
 0x134   : > { %2349 = vmatprep.mubr.f32.mxu1 %v1974_v41 }
 0x136   : > { %2220 = vmatmul.mubr.f32.gmra.mrb[24].mxu0 %v1971_v42 }
 0x137   : > { %2350 = vmatmul.mubr.f32.gmra.mrb[24].mxu1 %v1973_v43  ;;  %6828 = vmatprep.mubr.msk.f32.mxu0 %vm7705_vm0, %v7703_v15 }
 0x138   : > { %6849 = vmatprep.mubr.msk.f32.mxu1 %vm7705_vm0, %v7703_v15 }
 0x13a   : > { %6829 = vmatmul.mubr.msk.f32.vlgmr.msra.gmra.mrb[26].mxu0 %vm2055_vm1, %v1915_v44 }
 0x13b   : > { %6850 = vmatmul.mubr.msk.f32.vlgmr.msra.gmra.mrb[26].mxu1 %vm2055_vm1, %v1950_v45  ;;  %6831 = vmatprep.mubr.msk.f32.mxu0 %vm7705_vm0, %v7703_v15 }
 0x13c   : > { %6852 = vmatprep.mubr.msk.f32.mxu1 %vm7705_vm0, %v7703_v15 }
 0x13e   : > { %6832 = vmatmul.mubr.msk.f32.gmra.mrb[28].mxu0 %vm2055_vm1, %v1920_v46 }
 0x13f   : > { %6853 = vmatmul.mubr.msk.f32.gmra.mrb[28].mxu1 %vm2055_vm1, %v1955_v47  ;;  %6834 = vmatprep.mubr.msk.f32.mxu0 %vm7705_vm0, %v7703_v15 }
 0x140   : > { %6855 = vmatprep.mubr.msk.f32.mxu1 %vm7705_vm0, %v7703_v15 }
 0x142   : > { %6835 = vmatmul.mubr.msk.f32.gmra.mrb[30].mxu0 %vm2055_vm1, %v1925_v48 }
 0x143   : > { %6856 = vmatmul.mubr.msk.f32.gmra.mrb[30].mxu1 %vm2055_vm1, %v1960_v49  ;;  %6837 = vmatprep.mubr.msk.f32.mxu0 %vm7705_vm0, %v7703_v15 }
 0x144   : > { %6858 = vmatprep.mubr.msk.f32.mxu1 %vm7705_vm0, %v7703_v15 }
 0x146   : > { %6838 = vmatmul.mubr.msk.f32.gmra.mrb[32].mxu0 %vm2055_vm1, %v1930_v50 }
 0x147   : > { %6859 = vmatmul.mubr.msk.f32.gmra.mrb[32].mxu1 %vm2055_vm1, %v1965_v51  ;;  %6840 = vmatprep.mubr.msk.f32.mxu0 %vm7705_vm0, %v7703_v15 }
 0x148   : > { %6861 = vmatprep.mubr.msk.f32.mxu1 %vm7705_vm0, %v7703_v15 }
 0x14a   : > { %6841 = vmatmul.mubr.msk.f32.gmra.mrb[34].mxu0 %vm2055_vm1, %v1935_v52 }
 0x14b   : > { %6862 = vmatmul.mubr.msk.f32.gmra.mrb[34].mxu1 %vm2055_vm1, %v1970_v53  ;;  %6843 = vmatprep.mubr.msk.f32.mxu0 %vm7705_vm0, %v7703_v15 }
 0x14c   : > { %6864 = vmatprep.mubr.msk.f32.mxu1 %vm7705_vm0, %v7703_v15 }
 0x14e   : > { %6844 = vmatmul.mubr.msk.f32.gmra.mrb[36].mxu0 %vm2055_vm1, %v1940_v54 }
 0x14f   : > { %6865 = vmatmul.mubr.msk.f32.gmra.mrb[36].mxu1 %vm2055_vm1, %v1975_v55  ;;  %6846 = vmatprep.mubr.msk.f32.mxu0 %vm7705_vm0, %v7703_v15 }
 0x152   : > { %6847 = vmatmul.mubr.msk.f32.gmra.mrb[38].mxu0 %vm2055_vm1, %v1945_v56 }
 0x1d9   : > { %v6659_v57 = vpop.f32.mrb[0].mxu0 }
 0x1da   : > { %v6730_v58 = vpop.f32.mrb[0].mxu1  ;;  %v6660_v60 = vpop.f32.mrb[1].mxu0 }
 0x1db   : > { %v6661_v61 = vadd.f32 %v6660_v60, %v6659_v57  ;;  %v6731_v62 = vpop.f32.mrb[1].mxu1 }
 0x1dc   : > { %v6732_v63 = vadd.f32 %v6731_v62, %v6730_v58 }
 0x1dd   : > { %v2162_v0 = vadd.f32 %v6661_v61, %v9055_v59  ;;  %v6662_v1 = vpop.f32.mrb[2].mxu0 }
 0x1de   : > { %v6733_v2 = vpop.f32.mrb[2].mxu1  ;;  %v6663_v3 = vpop.f32.mrb[3].mxu0 }
 0x1df   : > { %v6664_v4 = vadd.f32 %v6663_v3, %v6662_v1  ;;  %v6734_v5 = vpop.f32.mrb[3].mxu1  ;;  %v9058_v6 = vadd.f32 %v6732_v63, %v2162_v0 }
 0x1e0   : > { %v6735_v15 = vadd.f32 %v6734_v5, %v6733_v2 }
 0x1e1   : > { %v2167_v7 = vadd.f32 %v6664_v4, %v9055_v59  ;;  %v6665_v8 = vpop.f32.mrb[4].mxu0 }
 0x1e2   : > { %v6736_v9 = vpop.f32.mrb[4].mxu1  ;;  %v6666_v10 = vpop.f32.mrb[5].mxu0 }
 0x1e3   : > { %v6667_v11 = vadd.f32 %v6666_v10, %v6665_v8  ;;  %v6737_v12 = vpop.f32.mrb[5].mxu1  ;;  %v9061_v13 = vadd.f32 %v6735_v15, %v2167_v7 }
 0x1e4   : > { %v6738_v14 = vadd.f32 %v6737_v12, %v6736_v9 }
 0x1e5   : > { %v2172_v16 = vadd.f32 %v6667_v11, %v9055_v59  ;;  %v6668_v17 = vpop.f32.mrb[6].mxu0 }
 0x1e6   : > { %v6739_v18 = vpop.f32.mrb[6].mxu1  ;;  %v6669_v19 = vpop.f32.mrb[7].mxu0 }
 0x1e7   : > { %v6670_v20 = vadd.f32 %v6669_v19, %v6668_v17  ;;  %v6740_v21 = vpop.f32.mrb[7].mxu1  ;;  %v9064_v22 = vadd.f32 %v6738_v14, %v2172_v16 }
 0x1e8   : > { %v6741_v23 = vadd.f32 %v6740_v21, %v6739_v18 }
 0x1e9   : > { %v2177_v24 = vadd.f32 %v6670_v20, %v9055_v59  ;;  %v6671_v25 = vpop.f32.mrb[8].mxu0 }
 0x1ea   : > { %v6742_v26 = vpop.f32.mrb[8].mxu1  ;;  %v6672_v27 = vpop.f32.mrb[9].mxu0 }
 0x1eb   : > { %v6673_v28 = vadd.f32 %v6672_v27, %v6671_v25  ;;  %v6743_v29 = vpop.f32.mrb[9].mxu1  ;;  %v9067_v30 = vadd.f32 %v6741_v23, %v2177_v24  ;;  %v7706_v24 = vmov 1983009808  }
 0x1ec   : > { %v6744_v31 = vadd.f32 %v6743_v29, %v6742_v26  ;;  %v2509_v25 = vunpack.c.l.s4 %v7706_v24  ;;  %v2511_v26 = vlaneseq }
 0x1ed   : > { %v2182_v32 = vadd.f32 %v6673_v28, %v9055_v59  ;;  %v6674_v33 = vpop.f32.mrb[10].mxu0 }
 0x1ee   : > { %v6745_v34 = vpop.f32.mrb[10].mxu1  ;;  %v6675_v35 = vpop.f32.mrb[11].mxu0 }
 0x1ef   : > { %v6676_v36 = vadd.f32 %v6675_v35, %v6674_v33  ;;  %v6746_v37 = vpop.f32.mrb[11].mxu1  ;;  %v9070_v38 = vadd.f32 %v6744_v31, %v2182_v32 }
 0x1f0   : > { %v6747_v39 = vadd.f32 %v6746_v37, %v6745_v34  ;;  %v2512_v37 = vshrl.u32 %v2511_v26, 7 }
 0x1f1   : > { %v2187_v40 = vadd.f32 %v6676_v36, %v9055_v59  ;;  %v6677_v41 = vpop.f32.mrb[12].mxu0  ;;  %v2510_v36 = vunpack.c.0.s8 %v2509_v25 }
 0x1f2   : > { %v6748_v42 = vpop.f32.mrb[12].mxu1  ;;  %v6678_v43 = vpop.f32.mrb[13].mxu0 }
 0x1f3   : > { %v6679_v44 = vadd.f32 %v6678_v43, %v6677_v41  ;;  %v6749_v45 = vpop.f32.mrb[13].mxu1  ;;  %v9073_v46 = vadd.f32 %v6747_v39, %v2187_v40 }
 0x1f4   : > { %v6750_v47 = vadd.f32 %v6749_v45, %v6748_v42 }
 0x1f5   : > { %v2192_v48 = vadd.f32 %v6679_v44, %v9055_v59  ;;  %v6680_v49 = vpop.f32.mrb[14].mxu0 }
 0x1f6   : > { %v6751_v50 = vpop.f32.mrb[14].mxu1  ;;  %v6681_v51 = vpop.f32.mrb[15].mxu0 }
 0x1f7   : > { %v6682_v52 = vadd.f32 %v6681_v51, %v6680_v49  ;;  %v6752_v53 = vpop.f32.mrb[15].mxu1  ;;  %v9076_v54 = vadd.f32 %v6750_v47, %v2192_v48  ;;  %v9089_v49 = vsub.s32 %v2510_v36, %v2512_v37 }
 0x1f8   : > { %v6753_v55 = vadd.f32 %v6752_v53, %v6751_v50 }
 0x1f9   : > { %v2197_v56 = vadd.f32 %v6682_v52, %v9055_v59  ;;  %v6683_v57 = vpop.f32.mrb[16].mxu0 }
 0x1fa   : > { %v6754_v58 = vpop.f32.mrb[16].mxu1  ;;  %v6684_v60 = vpop.f32.mrb[17].mxu0 }
 0x1fb   : > { %v6685_v61 = vadd.f32 %v6684_v60, %v6683_v57  ;;  %v6755_v62 = vpop.f32.mrb[17].mxu1  ;;  %v2327_v63 = vadd.f32 %v6753_v55, %v2197_v56 }
 0x1fc   : > { %v6756_v0 = vadd.f32 %v6755_v62, %v6754_v58 }
 0x1fd   : > { %v2202_v1 = vadd.f32 %v6685_v61, %v9055_v59  ;;  %v6686_v2 = vpop.f32.mrb[18].mxu0 }
 0x1fe   : > { %v6757_v3 = vpop.f32.mrb[18].mxu1  ;;  %v6687_v4 = vpop.f32.mrb[19].mxu0 }
 0x1ff   : > { %v6688_v5 = vadd.f32 %v6687_v4, %v6686_v2  ;;  %v6758_v15 = vpop.f32.mrb[19].mxu1  ;;  %v2332_v7 = vadd.f32 %v6756_v0, %v2202_v1 }
 0x200   : > { %v6759_v8 = vadd.f32 %v6758_v15, %v6757_v3 }
 0x201   : > { %v2207_v9 = vadd.f32 %v6688_v5, %v9055_v59  ;;  %v6689_v10 = vpop.f32.mrb[20].mxu0 }
 0x202   : > { %v6760_v11 = vpop.f32.mrb[20].mxu1  ;;  %v6690_v12 = vpop.f32.mrb[21].mxu0 }
 0x203   : > { %v6691_v14 = vadd.f32 %v6690_v12, %v6689_v10  ;;  %v6761_v16 = vpop.f32.mrb[21].mxu1  ;;  %v2337_v17 = vadd.f32 %v6759_v8, %v2207_v9 }
 0x204   : > { %v6762_v18 = vadd.f32 %v6761_v16, %v6760_v11 }
 0x205   : > { %v2212_v19 = vadd.f32 %v6691_v14, %v9055_v59  ;;  %v6692_v20 = vpop.f32.mrb[22].mxu0 }
 0x206   : > { %v6763_v21 = vpop.f32.mrb[22].mxu1  ;;  %v6693_v23 = vpop.f32.mrb[23].mxu0 }
 0x207   : > { %v6694_v27 = vadd.f32 %v6693_v23, %v6692_v20  ;;  %v6764_v28 = vpop.f32.mrb[23].mxu1  ;;  %v9082_v29 = vadd.f32 %v6762_v18, %v2212_v19 }
 0x208   : > { %v6765_v31 = vadd.f32 %v6764_v28, %v6763_v21 }
 0x209   : > { %v2217_v32 = vadd.f32 %v6694_v27, %v9055_v59  ;;  %v6695_v33 = vpop.f32.mrb[24].mxu0 }
 0x20a   : > { %v6766_v34 = vpop.f32.mrb[24].mxu1  ;;  %v6696_v35 = vpop.f32.mrb[25].mxu0 }
 0x20b   : > { %v6697_v39 = vadd.f32 %v6696_v35, %v6695_v33  ;;  %v6767_v40 = vpop.f32.mrb[25].mxu1  ;;  %v9085_v41 = vadd.f32 %v6765_v31, %v2217_v32 }
 0x20c   : > { %v6768_v42 = vadd.f32 %v6767_v40, %v6766_v34 }
 0x20d   : > { %v2222_v43 = vadd.f32 %v6697_v39, %v9055_v59  ;;  %v2421_v44 = vpop.f32.mrb[26].mxu0 }
 0x20e   : > { %v2422_v45 = vadd.f32 %v2421_v44, %v9058_v6  ;;  %v2456_v47 = vpop.f32.mrb[26].mxu1  ;;  %v6830_v48 = vpop.f32.mrb[27].mxu0 }
 0x20f   : > { %v2457_v50 = vadd.f32 %v2456_v47, %v2327_v63  ;;  %v6851_v51 = vpop.f32.mrb[27].mxu1  ;;  %v9091_v52 = vadd.f32 %v6768_v42, %v2222_v43 }
 0x210   : > { %v2485_v53 = vmax.f32 %v2422_v45, 0.0 }
 0x211   : > { %v2492_v55 = vmax.f32 %v2457_v50, 0.0  ;;  %v2426_v56 = vpop.f32.mrb[28].mxu0 }
 0x212   : > { %v2521_v57 = vcombine.high %v2485_v53, %v2485_v53  ;;  %v2427_v58 = vadd.f32 %v2426_v56, %v9061_v13  ;;  %v2461_v60 = vpop.f32.mrb[28].mxu1  ;;  %v6833_v61 = vpop.f32.mrb[29].mxu0  ;;  %v2514_v59 = vrot.slane %v2485_v53, %v9089_v49  ;;  %2506 = vst.msk [vmem:[#allocation2] sm:$0x3] %vm2504_vm2, %v2485_v53 }
 0x213   : > { %v2462_v6 = vadd.f32 %v2461_v60, %v2332_v7  ;;  %v6854_v62 = vpop.f32.mrb[29].mxu1  ;;  %v2724_v0 = vcombine.high %v2492_v55, %v2492_v55  ;;  %2710 = vst.msk [vmem:[#allocation2 + $0x1c] sm:$0x3] %vm2504_vm2, %v2492_v55  ;;  %v2718_v2 = vrot.slane %v2492_v55, %v9089_v49 }
 0x214   : > { %v2486_v63 = vmax.f32 %v2427_v58, 0.0  ;;  %v2515_v1 = vcombine.high %v2514_v59, %v2514_v59  ;;  %v2528_v3 = vrot.slane %v2521_v57, %v9089_v49 }
 0x215   : > { %v2493_v4 = vmax.f32 %v2462_v6, 0.0  ;;  %v2431_v5 = vpop.f32.mrb[30].mxu0  ;;  %v2731_v13 = vrot.slane %v2724_v0, %v9089_v49  ;;  %v2719_v18 = vcombine.high %v2718_v2, %v2718_v2 }
 0x216   : > { %v2550_v15 = vcombine.high %v2486_v63, %v2486_v63  ;;  %v2432_v8 = vadd.f32 %v2431_v5, %v9064_v22  ;;  %v2466_v9 = vpop.f32.mrb[30].mxu1  ;;  %2516 = vrot.lane.b32.xlu0 %v2515_v1, %s7707_s15  ;;  %v6836_v7 = vpop.f32.mrb[31].mxu0  ;;  %2530 = vst.msk [vmem:[#allocation2 + $0x2] sm:$0x3] %vm2504_vm2, %v2528_v3  ;;  %2536 = vst.msk [vmem:[#allocation2 + $0x4] sm:$0x3] %vm2504_vm2, %v2486_v63  ;;  %v2544_v16 = vrot.slane %v2486_v63, %v9089_v49 }
 0x217   : > { %v2753_v10 = vcombine.high %v2493_v4, %v2493_v4  ;;  %v2467_v11 = vadd.f32 %v2466_v9, %v2337_v17  ;;  %v6857_v12 = vpop.f32.mrb[31].mxu1  ;;  %v2734_v14 = vcombine.high %v2731_v13, %v2731_v13  ;;  %2733 = vst.msk [vmem:[#allocation2 + $0x1e] sm:$0x3] %vm2504_vm2, %v2731_v13  ;;  %2739 = vst.msk [vmem:[#allocation2 + $0x20] sm:$0x3] %vm2504_vm2, %v2493_v4 }
 0x218   : > { %v2487_v22 = vmax.f32 %v2432_v8, 0.0  ;;  %v2557_v19 = vrot.slane %v2550_v15, %v9089_v49  ;;  %v2545_v32 = vcombine.high %v2544_v16, %v2544_v16  ;;  %v2531_v34 = vcombine.high %v2528_v3, %v2528_v3 }
 0x219   : > { %v2494_v20 = vmax.f32 %v2467_v11, 0.0  ;;  %2735 = vrot.lane.b32.xlu1 %v2734_v14, %s7707_s15  ;;  %v2436_v21 = vpop.f32.mrb[32].mxu0  ;;  %v2760_v23 = vrot.slane %v2753_v10, %v9089_v49 }
 0x21a   : > { %v2579_v24 = vcombine.high %v2487_v22, %v2487_v22  ;;  %v2437_v17 = vadd.f32 %v2436_v21, %v9067_v30  ;;  %v2471_v25 = vpop.f32.mrb[32].mxu1  ;;  %2720 = vrot.lane.b32.xlu0 %v2719_v18, %s7707_s15  ;;  %v6839_v26 = vpop.f32.mrb[33].mxu0  ;;  %2559 = vst.msk [vmem:[#allocation2 + $0x6] sm:$0x3] %vm2504_vm2, %v2557_v19  ;;  %2565 = vst.msk [vmem:[#allocation2 + $0x8] sm:$0x3] %vm2504_vm2, %v2487_v22  ;;  %v2747_v30 = vrot.slane %v2493_v4, %v9089_v49 }
 0x21b   : > { %v2782_v27 = vcombine.high %v2494_v20, %v2494_v20  ;;  %v2472_v28 = vadd.f32 %v2471_v25, %v9082_v29  ;;  %v6860_v31 = vpop.f32.mrb[33].mxu1  ;;  %2768 = vst.msk [vmem:[#allocation2 + $0x24] sm:$0x3] %vm2504_vm2, %v2494_v20  ;;  %2762 = vst.msk [vmem:[#allocation2 + $0x22] sm:$0x3] %vm2504_vm2, %v2760_v23  ;;  %v2560_v48 = vcombine.high %v2557_v19, %v2557_v19 }
 0x21c   : > { %v2488_v33 = vmax.f32 %v2437_v17, 0.0  ;;  %v2586_v35 = vrot.slane %v2579_v24, %v9089_v49  ;;  %v2748_v50 = vcombine.high %v2747_v30, %v2747_v30  ;;  %v2573_v51 = vrot.slane %v2487_v22, %v9089_v49  ;;  %v6211_v25 = vld [vmem:[%s9776_s6] ss:$0 sm:$0xff] }
 0x21d   : > { %v9119_v36 = vmax.f32 %v2472_v28, 0.0  ;;  %2546 = vrot.lane.b32.xlu1 %v2545_v32, %s7707_s15  ;;  %v2441_v37 = vpop.f32.mrb[34].mxu0  ;;  %v9123_v39 = vrot.slane %v2782_v27, %v9089_v49  ;;  %v2763_v62 = vcombine.high %v2760_v23, %v2760_v23  ;;  %v2776_v1 = vrot.slane %v2494_v20, %v9089_v49  ;;  %2864 = vst [vmem:[#allocation4] sm:$0x3] %v6211_v25 }
 0x21e   : > { %v2608_v29 = vcombine.high %v2488_v33, %v2488_v33  ;;  %v2442_v40 = vadd.f32 %v2441_v37, %v9070_v38  ;;  %v2476_v42 = vpop.f32.mrb[34].mxu1  ;;  %2532 = vrot.lane.b32.xlu0 %v2531_v34, %s7707_s15  ;;  %v6842_v43 = vpop.f32.mrb[35].mxu0  ;;  %2594 = vst.msk [vmem:[#allocation2 + $0xc] sm:$0x3] %vm2504_vm2, %v2488_v33  ;;  %2588 = vst.msk [vmem:[#allocation2 + $0xa] sm:$0x3] %vm2504_vm2, %v2586_v35  ;;  %v2574_v63 = vcombine.high %v2573_v51, %v2573_v51 }
 0x21f   : > { %v2811_v44 = vcombine.high %v9119_v36, %v9119_v36  ;;  %v2477_v45 = vadd.f32 %v2476_v42, %v9085_v41  ;;  %v6863_v47 = vpop.f32.mrb[35].mxu1  ;;  %2797 = vst.msk [vmem:[#allocation2 + $0x28] sm:$0x3] %vm2504_vm2, %v9119_v36  ;;  %2791 = vst.msk [vmem:[#allocation2 + $0x26] sm:$0x3] %vm2504_vm2, %v9123_v39  ;;  %v2589_v8 = vcombine.high %v2586_v35, %v2586_v35 }
 0x220   : > { %v2489_v38 = vmax.f32 %v2442_v40, 0.0  ;;  %v2615_v53 = vrot.slane %v2608_v29, %v9089_v49  ;;  %v2777_v7 = vcombine.high %v2776_v1, %v2776_v1  ;;  %v2602_v10 = vrot.slane %v2488_v33, %v9089_v49 }
 0x221   : > { %v9138_v55 = vmax.f32 %v2477_v45, 0.0  ;;  %2561 = vrot.lane.b32.xlu1 %v2560_v48, %s7707_s15  ;;  %v2446_v56 = vpop.f32.mrb[36].mxu0  ;;  %v2818_v41 = vrot.slane %v2811_v44, %v9089_v49  ;;  %v2805_v16 = vrot.slane %v9119_v36, %v9089_v49 }
 0x222   : > { %v2637_v57 = vcombine.high %v2489_v38, %v2489_v38  ;;  %v2447_v58 = vadd.f32 %v2446_v56, %v9073_v46  ;;  %v2481_v60 = vpop.f32.mrb[36].mxu1  ;;  %2623 = vst.msk [vmem:[#allocation2 + $0x10] sm:$0x3] %vm2504_vm2, %v2489_v38  ;;  %2749 = vrot.lane.b32.xlu0 %v2748_v50, %s7707_s15  ;;  %v6845_v61 = vpop.f32.mrb[37].mxu0  ;;  %2617 = vst.msk [vmem:[#allocation2 + $0xe] sm:$0x3] %vm2504_vm2, %v2615_v53  ;;  %v2603_v14 = vcombine.high %v2602_v10, %v2602_v10 }
 0x223   : > { %v2840_v59 = vcombine.high %v9138_v55, %v9138_v55  ;;  %v2482_v6 = vadd.f32 %v2481_v60, %v9091_v52  ;;  %2826 = vst.msk [vmem:[#allocation2 + $0x2c] sm:$0x3] %vm2504_vm2, %v9138_v55  ;;  %2820 = vst.msk [vmem:[#allocation2 + $0x2a] sm:$0x3] %vm2504_vm2, %v2818_v41  ;;  %v6866_v46 = vpop.f32.mrb[37].mxu1  ;;  %v2618_v18 = vcombine.high %v2615_v53, %v2615_v53 }
 0x224   : > { %v2490_v0 = vmax.f32 %v2447_v58, 0.0  ;;  %v2644_v2 = vrot.slane %v2637_v57, %v9089_v49  ;;  %v2806_v19 = vcombine.high %v2805_v16, %v2805_v16  ;;  %v2631_v20 = vrot.slane %v2489_v38, %v9089_v49 }
 0x225   : > { %v2497_v3 = vmax.f32 %v2482_v6, 0.0  ;;  %2764 = vrot.lane.b32.xlu1 %v2763_v62, %s7707_s15  ;;  %v2451_v4 = vpop.f32.mrb[38].mxu0  ;;  %v2847_v5 = vrot.slane %v2840_v59, %v9089_v49  ;;  %v2821_v21 = vcombine.high %v2818_v41, %v2818_v41  ;;  %v2834_v32 = vrot.slane %v9138_v55, %v9089_v49 }
 0x226   : > { %v2666_v52 = vcombine.high %v2490_v0, %v2490_v0  ;;  %2652 = vst.msk [vmem:[#allocation2 + $0x14] sm:$0x3] %vm2504_vm2, %v2490_v0  ;;  %v2452_v13 = vadd.f32 %v2451_v4, %v9076_v54  ;;  %2575 = vrot.lane.b32.xlu0 %v2574_v63, %s7707_s15  ;;  %v6848_v15 = vpop.f32.mrb[39].mxu0  ;;  %2646 = vst.msk [vmem:[#allocation2 + $0x12] sm:$0x3] %vm2504_vm2, %v2644_v2  ;;  %v2792_v54 = vcombine.high %v9123_v39, %v9123_v39 }
 0x227   : > { %2855 = vst.msk [vmem:[#allocation2 + $0x30] sm:$0x3] %vm2504_vm2, %v2497_v3  ;;  %2849 = vst.msk [vmem:[#allocation2 + $0x2e] sm:$0x3] %vm2504_vm2, %v2847_v5  ;;  %v2632_v23 = vcombine.high %v2631_v20, %v2631_v20  ;;  %v2660_v24 = vrot.slane %v2490_v0, %v9089_v49  ;;  %v2647_v17 = vcombine.high %v2644_v2, %v2644_v2 }
 0x228   : > { %v2491_v9 = vmax.f32 %v2452_v13, 0.0  ;;  %v2673_v11 = vrot.slane %v2666_v52, %v9089_v49  ;;  %v2835_v34 = vcombine.high %v2834_v32, %v2834_v32  ;;  %v2850_v30 = vcombine.high %v2847_v5, %v2847_v5 }
 0x229   : > { %2590 = vrot.lane.b32.xlu1 %v2589_v8, %s7707_s15  ;;  %v2661_v26 = vcombine.high %v2660_v24, %v2660_v24 }
 0x22a   : > { %v2695_v12 = vcombine.high %v2491_v9, %v2491_v9  ;;  %2681 = vst.msk [vmem:[#allocation2 + $0x18] sm:$0x3] %vm2504_vm2, %v2491_v9  ;;  %2778 = vrot.lane.b32.xlu0 %v2777_v7, %s7707_s15  ;;  %2675 = vst.msk [vmem:[#allocation2 + $0x16] sm:$0x3] %vm2504_vm2, %v2673_v11  ;;  %v2689_v27 = vrot.slane %v2491_v9, %v9089_v49  ;;  %v2676_v28 = vcombine.high %v2673_v11, %v2673_v11 }
 0x22c   : > { %v2702_v22 = vrot.slane %v2695_v12, %v9089_v49  ;;  %v2690_v31 = vcombine.high %v2689_v27, %v2689_v27 }
 0x22d   : > { %2793 = vrot.lane.b32.xlu1 %v2792_v54, %s7707_s15 }
 0x22e   : > { %2604 = vrot.lane.b32.xlu0 %v2603_v14, %s7707_s15  ;;  %2704 = vst.msk [vmem:[#allocation2 + $0x1a] sm:$0x3] %vm2504_vm2, %v2702_v22  ;;  %v2705_v33 = vcombine.high %v2702_v22, %v2702_v22 }
 0x231   : > { %2619 = vrot.lane.b32.xlu1 %v2618_v18, %s7707_s15 }
 0x232   : > { %2807 = vrot.lane.b32.xlu0 %v2806_v19, %s7707_s15 }
 0x235   : > { %2822 = vrot.lane.b32.xlu1 %v2821_v21, %s7707_s15 }
 0x236   : > { %2633 = vrot.lane.b32.xlu0 %v2632_v23, %s7707_s15 }
 0x239   : > { %2648 = vrot.lane.b32.xlu1 %v2647_v17, %s7707_s15 }
 0x23a   : > { %2662 = vrot.lane.b32.xlu0 %v2661_v26, %s7707_s15 }
 0x23d   : > { %2677 = vrot.lane.b32.xlu1 %v2676_v28, %s7707_s15 }
 0x23e   : > { %2691 = vrot.lane.b32.xlu0 %v2690_v31, %s7707_s15 }
 0x241   : > { %2706 = vrot.lane.b32.xlu1 %v2705_v33, %s7707_s15 }
 0x242   : > { %2836 = vrot.lane.b32.xlu0 %v2835_v34, %s7707_s15 }
 0x245   : > { %2851 = vrot.lane.b32.xlu1 %v2850_v30, %s7707_s15 }
 0x288   : > { %v2517_v35 = vpop.permute.xlu0 %2516 }
 0x289   : > { %2520 = vst.msk [vmem:[#allocation2] sm:$0x3] %vm2519_vm3, %v2517_v35 }
 0x28b   : > { %v2736_v36 = vpop.permute.xlu1 %2735 }
 0x28c   : > { %2738 = vst.msk [vmem:[#allocation2 + $0x1e] sm:$0x3] %vm2519_vm3, %v2736_v36  ;;  %v2721_v49 = vpop.permute.xlu0 %2720 }
 0x28d   : > { %2723 = vst.msk [vmem:[#allocation2 + $0x1c] sm:$0x3] %vm2519_vm3, %v2721_v49 }
 0x28f   : > { %v2547_v37 = vpop.permute.xlu1 %2546 }
 0x290   : > { %2549 = vst.msk [vmem:[#allocation2 + $0x4] sm:$0x3] %vm2519_vm3, %v2547_v37  ;;  %v2533_v39 = vpop.permute.xlu0 %2532 }
 0x291   : > { %2535 = vst.msk [vmem:[#allocation2 + $0x2] sm:$0x3] %vm2519_vm3, %v2533_v39 }
 0x293   : > { %v2562_v29 = vpop.permute.xlu1 %2561 }
 0x294   : > { %2564 = vst.msk [vmem:[#allocation2 + $0x6] sm:$0x3] %vm2519_vm3, %v2562_v29  ;;  %v2750_v40 = vpop.permute.xlu0 %2749 }
 0x295   : > { %2752 = vst.msk [vmem:[#allocation2 + $0x20] sm:$0x3] %vm2519_vm3, %v2750_v40 }
 0x297   : > { %v2765_v42 = vpop.permute.xlu1 %2764 }
 0x298   : > { %2767 = vst.msk [vmem:[#allocation2 + $0x22] sm:$0x3] %vm2519_vm3, %v2765_v42  ;;  %v2576_v43 = vpop.permute.xlu0 %2575 }
 0x299   : > { %2578 = vst.msk [vmem:[#allocation2 + $0x8] sm:$0x3] %vm2519_vm3, %v2576_v43 }
 0x29b   : > { %v2591_v44 = vpop.permute.xlu1 %2590 }
 0x29c   : > { %2593 = vst.msk [vmem:[#allocation2 + $0xa] sm:$0x3] %vm2519_vm3, %v2591_v44  ;;  %v2779_v45 = vpop.permute.xlu0 %2778 }
 0x29d   : > { %2781 = vst.msk [vmem:[#allocation2 + $0x24] sm:$0x3] %vm2519_vm3, %v2779_v45 }
 0x29f   : > { %v2794_v47 = vpop.permute.xlu1 %2793 }
 0x2a0   : > { %2796 = vst.msk [vmem:[#allocation2 + $0x26] sm:$0x3] %vm2519_vm3, %v2794_v47  ;;  %v2605_v48 = vpop.permute.xlu0 %2604 }
 0x2a1   : > { %2607 = vst.msk [vmem:[#allocation2 + $0xc] sm:$0x3] %vm2519_vm3, %v2605_v48 }
 0x2a3   : > { %v2620_v38 = vpop.permute.xlu1 %2619 }
 0x2a4   : > { %2622 = vst.msk [vmem:[#allocation2 + $0xe] sm:$0x3] %vm2519_vm3, %v2620_v38  ;;  %v2808_v50 = vpop.permute.xlu0 %2807 }
 0x2a5   : > { %2810 = vst.msk [vmem:[#allocation2 + $0x28] sm:$0x3] %vm2519_vm3, %v2808_v50 }
 0x2a7   : > { %v2823_v51 = vpop.permute.xlu1 %2822 }
 0x2a8   : > { %2825 = vst.msk [vmem:[#allocation2 + $0x2a] sm:$0x3] %vm2519_vm3, %v2823_v51  ;;  %v2634_v53 = vpop.permute.xlu0 %2633 }
 0x2a9   : > { %2636 = vst.msk [vmem:[#allocation2 + $0x10] sm:$0x3] %vm2519_vm3, %v2634_v53 }
 0x2ab   : > { %v2649_v55 = vpop.permute.xlu1 %2648 }
 0x2ac   : > { %2651 = vst.msk [vmem:[#allocation2 + $0x12] sm:$0x3] %vm2519_vm3, %v2649_v55  ;;  %v2663_v56 = vpop.permute.xlu0 %2662 }
 0x2ad   : > { %2665 = vst.msk [vmem:[#allocation2 + $0x14] sm:$0x3] %vm2519_vm3, %v2663_v56 }
 0x2af   : > { %v2678_v41 = vpop.permute.xlu1 %2677 }
 0x2b0   : > { %2680 = vst.msk [vmem:[#allocation2 + $0x16] sm:$0x3] %vm2519_vm3, %v2678_v41  ;;  %v2692_v57 = vpop.permute.xlu0 %2691 }
 0x2b1   : > { %2694 = vst.msk [vmem:[#allocation2 + $0x18] sm:$0x3] %vm2519_vm3, %v2692_v57 }
 0x2b3   : > { %v2707_v58 = vpop.permute.xlu1 %2706 }
 0x2b4   : > { %2709 = vst.msk [vmem:[#allocation2 + $0x1a] sm:$0x3] %vm2519_vm3, %v2707_v58  ;;  %v2837_v60 = vpop.permute.xlu0 %2836 }
 0x2b5   : > { %2839 = vst.msk [vmem:[#allocation2 + $0x2c] sm:$0x3] %vm2519_vm3, %v2837_v60 }
 0x2b7   : > { %v2852_v61 = vpop.permute.xlu1 %2851 }
 0x2b8   : > { %2854 = vst.msk [vmem:[#allocation2 + $0x2e] sm:$0x3] %vm2519_vm3, %v2852_v61 }
 0x2b9 PF: > { %v7039_v59 = vld [vmem:[%s8591_s24 + $0x4] ss:$8 sps:$4 sm:$0xff]   ;;  %v7043_v62 = vld [vmem:[%s8591_s24] ss:$8 sps:$4 sm:$0xff]   ;;  %v7045_v0 = vld [vmem:[%s8591_s24 + $0x14] ss:$8 sps:$4 sm:$0xff]   ;;  %v2883_v34 = vlaneseq }
 0x2ba   : > { %v7041_v6 = vld [vmem:[%s8591_s24 + $0x604] ss:$8 sps:$4 sm:$0xff]   ;;  %5406 = vmatprep.subr.bf16.mxu1 %v7039_v59  ;;  %v7044_v46 = vld [vmem:[%s8591_s24 + $0x600] ss:$8 sps:$4 sm:$0xff]   ;;  %v7047_v63 = vld [vmem:[%s8591_s24 + $0x614] ss:$8 sps:$4 sm:$0xff]  }
 0x2bb   : > { %5652 = vmatprep.subr.bf16.mxu0 %v7041_v6  ;;  %5407 = vmatpush1.bf16.msra.mxu1 %v7043_v62  ;;  %v7049_v1 = vld [vmem:[%s8591_s24 + $0x10] ss:$8 sps:$4 sm:$0xff]   ;;  %v7051_v3 = vld [vmem:[%s8591_s24 + $0x24] ss:$8 sps:$4 sm:$0xff]   ;;  %v7055_v5 = vld [vmem:[%s8591_s24 + $0x20] ss:$8 sps:$4 sm:$0xff]  }
 0x2bc   : > { %5653 = vmatpush1.bf16.msra.mxu0 %v7044_v46  ;;  %5408 = vmatprep.subr.bf16.mxu1 %v7045_v0  ;;  %v7050_v2 = vld [vmem:[%s8591_s24 + $0x610] ss:$8 sps:$4 sm:$0xff]   ;;  %v7053_v4 = vld [vmem:[%s8591_s24 + $0x624] ss:$8 sps:$4 sm:$0xff]   ;;  %v7056_v52 = vld [vmem:[%s8591_s24 + $0x620] ss:$8 sps:$4 sm:$0xff]  }
 0x2bd   : > { %5654 = vmatprep.subr.bf16.mxu0 %v7047_v63  ;;  %v7057_v13 = vld [vmem:[%s8591_s24 + $0x34] ss:$8 sps:$4 sm:$0xff]   ;;  %v7061_v8 = vld [vmem:[%s8591_s24 + $0x30] ss:$8 sps:$4 sm:$0xff]   ;;  %v7063_v7 = vld [vmem:[%s8591_s24 + $0x44] ss:$8 sps:$4 sm:$0xff]  }
 0x2be   : > { %v7059_v15 = vld [vmem:[%s8591_s24 + $0x634] ss:$8 sps:$4 sm:$0xff]   ;;  %v7062_v9 = vld [vmem:[%s8591_s24 + $0x630] ss:$8 sps:$4 sm:$0xff]   ;;  %v7065_v10 = vld [vmem:[%s8591_s24 + $0x644] ss:$8 sps:$4 sm:$0xff]  }
 0x2bf   : > { %5409 = vmatpush1.bf16.msra.mxu1 %v7049_v1  ;;  %v7067_v11 = vld [vmem:[%s8591_s24 + $0x40] ss:$8 sps:$4 sm:$0xff]   ;;  %v7069_v54 = vld [vmem:[%s8591_s24 + $0x54] ss:$8 sps:$4 sm:$0xff]   ;;  %v7073_v16 = vld [vmem:[%s8591_s24 + $0x50] ss:$8 sps:$4 sm:$0xff]  }
 0x2c0   : > { %5655 = vmatpush1.bf16.msra.mxu0 %v7050_v2  ;;  %5410 = vmatprep.subr.bf16.mxu1 %v7051_v3  ;;  %v7068_v12 = vld [vmem:[%s8591_s24 + $0x640] ss:$8 sps:$4 sm:$0xff]   ;;  %v7071_v14 = vld [vmem:[%s8591_s24 + $0x654] ss:$8 sps:$4 sm:$0xff]   ;;  %v7074_v22 = vld [vmem:[%s8591_s24 + $0x650] ss:$8 sps:$4 sm:$0xff]  }
 0x2c1   : > { %5656 = vmatprep.subr.bf16.mxu0 %v7053_v4  ;;  %v7075_v18 = vld [vmem:[%s8591_s24 + $0x64] ss:$8 sps:$4 sm:$0xff]   ;;  %v7079_v20 = vld [vmem:[%s8591_s24 + $0x60] ss:$8 sps:$4 sm:$0xff]   ;;  %v7081_v23 = vld [vmem:[%s8591_s24 + $0x74] ss:$8 sps:$4 sm:$0xff]  }
 0x2c2   : > { %v7077_v19 = vld [vmem:[%s8591_s24 + $0x664] ss:$8 sps:$4 sm:$0xff]   ;;  %v7080_v21 = vld [vmem:[%s8591_s24 + $0x660] ss:$8 sps:$4 sm:$0xff]   ;;  %v7083_v24 = vld [vmem:[%s8591_s24 + $0x674] ss:$8 sps:$4 sm:$0xff]  }
 0x2c3   : > { %5411 = vmatpush1.bf16.msra.mxu1 %v7055_v5  ;;  %v7085_v17 = vld [vmem:[%s8591_s24 + $0x70] ss:$8 sps:$4 sm:$0xff]   ;;  %v7087_v26 = vld [vmem:[%s8591_s24 + $0x84] ss:$8 sps:$4 sm:$0xff]   ;;  %v7091_v28 = vld [vmem:[%s8591_s24 + $0x80] ss:$8 sps:$4 sm:$0xff]  }
 0x2c4   : > { %5657 = vmatpush1.bf16.msra.mxu0 %v7056_v52  ;;  %5412 = vmatprep.subr.bf16.mxu1 %v7057_v13  ;;  %v7086_v25 = vld [vmem:[%s8591_s24 + $0x670] ss:$8 sps:$4 sm:$0xff]   ;;  %v7089_v27 = vld [vmem:[%s8591_s24 + $0x684] ss:$8 sps:$4 sm:$0xff]   ;;  %v7092_v31 = vld [vmem:[%s8591_s24 + $0x680] ss:$8 sps:$4 sm:$0xff]  }
 0x2c5   : > { %5658 = vmatprep.subr.bf16.mxu0 %v7059_v15  ;;  %v7708_v32 = vmov 1983009808   ;;  %v7093_v30 = vld [vmem:[%s8591_s24 + $0x94] ss:$8 sps:$4 sm:$0xff]   ;;  %v7097_v36 = vld [vmem:[%s8591_s24 + $0x90] ss:$8 sps:$4 sm:$0xff]  }
 0x2c6   : > { %v2881_v33 = vunpack.c.l.s4 %v7708_v32  ;;  %v7095_v35 = vld [vmem:[%s8591_s24 + $0x694] ss:$8 sps:$4 sm:$0xff]   ;;  %v9258_v37 = vshrl.u32 %v2883_v34, 7  ;;  %v7098_v39 = vld [vmem:[%s8591_s24 + $0x690] ss:$8 sps:$4 sm:$0xff]   ;;  %v2868_v53 = vld [vmem:[#allocation2 + $0x18] sm:$0xff] }
 0x2c7   : > { %5413 = vmatpush1.bf16.msra.mxu1 %v7061_v8  ;;  %v7099_v29 = vld [vmem:[%s8591_s24 + $0xa4] ss:$8 sps:$4 sm:$0xff]   ;;  %v7103_v42 = vld [vmem:[%s8591_s24 + $0xa0] ss:$8 sps:$4 sm:$0xff]   ;;  %v7105_v45 = vld [vmem:[%s8591_s24 + $0xb4] ss:$8 sps:$4 sm:$0xff]   ;;  %v2930_v4 = vcombine.high %v2868_v53, %v2868_v53 }
 0x2c8   : > { %5659 = vmatpush1.bf16.msra.mxu0 %v7062_v9  ;;  %5414 = vmatprep.subr.bf16.mxu1 %v7063_v7  ;;  %v2882_v49 = vunpack.c.0.s8 %v2881_v33  ;;  %v7101_v40 = vld [vmem:[%s8591_s24 + $0x6a4] ss:$8 sps:$4 sm:$0xff]   ;;  %v7104_v43 = vld [vmem:[%s8591_s24 + $0x6a0] ss:$8 sps:$4 sm:$0xff]   ;;  %v7107_v47 = vld [vmem:[%s8591_s24 + $0x6b4] ss:$8 sps:$4 sm:$0xff]  }
 0x2c9   : > { %5660 = vmatprep.subr.bf16.mxu0 %v7065_v10  ;;  %v2865_v48 = vld [vmem:[#allocation2] sm:$0xff]  ;;  %v7115_v61 = vld [vmem:[%s8591_s24 + $0xc0] ss:$8 sps:$4 sm:$0xff]   ;;  %vm5402_vm4 = vcmask 523264   ;;  %s7710_s17 = smov [#allocation4]   ;;  %p7005_p11 = scmp.eq.s32.totalorder %s7767_s27, 1 }
 0x2ca   : > { %v9266_v44 = vsub.s32 %v2882_v49, %v9258_v37  ;;  %v7109_v38 = vld [vmem:[%s8591_s24 + $0xb0] ss:$8 sps:$4 sm:$0xff]   ;;  %v7111_v55 = vld [vmem:[%s8591_s24 + $0xc4] ss:$8 sps:$4 sm:$0xff]   ;;  %v7116_v59 = vld [vmem:[%s8591_s24 + $0x6c0] ss:$8 sps:$4 sm:$0xff]   ;;  %v2879_v3 = vcombine.high %v2865_v48, %v2865_v48 }
 0x2cb   : > { %5415 = vmatpush1.bf16.msra.mxu1 %v7067_v11  ;;  %v7110_v51 = vld [vmem:[%s8591_s24 + $0x6b0] ss:$8 sps:$4 sm:$0xff]   ;;  %v7113_v56 = vld [vmem:[%s8591_s24 + $0x6c4] ss:$8 sps:$4 sm:$0xff]   ;;  %v7117_v6 = vld [vmem:[%s8591_s24 + $0xd4] ss:$8 sps:$4 sm:$0xff]  }
 0x2cc   : > { %5661 = vmatpush1.bf16.msra.mxu0 %v7068_v12  ;;  %5416 = vmatprep.subr.bf16.mxu1 %v7069_v54  ;;  %v9272_v50 = vrot.slane %v2865_v48, %v9266_v44  ;;  %v2937_v57 = vrot.slane %v2868_v53, %v9266_v44  ;;  %v7119_v62 = vld [vmem:[%s8591_s24 + $0x6d4] ss:$8 sps:$4 sm:$0xff]   ;;  %v7121_v0 = vld [vmem:[%s8591_s24 + $0xd0] ss:$8 sps:$4 sm:$0xff]   ;;  %v7123_v1 = vld [vmem:[%s8591_s24 + $0xe4] ss:$8 sps:$4 sm:$0xff]   ;;  %v9293_v8 = vrot.slane %v2879_v3, %v9266_v44 }
 0x2cd   : > { %5662 = vmatprep.subr.bf16.mxu0 %v7071_v14  ;;  %v7122_v63 = vld [vmem:[%s8591_s24 + $0x6d0] ss:$8 sps:$4 sm:$0xff]   ;;  %v7125_v2 = vld [vmem:[%s8591_s24 + $0x6e4] ss:$8 sps:$4 sm:$0xff]   ;;  %v7127_v5 = vld [vmem:[%s8591_s24 + $0xe0] ss:$8 sps:$4 sm:$0xff]   ;;  %v9296_v9 = vrot.slane %v2930_v4, %v9266_v44 }
 0x2ce   : > { %v2894_v41 = vcombine.high %v9272_v50, %v9272_v50  ;;  %v2945_v60 = vcombine.high %v2937_v57, %v2937_v57  ;;  %v7128_v52 = vld [vmem:[%s8591_s24 + $0x6e0] ss:$8 sps:$4 sm:$0xff]   ;;  %v7129_v13 = vld [vmem:[%s8591_s24 + $0xf4] ss:$8 sps:$4 sm:$0xff]   ;;  %v7133_v7 = vld [vmem:[%s8591_s24 + $0xf0] ss:$8 sps:$4 sm:$0xff]   ;;  %v2895_v54 = vcombine.high %v9293_v8, %v9293_v8 }
 0x2cf   : > { %5417 = vmatpush1.bf16.msra.mxu1 %v7073_v16  ;;  %v7131_v15 = vld [vmem:[%s8591_s24 + $0x6f4] ss:$8 sps:$4 sm:$0xff]   ;;  %v7134_v10 = vld [vmem:[%s8591_s24 + $0x6f0] ss:$8 sps:$4 sm:$0xff]   ;;  %v7138_v11 = vld [vmem:[%s8591_s24 + $0x104] ss:$8 sps:$4 sm:$0xff]   ;;  %v2946_v14 = vcombine.high %v9296_v9, %v9296_v9  ;;  %v3013_v16 = vpack.c.bf16 %v9272_v50, %v9272_v50 }
 0x2d0   : > { %5663 = vmatpush1.bf16.msra.mxu0 %v7074_v22  ;;  %5418 = vmatprep.subr.bf16.mxu1 %v7075_v18  ;;  %v3014_v58 = vpack.c.bf16 %v2894_v41, %v2894_v41  ;;  %v3026_v46 = vpack.c.bf16 %v2945_v60, %v2945_v60  ;;  %v7142_v12 = vld [vmem:[%s8591_s24 + $0x704] ss:$8 sps:$4 sm:$0xff]   ;;  %v3025_v22 = vpack.c.bf16 %v2937_v57, %v2937_v57  ;;  %v7136_v18 = vld [vmem:[%s8591_s24 + $0x100] ss:$8 sps:$4 sm:$0xff]   ;;  %v7157_v32 = vld [vmem:[%s8591_s24 + $0x134] ss:$8 sps:$4 sm:$0xff]  }
 0x2d1   : > { %5664 = vmatprep.subr.bf16.mxu0 %v7077_v19  ;;  %v7140_v19 = vld [vmem:[%s8591_s24 + $0x700] ss:$8 sps:$4 sm:$0xff]   ;;  %v7160_v33 = vld [vmem:[%s8591_s24 + $0x734] ss:$8 sps:$4 sm:$0xff]   ;;  %v7155_v34 = vld [vmem:[%s8591_s24 + $0x130] ss:$8 sps:$4 sm:$0xff]  }
 0x2d2   : > { %5438 = vmatprep.mubr.bf16.mxu1 %v3014_v58  ;;  %5684 = vmatprep.mubr.bf16.mxu0 %v3026_v46  ;;  %v7161_v49 = vld [vmem:[%s8591_s24 + $0x140] ss:$8 sps:$4 sm:$0xff]   ;;  %v7181_v50 = vld [vmem:[%s8591_s24 + $0x174] ss:$8 sps:$4 sm:$0xff]   ;;  %v7179_v53 = vld [vmem:[%s8591_s24 + $0x170] ss:$8 sps:$4 sm:$0xff]  }
 0x2d3   : > { %5419 = vmatpush1.bf16.msra.mxu1 %v7079_v20  ;;  %v7145_v20 = vld [vmem:[%s8591_s24 + $0x114] ss:$8 sps:$4 sm:$0xff]   ;;  %v7173_v48 = vld [vmem:[%s8591_s24 + $0x160] ss:$8 sps:$4 sm:$0xff]   ;;  %v7190_v41 = vld [vmem:[%s8591_s24 + $0x784] ss:$8 sps:$4 sm:$0xff]  }
 0x2d4   : > { %5665 = vmatpush1.bf16.msra.mxu0 %v7080_v21  ;;  %5420 = vmatprep.subr.bf16.mxu1 %v7081_v23  ;;  %v7148_v21 = vld [vmem:[%s8591_s24 + $0x714] ss:$8 sps:$4 sm:$0xff]   ;;  %v3016_v23 = vpack.c.bf16 %v2895_v54, %v2895_v54  ;;  %v7185_v57 = vld [vmem:[%s8591_s24 + $0x180] ss:$8 sps:$4 sm:$0xff]   ;;  %v7202_v46 = vld [vmem:[%s8591_s24 + $0x7a4] ss:$8 sps:$4 sm:$0xff]  }
 0x2d5   : > { %5666 = vmatprep.subr.bf16.mxu0 %v7083_v24  ;;  %v3028_v24 = vpack.c.bf16 %v2946_v14, %v2946_v14  ;;  %v7188_v58 = vld [vmem:[%s8591_s24 + $0x780] ss:$8 sps:$4 sm:$0xff]   ;;  %v7193_v60 = vld [vmem:[%s8591_s24 + $0x194] ss:$8 sps:$4 sm:$0xff]   ;;  %v7203_v3 = vld [vmem:[%s8591_s24 + $0x1b0] ss:$8 sps:$4 sm:$0xff]  }
 0x2d6   : > { %v7206_v4 = vld [vmem:[%s8591_s24 + $0x7b0] ss:$8 sps:$4 sm:$0xff]   ;;  %v7223_v54 = vld [vmem:[%s8591_s24 + $0x1e4] ss:$8 sps:$4 sm:$0xff]  }
 0x2d7   : > { %5421 = vmatpush1.bf16.msra.mxu1 %v7085_v17  ;;  %v7143_v17 = vld [vmem:[%s8591_s24 + $0x110] ss:$8 sps:$4 sm:$0xff]   ;;  %v7226_v14 = vld [vmem:[%s8591_s24 + $0x7e4] ss:$8 sps:$4 sm:$0xff]  }
 0x2d8   : > { %5667 = vmatpush1.bf16.msra.mxu0 %v7086_v25  ;;  %5422 = vmatprep.subr.bf16.mxu1 %v7087_v26  ;;  %v7146_v25 = vld [vmem:[%s8591_s24 + $0x710] ss:$8 sps:$4 sm:$0xff]   ;;  %v7151_v26 = vld [vmem:[%s8591_s24 + $0x124] ss:$8 sps:$4 sm:$0xff]  }
 0x2d9   : > { %5668 = vmatprep.subr.bf16.mxu0 %v7089_v27  ;;  %v7154_v27 = vld [vmem:[%s8591_s24 + $0x724] ss:$8 sps:$4 sm:$0xff]  }
 0x2db   : > { %5423 = vmatpush1.bf16.msra.mxu1 %v7091_v28  ;;  %v7149_v28 = vld [vmem:[%s8591_s24 + $0x120] ss:$8 sps:$4 sm:$0xff]  }
 0x2dc   : > { %5669 = vmatpush1.bf16.msra.mxu0 %v7092_v31  ;;  %5424 = vmatprep.subr.bf16.mxu1 %v7093_v30  ;;  %v7152_v31 = vld [vmem:[%s8591_s24 + $0x720] ss:$8 sps:$4 sm:$0xff]   ;;  %v7158_v30 = vld [vmem:[%s8591_s24 + $0x730] ss:$8 sps:$4 sm:$0xff]  }
 0x2dd   : > { %5670 = vmatprep.subr.bf16.mxu0 %v7095_v35  ;;  %v7163_v35 = vld [vmem:[%s8591_s24 + $0x144] ss:$8 sps:$4 sm:$0xff]  }
 0x2df   : > { %5425 = vmatpush1.bf16.msra.mxu1 %v7097_v36  ;;  %v7166_v36 = vld [vmem:[%s8591_s24 + $0x744] ss:$8 sps:$4 sm:$0xff]  }
 0x2e0   : > { %5671 = vmatpush1.bf16.msra.mxu0 %v7098_v39  ;;  %5426 = vmatprep.subr.bf16.mxu1 %v7099_v29  ;;  %v7164_v39 = vld [vmem:[%s8591_s24 + $0x740] ss:$8 sps:$4 sm:$0xff]   ;;  %v7169_v29 = vld [vmem:[%s8591_s24 + $0x154] ss:$8 sps:$4 sm:$0xff]  }
 0x2e1   : > { %5672 = vmatprep.subr.bf16.mxu0 %v7101_v40  ;;  %v7172_v40 = vld [vmem:[%s8591_s24 + $0x754] ss:$8 sps:$4 sm:$0xff]  }
 0x2e3   : > { %5427 = vmatpush1.bf16.msra.mxu1 %v7103_v42  ;;  %v7167_v42 = vld [vmem:[%s8591_s24 + $0x150] ss:$8 sps:$4 sm:$0xff]  }
 0x2e4   : > { %5673 = vmatpush1.bf16.msra.mxu0 %v7104_v43  ;;  %5428 = vmatprep.subr.bf16.mxu1 %v7105_v45  ;;  %v7170_v43 = vld [vmem:[%s8591_s24 + $0x750] ss:$8 sps:$4 sm:$0xff]   ;;  %v7175_v45 = vld [vmem:[%s8591_s24 + $0x164] ss:$8 sps:$4 sm:$0xff]  }
 0x2e5   : > { %5674 = vmatprep.subr.bf16.mxu0 %v7107_v47  ;;  %v7178_v47 = vld [vmem:[%s8591_s24 + $0x764] ss:$8 sps:$4 sm:$0xff]  }
 0x2e7   : > { %5429 = vmatpush1.bf16.msra.mxu1 %v7109_v38  ;;  %v7176_v38 = vld [vmem:[%s8591_s24 + $0x760] ss:$8 sps:$4 sm:$0xff]  }
 0x2e8   : > { %5675 = vmatpush1.bf16.msra.mxu0 %v7110_v51  ;;  %5430 = vmatprep.subr.bf16.mxu1 %v7111_v55  ;;  %v7184_v51 = vld [vmem:[%s8591_s24 + $0x774] ss:$8 sps:$4 sm:$0xff]   ;;  %v7182_v55 = vld [vmem:[%s8591_s24 + $0x770] ss:$8 sps:$4 sm:$0xff]  }
 0x2e9   : > { %5676 = vmatprep.subr.bf16.mxu0 %v7113_v56  ;;  %v7187_v56 = vld [vmem:[%s8591_s24 + $0x184] ss:$8 sps:$4 sm:$0xff]  }
 0x2eb   : > { %5431 = vmatpush1.bf16.msra.mxu1 %v7115_v61  ;;  %v7196_v61 = vld [vmem:[%s8591_s24 + $0x794] ss:$8 sps:$4 sm:$0xff]  }
 0x2ec   : > { %5677 = vmatpush1.bf16.msra.mxu0 %v7116_v59  ;;  %5432 = vmatprep.subr.bf16.mxu1 %v7117_v6  ;;  %v7191_v59 = vld [vmem:[%s8591_s24 + $0x190] ss:$8 sps:$4 sm:$0xff]  }
 0x2ed   : > { %5678 = vmatprep.subr.bf16.mxu0 %v7119_v62  ;;  %v7194_v6 = vld [vmem:[%s8591_s24 + $0x790] ss:$8 sps:$4 sm:$0xff]   ;;  %v7199_v62 = vld [vmem:[%s8591_s24 + $0x1a4] ss:$8 sps:$4 sm:$0xff]  }
 0x2ef   : > { %5433 = vmatpush1.bf16.msra.mxu1 %v7121_v0  ;;  %v7197_v0 = vld [vmem:[%s8591_s24 + $0x1a0] ss:$8 sps:$4 sm:$0xff]  }
 0x2f0   : > { %5679 = vmatpush1.bf16.msra.mxu0 %v7122_v63  ;;  %5434 = vmatprep.subr.bf16.mxu1 %v7123_v1  ;;  %v7200_v63 = vld [vmem:[%s8591_s24 + $0x7a0] ss:$8 sps:$4 sm:$0xff]   ;;  %v7205_v1 = vld [vmem:[%s8591_s24 + $0x1b4] ss:$8 sps:$4 sm:$0xff]  }
 0x2f1   : > { %5680 = vmatprep.subr.bf16.mxu0 %v7125_v2  ;;  %v7208_v2 = vld [vmem:[%s8591_s24 + $0x7b4] ss:$8 sps:$4 sm:$0xff]  }
 0x2f3   : > { %5435 = vmatpush1.bf16.msra.mxu1 %v7127_v5  ;;  %v7211_v5 = vld [vmem:[%s8591_s24 + $0x1c4] ss:$8 sps:$4 sm:$0xff]  }
 0x2f4   : > { %5681 = vmatpush1.bf16.msra.mxu0 %v7128_v52  ;;  %5436 = vmatprep.subr.bf16.mxu1 %v7129_v13  ;;  %v7214_v52 = vld [vmem:[%s8591_s24 + $0x7c4] ss:$8 sps:$4 sm:$0xff]   ;;  %v7209_v13 = vld [vmem:[%s8591_s24 + $0x1c0] ss:$8 sps:$4 sm:$0xff]  }
 0x2f5   : > { %5682 = vmatprep.subr.bf16.mxu0 %v7131_v15  ;;  %v7212_v15 = vld [vmem:[%s8591_s24 + $0x7c0] ss:$8 sps:$4 sm:$0xff]  }
 0x2f7   : > { %5437 = vmatpush1.bf16.msra.mxu1 %v7133_v7  ;;  %v7217_v7 = vld [vmem:[%s8591_s24 + $0x1d4] ss:$8 sps:$4 sm:$0xff]  }
 0x2f8   : > { %5683 = vmatpush1.bf16.msra.mxu0 %v7134_v10  ;;  %5447 = vmatprep.subr.bf16.mxu1 %v7138_v11  ;;  %v7220_v10 = vld [vmem:[%s8591_s24 + $0x7d4] ss:$8 sps:$4 sm:$0xff]   ;;  %v7215_v11 = vld [vmem:[%s8591_s24 + $0x1d0] ss:$8 sps:$4 sm:$0xff]  }
 0x2f9   : > { %5693 = vmatprep.subr.bf16.mxu0 %v7142_v12  ;;  %v7218_v12 = vld [vmem:[%s8591_s24 + $0x7d0] ss:$8 sps:$4 sm:$0xff]  }
 0x2fa   : > { %5439 = vmatmul.mubr.bf16.vlgmr.msra.gmra.mrb[0].mxu1 %v3013_v16  ;;  %v7221_v16 = vld [vmem:[%s8591_s24 + $0x1e0] ss:$8 sps:$4 sm:$0xff]  }
 0x2fb   : > { %5685 = vmatmul.mubr.bf16.vlgmr.msra.gmra.mrb[0].mxu0 %v3025_v22  ;;  %5448 = vmatpush1.bf16.msra.mxu1 %v7136_v18  ;;  %v7224_v22 = vld [vmem:[%s8591_s24 + $0x7e0] ss:$8 sps:$4 sm:$0xff]   ;;  %v7229_v18 = vld [vmem:[%s8591_s24 + $0x1f4] ss:$8 sps:$4 sm:$0xff]  }
 0x2fc   : > { %5694 = vmatpush1.bf16.msra.mxu0 %v7140_v19  ;;  %5449 = vmatprep.subr.bf16.mxu1 %v7145_v20  ;;  %v7232_v19 = vld [vmem:[%s8591_s24 + $0x7f4] ss:$8 sps:$4 sm:$0xff]   ;;  %v7227_v20 = vld [vmem:[%s8591_s24 + $0x1f0] ss:$8 sps:$4 sm:$0xff]  }
 0x2fd   : > { %5695 = vmatprep.subr.bf16.mxu0 %v7148_v21  ;;  %5479 = vmatprep.mubr.bf16.mxu1 %v3016_v23  ;;  %v7230_v21 = vld [vmem:[%s8591_s24 + $0x7f0] ss:$8 sps:$4 sm:$0xff]   ;;  %v7235_v23 = vld [vmem:[%s8591_s24 + $0x204] ss:$8 sps:$4 sm:$0xff]  }
 0x2fe   : > { %5725 = vmatprep.mubr.bf16.mxu0 %v3028_v24  ;;  %v7238_v24 = vld [vmem:[%s8591_s24 + $0x804] ss:$8 sps:$4 sm:$0xff]  }
 0x2ff   : > { %5450 = vmatpush1.bf16.msra.mxu1 %v7143_v17  ;;  %v7233_v17 = vld [vmem:[%s8591_s24 + $0x200] ss:$8 sps:$4 sm:$0xff]  }
 0x300   : > { %5696 = vmatpush1.bf16.msra.mxu0 %v7146_v25  ;;  %5451 = vmatprep.subr.bf16.mxu1 %v7151_v26  ;;  %v3015_v25 = vpack.c.bf16 %v9293_v8, %v9293_v8  ;;  %v3027_v26 = vpack.c.bf16 %v9296_v9, %v9296_v9  ;;  %v9386_v8 = vld [vmem:[#allocation2 + $0x20] sm:$0xff] }
 0x301   : > { %5697 = vmatprep.subr.bf16.mxu0 %v7154_v27  ;;  %v7236_v27 = vld [vmem:[%s8591_s24 + $0x800] ss:$8 sps:$4 sm:$0xff]   ;;  %v7239_v9 = vld [vmem:[%s8591_s24 + $0x210] ss:$8 sps:$4 sm:$0xff]  }
 0x303   : > { %5452 = vmatpush1.bf16.msra.mxu1 %v7149_v28  ;;  %v7241_v28 = vld [vmem:[%s8591_s24 + $0x214] ss:$8 sps:$4 sm:$0xff]  }
 0x304   : > { %5698 = vmatpush1.bf16.msra.mxu0 %v7152_v31  ;;  %5453 = vmatprep.subr.bf16.mxu1 %v7157_v32  ;;  %v9379_v31 = vld [vmem:[#allocation2 + $0x8] sm:$0xff] }
 0x305   : > { %5699 = vmatprep.subr.bf16.mxu0 %v7160_v33  ;;  %v7244_v32 = vld [vmem:[%s8591_s24 + $0x814] ss:$8 sps:$4 sm:$0xff]   ;;  %v9384_v33 = vrot.slane %v9379_v31, %v9266_v44 }
 0x307   : > { %5454 = vmatpush1.bf16.msra.mxu1 %v7155_v34  ;;  %v7242_v34 = vld [vmem:[%s8591_s24 + $0x810] ss:$8 sps:$4 sm:$0xff]  }
 0x308   : > { %5700 = vmatpush1.bf16.msra.mxu0 %v7158_v30  ;;  %5455 = vmatprep.subr.bf16.mxu1 %v7163_v35  ;;  %v2911_v30 = vcombine.high %v9384_v33, %v9384_v33  ;;  %v9394_v35 = vrot.slane %v9386_v8, %v9266_v44 }
 0x309   : > { %5701 = vmatprep.subr.bf16.mxu0 %v7166_v36  ;;  %v7247_v36 = vld [vmem:[%s8591_s24 + $0x224] ss:$8 sps:$4 sm:$0xff]  }
 0x30b   : > { %5456 = vmatpush1.bf16.msra.mxu1 %v7161_v49  ;;  %v7250_v49 = vld [vmem:[%s8591_s24 + $0x824] ss:$8 sps:$4 sm:$0xff]  }
 0x30c   : > { %5702 = vmatpush1.bf16.msra.mxu0 %v7164_v39  ;;  %5457 = vmatprep.subr.bf16.mxu1 %v7169_v29  ;;  %v3018_v39 = vpack.c.bf16 %v2911_v30, %v2911_v30  ;;  %v2962_v29 = vcombine.high %v9394_v35, %v9394_v35  ;;  %v7325_v30 = vld [vmem:[%s8591_s24 + $0x2f4] ss:$8 sps:$4 sm:$0xff]  }
 0x30d   : > { %5703 = vmatprep.subr.bf16.mxu0 %v7172_v40  ;;  %v7245_v40 = vld [vmem:[%s8591_s24 + $0x220] ss:$8 sps:$4 sm:$0xff]  }
 0x30f   : > { %5458 = vmatpush1.bf16.msra.mxu1 %v7167_v42  ;;  %v7248_v42 = vld [vmem:[%s8591_s24 + $0x820] ss:$8 sps:$4 sm:$0xff]  }
 0x310   : > { %5704 = vmatpush1.bf16.msra.mxu0 %v7170_v43  ;;  %5459 = vmatprep.subr.bf16.mxu1 %v7175_v45  ;;  %v3030_v43 = vpack.c.bf16 %v2962_v29, %v2962_v29  ;;  %v7253_v45 = vld [vmem:[%s8591_s24 + $0x234] ss:$8 sps:$4 sm:$0xff]   ;;  %v7331_v29 = vld [vmem:[%s8591_s24 + $0x304] ss:$8 sps:$4 sm:$0xff]  }
 0x311   : > { %5705 = vmatprep.subr.bf16.mxu0 %v7178_v47  ;;  %v7256_v47 = vld [vmem:[%s8591_s24 + $0x834] ss:$8 sps:$4 sm:$0xff]  }
 0x313   : > { %5460 = vmatpush1.bf16.msra.mxu1 %v7173_v48  ;;  %v7251_v48 = vld [vmem:[%s8591_s24 + $0x230] ss:$8 sps:$4 sm:$0xff]  }
 0x314   : > { %5706 = vmatpush1.bf16.msra.mxu0 %v7176_v38  ;;  %5461 = vmatprep.subr.bf16.mxu1 %v7181_v50  ;;  %v7254_v38 = vld [vmem:[%s8591_s24 + $0x830] ss:$8 sps:$4 sm:$0xff]   ;;  %v7259_v50 = vld [vmem:[%s8591_s24 + $0x244] ss:$8 sps:$4 sm:$0xff]  }
 0x315   : > { %5707 = vmatprep.subr.bf16.mxu0 %v7184_v51  ;;  %v7262_v51 = vld [vmem:[%s8591_s24 + $0x844] ss:$8 sps:$4 sm:$0xff]  }
 0x317   : > { %5462 = vmatpush1.bf16.msra.mxu1 %v7179_v53  ;;  %v7257_v53 = vld [vmem:[%s8591_s24 + $0x240] ss:$8 sps:$4 sm:$0xff]  }
 0x318   : > { %5708 = vmatpush1.bf16.msra.mxu0 %v7182_v55  ;;  %5463 = vmatprep.subr.bf16.mxu1 %v7187_v56  ;;  %v7260_v55 = vld [vmem:[%s8591_s24 + $0x840] ss:$8 sps:$4 sm:$0xff]   ;;  %v7265_v56 = vld [vmem:[%s8591_s24 + $0x254] ss:$8 sps:$4 sm:$0xff]  }
 0x319   : > { %5709 = vmatprep.subr.bf16.mxu0 %v7190_v41  ;;  %v7268_v41 = vld [vmem:[%s8591_s24 + $0x854] ss:$8 sps:$4 sm:$0xff]  }
 0x31b   : > { %5464 = vmatpush1.bf16.msra.mxu1 %v7185_v57  ;;  %v7263_v57 = vld [vmem:[%s8591_s24 + $0x250] ss:$8 sps:$4 sm:$0xff]  }
 0x31c   : > { %5710 = vmatpush1.bf16.msra.mxu0 %v7188_v58  ;;  %5465 = vmatprep.subr.bf16.mxu1 %v7193_v60  ;;  %v7266_v58 = vld [vmem:[%s8591_s24 + $0x850] ss:$8 sps:$4 sm:$0xff]   ;;  %v7271_v60 = vld [vmem:[%s8591_s24 + $0x264] ss:$8 sps:$4 sm:$0xff]  }
 0x31d   : > { %5711 = vmatprep.subr.bf16.mxu0 %v7196_v61  ;;  %v7274_v61 = vld [vmem:[%s8591_s24 + $0x864] ss:$8 sps:$4 sm:$0xff]  }
 0x31f   : > { %5466 = vmatpush1.bf16.msra.mxu1 %v7191_v59  ;;  %v7269_v59 = vld [vmem:[%s8591_s24 + $0x260] ss:$8 sps:$4 sm:$0xff]  }
 0x320   : > { %5712 = vmatpush1.bf16.msra.mxu0 %v7194_v6  ;;  %5467 = vmatprep.subr.bf16.mxu1 %v7199_v62  ;;  %v7272_v6 = vld [vmem:[%s8591_s24 + $0x860] ss:$8 sps:$4 sm:$0xff]   ;;  %v7277_v62 = vld [vmem:[%s8591_s24 + $0x274] ss:$8 sps:$4 sm:$0xff]  }
 0x321   : > { %5713 = vmatprep.subr.bf16.mxu0 %v7202_v46  ;;  %v7280_v46 = vld [vmem:[%s8591_s24 + $0x874] ss:$8 sps:$4 sm:$0xff]  }
 0x323   : > { %5468 = vmatpush1.bf16.msra.mxu1 %v7197_v0  ;;  %v7275_v0 = vld [vmem:[%s8591_s24 + $0x270] ss:$8 sps:$4 sm:$0xff]  }
 0x324   : > { %5714 = vmatpush1.bf16.msra.mxu0 %v7200_v63  ;;  %5469 = vmatprep.subr.bf16.mxu1 %v7205_v1  ;;  %v7278_v63 = vld [vmem:[%s8591_s24 + $0x870] ss:$8 sps:$4 sm:$0xff]   ;;  %v7283_v1 = vld [vmem:[%s8591_s24 + $0x284] ss:$8 sps:$4 sm:$0xff]  }
 0x325   : > { %5715 = vmatprep.subr.bf16.mxu0 %v7208_v2  ;;  %v7286_v2 = vld [vmem:[%s8591_s24 + $0x884] ss:$8 sps:$4 sm:$0xff]  }
 0x327   : > { %5470 = vmatpush1.bf16.msra.mxu1 %v7203_v3  ;;  %v7281_v3 = vld [vmem:[%s8591_s24 + $0x280] ss:$8 sps:$4 sm:$0xff]  }
 0x328   : > { %5716 = vmatpush1.bf16.msra.mxu0 %v7206_v4  ;;  %5471 = vmatprep.subr.bf16.mxu1 %v7211_v5  ;;  %v7284_v4 = vld [vmem:[%s8591_s24 + $0x880] ss:$8 sps:$4 sm:$0xff]   ;;  %v7289_v5 = vld [vmem:[%s8591_s24 + $0x294] ss:$8 sps:$4 sm:$0xff]  }
 0x329   : > { %5717 = vmatprep.subr.bf16.mxu0 %v7214_v52  ;;  %v7292_v52 = vld [vmem:[%s8591_s24 + $0x894] ss:$8 sps:$4 sm:$0xff]  }
 0x32b   : > { %5472 = vmatpush1.bf16.msra.mxu1 %v7209_v13  ;;  %v7287_v13 = vld [vmem:[%s8591_s24 + $0x290] ss:$8 sps:$4 sm:$0xff]  }
 0x32c   : > { %5718 = vmatpush1.bf16.msra.mxu0 %v7212_v15  ;;  %5473 = vmatprep.subr.bf16.mxu1 %v7217_v7  ;;  %v7290_v15 = vld [vmem:[%s8591_s24 + $0x890] ss:$8 sps:$4 sm:$0xff]   ;;  %v7295_v7 = vld [vmem:[%s8591_s24 + $0x2a4] ss:$8 sps:$4 sm:$0xff]  }
 0x32d   : > { %5719 = vmatprep.subr.bf16.mxu0 %v7220_v10  ;;  %v7298_v10 = vld [vmem:[%s8591_s24 + $0x8a4] ss:$8 sps:$4 sm:$0xff]  }
 0x32f   : > { %5474 = vmatpush1.bf16.msra.mxu1 %v7215_v11  ;;  %v7293_v11 = vld [vmem:[%s8591_s24 + $0x2a0] ss:$8 sps:$4 sm:$0xff]  }
 0x330   : > { %5720 = vmatpush1.bf16.msra.mxu0 %v7218_v12  ;;  %5475 = vmatprep.subr.bf16.mxu1 %v7223_v54  ;;  %v7296_v12 = vld [vmem:[%s8591_s24 + $0x8a0] ss:$8 sps:$4 sm:$0xff]   ;;  %v7301_v54 = vld [vmem:[%s8591_s24 + $0x2b4] ss:$8 sps:$4 sm:$0xff]  }
 0x331   : > { %5721 = vmatprep.subr.bf16.mxu0 %v7226_v14  ;;  %v7304_v14 = vld [vmem:[%s8591_s24 + $0x8b4] ss:$8 sps:$4 sm:$0xff]  }
 0x333   : > { %5476 = vmatpush1.bf16.msra.mxu1 %v7221_v16  ;;  %v7299_v16 = vld [vmem:[%s8591_s24 + $0x2b0] ss:$8 sps:$4 sm:$0xff]  }
 0x334   : > { %5722 = vmatpush1.bf16.msra.mxu0 %v7224_v22  ;;  %5477 = vmatprep.subr.bf16.mxu1 %v7229_v18  ;;  %v7302_v22 = vld [vmem:[%s8591_s24 + $0x8b0] ss:$8 sps:$4 sm:$0xff]   ;;  %v7307_v18 = vld [vmem:[%s8591_s24 + $0x2c4] ss:$8 sps:$4 sm:$0xff]  }
 0x335   : > { %5723 = vmatprep.subr.bf16.mxu0 %v7232_v19  ;;  %v7310_v19 = vld [vmem:[%s8591_s24 + $0x8c4] ss:$8 sps:$4 sm:$0xff]  }
 0x337   : > { %5478 = vmatpush1.bf16.msra.mxu1 %v7227_v20  ;;  %v7305_v20 = vld [vmem:[%s8591_s24 + $0x2c0] ss:$8 sps:$4 sm:$0xff]  }
 0x338   : > { %5724 = vmatpush1.bf16.msra.mxu0 %v7230_v21  ;;  %5488 = vmatprep.subr.bf16.mxu1 %v7235_v23  ;;  %v7308_v21 = vld [vmem:[%s8591_s24 + $0x8c0] ss:$8 sps:$4 sm:$0xff]   ;;  %v7313_v23 = vld [vmem:[%s8591_s24 + $0x2d4] ss:$8 sps:$4 sm:$0xff]  }
 0x339   : > { %5734 = vmatprep.subr.bf16.mxu0 %v7238_v24  ;;  %v7316_v24 = vld [vmem:[%s8591_s24 + $0x8d4] ss:$8 sps:$4 sm:$0xff]  }
 0x33a   : > { %5480 = vmatmul.mubr.bf16.vlgmr.msra.gmra.mrb[0].mxu1 %v3015_v25  ;;  %v7314_v25 = vld [vmem:[%s8591_s24 + $0x8d0] ss:$8 sps:$4 sm:$0xff]  }
 0x33b   : > { %5726 = vmatmul.mubr.bf16.vlgmr.msra.gmra.mrb[0].mxu0 %v3027_v26  ;;  %5489 = vmatpush1.bf16.msra.mxu1 %v7233_v17  ;;  %v7311_v17 = vld [vmem:[%s8591_s24 + $0x2d0] ss:$8 sps:$4 sm:$0xff]   ;;  %v7319_v26 = vld [vmem:[%s8591_s24 + $0x2e4] ss:$8 sps:$4 sm:$0xff]  }
 0x33c   : > { %5735 = vmatpush1.bf16.msra.mxu0 %v7236_v27  ;;  %5490 = vmatprep.subr.bf16.mxu1 %v7241_v28  ;;  %v7322_v27 = vld [vmem:[%s8591_s24 + $0x8e4] ss:$8 sps:$4 sm:$0xff]   ;;  %v2896_v28 = vcombine.high %v9379_v31, %v9379_v31 }
 0x33d   : > { %5736 = vmatprep.subr.bf16.mxu0 %v7244_v32  ;;  %5520 = vmatprep.mubr.bf16.mxu1 %v3018_v39  ;;  %v2947_v32 = vcombine.high %v9386_v8, %v9386_v8  ;;  %v7323_v39 = vld [vmem:[%s8591_s24 + $0x2f0] ss:$8 sps:$4 sm:$0xff]  }
 0x33e   : > { %5766 = vmatprep.mubr.bf16.mxu0 %v3030_v43  ;;  %v7326_v8 = vld [vmem:[%s8591_s24 + $0x8f0] ss:$8 sps:$4 sm:$0xff]  }
 0x33f   : > { %5491 = vmatpush1.bf16.msra.mxu1 %v7239_v9  ;;  %v7317_v9 = vld [vmem:[%s8591_s24 + $0x2e0] ss:$8 sps:$4 sm:$0xff]   ;;  %v9460_v31 = vrot.slane %v2947_v32, %v9266_v44  ;;  %v7398_v32 = vld [vmem:[%s8591_s24 + $0x9b0] ss:$8 sps:$4 sm:$0xff]  }
 0x340   : > { %5737 = vmatpush1.bf16.msra.mxu0 %v7242_v34  ;;  %5492 = vmatprep.subr.bf16.mxu1 %v7247_v36  ;;  %v7320_v34 = vld [vmem:[%s8591_s24 + $0x8e0] ss:$8 sps:$4 sm:$0xff]   ;;  %v7328_v36 = vld [vmem:[%s8591_s24 + $0x8f4] ss:$8 sps:$4 sm:$0xff]  }
 0x341   : > { %5738 = vmatprep.subr.bf16.mxu0 %v7250_v49  ;;  %v9457_v49 = vrot.slane %v2896_v28, %v9266_v44  ;;  %v2963_v43 = vcombine.high %v9460_v31, %v9460_v31  ;;  %v7395_v28 = vld [vmem:[%s8591_s24 + $0x3b0] ss:$8 sps:$4 sm:$0xff]  }
 0x343   : > { %5493 = vmatpush1.bf16.msra.mxu1 %v7245_v40  ;;  %v7334_v40 = vld [vmem:[%s8591_s24 + $0x904] ss:$8 sps:$4 sm:$0xff]  }
 0x344   : > { %5739 = vmatpush1.bf16.msra.mxu0 %v7248_v42  ;;  %5494 = vmatprep.subr.bf16.mxu1 %v7253_v45  ;;  %v2912_v42 = vcombine.high %v9457_v49, %v9457_v49  ;;  %v7329_v45 = vld [vmem:[%s8591_s24 + $0x300] ss:$8 sps:$4 sm:$0xff]  }
 0x345   : > { %5740 = vmatprep.subr.bf16.mxu0 %v7256_v47  ;;  %v7332_v47 = vld [vmem:[%s8591_s24 + $0x900] ss:$8 sps:$4 sm:$0xff]  }
 0x347   : > { %5495 = vmatpush1.bf16.msra.mxu1 %v7251_v48  ;;  %v3017_v48 = vpack.c.bf16 %v9384_v33, %v9384_v33  ;;  %v7338_v33 = vld [vmem:[%s8591_s24 + $0x910] ss:$8 sps:$4 sm:$0xff]  }
 0x348   : > { %5741 = vmatpush1.bf16.msra.mxu0 %v7254_v38  ;;  %5496 = vmatprep.subr.bf16.mxu1 %v7259_v50  ;;  %v3029_v38 = vpack.c.bf16 %v9394_v35, %v9394_v35  ;;  %v7337_v50 = vld [vmem:[%s8591_s24 + $0x314] ss:$8 sps:$4 sm:$0xff]   ;;  %v7343_v35 = vld [vmem:[%s8591_s24 + $0x324] ss:$8 sps:$4 sm:$0xff]  }
 0x349   : > { %5742 = vmatprep.subr.bf16.mxu0 %v7262_v51  ;;  %v7340_v51 = vld [vmem:[%s8591_s24 + $0x914] ss:$8 sps:$4 sm:$0xff]  }
 0x34b   : > { %5497 = vmatpush1.bf16.msra.mxu1 %v7257_v53  ;;  %v3020_v53 = vpack.c.bf16 %v2912_v42, %v2912_v42  ;;  %v7415_v42 = vld [vmem:[%s8591_s24 + $0x3e4] ss:$8 sps:$4 sm:$0xff]  }
 0x34c   : > { %5743 = vmatpush1.bf16.msra.mxu0 %v7260_v55  ;;  %5498 = vmatprep.subr.bf16.mxu1 %v7265_v56  ;;  %v3032_v55 = vpack.c.bf16 %v2963_v43, %v2963_v43  ;;  %v7335_v56 = vld [vmem:[%s8591_s24 + $0x310] ss:$8 sps:$4 sm:$0xff]   ;;  %v7418_v43 = vld [vmem:[%s8591_s24 + $0x9e4] ss:$8 sps:$4 sm:$0xff]  }
 0x34d   : > { %5744 = vmatprep.subr.bf16.mxu0 %v7268_v41  ;;  %v7346_v41 = vld [vmem:[%s8591_s24 + $0x924] ss:$8 sps:$4 sm:$0xff]  }
 0x34f   : > { %5499 = vmatpush1.bf16.msra.mxu1 %v7263_v57  ;;  %v7341_v57 = vld [vmem:[%s8591_s24 + $0x320] ss:$8 sps:$4 sm:$0xff]  }
 0x350   : > { %5745 = vmatpush1.bf16.msra.mxu0 %v7266_v58  ;;  %5500 = vmatprep.subr.bf16.mxu1 %v7271_v60  ;;  %v7344_v58 = vld [vmem:[%s8591_s24 + $0x920] ss:$8 sps:$4 sm:$0xff]   ;;  %v7349_v60 = vld [vmem:[%s8591_s24 + $0x334] ss:$8 sps:$4 sm:$0xff]  }
 0x351   : > { %5746 = vmatprep.subr.bf16.mxu0 %v7274_v61  ;;  %v7352_v61 = vld [vmem:[%s8591_s24 + $0x934] ss:$8 sps:$4 sm:$0xff]  }
 0x353   : > { %5501 = vmatpush1.bf16.msra.mxu1 %v7269_v59  ;;  %v7347_v59 = vld [vmem:[%s8591_s24 + $0x330] ss:$8 sps:$4 sm:$0xff]  }
 0x354   : > { %5747 = vmatpush1.bf16.msra.mxu0 %v7272_v6  ;;  %5502 = vmatprep.subr.bf16.mxu1 %v7277_v62  ;;  %v7350_v6 = vld [vmem:[%s8591_s24 + $0x930] ss:$8 sps:$4 sm:$0xff]   ;;  %v7355_v62 = vld [vmem:[%s8591_s24 + $0x344] ss:$8 sps:$4 sm:$0xff]  }
 0x355   : > { %5748 = vmatprep.subr.bf16.mxu0 %v7280_v46  ;;  %v7358_v46 = vld [vmem:[%s8591_s24 + $0x944] ss:$8 sps:$4 sm:$0xff]  }
 0x357   : > { %5503 = vmatpush1.bf16.msra.mxu1 %v7275_v0  ;;  %v7353_v0 = vld [vmem:[%s8591_s24 + $0x340] ss:$8 sps:$4 sm:$0xff]  }
 0x358   : > { %5749 = vmatpush1.bf16.msra.mxu0 %v7278_v63  ;;  %5504 = vmatprep.subr.bf16.mxu1 %v7283_v1  ;;  %v7356_v63 = vld [vmem:[%s8591_s24 + $0x940] ss:$8 sps:$4 sm:$0xff]   ;;  %v7361_v1 = vld [vmem:[%s8591_s24 + $0x354] ss:$8 sps:$4 sm:$0xff]  }
 0x359   : > { %5750 = vmatprep.subr.bf16.mxu0 %v7286_v2  ;;  %v7364_v2 = vld [vmem:[%s8591_s24 + $0x954] ss:$8 sps:$4 sm:$0xff]  }
 0x35b   : > { %5505 = vmatpush1.bf16.msra.mxu1 %v7281_v3  ;;  %v7359_v3 = vld [vmem:[%s8591_s24 + $0x350] ss:$8 sps:$4 sm:$0xff]  }
 0x35c   : > { %5751 = vmatpush1.bf16.msra.mxu0 %v7284_v4  ;;  %5506 = vmatprep.subr.bf16.mxu1 %v7289_v5  ;;  %v7362_v4 = vld [vmem:[%s8591_s24 + $0x950] ss:$8 sps:$4 sm:$0xff]   ;;  %v7367_v5 = vld [vmem:[%s8591_s24 + $0x364] ss:$8 sps:$4 sm:$0xff]  }
 0x35d   : > { %5752 = vmatprep.subr.bf16.mxu0 %v7292_v52  ;;  %v7370_v52 = vld [vmem:[%s8591_s24 + $0x964] ss:$8 sps:$4 sm:$0xff]  }
 0x35f   : > { %5507 = vmatpush1.bf16.msra.mxu1 %v7287_v13  ;;  %v7365_v13 = vld [vmem:[%s8591_s24 + $0x360] ss:$8 sps:$4 sm:$0xff]  }
 0x360   : > { %5753 = vmatpush1.bf16.msra.mxu0 %v7290_v15  ;;  %5508 = vmatprep.subr.bf16.mxu1 %v7295_v7  ;;  %v7368_v15 = vld [vmem:[%s8591_s24 + $0x960] ss:$8 sps:$4 sm:$0xff]   ;;  %v7373_v7 = vld [vmem:[%s8591_s24 + $0x374] ss:$8 sps:$4 sm:$0xff]  }
 0x361   : > { %5754 = vmatprep.subr.bf16.mxu0 %v7298_v10  ;;  %v7376_v10 = vld [vmem:[%s8591_s24 + $0x974] ss:$8 sps:$4 sm:$0xff]  }
 0x363   : > { %5509 = vmatpush1.bf16.msra.mxu1 %v7293_v11  ;;  %v7371_v11 = vld [vmem:[%s8591_s24 + $0x370] ss:$8 sps:$4 sm:$0xff]  }
 0x364   : > { %5755 = vmatpush1.bf16.msra.mxu0 %v7296_v12  ;;  %5510 = vmatprep.subr.bf16.mxu1 %v7301_v54  ;;  %v7374_v12 = vld [vmem:[%s8591_s24 + $0x970] ss:$8 sps:$4 sm:$0xff]   ;;  %v7379_v54 = vld [vmem:[%s8591_s24 + $0x384] ss:$8 sps:$4 sm:$0xff]  }
 0x365   : > { %5756 = vmatprep.subr.bf16.mxu0 %v7304_v14  ;;  %v7382_v14 = vld [vmem:[%s8591_s24 + $0x984] ss:$8 sps:$4 sm:$0xff]  }
 0x367   : > { %5511 = vmatpush1.bf16.msra.mxu1 %v7299_v16  ;;  %v7377_v16 = vld [vmem:[%s8591_s24 + $0x380] ss:$8 sps:$4 sm:$0xff]  }
 0x368   : > { %5757 = vmatpush1.bf16.msra.mxu0 %v7302_v22  ;;  %5512 = vmatprep.subr.bf16.mxu1 %v7307_v18  ;;  %v7380_v22 = vld [vmem:[%s8591_s24 + $0x980] ss:$8 sps:$4 sm:$0xff]   ;;  %v7385_v18 = vld [vmem:[%s8591_s24 + $0x394] ss:$8 sps:$4 sm:$0xff]  }
 0x369   : > { %5758 = vmatprep.subr.bf16.mxu0 %v7310_v19  ;;  %v7388_v19 = vld [vmem:[%s8591_s24 + $0x994] ss:$8 sps:$4 sm:$0xff]  }
 0x36b   : > { %5513 = vmatpush1.bf16.msra.mxu1 %v7305_v20  ;;  %v7383_v20 = vld [vmem:[%s8591_s24 + $0x390] ss:$8 sps:$4 sm:$0xff]  }
 0x36c   : > { %5759 = vmatpush1.bf16.msra.mxu0 %v7308_v21  ;;  %5514 = vmatprep.subr.bf16.mxu1 %v7313_v23  ;;  %v7386_v21 = vld [vmem:[%s8591_s24 + $0x990] ss:$8 sps:$4 sm:$0xff]   ;;  %v7391_v23 = vld [vmem:[%s8591_s24 + $0x3a4] ss:$8 sps:$4 sm:$0xff]  }
 0x36d   : > { %5760 = vmatprep.subr.bf16.mxu0 %v7316_v24  ;;  %v7394_v24 = vld [vmem:[%s8591_s24 + $0x9a4] ss:$8 sps:$4 sm:$0xff]  }
 0x36f   : > { %5515 = vmatpush1.bf16.msra.mxu1 %v7311_v17  ;;  %v7389_v17 = vld [vmem:[%s8591_s24 + $0x3a0] ss:$8 sps:$4 sm:$0xff]  }
 0x370   : > { %5761 = vmatpush1.bf16.msra.mxu0 %v7314_v25  ;;  %5516 = vmatprep.subr.bf16.mxu1 %v7319_v26  ;;  %v7392_v25 = vld [vmem:[%s8591_s24 + $0x9a0] ss:$8 sps:$4 sm:$0xff]   ;;  %v7397_v26 = vld [vmem:[%s8591_s24 + $0x3b4] ss:$8 sps:$4 sm:$0xff]  }
 0x371   : > { %5762 = vmatprep.subr.bf16.mxu0 %v7322_v27  ;;  %v7400_v27 = vld [vmem:[%s8591_s24 + $0x9b4] ss:$8 sps:$4 sm:$0xff]  }
 0x373   : > { %5517 = vmatpush1.bf16.msra.mxu1 %v7317_v9  ;;  %v7403_v9 = vld [vmem:[%s8591_s24 + $0x3c4] ss:$8 sps:$4 sm:$0xff]  }
 0x374   : > { %5763 = vmatpush1.bf16.msra.mxu0 %v7320_v34  ;;  %5518 = vmatprep.subr.bf16.mxu1 %v7325_v30  ;;  %v7406_v34 = vld [vmem:[%s8591_s24 + $0x9c4] ss:$8 sps:$4 sm:$0xff]   ;;  %v7401_v30 = vld [vmem:[%s8591_s24 + $0x3c0] ss:$8 sps:$4 sm:$0xff]  }
 0x375   : > { %5764 = vmatprep.subr.bf16.mxu0 %v7328_v36  ;;  %v7404_v36 = vld [vmem:[%s8591_s24 + $0x9c0] ss:$8 sps:$4 sm:$0xff]  }
 0x377   : > { %5519 = vmatpush1.bf16.msra.mxu1 %v7323_v39  ;;  %v7409_v39 = vld [vmem:[%s8591_s24 + $0x3d4] ss:$8 sps:$4 sm:$0xff]  }
 0x378   : > { %5765 = vmatpush1.bf16.msra.mxu0 %v7326_v8  ;;  %5529 = vmatprep.subr.bf16.mxu1 %v7331_v29  ;;  %v7412_v8 = vld [vmem:[%s8591_s24 + $0x9d4] ss:$8 sps:$4 sm:$0xff]   ;;  %v7407_v29 = vld [vmem:[%s8591_s24 + $0x3d0] ss:$8 sps:$4 sm:$0xff]  }
 0x379   : > { %5775 = vmatprep.subr.bf16.mxu0 %v7334_v40  ;;  %v7410_v40 = vld [vmem:[%s8591_s24 + $0x9d0] ss:$8 sps:$4 sm:$0xff]  }
 0x37a   : > { %5521 = vmatmul.mubr.bf16.vlgmr.msra.gmra.mrb[0].mxu1 %v3017_v48  ;;  %v7413_v48 = vld [vmem:[%s8591_s24 + $0x3e0] ss:$8 sps:$4 sm:$0xff]  }
 0x37b   : > { %5767 = vmatmul.mubr.bf16.vlgmr.msra.gmra.mrb[0].mxu0 %v3029_v38  ;;  %5530 = vmatpush1.bf16.msra.mxu1 %v7329_v45  ;;  %v9530_v45 = vld [vmem:[#allocation2 + $0x10] sm:$0xff] }
 0x37c   : > { %5776 = vmatpush1.bf16.msra.mxu0 %v7332_v47  ;;  %5531 = vmatprep.subr.bf16.mxu1 %v7337_v50  ;;  %v9532_v47 = vld [vmem:[#allocation2 + $0x28] sm:$0xff]  ;;  %v7416_v38 = vld [vmem:[%s8591_s24 + $0x9e0] ss:$8 sps:$4 sm:$0xff]  }
 0x37d   : > { %5777 = vmatprep.subr.bf16.mxu0 %v7340_v51  ;;  %5561 = vmatprep.mubr.bf16.mxu1 %v3020_v53  ;;  %v7421_v50 = vld [vmem:[%s8591_s24 + $0x3f4] ss:$8 sps:$4 sm:$0xff]   ;;  %v9540_v53 = vrot.slane %v9530_v45, %v9266_v44 }
 0x37e   : > { %5807 = vmatprep.mubr.bf16.mxu0 %v3032_v55  ;;  %v7424_v51 = vld [vmem:[%s8591_s24 + $0x9f4] ss:$8 sps:$4 sm:$0xff]   ;;  %v9544_v55 = vrot.slane %v9532_v47, %v9266_v44 }
 0x37f   : > { %5532 = vmatpush1.bf16.msra.mxu1 %v7335_v56  ;;  %v7419_v56 = vld [vmem:[%s8591_s24 + $0x3f0] ss:$8 sps:$4 sm:$0xff]  }
 0x380   : > { %5778 = vmatpush1.bf16.msra.mxu0 %v7338_v33  ;;  %5533 = vmatprep.subr.bf16.mxu1 %v7343_v35  ;;  %v7422_v33 = vld [vmem:[%s8591_s24 + $0x9f0] ss:$8 sps:$4 sm:$0xff]   ;;  %v7428_v35 = vld [vmem:[%s8591_s24 + $0x404] ss:$8 sps:$4 sm:$0xff]  }
 0x381   : > { %5779 = vmatprep.subr.bf16.mxu0 %v7346_v41  ;;  %v7432_v41 = vld [vmem:[%s8591_s24 + $0xa04] ss:$8 sps:$4 sm:$0xff]  }
 0x383   : > { %5534 = vmatpush1.bf16.msra.mxu1 %v7341_v57  ;;  %v2928_v57 = vcombine.high %v9540_v53, %v9540_v53 }
 0x384   : > { %5780 = vmatpush1.bf16.msra.mxu0 %v7344_v58  ;;  %5535 = vmatprep.subr.bf16.mxu1 %v7349_v60  ;;  %v2979_v58 = vcombine.high %v9544_v55, %v9544_v55  ;;  %v3019_v60 = vpack.c.bf16 %v9457_v49, %v9457_v49  ;;  %v7436_v49 = vld [vmem:[%s8591_s24 + $0xa10] ss:$8 sps:$4 sm:$0xff]  }
 0x385   : > { %5781 = vmatprep.subr.bf16.mxu0 %v7352_v61  ;;  %v3031_v61 = vpack.c.bf16 %v9460_v31, %v9460_v31  ;;  %v7441_v31 = vld [vmem:[%s8591_s24 + $0x424] ss:$8 sps:$4 sm:$0xff]  }
 0x387   : > { %5536 = vmatpush1.bf16.msra.mxu1 %v7347_v59  ;;  %v7426_v59 = vld [vmem:[%s8591_s24 + $0x400] ss:$8 sps:$4 sm:$0xff]  }
 0x388   : > { %5782 = vmatpush1.bf16.msra.mxu0 %v7350_v6  ;;  %5537 = vmatprep.subr.bf16.mxu1 %v7355_v62  ;;  %v7430_v6 = vld [vmem:[%s8591_s24 + $0xa00] ss:$8 sps:$4 sm:$0xff]   ;;  %v7435_v62 = vld [vmem:[%s8591_s24 + $0x414] ss:$8 sps:$4 sm:$0xff]  }
 0x389   : > { %5783 = vmatprep.subr.bf16.mxu0 %v7358_v46  ;;  %v7438_v46 = vld [vmem:[%s8591_s24 + $0xa14] ss:$8 sps:$4 sm:$0xff]  }
 0x38b   : > { %5538 = vmatpush1.bf16.msra.mxu1 %v7353_v0  ;;  %v7433_v0 = vld [vmem:[%s8591_s24 + $0x410] ss:$8 sps:$4 sm:$0xff]  }
 0x38c   : > { %5784 = vmatpush1.bf16.msra.mxu0 %v7356_v63  ;;  %5539 = vmatprep.subr.bf16.mxu1 %v7361_v1  ;;  %v3022_v63 = vpack.c.bf16 %v2928_v57, %v2928_v57  ;;  %v3034_v1 = vpack.c.bf16 %v2979_v58, %v2979_v58  ;;  %v7505_v57 = vld [vmem:[%s8591_s24 + $0x4d0] ss:$8 sps:$4 sm:$0xff]  }
 0x38d   : > { %5785 = vmatprep.subr.bf16.mxu0 %v7364_v2  ;;  %v7444_v2 = vld [vmem:[%s8591_s24 + $0xa24] ss:$8 sps:$4 sm:$0xff]   ;;  %v7508_v58 = vld [vmem:[%s8591_s24 + $0xad0] ss:$8 sps:$4 sm:$0xff]  }
 0x38f   : > { %5540 = vmatpush1.bf16.msra.mxu1 %v7359_v3  ;;  %v7439_v3 = vld [vmem:[%s8591_s24 + $0x420] ss:$8 sps:$4 sm:$0xff]  }
 0x390   : > { %5786 = vmatpush1.bf16.msra.mxu0 %v7362_v4  ;;  %5541 = vmatprep.subr.bf16.mxu1 %v7367_v5  ;;  %v7442_v4 = vld [vmem:[%s8591_s24 + $0xa20] ss:$8 sps:$4 sm:$0xff]   ;;  %v7447_v5 = vld [vmem:[%s8591_s24 + $0x434] ss:$8 sps:$4 sm:$0xff]  }
 0x391   : > { %5787 = vmatprep.subr.bf16.mxu0 %v7370_v52  ;;  %v7450_v52 = vld [vmem:[%s8591_s24 + $0xa34] ss:$8 sps:$4 sm:$0xff]  }
 0x393   : > { %5542 = vmatpush1.bf16.msra.mxu1 %v7365_v13  ;;  %v7445_v13 = vld [vmem:[%s8591_s24 + $0x430] ss:$8 sps:$4 sm:$0xff]  }
 0x394   : > { %5788 = vmatpush1.bf16.msra.mxu0 %v7368_v15  ;;  %5543 = vmatprep.subr.bf16.mxu1 %v7373_v7  ;;  %v7448_v15 = vld [vmem:[%s8591_s24 + $0xa30] ss:$8 sps:$4 sm:$0xff]   ;;  %v7453_v7 = vld [vmem:[%s8591_s24 + $0x444] ss:$8 sps:$4 sm:$0xff]  }
 0x395   : > { %5789 = vmatprep.subr.bf16.mxu0 %v7376_v10  ;;  %v7456_v10 = vld [vmem:[%s8591_s24 + $0xa44] ss:$8 sps:$4 sm:$0xff]  }
 0x397   : > { %5544 = vmatpush1.bf16.msra.mxu1 %v7371_v11  ;;  %v7451_v11 = vld [vmem:[%s8591_s24 + $0x440] ss:$8 sps:$4 sm:$0xff]  }
 0x398   : > { %5790 = vmatpush1.bf16.msra.mxu0 %v7374_v12  ;;  %5545 = vmatprep.subr.bf16.mxu1 %v7379_v54  ;;  %v7454_v12 = vld [vmem:[%s8591_s24 + $0xa40] ss:$8 sps:$4 sm:$0xff]   ;;  %v7459_v54 = vld [vmem:[%s8591_s24 + $0x454] ss:$8 sps:$4 sm:$0xff]  }
 0x399   : > { %5791 = vmatprep.subr.bf16.mxu0 %v7382_v14  ;;  %v7462_v14 = vld [vmem:[%s8591_s24 + $0xa54] ss:$8 sps:$4 sm:$0xff]  }
 0x39b   : > { %5546 = vmatpush1.bf16.msra.mxu1 %v7377_v16  ;;  %v7457_v16 = vld [vmem:[%s8591_s24 + $0x450] ss:$8 sps:$4 sm:$0xff]  }
 0x39c   : > { %5792 = vmatpush1.bf16.msra.mxu0 %v7380_v22  ;;  %5547 = vmatprep.subr.bf16.mxu1 %v7385_v18  ;;  %v7460_v22 = vld [vmem:[%s8591_s24 + $0xa50] ss:$8 sps:$4 sm:$0xff]   ;;  %v7465_v18 = vld [vmem:[%s8591_s24 + $0x464] ss:$8 sps:$4 sm:$0xff]  }
 0x39d   : > { %5793 = vmatprep.subr.bf16.mxu0 %v7388_v19  ;;  %v7468_v19 = vld [vmem:[%s8591_s24 + $0xa64] ss:$8 sps:$4 sm:$0xff]  }
 0x39f   : > { %5548 = vmatpush1.bf16.msra.mxu1 %v7383_v20  ;;  %v7463_v20 = vld [vmem:[%s8591_s24 + $0x460] ss:$8 sps:$4 sm:$0xff]  }
 0x3a0   : > { %5794 = vmatpush1.bf16.msra.mxu0 %v7386_v21  ;;  %5549 = vmatprep.subr.bf16.mxu1 %v7391_v23  ;;  %v7466_v21 = vld [vmem:[%s8591_s24 + $0xa60] ss:$8 sps:$4 sm:$0xff]   ;;  %v7471_v23 = vld [vmem:[%s8591_s24 + $0x474] ss:$8 sps:$4 sm:$0xff]  }
 0x3a1   : > { %5795 = vmatprep.subr.bf16.mxu0 %v7394_v24  ;;  %v7474_v24 = vld [vmem:[%s8591_s24 + $0xa74] ss:$8 sps:$4 sm:$0xff]  }
 0x3a3   : > { %5550 = vmatpush1.bf16.msra.mxu1 %v7389_v17  ;;  %v7469_v17 = vld [vmem:[%s8591_s24 + $0x470] ss:$8 sps:$4 sm:$0xff]  }
 0x3a4   : > { %5796 = vmatpush1.bf16.msra.mxu0 %v7392_v25  ;;  %5551 = vmatprep.subr.bf16.mxu1 %v7397_v26  ;;  %v7472_v25 = vld [vmem:[%s8591_s24 + $0xa70] ss:$8 sps:$4 sm:$0xff]   ;;  %v7477_v26 = vld [vmem:[%s8591_s24 + $0x484] ss:$8 sps:$4 sm:$0xff]  }
 0x3a5   : > { %5797 = vmatprep.subr.bf16.mxu0 %v7400_v27  ;;  %v7480_v27 = vld [vmem:[%s8591_s24 + $0xa84] ss:$8 sps:$4 sm:$0xff]  }
 0x3a7   : > { %5552 = vmatpush1.bf16.msra.mxu1 %v7395_v28  ;;  %v7475_v28 = vld [vmem:[%s8591_s24 + $0x480] ss:$8 sps:$4 sm:$0xff]  }
 0x3a8   : > { %5798 = vmatpush1.bf16.msra.mxu0 %v7398_v32  ;;  %5553 = vmatprep.subr.bf16.mxu1 %v7403_v9  ;;  %v7478_v32 = vld [vmem:[%s8591_s24 + $0xa80] ss:$8 sps:$4 sm:$0xff]   ;;  %v7483_v9 = vld [vmem:[%s8591_s24 + $0x494] ss:$8 sps:$4 sm:$0xff]  }
 0x3a9   : > { %5799 = vmatprep.subr.bf16.mxu0 %v7406_v34  ;;  %v7486_v34 = vld [vmem:[%s8591_s24 + $0xa94] ss:$8 sps:$4 sm:$0xff]  }
 0x3ab   : > { %5554 = vmatpush1.bf16.msra.mxu1 %v7401_v30  ;;  %v7481_v30 = vld [vmem:[%s8591_s24 + $0x490] ss:$8 sps:$4 sm:$0xff]  }
 0x3ac   : > { %5800 = vmatpush1.bf16.msra.mxu0 %v7404_v36  ;;  %5555 = vmatprep.subr.bf16.mxu1 %v7409_v39  ;;  %v7484_v36 = vld [vmem:[%s8591_s24 + $0xa90] ss:$8 sps:$4 sm:$0xff]   ;;  %v7489_v39 = vld [vmem:[%s8591_s24 + $0x4a4] ss:$8 sps:$4 sm:$0xff]  }
 0x3ad   : > { %5801 = vmatprep.subr.bf16.mxu0 %v7412_v8  ;;  %v7492_v8 = vld [vmem:[%s8591_s24 + $0xaa4] ss:$8 sps:$4 sm:$0xff]  }
 0x3af   : > { %5556 = vmatpush1.bf16.msra.mxu1 %v7407_v29  ;;  %v7487_v29 = vld [vmem:[%s8591_s24 + $0x4a0] ss:$8 sps:$4 sm:$0xff]  }
 0x3b0   : > { %5802 = vmatpush1.bf16.msra.mxu0 %v7410_v40  ;;  %5557 = vmatprep.subr.bf16.mxu1 %v7415_v42  ;;  %v7490_v40 = vld [vmem:[%s8591_s24 + $0xaa0] ss:$8 sps:$4 sm:$0xff]   ;;  %v7495_v42 = vld [vmem:[%s8591_s24 + $0x4b4] ss:$8 sps:$4 sm:$0xff]  }
 0x3b1   : > { %5803 = vmatprep.subr.bf16.mxu0 %v7418_v43  ;;  %v7498_v43 = vld [vmem:[%s8591_s24 + $0xab4] ss:$8 sps:$4 sm:$0xff]  }
 0x3b3   : > { %5558 = vmatpush1.bf16.msra.mxu1 %v7413_v48  ;;  %v7493_v48 = vld [vmem:[%s8591_s24 + $0x4b0] ss:$8 sps:$4 sm:$0xff]  }
 0x3b4   : > { %5804 = vmatpush1.bf16.msra.mxu0 %v7416_v38  ;;  %5559 = vmatprep.subr.bf16.mxu1 %v7421_v50  ;;  %v7496_v38 = vld [vmem:[%s8591_s24 + $0xab0] ss:$8 sps:$4 sm:$0xff]   ;;  %v7501_v50 = vld [vmem:[%s8591_s24 + $0x4c4] ss:$8 sps:$4 sm:$0xff]  }
 0x3b5   : > { %5805 = vmatprep.subr.bf16.mxu0 %v7424_v51  ;;  %v7504_v51 = vld [vmem:[%s8591_s24 + $0xac4] ss:$8 sps:$4 sm:$0xff]  }
 0x3b7   : > { %5560 = vmatpush1.bf16.msra.mxu1 %v7419_v56  ;;  %v7499_v56 = vld [vmem:[%s8591_s24 + $0x4c0] ss:$8 sps:$4 sm:$0xff]  }
 0x3b8   : > { %5806 = vmatpush1.bf16.msra.mxu0 %v7422_v33  ;;  %5570 = vmatprep.subr.bf16.mxu1 %v7428_v35  ;;  %v7502_v33 = vld [vmem:[%s8591_s24 + $0xac0] ss:$8 sps:$4 sm:$0xff]   ;;  %v7507_v35 = vld [vmem:[%s8591_s24 + $0x4d4] ss:$8 sps:$4 sm:$0xff]  }
 0x3b9   : > { %5816 = vmatprep.subr.bf16.mxu0 %v7432_v41  ;;  %v7510_v41 = vld [vmem:[%s8591_s24 + $0xad4] ss:$8 sps:$4 sm:$0xff]  }
 0x3ba   : > { %5562 = vmatmul.mubr.bf16.vlgmr.msra.gmra.mrb[0].mxu1 %v3019_v60  ;;  %v7513_v60 = vld [vmem:[%s8591_s24 + $0x4e4] ss:$8 sps:$4 sm:$0xff]  }
 0x3bb   : > { %5808 = vmatmul.mubr.bf16.vlgmr.msra.gmra.mrb[0].mxu0 %v3031_v61  ;;  %5571 = vmatpush1.bf16.msra.mxu1 %v7426_v59  ;;  %v7516_v61 = vld [vmem:[%s8591_s24 + $0xae4] ss:$8 sps:$4 sm:$0xff]   ;;  %v2913_v59 = vcombine.high %v9530_v45, %v9530_v45  ;;  %v7517_v45 = vld [vmem:[%s8591_s24 + $0x4f0] ss:$8 sps:$4 sm:$0xff]  }
 0x3bc   : > { %5817 = vmatpush1.bf16.msra.mxu0 %v7430_v6  ;;  %5572 = vmatprep.subr.bf16.mxu1 %v7435_v62  ;;  %v2964_v6 = vcombine.high %v9532_v47, %v9532_v47  ;;  %v7511_v62 = vld [vmem:[%s8591_s24 + $0x4e0] ss:$8 sps:$4 sm:$0xff]   ;;  %v7520_v47 = vld [vmem:[%s8591_s24 + $0xaf0] ss:$8 sps:$4 sm:$0xff]  }
 0x3bd   : > { %5818 = vmatprep.subr.bf16.mxu0 %v7438_v46  ;;  %5602 = vmatprep.mubr.bf16.mxu1 %v3022_v63  ;;  %v7514_v46 = vld [vmem:[%s8591_s24 + $0xae0] ss:$8 sps:$4 sm:$0xff]   ;;  %v7522_v63 = vld [vmem:[%s8591_s24 + $0xaf4] ss:$8 sps:$4 sm:$0xff]  }
 0x3be   : > { %5848 = vmatprep.mubr.bf16.mxu0 %v3034_v1  ;;  %v9623_v1 = vrot.slane %v2913_v59, %v9266_v44  ;;  %v7592_v59 = vld [vmem:[%s8591_s24 + $0xbb0] ss:$8 sps:$4 sm:$0xff]  }
 0x3bf   : > { %5573 = vmatpush1.bf16.msra.mxu1 %v7433_v0  ;;  %v7519_v0 = vld [vmem:[%s8591_s24 + $0x4f4] ss:$8 sps:$4 sm:$0xff]  }
 0x3c0   : > { %5819 = vmatpush1.bf16.msra.mxu0 %v7436_v49  ;;  %5574 = vmatprep.subr.bf16.mxu1 %v7441_v31  ;;  %v9626_v49 = vrot.slane %v2964_v6, %v9266_v44  ;;  %v7525_v31 = vld [vmem:[%s8591_s24 + $0x504] ss:$8 sps:$4 sm:$0xff]   ;;  %v3021_v44 = vpack.c.bf16 %v9540_v53, %v9540_v53  ;;  %v7529_v53 = vld [vmem:[%s8591_s24 + $0x510] ss:$8 sps:$4 sm:$0xff]  }
 0x3c1   : > { %5820 = vmatprep.subr.bf16.mxu0 %v7444_v2  ;;  %v7528_v2 = vld [vmem:[%s8591_s24 + $0xb04] ss:$8 sps:$4 sm:$0xff]  }
 0x3c2   : > { %v7597_v6 = vld [vmem:[%s8591_s24 + $0x5c4] ss:$8 sps:$4 sm:$0xff]  }
 0x3c3   : > { %5575 = vmatpush1.bf16.msra.mxu1 %v7439_v3  ;;  %v2929_v3 = vcombine.high %v9623_v1, %v9623_v1 }
 0x3c4   : > { %5821 = vmatpush1.bf16.msra.mxu0 %v7442_v4  ;;  %5576 = vmatprep.subr.bf16.mxu1 %v7447_v5  ;;  %v2980_v4 = vcombine.high %v9626_v49, %v9626_v49  ;;  %v3033_v5 = vpack.c.bf16 %v9544_v55, %v9544_v55  ;;  %v7532_v55 = vld [vmem:[%s8591_s24 + $0xb10] ss:$8 sps:$4 sm:$0xff]  }
 0x3c5   : > { %5822 = vmatprep.subr.bf16.mxu0 %v7450_v52  ;;  %v7523_v52 = vld [vmem:[%s8591_s24 + $0x500] ss:$8 sps:$4 sm:$0xff]  }
 0x3c7   : > { %5577 = vmatpush1.bf16.msra.mxu1 %v7445_v13  ;;  %v7526_v13 = vld [vmem:[%s8591_s24 + $0xb00] ss:$8 sps:$4 sm:$0xff]  }
 0x3c8   : > { %5823 = vmatpush1.bf16.msra.mxu0 %v7448_v15  ;;  %5578 = vmatprep.subr.bf16.mxu1 %v7453_v7  ;;  %v7531_v15 = vld [vmem:[%s8591_s24 + $0x514] ss:$8 sps:$4 sm:$0xff]  }
 0x3c9   : > { %5824 = vmatprep.subr.bf16.mxu0 %v7456_v10  ;;  %v7534_v7 = vld [vmem:[%s8591_s24 + $0xb14] ss:$8 sps:$4 sm:$0xff]   ;;  %v3024_v10 = vpack.c.bf16 %v2929_v3, %v2929_v3  ;;  %v7612_v3 = vld [vmem:[%s8591_s24 + $0xbe4] ss:$8 sps:$4 sm:$0xff]  }
 0x3cb   : > { %5579 = vmatpush1.bf16.msra.mxu1 %v7451_v11  ;;  %v3036_v11 = vpack.c.bf16 %v2980_v4, %v2980_v4  ;;  %v7607_v4 = vld [vmem:[%s8591_s24 + $0x5e0] ss:$8 sps:$4 sm:$0xff]  }
 0x3cc   : > { %5825 = vmatpush1.bf16.msra.mxu0 %v7454_v12  ;;  %5580 = vmatprep.subr.bf16.mxu1 %v7459_v54  ;;  %v7537_v12 = vld [vmem:[%s8591_s24 + $0x524] ss:$8 sps:$4 sm:$0xff]  }
 0x3cd   : > { %5826 = vmatprep.subr.bf16.mxu0 %v7462_v14  ;;  %v7540_v54 = vld [vmem:[%s8591_s24 + $0xb24] ss:$8 sps:$4 sm:$0xff]   ;;  %v7535_v14 = vld [vmem:[%s8591_s24 + $0x520] ss:$8 sps:$4 sm:$0xff]  }
 0x3cf   : > { %5581 = vmatpush1.bf16.msra.mxu1 %v7457_v16  ;;  %v7538_v16 = vld [vmem:[%s8591_s24 + $0xb20] ss:$8 sps:$4 sm:$0xff]  }
 0x3d0   : > { %5827 = vmatpush1.bf16.msra.mxu0 %v7460_v22  ;;  %5582 = vmatprep.subr.bf16.mxu1 %v7465_v18  ;;  %v7543_v22 = vld [vmem:[%s8591_s24 + $0x534] ss:$8 sps:$4 sm:$0xff]  }
 0x3d1   : > { %5828 = vmatprep.subr.bf16.mxu0 %v7468_v19  ;;  %v7546_v18 = vld [vmem:[%s8591_s24 + $0xb34] ss:$8 sps:$4 sm:$0xff]   ;;  %v7541_v19 = vld [vmem:[%s8591_s24 + $0x530] ss:$8 sps:$4 sm:$0xff]  }
 0x3d3   : > { %5583 = vmatpush1.bf16.msra.mxu1 %v7463_v20  ;;  %v7544_v20 = vld [vmem:[%s8591_s24 + $0xb30] ss:$8 sps:$4 sm:$0xff]  }
 0x3d4   : > { %5829 = vmatpush1.bf16.msra.mxu0 %v7466_v21  ;;  %5584 = vmatprep.subr.bf16.mxu1 %v7471_v23  ;;  %v7549_v21 = vld [vmem:[%s8591_s24 + $0x544] ss:$8 sps:$4 sm:$0xff]  }
 0x3d5   : > { %5830 = vmatprep.subr.bf16.mxu0 %v7474_v24  ;;  %v7552_v23 = vld [vmem:[%s8591_s24 + $0xb44] ss:$8 sps:$4 sm:$0xff]   ;;  %v7547_v24 = vld [vmem:[%s8591_s24 + $0x540] ss:$8 sps:$4 sm:$0xff]  }
 0x3d7   : > { %5585 = vmatpush1.bf16.msra.mxu1 %v7469_v17  ;;  %v7550_v17 = vld [vmem:[%s8591_s24 + $0xb40] ss:$8 sps:$4 sm:$0xff]  }
 0x3d8   : > { %5831 = vmatpush1.bf16.msra.mxu0 %v7472_v25  ;;  %5586 = vmatprep.subr.bf16.mxu1 %v7477_v26  ;;  %v7555_v25 = vld [vmem:[%s8591_s24 + $0x554] ss:$8 sps:$4 sm:$0xff]  }
 0x3d9   : > { %5832 = vmatprep.subr.bf16.mxu0 %v7480_v27  ;;  %v7558_v26 = vld [vmem:[%s8591_s24 + $0xb54] ss:$8 sps:$4 sm:$0xff]   ;;  %v7553_v27 = vld [vmem:[%s8591_s24 + $0x550] ss:$8 sps:$4 sm:$0xff]  }
 0x3db   : > { %5587 = vmatpush1.bf16.msra.mxu1 %v7475_v28  ;;  %v7556_v28 = vld [vmem:[%s8591_s24 + $0xb50] ss:$8 sps:$4 sm:$0xff]  }
 0x3dc   : > { %5833 = vmatpush1.bf16.msra.mxu0 %v7478_v32  ;;  %5588 = vmatprep.subr.bf16.mxu1 %v7483_v9  ;;  %v7561_v32 = vld [vmem:[%s8591_s24 + $0x564] ss:$8 sps:$4 sm:$0xff]  }
 0x3dd   : > { %5834 = vmatprep.subr.bf16.mxu0 %v7486_v34  ;;  %v7564_v9 = vld [vmem:[%s8591_s24 + $0xb64] ss:$8 sps:$4 sm:$0xff]   ;;  %v7559_v34 = vld [vmem:[%s8591_s24 + $0x560] ss:$8 sps:$4 sm:$0xff]  }
 0x3df   : > { %5589 = vmatpush1.bf16.msra.mxu1 %v7481_v30  ;;  %v7562_v30 = vld [vmem:[%s8591_s24 + $0xb60] ss:$8 sps:$4 sm:$0xff]  }
 0x3e0   : > { %5835 = vmatpush1.bf16.msra.mxu0 %v7484_v36  ;;  %5590 = vmatprep.subr.bf16.mxu1 %v7489_v39  ;;  %v7567_v36 = vld [vmem:[%s8591_s24 + $0x574] ss:$8 sps:$4 sm:$0xff]  }
 0x3e1   : > { %5836 = vmatprep.subr.bf16.mxu0 %v7492_v8  ;;  %v7570_v39 = vld [vmem:[%s8591_s24 + $0xb74] ss:$8 sps:$4 sm:$0xff]   ;;  %v7565_v8 = vld [vmem:[%s8591_s24 + $0x570] ss:$8 sps:$4 sm:$0xff]  }
 0x3e3   : > { %5591 = vmatpush1.bf16.msra.mxu1 %v7487_v29  ;;  %v7568_v29 = vld [vmem:[%s8591_s24 + $0xb70] ss:$8 sps:$4 sm:$0xff]  }
 0x3e4   : > { %5837 = vmatpush1.bf16.msra.mxu0 %v7490_v40  ;;  %5592 = vmatprep.subr.bf16.mxu1 %v7495_v42  ;;  %v7573_v40 = vld [vmem:[%s8591_s24 + $0x584] ss:$8 sps:$4 sm:$0xff]  }
 0x3e5   : > { %5838 = vmatprep.subr.bf16.mxu0 %v7498_v43  ;;  %v7576_v42 = vld [vmem:[%s8591_s24 + $0xb84] ss:$8 sps:$4 sm:$0xff]   ;;  %v7571_v43 = vld [vmem:[%s8591_s24 + $0x580] ss:$8 sps:$4 sm:$0xff]  }
 0x3e7   : > { %5593 = vmatpush1.bf16.msra.mxu1 %v7493_v48  ;;  %v7574_v48 = vld [vmem:[%s8591_s24 + $0xb80] ss:$8 sps:$4 sm:$0xff]  }
 0x3e8   : > { %5839 = vmatpush1.bf16.msra.mxu0 %v7496_v38  ;;  %5594 = vmatprep.subr.bf16.mxu1 %v7501_v50  ;;  %v7579_v38 = vld [vmem:[%s8591_s24 + $0x594] ss:$8 sps:$4 sm:$0xff]  }
 0x3e9   : > { %5840 = vmatprep.subr.bf16.mxu0 %v7504_v51  ;;  %v7582_v50 = vld [vmem:[%s8591_s24 + $0xb94] ss:$8 sps:$4 sm:$0xff]   ;;  %v7577_v51 = vld [vmem:[%s8591_s24 + $0x590] ss:$8 sps:$4 sm:$0xff]  }
 0x3eb   : > { %5595 = vmatpush1.bf16.msra.mxu1 %v7499_v56  ;;  %v7580_v56 = vld [vmem:[%s8591_s24 + $0xb90] ss:$8 sps:$4 sm:$0xff]  }
 0x3ec   : > { %5841 = vmatpush1.bf16.msra.mxu0 %v7502_v33  ;;  %5596 = vmatprep.subr.bf16.mxu1 %v7507_v35  ;;  %v7585_v33 = vld [vmem:[%s8591_s24 + $0x5a4] ss:$8 sps:$4 sm:$0xff]  }
 0x3ed   : > { %5842 = vmatprep.subr.bf16.mxu0 %v7510_v41  ;;  %v7588_v35 = vld [vmem:[%s8591_s24 + $0xba4] ss:$8 sps:$4 sm:$0xff]   ;;  %v7583_v41 = vld [vmem:[%s8591_s24 + $0x5a0] ss:$8 sps:$4 sm:$0xff]  }
 0x3ef   : > { %5597 = vmatpush1.bf16.msra.mxu1 %v7505_v57  ;;  %v7586_v57 = vld [vmem:[%s8591_s24 + $0xba0] ss:$8 sps:$4 sm:$0xff]  }
 0x3f0   : > { %5843 = vmatpush1.bf16.msra.mxu0 %v7508_v58  ;;  %5598 = vmatprep.subr.bf16.mxu1 %v7513_v60  ;;  %v7591_v58 = vld [vmem:[%s8591_s24 + $0x5b4] ss:$8 sps:$4 sm:$0xff]  }
 0x3f1   : > { %5844 = vmatprep.subr.bf16.mxu0 %v7516_v61  ;;  %v7594_v60 = vld [vmem:[%s8591_s24 + $0xbb4] ss:$8 sps:$4 sm:$0xff]   ;;  %v7589_v61 = vld [vmem:[%s8591_s24 + $0x5b0] ss:$8 sps:$4 sm:$0xff]  }
 0x3f3   : > { %5599 = vmatpush1.bf16.msra.mxu1 %v7511_v62  ;;  %v7600_v62 = vld [vmem:[%s8591_s24 + $0xbc4] ss:$8 sps:$4 sm:$0xff]  }
 0x3f4   : > { %5845 = vmatpush1.bf16.msra.mxu0 %v7514_v46  ;;  %5600 = vmatprep.subr.bf16.mxu1 %v7519_v0  ;;  %v7595_v46 = vld [vmem:[%s8591_s24 + $0x5c0] ss:$8 sps:$4 sm:$0xff]  }
 0x3f5   : > { %5846 = vmatprep.subr.bf16.mxu0 %v7522_v63  ;;  %v7598_v0 = vld [vmem:[%s8591_s24 + $0xbc0] ss:$8 sps:$4 sm:$0xff]   ;;  %v7603_v63 = vld [vmem:[%s8591_s24 + $0x5d4] ss:$8 sps:$4 sm:$0xff]  }
 0x3f7   : > { %5601 = vmatpush1.bf16.msra.mxu1 %v7517_v45  ;;  %v7606_v45 = vld [vmem:[%s8591_s24 + $0xbd4] ss:$8 sps:$4 sm:$0xff]  }
 0x3f8   : > { %5847 = vmatpush1.bf16.msra.mxu0 %v7520_v47  ;;  %5611 = vmatprep.subr.bf16.mxu1 %v7525_v31  ;;  %v7601_v47 = vld [vmem:[%s8591_s24 + $0x5d0] ss:$8 sps:$4 sm:$0xff]  }
 0x3f9   : > { %5857 = vmatprep.subr.bf16.mxu0 %v7528_v2  ;;  %v7604_v31 = vld [vmem:[%s8591_s24 + $0xbd0] ss:$8 sps:$4 sm:$0xff]   ;;  %v7609_v2 = vld [vmem:[%s8591_s24 + $0x5e4] ss:$8 sps:$4 sm:$0xff]  }
 0x3fa   : > { %5603 = vmatmul.mubr.bf16.vlgmr.msra.gmra.mrb[0].mxu1 %v3021_v44  ;;  %v7610_v44 = vld [vmem:[%s8591_s24 + $0xbe0] ss:$8 sps:$4 sm:$0xff]  }
 0x3fb   : > { %5849 = vmatmul.mubr.bf16.vlgmr.msra.gmra.mrb[0].mxu0 %v3033_v5  ;;  %5612 = vmatpush1.bf16.msra.mxu1 %v7523_v52  ;;  %v7615_v5 = vld [vmem:[%s8591_s24 + $0x5f4] ss:$8 sps:$4 sm:$0xff]  }
 0x3fc   : > { %5858 = vmatpush1.bf16.msra.mxu0 %v7526_v13  ;;  %5613 = vmatprep.subr.bf16.mxu1 %v7531_v15  ;;  %v7618_v52 = vld [vmem:[%s8591_s24 + $0xbf4] ss:$8 sps:$4 sm:$0xff]   ;;  %v7613_v13 = vld [vmem:[%s8591_s24 + $0x5f0] ss:$8 sps:$4 sm:$0xff]  }
 0x3fd   : > { %5859 = vmatprep.subr.bf16.mxu0 %v7534_v7  ;;  %5643 = vmatprep.mubr.bf16.mxu1 %v3024_v10  ;;  %v7616_v15 = vld [vmem:[%s8591_s24 + $0xbf0] ss:$8 sps:$4 sm:$0xff]   ;;  %v7623_v7 = vld [vmem:[%s8591_s24 + $0xc04] ss:$8 sps:$4 sm:$0xff]  }
 0x3fe   : > { %5889 = vmatprep.mubr.bf16.mxu0 %v3036_v11  ;;  %v7633_v10 = vld [vmem:[%s8589_s30 + $0x40] sm:$0xff]   ;;  %v3023_v11 = vpack.c.bf16 %v9623_v1, %v9623_v1 }
 0x3ff   : > { %5614 = vmatpush1.bf16.msra.mxu1 %v7529_v53  ;;  %v3035_v53 = vpack.c.bf16 %v9626_v49, %v9626_v49  ;;  %v7624_v1 = vld [vmem:[%s8591_s24 + $0xc10] ss:$8 sps:$4 sm:$0xff]   ;;  %v7629_v49 = vld [vmem:[%s8591_s24 + $0xc24] ss:$8 sps:$4 sm:$0xff]  }
 0x400   : > { %5860 = vmatpush1.bf16.msra.mxu0 %v7532_v55  ;;  %5615 = vmatprep.subr.bf16.mxu1 %v7537_v12  ;;  %v7621_v55 = vld [vmem:[%s8591_s24 + $0xc00] ss:$8 sps:$4 sm:$0xff]   ;;  %v7626_v12 = vld [vmem:[%s8591_s24 + $0xc14] ss:$8 sps:$4 sm:$0xff]  }
 0x401   : > { %5861 = vmatprep.subr.bf16.mxu0 %v7540_v54  ;;  %v7634_v54 = vld [vmem:[%s8589_s30] sm:$0xff]  }
 0x403   : > { %5616 = vmatpush1.bf16.msra.mxu1 %v7535_v14  ;;  %v7635_v14 = vld [vmem:[%s8589_s30 + $0x48] sm:$0xff]  }
 0x404   : > { %5862 = vmatpush1.bf16.msra.mxu0 %v7538_v16  ;;  %5617 = vmatprep.subr.bf16.mxu1 %v7543_v22  ;;  %v7709_v16 = vmov 0   ;;  %v7636_v22 = vld [vmem:[%s8589_s30 + $0x8] sm:$0xff]  }
 0x405   : > { %5863 = vmatprep.subr.bf16.mxu0 %v7546_v18  ;;  %v7627_v18 = vld [vmem:[%s8591_s24 + $0xc20] ss:$8 sps:$4 sm:$0xff]  }
 0x407   : > { %5618 = vmatpush1.bf16.msra.mxu1 %v7541_v19  ;;  %v7632_v19 = vld [vmem:[%s8591_s24 + $0xc34] ss:$8 sps:$4 sm:$0xff]  }
 0x408   : > { %5864 = vmatpush1.bf16.msra.mxu0 %v7544_v20  ;;  %5619 = vmatprep.subr.bf16.mxu1 %v7549_v21  ;;  %v7630_v20 = vld [vmem:[%s8591_s24 + $0xc30] ss:$8 sps:$4 sm:$0xff]   ;;  %v6212_v21 = vld.sshfl [vmem:[#allocation2 + $0x30] sm:$0x3 pattern:$0x76325410] }
 0x409   : > { %5865 = vmatprep.subr.bf16.mxu0 %v7552_v23  ;;  %v3037_v23 = vpack.c.bf16 %v6212_v21, %v6212_v21 }
 0x40b   : > { %5620 = vmatpush1.bf16.msra.mxu1 %v7547_v24  ;;  %v7637_v24 = vld [vmem:[%s8589_s30 + $0x50] sm:$0xff]  }
 0x40c   : > { %5866 = vmatpush1.bf16.msra.mxu0 %v7550_v17  ;;  %5621 = vmatprep.subr.bf16.mxu1 %v7555_v25  ;;  %v7638_v17 = vld [vmem:[%s8589_s30 + $0x10] sm:$0xff]   ;;  %v7639_v25 = vld [vmem:[%s8589_s30 + $0x58] sm:$0xff]  }
 0x40d   : > { %5867 = vmatprep.subr.bf16.mxu0 %v7558_v26  ;;  %v7640_v26 = vld [vmem:[%s8589_s30 + $0x18] sm:$0xff]  }
 0x40f   : > { %5622 = vmatpush1.bf16.msra.mxu1 %v7553_v27  ;;  %v7641_v27 = vld [vmem:[%s8589_s30 + $0x60] sm:$0xff]  }
 0x410   : > { %5868 = vmatpush1.bf16.msra.mxu0 %v7556_v28  ;;  %5623 = vmatprep.subr.bf16.mxu1 %v7561_v32  ;;  %v7642_v28 = vld [vmem:[%s8589_s30 + $0x20] sm:$0xff]   ;;  %v7643_v32 = vld [vmem:[%s8589_s30 + $0x68] sm:$0xff]  }
 0x411   : > { %5869 = vmatprep.subr.bf16.mxu0 %v7564_v9  ;;  %v7644_v9 = vld [vmem:[%s8589_s30 + $0x28] sm:$0xff]  }
 0x413   : > { %5624 = vmatpush1.bf16.msra.mxu1 %v7559_v34  ;;  %v7645_v34 = vld [vmem:[%s8589_s30 + $0x70] sm:$0xff]  }
 0x414   : > { %5870 = vmatpush1.bf16.msra.mxu0 %v7562_v30  ;;  %5625 = vmatprep.subr.bf16.mxu1 %v7567_v36  ;;  %v7646_v30 = vld [vmem:[%s8589_s30 + $0x30] sm:$0xff]   ;;  %v7647_v36 = vld [vmem:[%s8589_s30 + $0x78] sm:$0xff]  }
 0x415   : > { %5871 = vmatprep.subr.bf16.mxu0 %v7570_v39  ;;  %v7648_v39 = vld [vmem:[%s8589_s30 + $0x38] sm:$0xff]  }
 0x417   : > { %5626 = vmatpush1.bf16.msra.mxu1 %v7565_v8 }
 0x418   : > { %5872 = vmatpush1.bf16.msra.mxu0 %v7568_v29  ;;  %5627 = vmatprep.subr.bf16.mxu1 %v7573_v40 }
 0x419   : > { %5873 = vmatprep.subr.bf16.mxu0 %v7576_v42 }
 0x41b   : > { %5628 = vmatpush1.bf16.msra.mxu1 %v7571_v43  ;;  %v3434_v43 = vsub.s32 0, %v9258_v37 }
 0x41c   : > { %5874 = vmatpush1.bf16.msra.mxu0 %v7574_v48  ;;  %5629 = vmatprep.subr.bf16.mxu1 %v7579_v38  ;;  %v3430_v48 = vld [vmem:[%s1898_s22] sm:$0x3]  ;;  %v3438_v38 = vsub.s32 1, %v9258_v37  ;;  %v5943_v37 = vld [vmem:[#allocation4] sm:$0x3]  ;;  %s6121_s22 = sshll.u32 %s7710_s17, 4  ;;  %s6122_s22 = int_to_ptr.vmem [resolvable:$true] %s6121_s22 }
 0x41d   : > { %5875 = vmatprep.subr.bf16.mxu0 %v7582_v50  ;;  %v3435_v50 = vrot.slane %v3430_v48, %v3434_v43  ;;  %s7649_s30 = scalar_lea.vmem %s6122_s22, 32  ;;  %p7656_p1 = scmp.lt.s32.totalorder %s6122_s22, %s6122_s22 }
 0x41e   : > { %p7650_p12 = scmp.ne.s32.totalorder %s6122_s22, %s7649_s30  ;;  %p7657_p2 = scmp.lt.s32.totalorder %s7649_s30, %s7649_s30 }
 0x41f   : > { %5630 = vmatpush1.bf16.msra.mxu1 %v7577_v51  ;;  %v3439_v51 = vrot.slane %v3430_v48, %v3438_v38 }
 0x420   : > { %5876 = vmatpush1.bf16.msra.mxu0 %v7580_v56  ;;  %5631 = vmatprep.subr.bf16.mxu1 %v7585_v33  ;;  %p7651_p13 = pnand %p7650_p12, %p7005_p11  ;;  %p7658_p3 = por %p7657_p2, %p7656_p1 }
 0x421   : > { %5877 = vmatprep.subr.bf16.mxu0 %v7588_v35 }
 0x422   : > { %p7652_p0 = pneg %p7651_p13 }
 0x423   : > { %5632 = vmatpush1.bf16.msra.mxu1 %v7583_v41 }
 0x424   : > { %5878 = vmatpush1.bf16.msra.mxu0 %v7586_v57  ;;  %5633 = vmatprep.subr.bf16.mxu1 %v7591_v58  ;;  %p7659_p4 = pnand %p7658_p3, %p7652_p0 }
 0x425   : > { %5879 = vmatprep.subr.bf16.mxu0 %v7594_v60 }
 0x427   : > { %5634 = vmatpush1.bf16.msra.mxu1 %v7589_v61 }
 0x428   : > { %5880 = vmatpush1.bf16.msra.mxu0 %v7592_v59  ;;  %5635 = vmatprep.subr.bf16.mxu1 %v7597_v6 }
 0x429   : > { %5881 = vmatprep.subr.bf16.mxu0 %v7600_v62 }
 0x42b   : > { %5636 = vmatpush1.bf16.msra.mxu1 %v7595_v46 }
 0x42c   : > { %5882 = vmatpush1.bf16.msra.mxu0 %v7598_v0  ;;  %5637 = vmatprep.subr.bf16.mxu1 %v7603_v63 }
 0x42d   : > { %5883 = vmatprep.subr.bf16.mxu0 %v7606_v45 }
 0x42f   : > { %5638 = vmatpush1.bf16.msra.mxu1 %v7601_v47 }
 0x430   : > { %5884 = vmatpush1.bf16.msra.mxu0 %v7604_v31  ;;  %5639 = vmatprep.subr.bf16.mxu1 %v7609_v2 }
 0x431   : > { %5885 = vmatprep.subr.bf16.mxu0 %v7612_v3 }
 0x433   : > { %5640 = vmatpush1.bf16.msra.mxu1 %v7607_v4 }
 0x434   : > { %5886 = vmatpush1.bf16.msra.mxu0 %v7610_v44  ;;  %5641 = vmatprep.subr.bf16.mxu1 %v7615_v5 }
 0x435   : > { %5887 = vmatprep.subr.bf16.mxu0 %v7618_v52 }
 0x437   : > { %5642 = vmatpush1.bf16.msra.mxu1 %v7613_v13 }
 0x438   : > { %5888 = vmatpush1.bf16.msra.mxu0 %v7616_v15  ;;  %6790 = vmatprep.subr.bf16.mxu1 %v7633_v10 }
 0x439   : > { %5898 = vmatprep.subr.bf16.mxu0 %v7623_v7 }
 0x43a   : > { %5644 = vmatmul.mubr.bf16.vlgmr.msra.gmra.mrb[0].mxu1 %v3023_v11 }
 0x43b   : > { %5890 = vmatmul.mubr.bf16.vlgmr.msra.gmra.mrb[0].mxu0 %v3035_v53  ;;  %6791 = vmatpush3.bf16.msra.mxu1 %v7634_v54 }
 0x43c   : > { %5899 = vmatpush1.bf16.msra.mxu0 %v7621_v55  ;;  %5930 = vmatprep.mubr.bf16.mxu0 %v7709_v16 }
 0x43d   : > { %5900 = vmatprep.subr.bf16.mxu0 %v7626_v12  ;;  %6792 = vmatprep.subr.bf16.mxu1 %v7635_v14 }
 0x43f   : > { %6793 = vmatpush3.bf16.msra.mxu1 %v7636_v22 }
 0x440   : > { %5901 = vmatpush1.bf16.msra.mxu0 %v7624_v1  ;;  %6794 = vmatprep.subr.bf16.mxu1 %v7637_v24 }
 0x441   : > { %5902 = vmatprep.subr.bf16.mxu0 %v7629_v49 }
 0x443   : > { %6795 = vmatpush3.bf16.msra.mxu1 %v7638_v17 }
 0x444   : > { %5903 = vmatpush1.bf16.msra.mxu0 %v7627_v18  ;;  %6796 = vmatprep.subr.bf16.mxu1 %v7639_v25 }
 0x445   : > { %5904 = vmatprep.subr.bf16.mxu0 %v7632_v19 }
 0x447   : > { %6797 = vmatpush3.bf16.msra.mxu1 %v7640_v26 }
 0x448   : > { %5905 = vmatpush1.bf16.msra.mxu0 %v7630_v20  ;;  %6798 = vmatprep.subr.bf16.mxu1 %v7641_v27 }
 0x44b   : > { %6605 = vmatmul.mubr.msk.bf16.vlgmr.msra.gmra.mrb[0].mxu0 %vm5402_vm4, %v3037_v23  ;;  %6799 = vmatpush3.bf16.msra.mxu1 %v7642_v28 }
 0x44c   : > { %6800 = vmatprep.subr.bf16.mxu1 %v7643_v32 }
 0x44f   : > { %6801 = vmatpush3.bf16.msra.mxu1 %v7644_v9 }
 0x450   : > { %6802 = vmatprep.subr.bf16.mxu1 %v7645_v34 }
 0x453   : > { %6803 = vmatpush3.bf16.msra.mxu1 %v7646_v30 }
 0x454   : > { %6804 = vmatprep.subr.bf16.mxu1 %v7647_v36 }
 0x457   : > { %6805 = vmatpush3.bf16.msra.mxu1 %v7648_v39 }
 0x50d   : > { %v5645_v8 = vpop.f32.mrb[0].mxu1 }
 0x50e   : > { %v5647_v29 = vpop.f32.mrb[1].mxu1  ;;  %v6951_v56 = vadd.f32 %v5645_v8, %v3435_v50 }
 0x50f   : > { %v5649_v40 = vpop.f32.mrb[2].mxu1  ;;  %v6953_v33 = vadd.f32 %v5647_v29, %v3439_v51 }
 0x510   : > { %v5650_v42 = vpop.f32.mrb[3].mxu1 }
 0x51e   : > { %v5932_v35 = vpop.f32.mrb[0].mxu0 }
 0x51f   : > { %v6952_v41 = vadd.f32 %v6951_v56, %v5932_v35  ;;  %v5934_v57 = vpop.f32.mrb[1].mxu0 }
 0x520   : > { %v6954_v58 = vadd.f32 %v6953_v33, %v5934_v57  ;;  %v5936_v60 = vpop.f32.mrb[2].mxu0 }
 0x521   : > { %v5939_v61 = vmax.f32 %v6952_v41, 0.0  ;;  %v5937_v59 = vpop.f32.mrb[3].mxu0 }
 0x522   : > { %v5940_v6 = vmax.f32 %v6954_v58, 0.0 }
 0x523   : > { %v5941_v46 = vpack.c.bf16 %v5939_v61, %v5939_v61 }
 0x524   : > { %v5942_v62 = vpack.c.bf16 %v5940_v6, %v5940_v6 }
 0x526   : > { %6104 = vmatprep.mubr.bf16.mxu1 %v5942_v62 }
 0x527   : > { %6105 = vmatmul.mubr.bf16.vlgmr.msra.gmra.mrb[4].mxu1 %v5941_v46 }
 0x5fa   : > { %v6806_v0 = vpop.f32.mrb[4].mxu1 }
 0x5fb   : > { %v6807_v63 = vpop.f32.mrb[5].mxu1 }
 0x5fc   : > { %v6808_v45 = vadd.f32 %v6807_v63, %v6806_v0  ;;  %v6809_v47 = vpop.f32.mrb[6].mxu1 }
 0x5fd   : > { %v6810_v31 = vpop.f32.mrb[7].mxu1 }
 0x5fe   : > { %v6112_v2 = vadd.f32 %v6808_v45, %v5943_v37 }
 0x600   : > { %6113 = vst [vmem:[#allocation4] sm:$0x3] %v6112_v2 }
 0x601   : > { %7662 = shalt.err (!%p7659_p4)
}
 0x602   : > { %s7663_s23 = scalar_lea.hbm %s9777_s7, 32 }
 0x603   : > { %p7664_p5 = scmp.ne.s32.totalorder %s9777_s7, %s7663_s23  ;;  %p7669_p8 = scmp.lt.u32.totalorder %s7663_s23, %s9777_s7 }
 0x605   : > { %p7665_p6 = pnand %p7664_p5, %p7005_p11 }
 0x607   : > { %p7666_p7 = pneg %p7665_p6 }
 0x609   : > { %p7671_p9 = pnand %p7669_p8, %p7666_p7 }
 0x60b   : > { %7674 = shalt.err (!%p7671_p9)
}
 0x60c   : > { %7002 = dma.vmem_to_hbm [thread:$0]  (%p7005_p11), %s6122_s22, 32, %s9777_s7, [#allocation5]  }
 0x60d   : > { %7688 = dma.done.wait (%p7005_p11), [#allocation5], 32  }
 0x60e   : > { %7690 = vsyncadd (%p7005_p11), [#allocation5], 4294967264 }
 0x60f PF: > { %p15_p10 = scmp.ge.s32.totalorder %s7770_s28, 4   ;;  %s9778_s24 = smov %s7697_s25 }
 0x610   : > { %s9779_s25 = smov %s7779_s8  ;;  %s9780_s26 = smov %s7770_s28 }
 0x611   :  { %17 = sbr.rel (!%p15_p10) target bundleno = 2 (0x2), region = 128 }
 0x618   :  { %6134 = vsyncpa [#allocation5], 1 }
 0x619   :  { %6136 = vsyncpa [#allocation5 + $0x1], 1 }

</bundles_post_ra>
